<compile_context>
chip_gen: v6e
topology: v6e:2x2x1
jax: 0.10.0
libtpu: 0.0.40
codegen_flags: <defaults>
</compile_context>

<pallas_src>
import functools

import jax
import jax.numpy as jnp
from jax.experimental import pallas as pl
from jax.experimental.pallas import tpu as pltpu


LAYERS = ("conv1", "conv2", "conv3", "trans_conv3", "trans_conv2", "trans_conv1")
PADS = (2, 2, 2, 1, 1, 1)   # effective cross-correlation padding per layer (K-1-2=1 for transpose)
K = 4                        # kernel size of every layer


def _round_up(x, m):
    return ((x + m - 1) // m) * m


# ----------------------------------------------------------------------------- Pallas kernel
def _conv_mm_kernel(w_ref, b_ref, p_ref, o_ref):
    """One MXU matmul per tile: (Cout, K^3*Cin) @ (K^3*Cin, TILE_M), fused bias + ReLU.
    Patch tile and output tile are lane-dense (last dim = TILE_M)."""
    acc = jnp.dot(w_ref[...], p_ref[...], preferred_element_type=jnp.float32)
    o_ref[...] = jnp.maximum(acc + b_ref[...], 0.0).astype(o_ref.dtype)


def _conv_matmul_pallas(w_t, b2, patches, tile_m):
    """w_t: (Cout, K3Cin) bf16, b2: (Cout, 1) f32, patches: (K3Cin, M_pad) bf16."""
    Cout, K3Cin = w_t.shape
    M_pad = patches.shape[1]
    return pl.pallas_call(
        _conv_mm_kernel,
        out_shape=jax.ShapeDtypeStruct((Cout, M_pad), jnp.float32),
        grid_spec=pltpu.PrefetchScalarGridSpec(
            num_scalar_prefetch=0,
            grid=(M_pad // tile_m,),
            in_specs=[
                pl.BlockSpec((Cout, K3Cin), lambda i: (0, 0)),    # weights (VMEM-resident)
                pl.BlockSpec((Cout, 1), lambda i: (0, 0)),        # bias
                pl.BlockSpec((K3Cin, tile_m), lambda i: (0, i)),  # im2col tile (lane-dense)
            ],
            out_specs=pl.BlockSpec((Cout, tile_m), lambda i: (0, i)),
        ),
        compiler_params=pltpu.CompilerParams(
            dimension_semantics=("parallel",),   # independent M-tiles -> 2nd TensorCore on v7x
        ),
    )(w_t, b2, patches)


# ----------------------------------------------------------------------------- conv layer
def conv3d_relu_pallas(x_cf, w_t, b2, pad, tile_m=512):
    """Stride-1 cross-correlation + bias + ReLU with channels-first activations.

    x_cf: (Cin, N, D, H, W) f32; w_t: (Cout_pad, K^3*Cin) bf16; b2: (Cout_pad, 1) f32.
    Returns (Cout_pad, N, Do, Ho, Wo) f32.
    """
    Cin, N, D, H, W = x_cf.shape
    Do, Ho, Wo = D + 2 * pad - K + 1, H + 2 * pad - K + 1, W + 2 * pad - K + 1
    M = N * Do * Ho * Wo
    tile_m = min(tile_m, _round_up(M, 128))
    M_pad = _round_up(M, tile_m)

    # Folded im2col in the transposed (K^3*Cin, M) layout, built once per layer in bf16.
    xp = jnp.pad(x_cf.astype(jnp.bfloat16),
                 ((0, 0), (0, 0), (pad, pad), (pad, pad), (pad, pad)))
    cols = []
    for kd in range(K):
        for kh in range(K):
            for kw in range(K):
                cols.append(
                    xp[:, :, kd:kd + Do, kh:kh + Ho, kw:kw + Wo].reshape(Cin, M))
    patches = jnp.concatenate(cols, axis=0)                  # (K^3*Cin, M)
    patches = jnp.pad(patches, ((0, 0), (0, M_pad - M)))     # pad M to a tile multiple

    y = _conv_matmul_pallas(w_t, b2, patches, tile_m)        # (Cout_pad, M_pad) f32
    return y[:, :M].reshape(w_t.shape[0], N, Do, Ho, Wo)


# ----------------------------------------------------------------------------- weight prep
def prepare_params(params):
    """One-time weight preprocessing (hoisted out of the forward path).

    Conv3d weights (Cout, Cin, K, K, K) and ConvTranspose3d weights (Cin, Cout, K, K, K)
    both become a cross-correlation matrix (Cout_pad, K^3*Cin) in bf16; ConvTranspose is
    realized as a conv with spatially flipped, channel-swapped weights (stride 1).
    Cout is zero-padded up to a multiple of 8 (sublane alignment)."""
    prep = {}
    for name in LAYERS:
        w, b = params[name]
        if name.startswith("conv"):
            w_eff = jnp.transpose(w, (2, 3, 4, 1, 0))                          # (K,K,K,Cin,Cout)
        else:
            w_eff = jnp.transpose(w[:, :, ::-1, ::-1, ::-1], (2, 3, 4, 0, 1))  # flip + swap
        cout = w_eff.shape[-1]
        cout_pad = _round_up(cout, 8)
        w_t = jnp.transpose(w_eff, (4, 0, 1, 2, 3)).reshape(cout, -1)          # (Cout, K^3*Cin)
        w_t = jnp.pad(w_t, ((0, cout_pad - cout), (0, 0))).astype(jnp.bfloat16)
        b2 = jnp.pad(b, (0, cout_pad - cout)).reshape(cout_pad, 1).astype(jnp.float32)
        prep[name] = (w_t, b2)
    return prep


# ----------------------------------------------------------------------------- forward passes
def encoder_forward_pallas(x_ncdhw, prep):
    """Exact semantics of encoder.forward (ReLU after every layer)."""
    c = x_ncdhw.shape[1]
    x = jnp.transpose(x_ncdhw, (1, 0, 2, 3, 4))              # NCDHW -> (C, N, D, H, W)
    for name, pad in zip(LAYERS, PADS):
        w_t, b2 = prep[name]
        x = conv3d_relu_pallas(x, w_t, b2, pad)
    x = x[:c]                                                # drop zero-padded output channels
    return jnp.transpose(x, (1, 0, 2, 3, 4))                 # back to NCDHW


def encoder_forward_ref(x_ncdhw, params, compute_dtype=jnp.float32):
    """Pure-XLA reference (same math; matmul inputs cast to `compute_dtype`)."""
    def conv(x, w_eff, b, pad):
        y = jax.lax.conv_general_dilated(
            x.astype(compute_dtype), w_eff.astype(compute_dtype),
            window_strides=(1, 1, 1), padding=[(pad, pad)] * 3,
            dimension_numbers=("NDHWC", "DHWIO", "NDHWC"),
            preferred_element_type=jnp.float32)
        return jnp.maximum(y + b, 0.0)

    x = jnp.transpose(x_ncdhw, (0, 2, 3, 4, 1))
    for name in ("conv1", "conv2", "conv3"):
        w, b = params[name]
        x = conv(x, jnp.transpose(w, (2, 3, 4, 1, 0)), b, 2)
    for name in ("trans_conv3", "trans_conv2", "trans_conv1"):
        w, b = params[name]
        x = conv(x, jnp.transpose(w[:, :, ::-1, ::-1, ::-1], (2, 3, 4, 0, 1)), b, 1)
    return jnp.transpose(x, (0, 4, 1, 2, 3))


# ----------------------------------------------------------------------------- params
def init_params(key, c, k=4):
    """Deterministic synthetic parameters with PyTorch-layout shapes."""
    def conv_init(key, cout, cin):
        fan_in = cin * k ** 3
        bound = 1.0 / (fan_in ** 0.5)
        k1, k2 = jax.random.split(key)
        w = jax.random.uniform(k1, (cout, cin, k, k, k), jnp.float32, -bound, bound)
        b = jax.random.uniform(k2, (cout,), jnp.float32, -bound, bound)
        return w, b

    def tconv_init(key, cin, cout):
        fan = cout * k ** 3
        bound = 1.0 / (fan ** 0.5)
        k1, k2 = jax.random.split(key)
        w = jax.random.uniform(k1, (cin, cout, k, k, k), jnp.float32, -bound, bound)
        b = jax.random.uniform(k2, (cout,), jnp.float32, -bound, bound)
        return w, b

    keys = jax.random.split(key, 6)
    return {
        "conv1": conv_init(keys[0], 16, c),
        "conv2": conv_init(keys[1], 16, 16),
        "conv3": conv_init(keys[2], 16, 16),
        "trans_conv1": tconv_init(keys[3], 16, c),
        "trans_conv2": tconv_init(keys[4], 16, 16),
        "trans_conv3": tconv_init(keys[5], 16, 16),
    }


# ----------------------------------------------------------------------------- main
if __name__ == "__main__":
    N, C, D = 2, 1, 8                                       # (N, c, d, d, d) input box
    key = jax.random.PRNGKey(0)
    kx, kp = jax.random.split(key)

    x = jax.random.normal(kx, (N, C, D, D, D), jnp.float32)
    params = init_params(kp, C)
    prep = prepare_params(params)                           # one-time weight preprocessing

    fwd = jax.jit(encoder_forward_pallas)
    y = jax.block_until_ready(fwd(x, prep))
    assert y.shape == (N, C, D, D, D), y.shape

    # Tight check against a reference using the same bf16-input / f32-accumulate matmul math.
    y_ref_bf16 = jax.block_until_ready(
        jax.jit(functools.partial(encoder_forward_ref, compute_dtype=jnp.bfloat16))(x, params))
    assert jnp.allclose(y, y_ref_bf16, atol=2e-3, rtol=2e-3), \
        float(jnp.max(jnp.abs(y - y_ref_bf16)))

    # Loose sanity check against the full-f32 reference (difference = bf16 MXU quantization only).
    y_ref_f32 = jax.block_until_ready(
        jax.jit(functools.partial(encoder_forward_ref, compute_dtype=jnp.float32))(x, params))
    assert jnp.allclose(y, y_ref_f32, atol=5e-2, rtol=5e-2), \
        float(jnp.max(jnp.abs(y - y_ref_f32)))

    print("KERNEL_OK")
</pallas_src>

<mosaic_0001>
module attributes {stable_mosaic.version = 11 : i64} {
  func.func @_conv_mm_kernel(%arg0: i32, %arg1: memref<16x64xbf16, #tpu.memory_space<vmem>>, %arg2: memref<16x1xf32, #tpu.memory_space<vmem>>, %arg3: memref<64x512xbf16, #tpu.memory_space<vmem>>, %arg4: memref<16x512xf32, #tpu.memory_space<vmem>>) attributes {dimension_semantics = [#tpu.dimension_semantics<parallel>], iteration_bounds = array<i64: 3>, scalar_prefetch = 0 : i64, scratch_operands = 0 : i64, tpu.core_type = #tpu.core_type<tc>, window_params = [{pipeline_mode = #tpu.pipeline_mode<synchronous>, transform_indices = @transform_0, window_bounds = array<i64: 16, 64>}, {pipeline_mode = #tpu.pipeline_mode<synchronous>, transform_indices = @transform_1, window_bounds = array<i64: 16, 1>}, {transform_indices = @transform_2, window_bounds = array<i64: 64, 512>}, {transform_indices = @transform_3, window_bounds = array<i64: 16, 512>}]} {
    %c0 = arith.constant 0 : index
    %c0_0 = arith.constant 0 : index
    %0 = vector.load %arg1[%c0, %c0_0] : memref<16x64xbf16, #tpu.memory_space<vmem>>, vector<16x64xbf16>
    %c0_1 = arith.constant 0 : index
    %c0_2 = arith.constant 0 : index
    %1 = vector.load %arg3[%c0_1, %c0_2] : memref<64x512xbf16, #tpu.memory_space<vmem>>, vector<64x512xbf16>
    %cst = arith.constant dense<0.000000e+00> : vector<16x512xf32>
    %2 = tpu.matmul %0, %1, %cst {dimension_numbers = #tpu.dot_dimension_numbers<[1], [0], [0], [1], [0, 0, 1, 1], [], []>} : vector<16x64xbf16>, vector<64x512xbf16>, vector<16x512xf32> -> vector<16x512xf32>
    %c0_3 = arith.constant 0 : index
    %c0_4 = arith.constant 0 : index
    %3 = vector.load %arg2[%c0_3, %c0_4] : memref<16x1xf32, #tpu.memory_space<vmem>>, vector<16x1xf32>
    %4 = vector.broadcast %3 : vector<16x1xf32> to vector<16x512xf32>
    %5 = arith.addf %2, %4 : vector<16x512xf32>
    %cst_5 = arith.constant 0.000000e+00 : f32
    %6 = vector.broadcast %cst_5 : f32 to vector<16x512xf32>
    %7 = arith.maximumf %5, %6 : vector<16x512xf32>
    %c0_6 = arith.constant 0 : index
    %c0_7 = arith.constant 0 : index
    %8 = vector.load %arg4[%c0_6, %c0_7] : memref<16x512xf32, #tpu.memory_space<vmem>>, vector<16x512xf32>
    tpu.vector_store %arg4[%c0_6, %c0_7], %7 {strides = array<i32>} : memref<16x512xf32, #tpu.memory_space<vmem>>, vector<16x512xf32>,
    return
  }
  func.func @transform_0(%arg0: i32) -> (i32, i32) {
    %c0_i32 = arith.constant 0 : i32
    %c0_i32_0 = arith.constant 0 : i32
    %c0_i32_1 = arith.constant 0 : i32
    return %c0_i32, %c0_i32_0 : i32, i32
  }
  func.func @transform_1(%arg0: i32) -> (i32, i32) {
    %c0_i32 = arith.constant 0 : i32
    %c0_i32_0 = arith.constant 0 : i32
    %c0_i32_1 = arith.constant 0 : i32
    return %c0_i32, %c0_i32_0 : i32, i32
  }
  func.func @transform_2(%arg0: i32) -> (i32, i32) {
    %c0_i32 = arith.constant 0 : i32
    %c0_i32_0 = arith.constant 0 : i32
    return %c0_i32, %arg0 : i32, i32
  }
  func.func @transform_3(%arg0: i32) -> (i32, i32) {
    %c0_i32 = arith.constant 0 : i32
    %c0_i32_0 = arith.constant 0 : i32
    return %c0_i32, %arg0 : i32, i32
  }
}

module attributes {stable_mosaic.version = 11 : i64} {
  func.func @_conv_mm_kernel(%arg0: i32, %arg1: memref<16x1024xbf16, #tpu.memory_space<vmem>>, %arg2: memref<16x1xf32, #tpu.memory_space<vmem>>, %arg3: memref<1024x512xbf16, #tpu.memory_space<vmem>>, %arg4: memref<16x512xf32, #tpu.memory_space<vmem>>) attributes {dimension_semantics = [#tpu.dimension_semantics<parallel>], iteration_bounds = array<i64: 4>, scalar_prefetch = 0 : i64, scratch_operands = 0 : i64, tpu.core_type = #tpu.core_type<tc>, window_params = [{pipeline_mode = #tpu.pipeline_mode<synchronous>, transform_indices = @transform_0, window_bounds = array<i64: 16, 1024>}, {pipeline_mode = #tpu.pipeline_mode<synchronous>, transform_indices = @transform_1, window_bounds = array<i64: 16, 1>}, {transform_indices = @transform_2, window_bounds = array<i64: 1024, 512>}, {transform_indices = @transform_3, window_bounds = array<i64: 16, 512>}]} {
    %c0 = arith.constant 0 : index
    %c0_0 = arith.constant 0 : index
    %0 = vector.load %arg1[%c0, %c0_0] : memref<16x1024xbf16, #tpu.memory_space<vmem>>, vector<16x1024xbf16>
    %c0_1 = arith.constant 0 : index
    %c0_2 = arith.constant 0 : index
    %1 = vector.load %arg3[%c0_1, %c0_2] : memref<1024x512xbf16, #tpu.memory_space<vmem>>, vector<1024x512xbf16>
    %cst = arith.constant dense<0.000000e+00> : vector<16x512xf32>
    %2 = tpu.matmul %0, %1, %cst {dimension_numbers = #tpu.dot_dimension_numbers<[1], [0], [0], [1], [0, 0, 1, 1], [], []>} : vector<16x1024xbf16>, vector<1024x512xbf16>, vector<16x512xf32> -> vector<16x512xf32>
    %c0_3 = arith.constant 0 : index
    %c0_4 = arith.constant 0 : index
    %3 = vector.load %arg2[%c0_3, %c0_4] : memref<16x1xf32, #tpu.memory_space<vmem>>, vector<16x1xf32>
    %4 = vector.broadcast %3 : vector<16x1xf32> to vector<16x512xf32>
    %5 = arith.addf %2, %4 : vector<16x512xf32>
    %cst_5 = arith.constant 0.000000e+00 : f32
    %6 = vector.broadcast %cst_5 : f32 to vector<16x512xf32>
    %7 = arith.maximumf %5, %6 : vector<16x512xf32>
    %c0_6 = arith.constant 0 : index
    %c0_7 = arith.constant 0 : index
    %8 = vector.load %arg4[%c0_6, %c0_7] : memref<16x512xf32, #tpu.memory_space<vmem>>, vector<16x512xf32>
    tpu.vector_store %arg4[%c0_6, %c0_7], %7 {strides = array<i32>} : memref<16x512xf32, #tpu.memory_space<vmem>>, vector<16x512xf32>,
    return
  }
  func.func @transform_0(%arg0: i32) -> (i32, i32) {
    %c0_i32 = arith.constant 0 : i32
    %c0_i32_0 = arith.constant 0 : i32
    %c0_i32_1 = arith.constant 0 : i32
    return %c0_i32, %c0_i32_0 : i32, i32
  }
  func.func @transform_1(%arg0: i32) -> (i32, i32) {
    %c0_i32 = arith.constant 0 : i32
    %c0_i32_0 = arith.constant 0 : i32
    %c0_i32_1 = arith.constant 0 : i32
    return %c0_i32, %c0_i32_0 : i32, i32
  }
  func.func @transform_2(%arg0: i32) -> (i32, i32) {
    %c0_i32 = arith.constant 0 : i32
    %c0_i32_0 = arith.constant 0 : i32
    return %c0_i32, %arg0 : i32, i32
  }
  func.func @transform_3(%arg0: i32) -> (i32, i32) {
    %c0_i32 = arith.constant 0 : i32
    %c0_i32_0 = arith.constant 0 : i32
    return %c0_i32, %arg0 : i32, i32
  }
}

module attributes {stable_mosaic.version = 11 : i64} {
  func.func @_conv_mm_kernel(%arg0: i32, %arg1: memref<16x1024xbf16, #tpu.memory_space<vmem>>, %arg2: memref<16x1xf32, #tpu.memory_space<vmem>>, %arg3: memref<1024x512xbf16, #tpu.memory_space<vmem>>, %arg4: memref<16x512xf32, #tpu.memory_space<vmem>>) attributes {dimension_semantics = [#tpu.dimension_semantics<parallel>], iteration_bounds = array<i64: 6>, scalar_prefetch = 0 : i64, scratch_operands = 0 : i64, tpu.core_type = #tpu.core_type<tc>, window_params = [{pipeline_mode = #tpu.pipeline_mode<synchronous>, transform_indices = @transform_0, window_bounds = array<i64: 16, 1024>}, {pipeline_mode = #tpu.pipeline_mode<synchronous>, transform_indices = @transform_1, window_bounds = array<i64: 16, 1>}, {transform_indices = @transform_2, window_bounds = array<i64: 1024, 512>}, {transform_indices = @transform_3, window_bounds = array<i64: 16, 512>}]} {
    %c0 = arith.constant 0 : index
    %c0_0 = arith.constant 0 : index
    %0 = vector.load %arg1[%c0, %c0_0] : memref<16x1024xbf16, #tpu.memory_space<vmem>>, vector<16x1024xbf16>
    %c0_1 = arith.constant 0 : index
    %c0_2 = arith.constant 0 : index
    %1 = vector.load %arg3[%c0_1, %c0_2] : memref<1024x512xbf16, #tpu.memory_space<vmem>>, vector<1024x512xbf16>
    %cst = arith.constant dense<0.000000e+00> : vector<16x512xf32>
    %2 = tpu.matmul %0, %1, %cst {dimension_numbers = #tpu.dot_dimension_numbers<[1], [0], [0], [1], [0, 0, 1, 1], [], []>} : vector<16x1024xbf16>, vector<1024x512xbf16>, vector<16x512xf32> -> vector<16x512xf32>
    %c0_3 = arith.constant 0 : index
    %c0_4 = arith.constant 0 : index
    %3 = vector.load %arg2[%c0_3, %c0_4] : memref<16x1xf32, #tpu.memory_space<vmem>>, vector<16x1xf32>
    %4 = vector.broadcast %3 : vector<16x1xf32> to vector<16x512xf32>
    %5 = arith.addf %2, %4 : vector<16x512xf32>
    %cst_5 = arith.constant 0.000000e+00 : f32
    %6 = vector.broadcast %cst_5 : f32 to vector<16x512xf32>
    %7 = arith.maximumf %5, %6 : vector<16x512xf32>
    %c0_6 = arith.constant 0 : index
    %c0_7 = arith.constant 0 : index
    %8 = vector.load %arg4[%c0_6, %c0_7] : memref<16x512xf32, #tpu.memory_space<vmem>>, vector<16x512xf32>
    tpu.vector_store %arg4[%c0_6, %c0_7], %7 {strides = array<i32>} : memref<16x512xf32, #tpu.memory_space<vmem>>, vector<16x512xf32>,
    return
  }
  func.func @transform_0(%arg0: i32) -> (i32, i32) {
    %c0_i32 = arith.constant 0 : i32
    %c0_i32_0 = arith.constant 0 : i32
    %c0_i32_1 = arith.constant 0 : i32
    return %c0_i32, %c0_i32_0 : i32, i32
  }
  func.func @transform_1(%arg0: i32) -> (i32, i32) {
    %c0_i32 = arith.constant 0 : i32
    %c0_i32_0 = arith.constant 0 : i32
    %c0_i32_1 = arith.constant 0 : i32
    return %c0_i32, %c0_i32_0 : i32, i32
  }
  func.func @transform_2(%arg0: i32) -> (i32, i32) {
    %c0_i32 = arith.constant 0 : i32
    %c0_i32_0 = arith.constant 0 : i32
    return %c0_i32, %arg0 : i32, i32
  }
  func.func @transform_3(%arg0: i32) -> (i32, i32) {
    %c0_i32 = arith.constant 0 : i32
    %c0_i32_0 = arith.constant 0 : i32
    return %c0_i32, %arg0 : i32, i32
  }
}

module attributes {stable_mosaic.version = 11 : i64} {
  func.func @_conv_mm_kernel(%arg0: i32, %arg1: memref<16x1024xbf16, #tpu.memory_space<vmem>>, %arg2: memref<16x1xf32, #tpu.memory_space<vmem>>, %arg3: memref<1024x512xbf16, #tpu.memory_space<vmem>>, %arg4: memref<16x512xf32, #tpu.memory_space<vmem>>) attributes {dimension_semantics = [#tpu.dimension_semantics<parallel>], iteration_bounds = array<i64: 3>, scalar_prefetch = 0 : i64, scratch_operands = 0 : i64, tpu.core_type = #tpu.core_type<tc>, window_params = [{pipeline_mode = #tpu.pipeline_mode<synchronous>, transform_indices = @transform_0, window_bounds = array<i64: 16, 1024>}, {pipeline_mode = #tpu.pipeline_mode<synchronous>, transform_indices = @transform_1, window_bounds = array<i64: 16, 1>}, {transform_indices = @transform_2, window_bounds = array<i64: 1024, 512>}, {transform_indices = @transform_3, window_bounds = array<i64: 16, 512>}]} {
    %c0 = arith.constant 0 : index
    %c0_0 = arith.constant 0 : index
    %0 = vector.load %arg1[%c0, %c0_0] : memref<16x1024xbf16, #tpu.memory_space<vmem>>, vector<16x1024xbf16>
    %c0_1 = arith.constant 0 : index
    %c0_2 = arith.constant 0 : index
    %1 = vector.load %arg3[%c0_1, %c0_2] : memref<1024x512xbf16, #tpu.memory_space<vmem>>, vector<1024x512xbf16>
    %cst = arith.constant dense<0.000000e+00> : vector<16x512xf32>
    %2 = tpu.matmul %0, %1, %cst {dimension_numbers = #tpu.dot_dimension_numbers<[1], [0], [0], [1], [0, 0, 1, 1], [], []>} : vector<16x1024xbf16>, vector<1024x512xbf16>, vector<16x512xf32> -> vector<16x512xf32>
    %c0_3 = arith.constant 0 : index
    %c0_4 = arith.constant 0 : index
    %3 = vector.load %arg2[%c0_3, %c0_4] : memref<16x1xf32, #tpu.memory_space<vmem>>, vector<16x1xf32>
    %4 = vector.broadcast %3 : vector<16x1xf32> to vector<16x512xf32>
    %5 = arith.addf %2, %4 : vector<16x512xf32>
    %cst_5 = arith.constant 0.000000e+00 : f32
    %6 = vector.broadcast %cst_5 : f32 to vector<16x512xf32>
    %7 = arith.maximumf %5, %6 : vector<16x512xf32>
    %c0_6 = arith.constant 0 : index
    %c0_7 = arith.constant 0 : index
    %8 = vector.load %arg4[%c0_6, %c0_7] : memref<16x512xf32, #tpu.memory_space<vmem>>, vector<16x512xf32>
    tpu.vector_store %arg4[%c0_6, %c0_7], %7 {strides = array<i32>} : memref<16x512xf32, #tpu.memory_space<vmem>>, vector<16x512xf32>,
    return
  }
  func.func @transform_0(%arg0: i32) -> (i32, i32) {
    %c0_i32 = arith.constant 0 : i32
    %c0_i32_0 = arith.constant 0 : i32
    %c0_i32_1 = arith.constant 0 : i32
    return %c0_i32, %c0_i32_0 : i32, i32
  }
  func.func @transform_1(%arg0: i32) -> (i32, i32) {
    %c0_i32 = arith.constant 0 : i32
    %c0_i32_0 = arith.constant 0 : i32
    %c0_i32_1 = arith.constant 0 : i32
    return %c0_i32, %c0_i32_0 : i32, i32
  }
  func.func @transform_2(%arg0: i32) -> (i32, i32) {
    %c0_i32 = arith.constant 0 : i32
    %c0_i32_0 = arith.constant 0 : i32
    return %c0_i32, %arg0 : i32, i32
  }
  func.func @transform_3(%arg0: i32) -> (i32, i32) {
    %c0_i32 = arith.constant 0 : i32
    %c0_i32_0 = arith.constant 0 : i32
    return %c0_i32, %arg0 : i32, i32
  }
}

module attributes {stable_mosaic.version = 11 : i64} {
  func.func @_conv_mm_kernel(%arg0: i32, %arg1: memref<8x1024xbf16, #tpu.memory_space<vmem>>, %arg2: memref<8x1xf32, #tpu.memory_space<vmem>>, %arg3: memref<1024x512xbf16, #tpu.memory_space<vmem>>, %arg4: memref<8x512xf32, #tpu.memory_space<vmem>>) attributes {dimension_semantics = [#tpu.dimension_semantics<parallel>], iteration_bounds = array<i64: 2>, scalar_prefetch = 0 : i64, scratch_operands = 0 : i64, tpu.core_type = #tpu.core_type<tc>, window_params = [{pipeline_mode = #tpu.pipeline_mode<synchronous>, transform_indices = @transform_0, window_bounds = array<i64: 8, 1024>}, {pipeline_mode = #tpu.pipeline_mode<synchronous>, transform_indices = @transform_1, window_bounds = array<i64: 8, 1>}, {transform_indices = @transform_2, window_bounds = array<i64: 1024, 512>}, {transform_indices = @transform_3, window_bounds = array<i64: 8, 512>}]} {
    %c0 = arith.constant 0 : index
    %c0_0 = arith.constant 0 : index
    %0 = vector.load %arg1[%c0, %c0_0] : memref<8x1024xbf16, #tpu.memory_space<vmem>>, vector<8x1024xbf16>
    %c0_1 = arith.constant 0 : index
    %c0_2 = arith.constant 0 : index
    %1 = vector.load %arg3[%c0_1, %c0_2] : memref<1024x512xbf16, #tpu.memory_space<vmem>>, vector<1024x512xbf16>
    %cst = arith.constant dense<0.000000e+00> : vector<8x512xf32>
    %2 = tpu.matmul %0, %1, %cst {dimension_numbers = #tpu.dot_dimension_numbers<[1], [0], [0], [1], [0, 0, 1, 1], [], []>} : vector<8x1024xbf16>, vector<1024x512xbf16>, vector<8x512xf32> -> vector<8x512xf32>
    %c0_3 = arith.constant 0 : index
    %c0_4 = arith.constant 0 : index
    %3 = vector.load %arg2[%c0_3, %c0_4] : memref<8x1xf32, #tpu.memory_space<vmem>>, vector<8x1xf32>
    %4 = vector.broadcast %3 : vector<8x1xf32> to vector<8x512xf32>
    %5 = arith.addf %2, %4 : vector<8x512xf32>
    %cst_5 = arith.constant 0.000000e+00 : f32
    %6 = vector.broadcast %cst_5 : f32 to vector<8x512xf32>
    %7 = arith.maximumf %5, %6 : vector<8x512xf32>
    %c0_6 = arith.constant 0 : index
    %c0_7 = arith.constant 0 : index
    %8 = vector.load %arg4[%c0_6, %c0_7] : memref<8x512xf32, #tpu.memory_space<vmem>>, vector<8x512xf32>
    tpu.vector_store %arg4[%c0_6, %c0_7], %7 {strides = array<i32>} : memref<8x512xf32, #tpu.memory_space<vmem>>, vector<8x512xf32>,
    return
  }
  func.func @transform_0(%arg0: i32) -> (i32, i32) {
    %c0_i32 = arith.constant 0 : i32
    %c0_i32_0 = arith.constant 0 : i32
    %c0_i32_1 = arith.constant 0 : i32
    return %c0_i32, %c0_i32_0 : i32, i32
  }
  func.func @transform_1(%arg0: i32) -> (i32, i32) {
    %c0_i32 = arith.constant 0 : i32
    %c0_i32_0 = arith.constant 0 : i32
    %c0_i32_1 = arith.constant 0 : i32
    return %c0_i32, %c0_i32_0 : i32, i32
  }
  func.func @transform_2(%arg0: i32) -> (i32, i32) {
    %c0_i32 = arith.constant 0 : i32
    %c0_i32_0 = arith.constant 0 : i32
    return %c0_i32, %arg0 : i32, i32
  }
  func.func @transform_3(%arg0: i32) -> (i32, i32) {
    %c0_i32 = arith.constant 0 : i32
    %c0_i32_0 = arith.constant 0 : i32
    return %c0_i32, %arg0 : i32, i32
  }
}

</mosaic_0001>

<bundles_post_ra>
// kernel: encoder_forward_pallas.6
= control target key start
LH: loop header
LB: loop body
LE: loop exit
PB: predicated region body
PF: predicated region fallthrough
CT: control target
= control target key end

     0   :  { %s668_s12 = smov 0   ;;  %s670_s13 = smov 0   ;;  %s795_s0 = inlined_call_operand.vmem [shape: bf16[16,64], index: 0, kind: input, shape index: {}]   ;;  %s796_s1 = inlined_call_operand.vmem [shape: f32[16,1], index: 1, kind: input, shape index: {}]   ;;  %s797_s2 = inlined_call_operand.vmem [shape: bf16[64,1536], index: 2, kind: input, shape index: {}]   ;;  %s798_s3 = inlined_call_operand.vmem [shape: f32[16,1536], index: 3, kind: output, shape index: {}]  }
   0x1   :  { %s672_s14 = smov 0  }
   0x2 LB: > { %s536_s15 = sadd.s32 4294967295, %s645_s14   ;;  %s685_s16 = sadd.s32 1, %s645_s14   ;;  %s645_s14 = sphi %s672_s14, %s802_s14   ;;  %s641_s13 = sphi %s670_s13, %s801_s13   ;;  %s637_s12 = sphi %s668_s12, %s800_s12  }
   0x3   : > { %s59_s17 = ssub.s32 %s645_s14, %s685_s16  ;;  %s62_s18 = sadd.s32 1, %s641_s13 }
   0x4   : > { %p60_p0 = scmp.eq.s32.totalorder %s59_s17, 0  ;;  %p69_p1 = scmp.ne.s32.totalorder %s641_s13, %s637_s12 }
   0x5   : > { %p70_p2 = scmp.eq.s32.totalorder %s645_s14, 0  ;;  %p99_p3 = scmp.eq.s32.totalorder %s536_s15, 2 }
   0x6   : > { %s696_s19 = scalar_select %p60_p0, %s641_s13, %s62_s18  }
   0x7   : > { %p71_p4 = por %p70_p2, %p69_p1  ;;  %p698_p5 = por %p99_p3, %p69_p1 }
   0x8   : > { %p539_p6 = scmp.ge.s32.totalorder %s645_s14, 3 }
   0xa   : > { %127 = sbr.rel (%p539_p6) target bundleno = 27 (0x1b), region = 24 }
   0xf   : > { %130 = sbr.rel (!%p71_p4) target bundleno = 27 (0x1b), region = 28  ;;  %s132_s21 = sand.u32 (%p71_p4), 1, %s641_s13  }
  0x10   : > { %s570_s22 = sshll.u32 (%p71_p4), %s645_s14, 4  ;;  %s540_s23 = sshll.u32 (%p71_p4), %s132_s21, 7 }
  0x11   : > { %s708_s26 = scalar_lea.vmem (%p71_p4), %s797_s2, %s570_s22  ;;  %s134_s27 = scalar_lea.vmem (%p71_p4), [#allocation2], %s540_s23 }
  0x12   : > { %v150_v0 = vld [vmem:[%s708_s26] sm:$0xff] (%p71_p4)  ;;  %v152_v1 = vld [vmem:[%s708_s26 + $0x8] sm:$0xff] (%p71_p4)  ;;  %v154_v2 = vld [vmem:[%s708_s26 + $0x30] sm:$0xff] (%p71_p4) }
  0x13   : > { %151 = vst [vmem:[%s134_s27] sm:$0xff] (%p71_p4), %v150_v0  ;;  %153 = vst [vmem:[%s134_s27 + $0x8] sm:$0xff] (%p71_p4), %v152_v1  ;;  %v156_v3 = vld [vmem:[%s708_s26 + $0x38] sm:$0xff] (%p71_p4)  ;;  %v158_v4 = vld [vmem:[%s708_s26 + $0x60] sm:$0xff] (%p71_p4) }
  0x14   : > { %155 = vst [vmem:[%s134_s27 + $0x10] sm:$0xff] %v154_v2  ;;  %v160_v5 = vld [vmem:[%s708_s26 + $0x68] sm:$0xff]  ;;  %157 = vst [vmem:[%s134_s27 + $0x18] sm:$0xff] %v156_v3  ;;  %v162_v6 = vld [vmem:[%s708_s26 + $0x90] sm:$0xff] }
  0x15   : > { %159 = vst [vmem:[%s134_s27 + $0x20] sm:$0xff] %v158_v4  ;;  %161 = vst [vmem:[%s134_s27 + $0x28] sm:$0xff] %v160_v5  ;;  %v164_v7 = vld [vmem:[%s708_s26 + $0x98] sm:$0xff]  ;;  %v166_v8 = vld [vmem:[%s708_s26 + $0xc0] sm:$0xff] }
  0x16   : > { %163 = vst [vmem:[%s134_s27 + $0x30] sm:$0xff] %v162_v6  ;;  %165 = vst [vmem:[%s134_s27 + $0x38] sm:$0xff] %v164_v7  ;;  %v168_v9 = vld [vmem:[%s708_s26 + $0xc8] sm:$0xff]  ;;  %v170_v10 = vld [vmem:[%s708_s26 + $0xf0] sm:$0xff] }
  0x17   : > { %167 = vst [vmem:[%s134_s27 + $0x40] sm:$0xff] %v166_v8  ;;  %v172_v11 = vld [vmem:[%s708_s26 + $0xf8] sm:$0xff]  ;;  %169 = vst [vmem:[%s134_s27 + $0x48] sm:$0xff] %v168_v9  ;;  %v174_v12 = vld [vmem:[%s708_s26 + $0x120] sm:$0xff] }
  0x18   : > { %171 = vst [vmem:[%s134_s27 + $0x50] sm:$0xff] %v170_v10  ;;  %173 = vst [vmem:[%s134_s27 + $0x58] sm:$0xff] %v172_v11  ;;  %v176_v13 = vld [vmem:[%s708_s26 + $0x128] sm:$0xff]  ;;  %v178_v14 = vld [vmem:[%s708_s26 + $0x150] sm:$0xff] }
  0x19   : > { %175 = vst [vmem:[%s134_s27 + $0x60] sm:$0xff] %v174_v12  ;;  %177 = vst [vmem:[%s134_s27 + $0x68] sm:$0xff] %v176_v13  ;;  %v180_v15 = vld [vmem:[%s708_s26 + $0x158] sm:$0xff] }
  0x1a   : > { %179 = vst [vmem:[%s134_s27 + $0x70] sm:$0xff] %v178_v14  ;;  %181 = vst [vmem:[%s134_s27 + $0x78] sm:$0xff] %v180_v15 }
  0x1b PF: > { %p543_p7 = scmp.ge.s32.totalorder %s645_s14, 1  ;;  %p186_p8 = scmp.lt.s32.totalorder %s645_s14, 4 }
  0x1d   : > { %p187_p9 = pnand %p543_p7, %p186_p8 }
  0x1e   : > { %s193_s28 = sand.u32 (!%p187_p9), 1, %s637_s12  }
  0x1f   : > { %190 = sbr.rel (%p187_p9) target bundleno = 267 (0x10b), region = 51  ;;  %s544_s29 = sshll.u32 (!%p187_p9), %s193_s28, 7 }
  0x20   : > { %s734_s5 = scalar_lea.vmem (!%p187_p9), [#allocation2], %s544_s29  ;;  %s545_s10 = sshll.u32 (!%p187_p9), %s193_s28, 6 }
  0x21   : > { %s760_s11 = scalar_lea.vmem (!%p187_p9), [#allocation3], %s545_s10 }
  0x24   : > { %v647_v16 = vmov 0   ;;  %v236_v17 = vld [vmem:[%s796_s1] sm:$0xff]  ;;  %v237_v19 = vld [vmem:[%s796_s1 + $0x8] sm:$0xff]  ;;  %vm333_vm0 = vcmask 523264   ;;  %s571_s12 = sshll.u32 (%p698_p5), %s536_s15, 5 }
  0x25   : > { %369 = vmatprep.mubr.bf16.mxu0 %v647_v16  ;;  %412 = vmatprep.mubr.bf16.mxu1 %v647_v16  ;;  %v598_v18 = vld [vmem:[%s734_s5 + $0x64] ss:$16 sps:$4 sm:$0xff]   ;;  %v600_v20 = vld [vmem:[%s734_s5 + $0x6c] ss:$16 sps:$4 sm:$0xff]   ;;  %v602_v21 = vld [vmem:[%s734_s5 + $0x60] ss:$16 sps:$4 sm:$0xff]   ;;  %s448_s21 = scalar_lea.vmem (%p698_p5), %s798_s3, %s571_s12 }
  0x26   : > { %597 = vset.pattern.permute.xlu0 %v647_v16  ;;  %345 = vmatprep.subr.bf16.mxu0 %v598_v18  ;;  %v603_v22 = vld [vmem:[%s734_s5 + $0x68] ss:$16 sps:$4 sm:$0xff]   ;;  %v604_v23 = vld [vmem:[%s734_s5 + $0x44] ss:$16 sps:$4 sm:$0xff]   ;;  %v606_v24 = vld [vmem:[%s734_s5 + $0x4c] ss:$16 sps:$4 sm:$0xff]  }
  0x27   : > { %240 = vperm.xlu0 %597, %v236_v17   ;;  %388 = vmatprep.subr.bf16.mxu1 %v600_v20  ;;  %v608_v25 = vld [vmem:[%s734_s5 + $0x40] ss:$16 sps:$4 sm:$0xff]   ;;  %v609_v26 = vld [vmem:[%s734_s5 + $0x48] ss:$16 sps:$4 sm:$0xff]   ;;  %v610_v27 = vld [vmem:[%s734_s5 + $0x24] ss:$16 sps:$4 sm:$0xff]  }
  0x28   : > { %346 = vmatpush1.bf16.msra.mxu0 %v602_v21  ;;  %389 = vmatpush1.bf16.msra.mxu1 %v603_v22  ;;  %v612_v28 = vld [vmem:[%s734_s5 + $0x2c] ss:$16 sps:$4 sm:$0xff]   ;;  %v614_v29 = vld [vmem:[%s734_s5 + $0x20] ss:$16 sps:$4 sm:$0xff]   ;;  %v615_v30 = vld [vmem:[%s734_s5 + $0x28] ss:$16 sps:$4 sm:$0xff]  }
  0x29   : > { %347 = vmatprep.subr.bf16.mxu0 %v604_v23  ;;  %390 = vmatprep.subr.bf16.mxu1 %v606_v24  ;;  %v616_v31 = vld [vmem:[%s734_s5 + $0x4] ss:$16 sps:$4 sm:$0xff]   ;;  %v618_v32 = vld [vmem:[%s734_s5 + $0xc] ss:$16 sps:$4 sm:$0xff]   ;;  %v620_v33 = vld [vmem:[%s734_s5] ss:$16 sps:$4 sm:$0xff]  }
  0x2a   : > { %v621_v34 = vld [vmem:[%s734_s5 + $0x8] ss:$16 sps:$4 sm:$0xff]   ;;  %v622_v35 = vld [vmem:[%s795_s0] sm:$0xff]  }
  0x2b   : > { %245 = vperm.xlu0 %597, %v237_v19  }
  0x2c   : > { %348 = vmatpush1.bf16.msra.mxu0 %v608_v25  ;;  %391 = vmatpush1.bf16.msra.mxu1 %v609_v26 }
  0x2d   : > { %349 = vmatprep.subr.bf16.mxu0 %v610_v27  ;;  %392 = vmatprep.subr.bf16.mxu1 %v612_v28 }
  0x30   : > { %350 = vmatpush1.bf16.msra.mxu0 %v614_v29  ;;  %393 = vmatpush1.bf16.msra.mxu1 %v615_v30 }
  0x31   : > { %351 = vmatprep.subr.bf16.mxu0 %v616_v31  ;;  %394 = vmatprep.subr.bf16.mxu1 %v618_v32 }
  0x34   : > { %352 = vmatpush1.bf16.msra.mxu0 %v620_v33  ;;  %395 = vmatpush1.bf16.msra.mxu1 %v621_v34 }
  0x37   : > { %563 = vmatmul.mubr.msk.bf16.vlgmr.msra.gmra.mxu0 %vm333_vm0, %v622_v35  ;;  %564 = vmatmul.mubr.msk.bf16.vlgmr.msra.gmra.mxu1 %vm333_vm0, %v622_v35 }
  0xa2   : > { %v241_v36 = vpop.permute.xlu0 %240 }
  0xa6   : > { %v246_v45 = vpop.permute.xlu0 %245 }
  0xf7   : > { %v371_v37 = vpop.f32.mrf.mxu0  ;;  %v414_v38 = vpop.f32.mrf.mxu1 }
  0xf8   : > { %v372_v39 = vadd.f32 %v371_v37, %v241_v36  ;;  %v415_v40 = vadd.f32 %v414_v38, %v241_v36 }
  0xf9   : > { %v373_v41 = vpop.f32.mrf.mxu0  ;;  %v416_v42 = vpop.f32.mrf.mxu1 }
  0xfa   : > { %v423_v43 = vmax.f32 %v372_v39, 0.0  ;;  %v425_v44 = vmax.f32 %v415_v40, 0.0  ;;  %v374_v46 = vadd.f32 %v373_v41, %v241_v36  ;;  %v417_v47 = vadd.f32 %v416_v42, %v241_v36 }
  0xfb   : > { %v375_v48 = vpop.f32.mrf.mxu0  ;;  %v418_v49 = vpop.f32.mrf.mxu1 }
  0xfc   : > { %431 = vst [vmem:[%s760_s11] sm:$0xff] %v423_v43  ;;  %433 = vst [vmem:[%s760_s11 + $0x10] sm:$0xff] %v425_v44  ;;  %v424_v50 = vmax.f32 %v374_v46, 0.0  ;;  %v426_v51 = vmax.f32 %v417_v47, 0.0  ;;  %v376_v52 = vadd.f32 %v375_v48, %v246_v45  ;;  %v419_v53 = vadd.f32 %v418_v49, %v246_v45 }
  0xfd   : > { %v377_v54 = vpop.f32.mrf.mxu0  ;;  %v420_v55 = vpop.f32.mrf.mxu1 }
  0xfe   : > { %432 = vst [vmem:[%s760_s11 + $0x8] sm:$0xff] %v424_v50  ;;  %434 = vst [vmem:[%s760_s11 + $0x18] sm:$0xff] %v426_v51  ;;  %v427_v56 = vmax.f32 %v376_v52, 0.0  ;;  %v429_v57 = vmax.f32 %v419_v53, 0.0  ;;  %v378_v58 = vadd.f32 %v377_v54, %v246_v45  ;;  %v421_v59 = vadd.f32 %v420_v55, %v246_v45  ;;  %445 = sbr.rel (!%p698_p5) target bundleno = 267 (0x10b), region = 59 }
 0x100   : > { %435 = vst [vmem:[%s760_s11 + $0x20] sm:$0xff] %v427_v56  ;;  %437 = vst [vmem:[%s760_s11 + $0x30] sm:$0xff] %v429_v57  ;;  %v428_v60 = vmax.f32 %v378_v58, 0.0  ;;  %v430_v61 = vmax.f32 %v421_v59, 0.0 }
 0x102   : > { %436 = vst [vmem:[%s760_s11 + $0x28] sm:$0xff] %v428_v60  ;;  %438 = vst [vmem:[%s760_s11 + $0x38] sm:$0xff] %v430_v61 }
 0x103   : > { %v461_v62 = vld [vmem:[%s760_s11] sm:$0xff]  ;;  %v465_v0 = vld [vmem:[%s760_s11 + $0x10] sm:$0xff] }
 0x104   : > { %462 = vst [vmem:[%s448_s21] sm:$0xff] %v461_v62  ;;  %466 = vst [vmem:[%s448_s21 + $0x10] sm:$0xff] %v465_v0 }
 0x105   : > { %v463_v63 = vld [vmem:[%s760_s11 + $0x8] sm:$0xff]  ;;  %v467_v1 = vld [vmem:[%s760_s11 + $0x18] sm:$0xff] }
 0x106   : > { %464 = vst [vmem:[%s448_s21 + $0x8] sm:$0xff] %v463_v63  ;;  %468 = vst [vmem:[%s448_s21 + $0x18] sm:$0xff] %v467_v1 }
 0x107   : > { %v469_v2 = vld [vmem:[%s760_s11 + $0x20] sm:$0xff]  ;;  %v473_v4 = vld [vmem:[%s760_s11 + $0x30] sm:$0xff] }
 0x108   : > { %470 = vst [vmem:[%s448_s21 + $0x60] sm:$0xff] %v469_v2  ;;  %474 = vst [vmem:[%s448_s21 + $0x70] sm:$0xff] %v473_v4 }
 0x109   : > { %v471_v3 = vld [vmem:[%s760_s11 + $0x28] sm:$0xff]  ;;  %v475_v5 = vld [vmem:[%s760_s11 + $0x38] sm:$0xff] }
 0x10a   : > { %472 = vst [vmem:[%s448_s21 + $0x68] sm:$0xff] %v471_v3  ;;  %476 = vst [vmem:[%s448_s21 + $0x78] sm:$0xff] %v475_v5 }
 0x10b PF: > { %p10_p10 = scmp.ge.s32.totalorder %s685_s16, 5   ;;  %s800_s12 = smov %s641_s13 }
 0x10c   : > { %s801_s13 = smov %s696_s19  ;;  %s802_s14 = smov %s685_s16 }
 0x10d   :  { %12 = sbr.rel (!%p10_p10) target bundleno = 2 (0x2), region = 113 }

// kernel: encoder_forward_pallas.7
= control target key start
LH: loop header
LB: loop body
LE: loop exit
PB: predicated region body
PF: predicated region fallthrough
CT: control target
= control target key end

     0   :  { %s3486_s12 = smov 0   ;;  %s3488_s13 = smov 0   ;;  %s4420_s0 = inlined_call_operand.vmem [shape: bf16[16,1024], index: 0, kind: input, shape index: {}]   ;;  %s4421_s1 = inlined_call_operand.vmem [shape: f32[16,1], index: 1, kind: input, shape index: {}]   ;;  %s4422_s2 = inlined_call_operand.vmem [shape: bf16[1024,2048], index: 2, kind: input, shape index: {}]   ;;  %s4423_s3 = inlined_call_operand.vmem [shape: f32[16,2048], index: 3, kind: output, shape index: {}]  }
   0x1   :  { %s3490_s14 = smov 0  }
   0x2 LB: > { %s2750_s15 = sadd.s32 4294967295, %s3463_s14   ;;  %s3503_s16 = sadd.s32 1, %s3463_s14   ;;  %s3463_s14 = sphi %s3490_s14, %s4427_s14   ;;  %s3459_s13 = sphi %s3488_s13, %s4426_s13   ;;  %s3455_s12 = sphi %s3486_s12, %s4425_s12  }
   0x3   : > { %s59_s17 = ssub.s32 %s3463_s14, %s3503_s16  ;;  %s62_s18 = sadd.s32 1, %s3459_s13 }
   0x4   : > { %p60_p0 = scmp.eq.s32.totalorder %s59_s17, 0  ;;  %p69_p1 = scmp.ne.s32.totalorder %s3459_s13, %s3455_s12 }
   0x5   : > { %p70_p2 = scmp.eq.s32.totalorder %s3463_s14, 0  ;;  %p99_p3 = scmp.eq.s32.totalorder %s2750_s15, 3 }
   0x6   : > { %s3514_s19 = scalar_select %p60_p0, %s3459_s13, %s62_s18  }
   0x7   : > { %p71_p4 = por %p70_p2, %p69_p1  ;;  %p3516_p5 = por %p99_p3, %p69_p1 }
   0x8   : > { %p2753_p6 = scmp.ge.s32.totalorder %s3463_s14, 4 }
   0xa   : > { %127 = sbr.rel (%p2753_p6) target bundleno = 147 (0x93), region = 24 }
   0xf   : > { %130 = sbr.rel (!%p71_p4) target bundleno = 147 (0x93), region = 28  ;;  %s132_s21 = sand.u32 (%p71_p4), 1, %s3459_s13  }
  0x10   : > { %s3029_s22 = sshll.u32 (%p71_p4), %s3463_s14, 4  ;;  %s2754_s23 = sshll.u32 (%p71_p4), %s132_s21, 11 }
  0x11   : > { %s3526_s26 = scalar_lea.vmem (%p71_p4), %s4422_s2, %s3029_s22  ;;  %s3531_s27 = scalar_lea.vmem (%p71_p4), [#allocation2], %s2754_s23 }
  0x12   : > { %v150_v0 = vld [vmem:[%s3526_s26] sm:$0xff] (%p71_p4)  ;;  %v152_v1 = vld [vmem:[%s3526_s26 + $0x8] sm:$0xff] (%p71_p4) }
  0x13   : > { %v154_v2 = vld [vmem:[%s3526_s26 + $0x40] sm:$0xff] (%p71_p4)  ;;  %151 = vst [vmem:[%s3531_s27] sm:$0xff] (%p71_p4), %v150_v0  ;;  %153 = vst [vmem:[%s3531_s27 + $0x8] sm:$0xff] (%p71_p4), %v152_v1  ;;  %v156_v3 = vld [vmem:[%s3526_s26 + $0x48] sm:$0xff] (%p71_p4) }
  0x14   : > { %155 = vst [vmem:[%s3531_s27 + $0x10] sm:$0xff] %v154_v2  ;;  %v158_v4 = vld [vmem:[%s3526_s26 + $0x80] sm:$0xff]  ;;  %v160_v5 = vld [vmem:[%s3526_s26 + $0x88] sm:$0xff]  ;;  %157 = vst [vmem:[%s3531_s27 + $0x18] sm:$0xff] %v156_v3 }
  0x15   : > { %159 = vst [vmem:[%s3531_s27 + $0x20] sm:$0xff] %v158_v4  ;;  %161 = vst [vmem:[%s3531_s27 + $0x28] sm:$0xff] %v160_v5  ;;  %v162_v6 = vld [vmem:[%s3526_s26 + $0xc0] sm:$0xff]  ;;  %v164_v7 = vld [vmem:[%s3526_s26 + $0xc8] sm:$0xff] }
  0x16   : > { %v166_v8 = vld [vmem:[%s3526_s26 + $0x100] sm:$0xff]  ;;  %163 = vst [vmem:[%s3531_s27 + $0x30] sm:$0xff] %v162_v6  ;;  %165 = vst [vmem:[%s3531_s27 + $0x38] sm:$0xff] %v164_v7  ;;  %v168_v9 = vld [vmem:[%s3526_s26 + $0x108] sm:$0xff] }
  0x17   : > { %167 = vst [vmem:[%s3531_s27 + $0x40] sm:$0xff] %v166_v8  ;;  %v170_v10 = vld [vmem:[%s3526_s26 + $0x140] sm:$0xff]  ;;  %v172_v11 = vld [vmem:[%s3526_s26 + $0x148] sm:$0xff]  ;;  %169 = vst [vmem:[%s3531_s27 + $0x48] sm:$0xff] %v168_v9 }
  0x18   : > { %171 = vst [vmem:[%s3531_s27 + $0x50] sm:$0xff] %v170_v10  ;;  %173 = vst [vmem:[%s3531_s27 + $0x58] sm:$0xff] %v172_v11  ;;  %v174_v12 = vld [vmem:[%s3526_s26 + $0x180] sm:$0xff]  ;;  %v176_v13 = vld [vmem:[%s3526_s26 + $0x188] sm:$0xff] }
  0x19   : > { %v178_v14 = vld [vmem:[%s3526_s26 + $0x1c0] sm:$0xff]  ;;  %175 = vst [vmem:[%s3531_s27 + $0x60] sm:$0xff] %v174_v12  ;;  %177 = vst [vmem:[%s3531_s27 + $0x68] sm:$0xff] %v176_v13  ;;  %v180_v15 = vld [vmem:[%s3526_s26 + $0x1c8] sm:$0xff] }
  0x1a   : > { %179 = vst [vmem:[%s3531_s27 + $0x70] sm:$0xff] %v178_v14  ;;  %v182_v16 = vld [vmem:[%s3526_s26 + $0x200] sm:$0xff]  ;;  %v184_v17 = vld [vmem:[%s3526_s26 + $0x208] sm:$0xff]  ;;  %181 = vst [vmem:[%s3531_s27 + $0x78] sm:$0xff] %v180_v15 }
  0x1b   : > { %183 = vst [vmem:[%s3531_s27 + $0x80] sm:$0xff] %v182_v16  ;;  %185 = vst [vmem:[%s3531_s27 + $0x88] sm:$0xff] %v184_v17  ;;  %v186_v18 = vld [vmem:[%s3526_s26 + $0x240] sm:$0xff]  ;;  %v188_v19 = vld [vmem:[%s3526_s26 + $0x248] sm:$0xff] }
  0x1c   : > { %v190_v20 = vld [vmem:[%s3526_s26 + $0x280] sm:$0xff]  ;;  %187 = vst [vmem:[%s3531_s27 + $0x90] sm:$0xff] %v186_v18  ;;  %189 = vst [vmem:[%s3531_s27 + $0x98] sm:$0xff] %v188_v19  ;;  %v192_v21 = vld [vmem:[%s3526_s26 + $0x288] sm:$0xff] }
  0x1d   : > { %191 = vst [vmem:[%s3531_s27 + $0xa0] sm:$0xff] %v190_v20  ;;  %v194_v22 = vld [vmem:[%s3526_s26 + $0x2c0] sm:$0xff]  ;;  %v196_v23 = vld [vmem:[%s3526_s26 + $0x2c8] sm:$0xff]  ;;  %193 = vst [vmem:[%s3531_s27 + $0xa8] sm:$0xff] %v192_v21 }
  0x1e   : > { %195 = vst [vmem:[%s3531_s27 + $0xb0] sm:$0xff] %v194_v22  ;;  %197 = vst [vmem:[%s3531_s27 + $0xb8] sm:$0xff] %v196_v23  ;;  %v198_v24 = vld [vmem:[%s3526_s26 + $0x300] sm:$0xff]  ;;  %v200_v25 = vld [vmem:[%s3526_s26 + $0x308] sm:$0xff] }
  0x1f   : > { %v202_v26 = vld [vmem:[%s3526_s26 + $0x340] sm:$0xff]  ;;  %199 = vst [vmem:[%s3531_s27 + $0xc0] sm:$0xff] %v198_v24  ;;  %201 = vst [vmem:[%s3531_s27 + $0xc8] sm:$0xff] %v200_v25  ;;  %v204_v27 = vld [vmem:[%s3526_s26 + $0x348] sm:$0xff] }
  0x20   : > { %203 = vst [vmem:[%s3531_s27 + $0xd0] sm:$0xff] %v202_v26  ;;  %v206_v28 = vld [vmem:[%s3526_s26 + $0x380] sm:$0xff]  ;;  %v208_v29 = vld [vmem:[%s3526_s26 + $0x388] sm:$0xff]  ;;  %205 = vst [vmem:[%s3531_s27 + $0xd8] sm:$0xff] %v204_v27 }
  0x21   : > { %207 = vst [vmem:[%s3531_s27 + $0xe0] sm:$0xff] %v206_v28  ;;  %209 = vst [vmem:[%s3531_s27 + $0xe8] sm:$0xff] %v208_v29  ;;  %v210_v30 = vld [vmem:[%s3526_s26 + $0x3c0] sm:$0xff]  ;;  %v212_v31 = vld [vmem:[%s3526_s26 + $0x3c8] sm:$0xff] }
  0x22   : > { %v214_v32 = vld [vmem:[%s3526_s26 + $0x400] sm:$0xff]  ;;  %211 = vst [vmem:[%s3531_s27 + $0xf0] sm:$0xff] %v210_v30  ;;  %213 = vst [vmem:[%s3531_s27 + $0xf8] sm:$0xff] %v212_v31  ;;  %v216_v33 = vld [vmem:[%s3526_s26 + $0x408] sm:$0xff] }
  0x23   : > { %215 = vst [vmem:[%s3531_s27 + $0x100] sm:$0xff] %v214_v32  ;;  %v218_v34 = vld [vmem:[%s3526_s26 + $0x440] sm:$0xff]  ;;  %v220_v35 = vld [vmem:[%s3526_s26 + $0x448] sm:$0xff]  ;;  %217 = vst [vmem:[%s3531_s27 + $0x108] sm:$0xff] %v216_v33 }
  0x24   : > { %219 = vst [vmem:[%s3531_s27 + $0x110] sm:$0xff] %v218_v34  ;;  %221 = vst [vmem:[%s3531_s27 + $0x118] sm:$0xff] %v220_v35  ;;  %v222_v36 = vld [vmem:[%s3526_s26 + $0x480] sm:$0xff]  ;;  %v224_v37 = vld [vmem:[%s3526_s26 + $0x488] sm:$0xff] }
  0x25   : > { %v226_v38 = vld [vmem:[%s3526_s26 + $0x4c0] sm:$0xff]  ;;  %223 = vst [vmem:[%s3531_s27 + $0x120] sm:$0xff] %v222_v36  ;;  %225 = vst [vmem:[%s3531_s27 + $0x128] sm:$0xff] %v224_v37  ;;  %v228_v39 = vld [vmem:[%s3526_s26 + $0x4c8] sm:$0xff] }
  0x26   : > { %227 = vst [vmem:[%s3531_s27 + $0x130] sm:$0xff] %v226_v38  ;;  %v230_v40 = vld [vmem:[%s3526_s26 + $0x500] sm:$0xff]  ;;  %v232_v41 = vld [vmem:[%s3526_s26 + $0x508] sm:$0xff]  ;;  %229 = vst [vmem:[%s3531_s27 + $0x138] sm:$0xff] %v228_v39 }
  0x27   : > { %231 = vst [vmem:[%s3531_s27 + $0x140] sm:$0xff] %v230_v40  ;;  %233 = vst [vmem:[%s3531_s27 + $0x148] sm:$0xff] %v232_v41  ;;  %v234_v42 = vld [vmem:[%s3526_s26 + $0x540] sm:$0xff]  ;;  %v236_v43 = vld [vmem:[%s3526_s26 + $0x548] sm:$0xff] }
  0x28   : > { %v238_v44 = vld [vmem:[%s3526_s26 + $0x580] sm:$0xff]  ;;  %235 = vst [vmem:[%s3531_s27 + $0x150] sm:$0xff] %v234_v42  ;;  %237 = vst [vmem:[%s3531_s27 + $0x158] sm:$0xff] %v236_v43  ;;  %v240_v45 = vld [vmem:[%s3526_s26 + $0x588] sm:$0xff] }
  0x29   : > { %239 = vst [vmem:[%s3531_s27 + $0x160] sm:$0xff] %v238_v44  ;;  %v242_v46 = vld [vmem:[%s3526_s26 + $0x5c0] sm:$0xff]  ;;  %v244_v47 = vld [vmem:[%s3526_s26 + $0x5c8] sm:$0xff]  ;;  %241 = vst [vmem:[%s3531_s27 + $0x168] sm:$0xff] %v240_v45 }
  0x2a   : > { %243 = vst [vmem:[%s3531_s27 + $0x170] sm:$0xff] %v242_v46  ;;  %245 = vst [vmem:[%s3531_s27 + $0x178] sm:$0xff] %v244_v47  ;;  %v246_v48 = vld [vmem:[%s3526_s26 + $0x600] sm:$0xff]  ;;  %v248_v49 = vld [vmem:[%s3526_s26 + $0x608] sm:$0xff] }
  0x2b   : > { %v250_v50 = vld [vmem:[%s3526_s26 + $0x640] sm:$0xff]  ;;  %247 = vst [vmem:[%s3531_s27 + $0x180] sm:$0xff] %v246_v48  ;;  %249 = vst [vmem:[%s3531_s27 + $0x188] sm:$0xff] %v248_v49  ;;  %v252_v51 = vld [vmem:[%s3526_s26 + $0x648] sm:$0xff] }
  0x2c   : > { %251 = vst [vmem:[%s3531_s27 + $0x190] sm:$0xff] %v250_v50  ;;  %v254_v52 = vld [vmem:[%s3526_s26 + $0x680] sm:$0xff]  ;;  %v256_v53 = vld [vmem:[%s3526_s26 + $0x688] sm:$0xff]  ;;  %253 = vst [vmem:[%s3531_s27 + $0x198] sm:$0xff] %v252_v51 }
  0x2d   : > { %255 = vst [vmem:[%s3531_s27 + $0x1a0] sm:$0xff] %v254_v52  ;;  %257 = vst [vmem:[%s3531_s27 + $0x1a8] sm:$0xff] %v256_v53  ;;  %v258_v54 = vld [vmem:[%s3526_s26 + $0x6c0] sm:$0xff]  ;;  %v260_v55 = vld [vmem:[%s3526_s26 + $0x6c8] sm:$0xff] }
  0x2e   : > { %v262_v56 = vld [vmem:[%s3526_s26 + $0x700] sm:$0xff]  ;;  %259 = vst [vmem:[%s3531_s27 + $0x1b0] sm:$0xff] %v258_v54  ;;  %261 = vst [vmem:[%s3531_s27 + $0x1b8] sm:$0xff] %v260_v55  ;;  %v264_v57 = vld [vmem:[%s3526_s26 + $0x708] sm:$0xff] }
  0x2f   : > { %263 = vst [vmem:[%s3531_s27 + $0x1c0] sm:$0xff] %v262_v56  ;;  %v266_v58 = vld [vmem:[%s3526_s26 + $0x740] sm:$0xff]  ;;  %v268_v59 = vld [vmem:[%s3526_s26 + $0x748] sm:$0xff]  ;;  %265 = vst [vmem:[%s3531_s27 + $0x1c8] sm:$0xff] %v264_v57 }
  0x30   : > { %267 = vst [vmem:[%s3531_s27 + $0x1d0] sm:$0xff] %v266_v58  ;;  %269 = vst [vmem:[%s3531_s27 + $0x1d8] sm:$0xff] %v268_v59  ;;  %v270_v60 = vld [vmem:[%s3526_s26 + $0x780] sm:$0xff]  ;;  %v272_v61 = vld [vmem:[%s3526_s26 + $0x788] sm:$0xff] }
  0x31   : > { %v274_v62 = vld [vmem:[%s3526_s26 + $0x7c0] sm:$0xff]  ;;  %271 = vst [vmem:[%s3531_s27 + $0x1e0] sm:$0xff] %v270_v60  ;;  %273 = vst [vmem:[%s3531_s27 + $0x1e8] sm:$0xff] %v272_v61  ;;  %v276_v63 = vld [vmem:[%s3526_s26 + $0x7c8] sm:$0xff] }
  0x32   : > { %275 = vst [vmem:[%s3531_s27 + $0x1f0] sm:$0xff] %v274_v62  ;;  %v278_v0 = vld [vmem:[%s3526_s26 + $0x800] sm:$0xff]  ;;  %v280_v1 = vld [vmem:[%s3526_s26 + $0x808] sm:$0xff]  ;;  %277 = vst [vmem:[%s3531_s27 + $0x1f8] sm:$0xff] %v276_v63 }
  0x33   : > { %279 = vst [vmem:[%s3531_s27 + $0x200] sm:$0xff] %v278_v0  ;;  %281 = vst [vmem:[%s3531_s27 + $0x208] sm:$0xff] %v280_v1  ;;  %v282_v2 = vld [vmem:[%s3526_s26 + $0x840] sm:$0xff]  ;;  %v284_v3 = vld [vmem:[%s3526_s26 + $0x848] sm:$0xff] }
  0x34   : > { %v286_v4 = vld [vmem:[%s3526_s26 + $0x880] sm:$0xff]  ;;  %283 = vst [vmem:[%s3531_s27 + $0x210] sm:$0xff] %v282_v2  ;;  %285 = vst [vmem:[%s3531_s27 + $0x218] sm:$0xff] %v284_v3  ;;  %v288_v5 = vld [vmem:[%s3526_s26 + $0x888] sm:$0xff] }
  0x35   : > { %287 = vst [vmem:[%s3531_s27 + $0x220] sm:$0xff] %v286_v4  ;;  %v290_v6 = vld [vmem:[%s3526_s26 + $0x8c0] sm:$0xff]  ;;  %v292_v7 = vld [vmem:[%s3526_s26 + $0x8c8] sm:$0xff]  ;;  %289 = vst [vmem:[%s3531_s27 + $0x228] sm:$0xff] %v288_v5 }
  0x36   : > { %291 = vst [vmem:[%s3531_s27 + $0x230] sm:$0xff] %v290_v6  ;;  %293 = vst [vmem:[%s3531_s27 + $0x238] sm:$0xff] %v292_v7  ;;  %v294_v8 = vld [vmem:[%s3526_s26 + $0x900] sm:$0xff]  ;;  %v296_v9 = vld [vmem:[%s3526_s26 + $0x908] sm:$0xff] }
  0x37   : > { %v298_v10 = vld [vmem:[%s3526_s26 + $0x940] sm:$0xff]  ;;  %295 = vst [vmem:[%s3531_s27 + $0x240] sm:$0xff] %v294_v8  ;;  %297 = vst [vmem:[%s3531_s27 + $0x248] sm:$0xff] %v296_v9  ;;  %v300_v11 = vld [vmem:[%s3526_s26 + $0x948] sm:$0xff] }
  0x38   : > { %299 = vst [vmem:[%s3531_s27 + $0x250] sm:$0xff] %v298_v10  ;;  %v302_v12 = vld [vmem:[%s3526_s26 + $0x980] sm:$0xff]  ;;  %v304_v13 = vld [vmem:[%s3526_s26 + $0x988] sm:$0xff]  ;;  %301 = vst [vmem:[%s3531_s27 + $0x258] sm:$0xff] %v300_v11 }
  0x39   : > { %303 = vst [vmem:[%s3531_s27 + $0x260] sm:$0xff] %v302_v12  ;;  %305 = vst [vmem:[%s3531_s27 + $0x268] sm:$0xff] %v304_v13  ;;  %v306_v14 = vld [vmem:[%s3526_s26 + $0x9c0] sm:$0xff]  ;;  %v308_v15 = vld [vmem:[%s3526_s26 + $0x9c8] sm:$0xff] }
  0x3a   : > { %v310_v16 = vld [vmem:[%s3526_s26 + $0xa00] sm:$0xff]  ;;  %307 = vst [vmem:[%s3531_s27 + $0x270] sm:$0xff] %v306_v14  ;;  %309 = vst [vmem:[%s3531_s27 + $0x278] sm:$0xff] %v308_v15  ;;  %v312_v17 = vld [vmem:[%s3526_s26 + $0xa08] sm:$0xff] }
  0x3b   : > { %311 = vst [vmem:[%s3531_s27 + $0x280] sm:$0xff] %v310_v16  ;;  %v314_v18 = vld [vmem:[%s3526_s26 + $0xa40] sm:$0xff]  ;;  %v316_v19 = vld [vmem:[%s3526_s26 + $0xa48] sm:$0xff]  ;;  %313 = vst [vmem:[%s3531_s27 + $0x288] sm:$0xff] %v312_v17 }
  0x3c   : > { %315 = vst [vmem:[%s3531_s27 + $0x290] sm:$0xff] %v314_v18  ;;  %317 = vst [vmem:[%s3531_s27 + $0x298] sm:$0xff] %v316_v19  ;;  %v318_v20 = vld [vmem:[%s3526_s26 + $0xa80] sm:$0xff]  ;;  %v320_v21 = vld [vmem:[%s3526_s26 + $0xa88] sm:$0xff] }
  0x3d   : > { %v322_v22 = vld [vmem:[%s3526_s26 + $0xac0] sm:$0xff]  ;;  %319 = vst [vmem:[%s3531_s27 + $0x2a0] sm:$0xff] %v318_v20  ;;  %321 = vst [vmem:[%s3531_s27 + $0x2a8] sm:$0xff] %v320_v21  ;;  %v324_v23 = vld [vmem:[%s3526_s26 + $0xac8] sm:$0xff] }
  0x3e   : > { %323 = vst [vmem:[%s3531_s27 + $0x2b0] sm:$0xff] %v322_v22  ;;  %v326_v24 = vld [vmem:[%s3526_s26 + $0xb00] sm:$0xff]  ;;  %v328_v25 = vld [vmem:[%s3526_s26 + $0xb08] sm:$0xff]  ;;  %325 = vst [vmem:[%s3531_s27 + $0x2b8] sm:$0xff] %v324_v23 }
  0x3f   : > { %327 = vst [vmem:[%s3531_s27 + $0x2c0] sm:$0xff] %v326_v24  ;;  %329 = vst [vmem:[%s3531_s27 + $0x2c8] sm:$0xff] %v328_v25  ;;  %v330_v26 = vld [vmem:[%s3526_s26 + $0xb40] sm:$0xff]  ;;  %v332_v27 = vld [vmem:[%s3526_s26 + $0xb48] sm:$0xff] }
  0x40   : > { %v334_v28 = vld [vmem:[%s3526_s26 + $0xb80] sm:$0xff]  ;;  %331 = vst [vmem:[%s3531_s27 + $0x2d0] sm:$0xff] %v330_v26  ;;  %333 = vst [vmem:[%s3531_s27 + $0x2d8] sm:$0xff] %v332_v27  ;;  %v336_v29 = vld [vmem:[%s3526_s26 + $0xb88] sm:$0xff] }
  0x41   : > { %335 = vst [vmem:[%s3531_s27 + $0x2e0] sm:$0xff] %v334_v28  ;;  %v338_v30 = vld [vmem:[%s3526_s26 + $0xbc0] sm:$0xff]  ;;  %v340_v31 = vld [vmem:[%s3526_s26 + $0xbc8] sm:$0xff]  ;;  %337 = vst [vmem:[%s3531_s27 + $0x2e8] sm:$0xff] %v336_v29 }
  0x42   : > { %339 = vst [vmem:[%s3531_s27 + $0x2f0] sm:$0xff] %v338_v30  ;;  %341 = vst [vmem:[%s3531_s27 + $0x2f8] sm:$0xff] %v340_v31  ;;  %v342_v32 = vld [vmem:[%s3526_s26 + $0xc00] sm:$0xff]  ;;  %v344_v33 = vld [vmem:[%s3526_s26 + $0xc08] sm:$0xff] }
  0x43   : > { %v346_v34 = vld [vmem:[%s3526_s26 + $0xc40] sm:$0xff]  ;;  %343 = vst [vmem:[%s3531_s27 + $0x300] sm:$0xff] %v342_v32  ;;  %345 = vst [vmem:[%s3531_s27 + $0x308] sm:$0xff] %v344_v33  ;;  %v348_v35 = vld [vmem:[%s3526_s26 + $0xc48] sm:$0xff] }
  0x44   : > { %347 = vst [vmem:[%s3531_s27 + $0x310] sm:$0xff] %v346_v34  ;;  %v350_v36 = vld [vmem:[%s3526_s26 + $0xc80] sm:$0xff]  ;;  %v352_v37 = vld [vmem:[%s3526_s26 + $0xc88] sm:$0xff]  ;;  %349 = vst [vmem:[%s3531_s27 + $0x318] sm:$0xff] %v348_v35 }
  0x45   : > { %351 = vst [vmem:[%s3531_s27 + $0x320] sm:$0xff] %v350_v36  ;;  %353 = vst [vmem:[%s3531_s27 + $0x328] sm:$0xff] %v352_v37  ;;  %v354_v38 = vld [vmem:[%s3526_s26 + $0xcc0] sm:$0xff]  ;;  %v356_v39 = vld [vmem:[%s3526_s26 + $0xcc8] sm:$0xff] }
  0x46   : > { %v358_v40 = vld [vmem:[%s3526_s26 + $0xd00] sm:$0xff]  ;;  %355 = vst [vmem:[%s3531_s27 + $0x330] sm:$0xff] %v354_v38  ;;  %357 = vst [vmem:[%s3531_s27 + $0x338] sm:$0xff] %v356_v39  ;;  %v360_v41 = vld [vmem:[%s3526_s26 + $0xd08] sm:$0xff] }
  0x47   : > { %359 = vst [vmem:[%s3531_s27 + $0x340] sm:$0xff] %v358_v40  ;;  %v362_v42 = vld [vmem:[%s3526_s26 + $0xd40] sm:$0xff]  ;;  %v364_v43 = vld [vmem:[%s3526_s26 + $0xd48] sm:$0xff]  ;;  %361 = vst [vmem:[%s3531_s27 + $0x348] sm:$0xff] %v360_v41 }
  0x48   : > { %363 = vst [vmem:[%s3531_s27 + $0x350] sm:$0xff] %v362_v42  ;;  %365 = vst [vmem:[%s3531_s27 + $0x358] sm:$0xff] %v364_v43  ;;  %v366_v44 = vld [vmem:[%s3526_s26 + $0xd80] sm:$0xff]  ;;  %v368_v45 = vld [vmem:[%s3526_s26 + $0xd88] sm:$0xff] }
  0x49   : > { %v370_v46 = vld [vmem:[%s3526_s26 + $0xdc0] sm:$0xff]  ;;  %367 = vst [vmem:[%s3531_s27 + $0x360] sm:$0xff] %v366_v44  ;;  %369 = vst [vmem:[%s3531_s27 + $0x368] sm:$0xff] %v368_v45  ;;  %v372_v47 = vld [vmem:[%s3526_s26 + $0xdc8] sm:$0xff] }
  0x4a   : > { %371 = vst [vmem:[%s3531_s27 + $0x370] sm:$0xff] %v370_v46  ;;  %v374_v48 = vld [vmem:[%s3526_s26 + $0xe00] sm:$0xff]  ;;  %v376_v49 = vld [vmem:[%s3526_s26 + $0xe08] sm:$0xff]  ;;  %373 = vst [vmem:[%s3531_s27 + $0x378] sm:$0xff] %v372_v47 }
  0x4b   : > { %375 = vst [vmem:[%s3531_s27 + $0x380] sm:$0xff] %v374_v48  ;;  %377 = vst [vmem:[%s3531_s27 + $0x388] sm:$0xff] %v376_v49  ;;  %v378_v50 = vld [vmem:[%s3526_s26 + $0xe40] sm:$0xff]  ;;  %v380_v51 = vld [vmem:[%s3526_s26 + $0xe48] sm:$0xff] }
  0x4c   : > { %v382_v52 = vld [vmem:[%s3526_s26 + $0xe80] sm:$0xff]  ;;  %379 = vst [vmem:[%s3531_s27 + $0x390] sm:$0xff] %v378_v50  ;;  %381 = vst [vmem:[%s3531_s27 + $0x398] sm:$0xff] %v380_v51  ;;  %v384_v53 = vld [vmem:[%s3526_s26 + $0xe88] sm:$0xff] }
  0x4d   : > { %383 = vst [vmem:[%s3531_s27 + $0x3a0] sm:$0xff] %v382_v52  ;;  %v386_v54 = vld [vmem:[%s3526_s26 + $0xec0] sm:$0xff]  ;;  %v388_v55 = vld [vmem:[%s3526_s26 + $0xec8] sm:$0xff]  ;;  %385 = vst [vmem:[%s3531_s27 + $0x3a8] sm:$0xff] %v384_v53 }
  0x4e   : > { %387 = vst [vmem:[%s3531_s27 + $0x3b0] sm:$0xff] %v386_v54  ;;  %389 = vst [vmem:[%s3531_s27 + $0x3b8] sm:$0xff] %v388_v55  ;;  %v390_v56 = vld [vmem:[%s3526_s26 + $0xf00] sm:$0xff]  ;;  %v392_v57 = vld [vmem:[%s3526_s26 + $0xf08] sm:$0xff] }
  0x4f   : > { %v394_v58 = vld [vmem:[%s3526_s26 + $0xf40] sm:$0xff]  ;;  %391 = vst [vmem:[%s3531_s27 + $0x3c0] sm:$0xff] %v390_v56  ;;  %393 = vst [vmem:[%s3531_s27 + $0x3c8] sm:$0xff] %v392_v57  ;;  %v396_v59 = vld [vmem:[%s3526_s26 + $0xf48] sm:$0xff] }
  0x50   : > { %395 = vst [vmem:[%s3531_s27 + $0x3d0] sm:$0xff] %v394_v58  ;;  %v398_v60 = vld [vmem:[%s3526_s26 + $0xf80] sm:$0xff]  ;;  %v400_v61 = vld [vmem:[%s3526_s26 + $0xf88] sm:$0xff]  ;;  %397 = vst [vmem:[%s3531_s27 + $0x3d8] sm:$0xff] %v396_v59 }
  0x51   : > { %399 = vst [vmem:[%s3531_s27 + $0x3e0] sm:$0xff] %v398_v60  ;;  %401 = vst [vmem:[%s3531_s27 + $0x3e8] sm:$0xff] %v400_v61  ;;  %v402_v62 = vld [vmem:[%s3526_s26 + $0xfc0] sm:$0xff]  ;;  %v404_v63 = vld [vmem:[%s3526_s26 + $0xfc8] sm:$0xff] }
  0x52   : > { %v406_v0 = vld [vmem:[%s3526_s26 + $0x1000] sm:$0xff]  ;;  %403 = vst [vmem:[%s3531_s27 + $0x3f0] sm:$0xff] %v402_v62  ;;  %405 = vst [vmem:[%s3531_s27 + $0x3f8] sm:$0xff] %v404_v63  ;;  %v408_v1 = vld [vmem:[%s3526_s26 + $0x1008] sm:$0xff] }
  0x53   : > { %407 = vst [vmem:[%s3531_s27 + $0x400] sm:$0xff] %v406_v0  ;;  %v410_v2 = vld [vmem:[%s3526_s26 + $0x1040] sm:$0xff]  ;;  %v412_v3 = vld [vmem:[%s3526_s26 + $0x1048] sm:$0xff]  ;;  %409 = vst [vmem:[%s3531_s27 + $0x408] sm:$0xff] %v408_v1 }
  0x54   : > { %411 = vst [vmem:[%s3531_s27 + $0x410] sm:$0xff] %v410_v2  ;;  %413 = vst [vmem:[%s3531_s27 + $0x418] sm:$0xff] %v412_v3  ;;  %v414_v4 = vld [vmem:[%s3526_s26 + $0x1080] sm:$0xff]  ;;  %v416_v5 = vld [vmem:[%s3526_s26 + $0x1088] sm:$0xff] }
  0x55   : > { %v418_v6 = vld [vmem:[%s3526_s26 + $0x10c0] sm:$0xff]  ;;  %415 = vst [vmem:[%s3531_s27 + $0x420] sm:$0xff] %v414_v4  ;;  %417 = vst [vmem:[%s3531_s27 + $0x428] sm:$0xff] %v416_v5  ;;  %v420_v7 = vld [vmem:[%s3526_s26 + $0x10c8] sm:$0xff] }
  0x56   : > { %419 = vst [vmem:[%s3531_s27 + $0x430] sm:$0xff] %v418_v6  ;;  %v422_v8 = vld [vmem:[%s3526_s26 + $0x1100] sm:$0xff]  ;;  %v424_v9 = vld [vmem:[%s3526_s26 + $0x1108] sm:$0xff]  ;;  %421 = vst [vmem:[%s3531_s27 + $0x438] sm:$0xff] %v420_v7 }
  0x57   : > { %423 = vst [vmem:[%s3531_s27 + $0x440] sm:$0xff] %v422_v8  ;;  %425 = vst [vmem:[%s3531_s27 + $0x448] sm:$0xff] %v424_v9  ;;  %v426_v10 = vld [vmem:[%s3526_s26 + $0x1140] sm:$0xff]  ;;  %v428_v11 = vld [vmem:[%s3526_s26 + $0x1148] sm:$0xff] }
  0x58   : > { %v430_v12 = vld [vmem:[%s3526_s26 + $0x1180] sm:$0xff]  ;;  %427 = vst [vmem:[%s3531_s27 + $0x450] sm:$0xff] %v426_v10  ;;  %429 = vst [vmem:[%s3531_s27 + $0x458] sm:$0xff] %v428_v11  ;;  %v432_v13 = vld [vmem:[%s3526_s26 + $0x1188] sm:$0xff] }
  0x59   : > { %431 = vst [vmem:[%s3531_s27 + $0x460] sm:$0xff] %v430_v12  ;;  %v434_v14 = vld [vmem:[%s3526_s26 + $0x11c0] sm:$0xff]  ;;  %v436_v15 = vld [vmem:[%s3526_s26 + $0x11c8] sm:$0xff]  ;;  %433 = vst [vmem:[%s3531_s27 + $0x468] sm:$0xff] %v432_v13 }
  0x5a   : > { %435 = vst [vmem:[%s3531_s27 + $0x470] sm:$0xff] %v434_v14  ;;  %437 = vst [vmem:[%s3531_s27 + $0x478] sm:$0xff] %v436_v15  ;;  %v438_v16 = vld [vmem:[%s3526_s26 + $0x1200] sm:$0xff]  ;;  %v440_v17 = vld [vmem:[%s3526_s26 + $0x1208] sm:$0xff] }
  0x5b   : > { %v442_v18 = vld [vmem:[%s3526_s26 + $0x1240] sm:$0xff]  ;;  %439 = vst [vmem:[%s3531_s27 + $0x480] sm:$0xff] %v438_v16  ;;  %441 = vst [vmem:[%s3531_s27 + $0x488] sm:$0xff] %v440_v17  ;;  %v444_v19 = vld [vmem:[%s3526_s26 + $0x1248] sm:$0xff] }
  0x5c   : > { %443 = vst [vmem:[%s3531_s27 + $0x490] sm:$0xff] %v442_v18  ;;  %v446_v20 = vld [vmem:[%s3526_s26 + $0x1280] sm:$0xff]  ;;  %v448_v21 = vld [vmem:[%s3526_s26 + $0x1288] sm:$0xff]  ;;  %445 = vst [vmem:[%s3531_s27 + $0x498] sm:$0xff] %v444_v19 }
  0x5d   : > { %447 = vst [vmem:[%s3531_s27 + $0x4a0] sm:$0xff] %v446_v20  ;;  %449 = vst [vmem:[%s3531_s27 + $0x4a8] sm:$0xff] %v448_v21  ;;  %v450_v22 = vld [vmem:[%s3526_s26 + $0x12c0] sm:$0xff]  ;;  %v452_v23 = vld [vmem:[%s3526_s26 + $0x12c8] sm:$0xff] }
  0x5e   : > { %v454_v24 = vld [vmem:[%s3526_s26 + $0x1300] sm:$0xff]  ;;  %451 = vst [vmem:[%s3531_s27 + $0x4b0] sm:$0xff] %v450_v22  ;;  %453 = vst [vmem:[%s3531_s27 + $0x4b8] sm:$0xff] %v452_v23  ;;  %v456_v25 = vld [vmem:[%s3526_s26 + $0x1308] sm:$0xff] }
  0x5f   : > { %455 = vst [vmem:[%s3531_s27 + $0x4c0] sm:$0xff] %v454_v24  ;;  %v458_v26 = vld [vmem:[%s3526_s26 + $0x1340] sm:$0xff]  ;;  %v460_v27 = vld [vmem:[%s3526_s26 + $0x1348] sm:$0xff]  ;;  %457 = vst [vmem:[%s3531_s27 + $0x4c8] sm:$0xff] %v456_v25 }
  0x60   : > { %459 = vst [vmem:[%s3531_s27 + $0x4d0] sm:$0xff] %v458_v26  ;;  %461 = vst [vmem:[%s3531_s27 + $0x4d8] sm:$0xff] %v460_v27  ;;  %v462_v28 = vld [vmem:[%s3526_s26 + $0x1380] sm:$0xff]  ;;  %v464_v29 = vld [vmem:[%s3526_s26 + $0x1388] sm:$0xff] }
  0x61   : > { %v466_v30 = vld [vmem:[%s3526_s26 + $0x13c0] sm:$0xff]  ;;  %463 = vst [vmem:[%s3531_s27 + $0x4e0] sm:$0xff] %v462_v28  ;;  %465 = vst [vmem:[%s3531_s27 + $0x4e8] sm:$0xff] %v464_v29  ;;  %v468_v31 = vld [vmem:[%s3526_s26 + $0x13c8] sm:$0xff] }
  0x62   : > { %467 = vst [vmem:[%s3531_s27 + $0x4f0] sm:$0xff] %v466_v30  ;;  %v470_v32 = vld [vmem:[%s3526_s26 + $0x1400] sm:$0xff]  ;;  %v472_v33 = vld [vmem:[%s3526_s26 + $0x1408] sm:$0xff]  ;;  %469 = vst [vmem:[%s3531_s27 + $0x4f8] sm:$0xff] %v468_v31 }
  0x63   : > { %471 = vst [vmem:[%s3531_s27 + $0x500] sm:$0xff] %v470_v32  ;;  %473 = vst [vmem:[%s3531_s27 + $0x508] sm:$0xff] %v472_v33  ;;  %v474_v34 = vld [vmem:[%s3526_s26 + $0x1440] sm:$0xff]  ;;  %v476_v35 = vld [vmem:[%s3526_s26 + $0x1448] sm:$0xff] }
  0x64   : > { %v478_v36 = vld [vmem:[%s3526_s26 + $0x1480] sm:$0xff]  ;;  %475 = vst [vmem:[%s3531_s27 + $0x510] sm:$0xff] %v474_v34  ;;  %477 = vst [vmem:[%s3531_s27 + $0x518] sm:$0xff] %v476_v35  ;;  %v480_v37 = vld [vmem:[%s3526_s26 + $0x1488] sm:$0xff] }
  0x65   : > { %479 = vst [vmem:[%s3531_s27 + $0x520] sm:$0xff] %v478_v36  ;;  %v482_v38 = vld [vmem:[%s3526_s26 + $0x14c0] sm:$0xff]  ;;  %v484_v39 = vld [vmem:[%s3526_s26 + $0x14c8] sm:$0xff]  ;;  %481 = vst [vmem:[%s3531_s27 + $0x528] sm:$0xff] %v480_v37 }
  0x66   : > { %483 = vst [vmem:[%s3531_s27 + $0x530] sm:$0xff] %v482_v38  ;;  %485 = vst [vmem:[%s3531_s27 + $0x538] sm:$0xff] %v484_v39  ;;  %v486_v40 = vld [vmem:[%s3526_s26 + $0x1500] sm:$0xff]  ;;  %v488_v41 = vld [vmem:[%s3526_s26 + $0x1508] sm:$0xff] }
  0x67   : > { %v490_v42 = vld [vmem:[%s3526_s26 + $0x1540] sm:$0xff]  ;;  %487 = vst [vmem:[%s3531_s27 + $0x540] sm:$0xff] %v486_v40  ;;  %489 = vst [vmem:[%s3531_s27 + $0x548] sm:$0xff] %v488_v41  ;;  %v492_v43 = vld [vmem:[%s3526_s26 + $0x1548] sm:$0xff] }
  0x68   : > { %491 = vst [vmem:[%s3531_s27 + $0x550] sm:$0xff] %v490_v42  ;;  %v494_v44 = vld [vmem:[%s3526_s26 + $0x1580] sm:$0xff]  ;;  %v496_v45 = vld [vmem:[%s3526_s26 + $0x1588] sm:$0xff]  ;;  %493 = vst [vmem:[%s3531_s27 + $0x558] sm:$0xff] %v492_v43 }
  0x69   : > { %495 = vst [vmem:[%s3531_s27 + $0x560] sm:$0xff] %v494_v44  ;;  %497 = vst [vmem:[%s3531_s27 + $0x568] sm:$0xff] %v496_v45  ;;  %v498_v46 = vld [vmem:[%s3526_s26 + $0x15c0] sm:$0xff]  ;;  %v500_v47 = vld [vmem:[%s3526_s26 + $0x15c8] sm:$0xff] }
  0x6a   : > { %v502_v48 = vld [vmem:[%s3526_s26 + $0x1600] sm:$0xff]  ;;  %499 = vst [vmem:[%s3531_s27 + $0x570] sm:$0xff] %v498_v46  ;;  %501 = vst [vmem:[%s3531_s27 + $0x578] sm:$0xff] %v500_v47  ;;  %v504_v49 = vld [vmem:[%s3526_s26 + $0x1608] sm:$0xff] }
  0x6b   : > { %503 = vst [vmem:[%s3531_s27 + $0x580] sm:$0xff] %v502_v48  ;;  %v506_v50 = vld [vmem:[%s3526_s26 + $0x1640] sm:$0xff]  ;;  %v508_v51 = vld [vmem:[%s3526_s26 + $0x1648] sm:$0xff]  ;;  %505 = vst [vmem:[%s3531_s27 + $0x588] sm:$0xff] %v504_v49 }
  0x6c   : > { %507 = vst [vmem:[%s3531_s27 + $0x590] sm:$0xff] %v506_v50  ;;  %509 = vst [vmem:[%s3531_s27 + $0x598] sm:$0xff] %v508_v51  ;;  %v510_v52 = vld [vmem:[%s3526_s26 + $0x1680] sm:$0xff]  ;;  %v512_v53 = vld [vmem:[%s3526_s26 + $0x1688] sm:$0xff] }
  0x6d   : > { %v514_v54 = vld [vmem:[%s3526_s26 + $0x16c0] sm:$0xff]  ;;  %511 = vst [vmem:[%s3531_s27 + $0x5a0] sm:$0xff] %v510_v52  ;;  %513 = vst [vmem:[%s3531_s27 + $0x5a8] sm:$0xff] %v512_v53  ;;  %v516_v55 = vld [vmem:[%s3526_s26 + $0x16c8] sm:$0xff] }
  0x6e   : > { %515 = vst [vmem:[%s3531_s27 + $0x5b0] sm:$0xff] %v514_v54  ;;  %v518_v56 = vld [vmem:[%s3526_s26 + $0x1700] sm:$0xff]  ;;  %v520_v57 = vld [vmem:[%s3526_s26 + $0x1708] sm:$0xff]  ;;  %517 = vst [vmem:[%s3531_s27 + $0x5b8] sm:$0xff] %v516_v55 }
  0x6f   : > { %519 = vst [vmem:[%s3531_s27 + $0x5c0] sm:$0xff] %v518_v56  ;;  %521 = vst [vmem:[%s3531_s27 + $0x5c8] sm:$0xff] %v520_v57  ;;  %v522_v58 = vld [vmem:[%s3526_s26 + $0x1740] sm:$0xff]  ;;  %v524_v59 = vld [vmem:[%s3526_s26 + $0x1748] sm:$0xff] }
  0x70   : > { %v526_v60 = vld [vmem:[%s3526_s26 + $0x1780] sm:$0xff]  ;;  %523 = vst [vmem:[%s3531_s27 + $0x5d0] sm:$0xff] %v522_v58  ;;  %525 = vst [vmem:[%s3531_s27 + $0x5d8] sm:$0xff] %v524_v59  ;;  %v528_v61 = vld [vmem:[%s3526_s26 + $0x1788] sm:$0xff] }
  0x71   : > { %527 = vst [vmem:[%s3531_s27 + $0x5e0] sm:$0xff] %v526_v60  ;;  %v530_v62 = vld [vmem:[%s3526_s26 + $0x17c0] sm:$0xff]  ;;  %v532_v63 = vld [vmem:[%s3526_s26 + $0x17c8] sm:$0xff]  ;;  %529 = vst [vmem:[%s3531_s27 + $0x5e8] sm:$0xff] %v528_v61 }
  0x72   : > { %531 = vst [vmem:[%s3531_s27 + $0x5f0] sm:$0xff] %v530_v62  ;;  %533 = vst [vmem:[%s3531_s27 + $0x5f8] sm:$0xff] %v532_v63  ;;  %v534_v0 = vld [vmem:[%s3526_s26 + $0x1800] sm:$0xff]  ;;  %v536_v1 = vld [vmem:[%s3526_s26 + $0x1808] sm:$0xff] }
  0x73   : > { %v538_v2 = vld [vmem:[%s3526_s26 + $0x1840] sm:$0xff]  ;;  %535 = vst [vmem:[%s3531_s27 + $0x600] sm:$0xff] %v534_v0  ;;  %537 = vst [vmem:[%s3531_s27 + $0x608] sm:$0xff] %v536_v1  ;;  %v540_v3 = vld [vmem:[%s3526_s26 + $0x1848] sm:$0xff] }
  0x74   : > { %539 = vst [vmem:[%s3531_s27 + $0x610] sm:$0xff] %v538_v2  ;;  %v542_v4 = vld [vmem:[%s3526_s26 + $0x1880] sm:$0xff]  ;;  %v544_v5 = vld [vmem:[%s3526_s26 + $0x1888] sm:$0xff]  ;;  %541 = vst [vmem:[%s3531_s27 + $0x618] sm:$0xff] %v540_v3 }
  0x75   : > { %543 = vst [vmem:[%s3531_s27 + $0x620] sm:$0xff] %v542_v4  ;;  %545 = vst [vmem:[%s3531_s27 + $0x628] sm:$0xff] %v544_v5  ;;  %v546_v6 = vld [vmem:[%s3526_s26 + $0x18c0] sm:$0xff]  ;;  %v548_v7 = vld [vmem:[%s3526_s26 + $0x18c8] sm:$0xff] }
  0x76   : > { %v550_v8 = vld [vmem:[%s3526_s26 + $0x1900] sm:$0xff]  ;;  %547 = vst [vmem:[%s3531_s27 + $0x630] sm:$0xff] %v546_v6  ;;  %549 = vst [vmem:[%s3531_s27 + $0x638] sm:$0xff] %v548_v7  ;;  %v552_v9 = vld [vmem:[%s3526_s26 + $0x1908] sm:$0xff] }
  0x77   : > { %551 = vst [vmem:[%s3531_s27 + $0x640] sm:$0xff] %v550_v8  ;;  %v554_v10 = vld [vmem:[%s3526_s26 + $0x1940] sm:$0xff]  ;;  %v556_v11 = vld [vmem:[%s3526_s26 + $0x1948] sm:$0xff]  ;;  %553 = vst [vmem:[%s3531_s27 + $0x648] sm:$0xff] %v552_v9 }
  0x78   : > { %555 = vst [vmem:[%s3531_s27 + $0x650] sm:$0xff] %v554_v10  ;;  %557 = vst [vmem:[%s3531_s27 + $0x658] sm:$0xff] %v556_v11  ;;  %v558_v12 = vld [vmem:[%s3526_s26 + $0x1980] sm:$0xff]  ;;  %v560_v13 = vld [vmem:[%s3526_s26 + $0x1988] sm:$0xff] }
  0x79   : > { %v562_v14 = vld [vmem:[%s3526_s26 + $0x19c0] sm:$0xff]  ;;  %559 = vst [vmem:[%s3531_s27 + $0x660] sm:$0xff] %v558_v12  ;;  %561 = vst [vmem:[%s3531_s27 + $0x668] sm:$0xff] %v560_v13  ;;  %v564_v15 = vld [vmem:[%s3526_s26 + $0x19c8] sm:$0xff] }
  0x7a   : > { %563 = vst [vmem:[%s3531_s27 + $0x670] sm:$0xff] %v562_v14  ;;  %v566_v16 = vld [vmem:[%s3526_s26 + $0x1a00] sm:$0xff]  ;;  %v568_v17 = vld [vmem:[%s3526_s26 + $0x1a08] sm:$0xff]  ;;  %565 = vst [vmem:[%s3531_s27 + $0x678] sm:$0xff] %v564_v15 }
  0x7b   : > { %567 = vst [vmem:[%s3531_s27 + $0x680] sm:$0xff] %v566_v16  ;;  %569 = vst [vmem:[%s3531_s27 + $0x688] sm:$0xff] %v568_v17  ;;  %v570_v18 = vld [vmem:[%s3526_s26 + $0x1a40] sm:$0xff]  ;;  %v572_v19 = vld [vmem:[%s3526_s26 + $0x1a48] sm:$0xff] }
  0x7c   : > { %v574_v20 = vld [vmem:[%s3526_s26 + $0x1a80] sm:$0xff]  ;;  %571 = vst [vmem:[%s3531_s27 + $0x690] sm:$0xff] %v570_v18  ;;  %573 = vst [vmem:[%s3531_s27 + $0x698] sm:$0xff] %v572_v19  ;;  %v576_v21 = vld [vmem:[%s3526_s26 + $0x1a88] sm:$0xff] }
  0x7d   : > { %575 = vst [vmem:[%s3531_s27 + $0x6a0] sm:$0xff] %v574_v20  ;;  %v578_v22 = vld [vmem:[%s3526_s26 + $0x1ac0] sm:$0xff]  ;;  %v580_v23 = vld [vmem:[%s3526_s26 + $0x1ac8] sm:$0xff]  ;;  %577 = vst [vmem:[%s3531_s27 + $0x6a8] sm:$0xff] %v576_v21 }
  0x7e   : > { %579 = vst [vmem:[%s3531_s27 + $0x6b0] sm:$0xff] %v578_v22  ;;  %581 = vst [vmem:[%s3531_s27 + $0x6b8] sm:$0xff] %v580_v23  ;;  %v582_v24 = vld [vmem:[%s3526_s26 + $0x1b00] sm:$0xff]  ;;  %v584_v25 = vld [vmem:[%s3526_s26 + $0x1b08] sm:$0xff] }
  0x7f   : > { %v586_v26 = vld [vmem:[%s3526_s26 + $0x1b40] sm:$0xff]  ;;  %583 = vst [vmem:[%s3531_s27 + $0x6c0] sm:$0xff] %v582_v24  ;;  %585 = vst [vmem:[%s3531_s27 + $0x6c8] sm:$0xff] %v584_v25  ;;  %v588_v27 = vld [vmem:[%s3526_s26 + $0x1b48] sm:$0xff] }
  0x80   : > { %587 = vst [vmem:[%s3531_s27 + $0x6d0] sm:$0xff] %v586_v26  ;;  %v590_v28 = vld [vmem:[%s3526_s26 + $0x1b80] sm:$0xff]  ;;  %v592_v29 = vld [vmem:[%s3526_s26 + $0x1b88] sm:$0xff]  ;;  %589 = vst [vmem:[%s3531_s27 + $0x6d8] sm:$0xff] %v588_v27 }
  0x81   : > { %591 = vst [vmem:[%s3531_s27 + $0x6e0] sm:$0xff] %v590_v28  ;;  %593 = vst [vmem:[%s3531_s27 + $0x6e8] sm:$0xff] %v592_v29  ;;  %v594_v30 = vld [vmem:[%s3526_s26 + $0x1bc0] sm:$0xff]  ;;  %v596_v31 = vld [vmem:[%s3526_s26 + $0x1bc8] sm:$0xff] }
  0x82   : > { %v598_v32 = vld [vmem:[%s3526_s26 + $0x1c00] sm:$0xff]  ;;  %595 = vst [vmem:[%s3531_s27 + $0x6f0] sm:$0xff] %v594_v30  ;;  %597 = vst [vmem:[%s3531_s27 + $0x6f8] sm:$0xff] %v596_v31  ;;  %v600_v33 = vld [vmem:[%s3526_s26 + $0x1c08] sm:$0xff] }
  0x83   : > { %599 = vst [vmem:[%s3531_s27 + $0x700] sm:$0xff] %v598_v32  ;;  %v602_v34 = vld [vmem:[%s3526_s26 + $0x1c40] sm:$0xff]  ;;  %v604_v35 = vld [vmem:[%s3526_s26 + $0x1c48] sm:$0xff]  ;;  %601 = vst [vmem:[%s3531_s27 + $0x708] sm:$0xff] %v600_v33 }
  0x84   : > { %603 = vst [vmem:[%s3531_s27 + $0x710] sm:$0xff] %v602_v34  ;;  %605 = vst [vmem:[%s3531_s27 + $0x718] sm:$0xff] %v604_v35  ;;  %v606_v36 = vld [vmem:[%s3526_s26 + $0x1c80] sm:$0xff]  ;;  %v608_v37 = vld [vmem:[%s3526_s26 + $0x1c88] sm:$0xff] }
  0x85   : > { %v610_v38 = vld [vmem:[%s3526_s26 + $0x1cc0] sm:$0xff]  ;;  %607 = vst [vmem:[%s3531_s27 + $0x720] sm:$0xff] %v606_v36  ;;  %609 = vst [vmem:[%s3531_s27 + $0x728] sm:$0xff] %v608_v37  ;;  %v612_v39 = vld [vmem:[%s3526_s26 + $0x1cc8] sm:$0xff] }
  0x86   : > { %611 = vst [vmem:[%s3531_s27 + $0x730] sm:$0xff] %v610_v38  ;;  %v614_v40 = vld [vmem:[%s3526_s26 + $0x1d00] sm:$0xff]  ;;  %v616_v41 = vld [vmem:[%s3526_s26 + $0x1d08] sm:$0xff]  ;;  %613 = vst [vmem:[%s3531_s27 + $0x738] sm:$0xff] %v612_v39 }
  0x87   : > { %615 = vst [vmem:[%s3531_s27 + $0x740] sm:$0xff] %v614_v40  ;;  %617 = vst [vmem:[%s3531_s27 + $0x748] sm:$0xff] %v616_v41  ;;  %v618_v42 = vld [vmem:[%s3526_s26 + $0x1d40] sm:$0xff]  ;;  %v620_v43 = vld [vmem:[%s3526_s26 + $0x1d48] sm:$0xff] }
  0x88   : > { %v622_v44 = vld [vmem:[%s3526_s26 + $0x1d80] sm:$0xff]  ;;  %619 = vst [vmem:[%s3531_s27 + $0x750] sm:$0xff] %v618_v42  ;;  %621 = vst [vmem:[%s3531_s27 + $0x758] sm:$0xff] %v620_v43  ;;  %v624_v45 = vld [vmem:[%s3526_s26 + $0x1d88] sm:$0xff] }
  0x89   : > { %623 = vst [vmem:[%s3531_s27 + $0x760] sm:$0xff] %v622_v44  ;;  %v626_v46 = vld [vmem:[%s3526_s26 + $0x1dc0] sm:$0xff]  ;;  %v628_v47 = vld [vmem:[%s3526_s26 + $0x1dc8] sm:$0xff]  ;;  %625 = vst [vmem:[%s3531_s27 + $0x768] sm:$0xff] %v624_v45 }
  0x8a   : > { %627 = vst [vmem:[%s3531_s27 + $0x770] sm:$0xff] %v626_v46  ;;  %629 = vst [vmem:[%s3531_s27 + $0x778] sm:$0xff] %v628_v47  ;;  %v630_v48 = vld [vmem:[%s3526_s26 + $0x1e00] sm:$0xff]  ;;  %v632_v49 = vld [vmem:[%s3526_s26 + $0x1e08] sm:$0xff] }
  0x8b   : > { %v634_v50 = vld [vmem:[%s3526_s26 + $0x1e40] sm:$0xff]  ;;  %631 = vst [vmem:[%s3531_s27 + $0x780] sm:$0xff] %v630_v48  ;;  %633 = vst [vmem:[%s3531_s27 + $0x788] sm:$0xff] %v632_v49  ;;  %v636_v51 = vld [vmem:[%s3526_s26 + $0x1e48] sm:$0xff] }
  0x8c   : > { %635 = vst [vmem:[%s3531_s27 + $0x790] sm:$0xff] %v634_v50  ;;  %v638_v52 = vld [vmem:[%s3526_s26 + $0x1e80] sm:$0xff]  ;;  %v640_v53 = vld [vmem:[%s3526_s26 + $0x1e88] sm:$0xff]  ;;  %637 = vst [vmem:[%s3531_s27 + $0x798] sm:$0xff] %v636_v51 }
  0x8d   : > { %639 = vst [vmem:[%s3531_s27 + $0x7a0] sm:$0xff] %v638_v52  ;;  %641 = vst [vmem:[%s3531_s27 + $0x7a8] sm:$0xff] %v640_v53  ;;  %v642_v54 = vld [vmem:[%s3526_s26 + $0x1ec0] sm:$0xff]  ;;  %v644_v55 = vld [vmem:[%s3526_s26 + $0x1ec8] sm:$0xff] }
  0x8e   : > { %v646_v56 = vld [vmem:[%s3526_s26 + $0x1f00] sm:$0xff]  ;;  %643 = vst [vmem:[%s3531_s27 + $0x7b0] sm:$0xff] %v642_v54  ;;  %645 = vst [vmem:[%s3531_s27 + $0x7b8] sm:$0xff] %v644_v55  ;;  %v648_v57 = vld [vmem:[%s3526_s26 + $0x1f08] sm:$0xff] }
  0x8f   : > { %647 = vst [vmem:[%s3531_s27 + $0x7c0] sm:$0xff] %v646_v56  ;;  %v650_v58 = vld [vmem:[%s3526_s26 + $0x1f40] sm:$0xff]  ;;  %v652_v59 = vld [vmem:[%s3526_s26 + $0x1f48] sm:$0xff]  ;;  %649 = vst [vmem:[%s3531_s27 + $0x7c8] sm:$0xff] %v648_v57 }
  0x90   : > { %651 = vst [vmem:[%s3531_s27 + $0x7d0] sm:$0xff] %v650_v58  ;;  %653 = vst [vmem:[%s3531_s27 + $0x7d8] sm:$0xff] %v652_v59  ;;  %v654_v60 = vld [vmem:[%s3526_s26 + $0x1f80] sm:$0xff]  ;;  %v656_v61 = vld [vmem:[%s3526_s26 + $0x1f88] sm:$0xff] }
  0x91   : > { %v658_v62 = vld [vmem:[%s3526_s26 + $0x1fc0] sm:$0xff]  ;;  %655 = vst [vmem:[%s3531_s27 + $0x7e0] sm:$0xff] %v654_v60  ;;  %657 = vst [vmem:[%s3531_s27 + $0x7e8] sm:$0xff] %v656_v61  ;;  %v660_v63 = vld [vmem:[%s3526_s26 + $0x1fc8] sm:$0xff] }
  0x92   : > { %659 = vst [vmem:[%s3531_s27 + $0x7f0] sm:$0xff] %v658_v62  ;;  %661 = vst [vmem:[%s3531_s27 + $0x7f8] sm:$0xff] %v660_v63 }
  0x93 PF: > { %p2757_p7 = scmp.ge.s32.totalorder %s3463_s14, 1  ;;  %p666_p8 = scmp.lt.s32.totalorder %s3463_s14, 5 }
  0x95   : > { %p667_p9 = pnand %p2757_p7, %p666_p8 }
  0x96   : > { %s673_s28 = sand.u32 (!%p667_p9), 1, %s3455_s12  }
  0x97   : > { %670 = sbr.rel (%p667_p9) target bundleno = 630 (0x276), region = 51  ;;  %s2758_s8 = sshll.u32 (!%p667_p9), %s673_s28, 11 }
  0x98   : > { %s4067_s11 = scalar_lea.vmem (!%p667_p9), [#allocation2], %s2758_s8  ;;  %s2759_s5 = sshll.u32 (!%p667_p9), %s673_s28, 6 }
  0x99   : > { %s4385_s6 = scalar_lea.vmem (!%p667_p9), [#allocation3], %s2759_s5 }
  0x9c   : > { %v697_v0 = vld [vmem:[%s4420_s0] sm:$0xff]  ;;  %v698_v2 = vld [vmem:[%s4420_s0 + $0x8] sm:$0xff]  ;;  %v3465_v16 = vmov 0   ;;  %s3030_s12 = sshll.u32 (%p3516_p5), %s2750_s15, 5 }
  0x9d   : > { %v701_v1 = vld [vmem:[%s4420_s0 + $0x20] sm:$0xff]  ;;  %v702_v5 = vld [vmem:[%s4420_s0 + $0x28] sm:$0xff]  ;;  %3056 = vset.pattern.permute.xlu0 %v3465_v16  ;;  %v4145_v16 = vld [vmem:[%s4420_s0 + $0x30] sm:$0xff]  ;;  %s2662_s8 = scalar_lea.vmem (%p3516_p5), %s4423_s3, %s3030_s12 }
  0x9e   : > { %v4056_v3 = vcombine.low %v697_v0, %v701_v1  ;;  %v4058_v4 = vcombine.high %v697_v0, %v701_v1  ;;  %v4063_v6 = vcombine.low %v698_v2, %v702_v5  ;;  %v4065_v7 = vcombine.high %v698_v2, %v702_v5  ;;  %v3057_v8 = vld [vmem:[%s4067_s11 + $0xe4] ss:$16 sps:$4 sm:$0xff]   ;;  %v3061_v10 = vld [vmem:[%s4067_s11 + $0xe0] ss:$16 sps:$4 sm:$0xff]  }
  0x9f   : > { %v3059_v9 = vld [vmem:[%s4067_s11 + $0x2e4] ss:$16 sps:$4 sm:$0xff]   ;;  %2293 = vmatprep.subr.bf16.mxu0 %v3057_v8  ;;  %v3062_v11 = vld [vmem:[%s4067_s11 + $0x2e0] ss:$16 sps:$4 sm:$0xff]  }
  0xa0   : > { %2325 = vmatprep.mubr.bf16.mxu0 %v4058_v4  ;;  %2368 = vmatprep.mubr.bf16.mxu1 %v4065_v7  ;;  %v3063_v12 = vld [vmem:[%s4067_s11 + $0xc4] ss:$16 sps:$4 sm:$0xff]   ;;  %v3067_v14 = vld [vmem:[%s4067_s11 + $0xc0] ss:$16 sps:$4 sm:$0xff]  }
  0xa1   : > { %2336 = vmatprep.subr.bf16.mxu1 %v3059_v9  ;;  %2294 = vmatpush1.bf16.msra.mxu0 %v3061_v10  ;;  %v3065_v13 = vld [vmem:[%s4067_s11 + $0x2c4] ss:$16 sps:$4 sm:$0xff]   ;;  %v3068_v15 = vld [vmem:[%s4067_s11 + $0x2c0] ss:$16 sps:$4 sm:$0xff]  }
  0xa2   : > { %2337 = vmatpush1.bf16.msra.mxu1 %v3062_v11  ;;  %2295 = vmatprep.subr.bf16.mxu0 %v3063_v12  ;;  %v3069_v17 = vld [vmem:[%s4067_s11 + $0xa4] ss:$16 sps:$4 sm:$0xff]   ;;  %v3073_v19 = vld [vmem:[%s4067_s11 + $0xa0] ss:$16 sps:$4 sm:$0xff]  }
  0xa3   : > { %2338 = vmatprep.subr.bf16.mxu1 %v3065_v13  ;;  %v3071_v18 = vld [vmem:[%s4067_s11 + $0x2a4] ss:$16 sps:$4 sm:$0xff]   ;;  %v3074_v20 = vld [vmem:[%s4067_s11 + $0x2a0] ss:$16 sps:$4 sm:$0xff]  }
  0xa4   : > { %v3075_v21 = vld [vmem:[%s4067_s11 + $0x84] ss:$16 sps:$4 sm:$0xff]   ;;  %v3079_v23 = vld [vmem:[%s4067_s11 + $0x80] ss:$16 sps:$4 sm:$0xff]  }
  0xa5   : > { %2296 = vmatpush1.bf16.msra.mxu0 %v3067_v14  ;;  %v3077_v22 = vld [vmem:[%s4067_s11 + $0x284] ss:$16 sps:$4 sm:$0xff]   ;;  %v3080_v24 = vld [vmem:[%s4067_s11 + $0x280] ss:$16 sps:$4 sm:$0xff]  }
  0xa6   : > { %2339 = vmatpush1.bf16.msra.mxu1 %v3068_v15  ;;  %2297 = vmatprep.subr.bf16.mxu0 %v3069_v17  ;;  %v3081_v25 = vld [vmem:[%s4067_s11 + $0x64] ss:$16 sps:$4 sm:$0xff]   ;;  %v3085_v27 = vld [vmem:[%s4067_s11 + $0x60] ss:$16 sps:$4 sm:$0xff]  }
  0xa7   : > { %2340 = vmatprep.subr.bf16.mxu1 %v3071_v18  ;;  %v3083_v26 = vld [vmem:[%s4067_s11 + $0x264] ss:$16 sps:$4 sm:$0xff]   ;;  %v3086_v28 = vld [vmem:[%s4067_s11 + $0x260] ss:$16 sps:$4 sm:$0xff]  }
  0xa8   : > { %v3087_v29 = vld [vmem:[%s4067_s11 + $0x44] ss:$16 sps:$4 sm:$0xff]   ;;  %v3091_v31 = vld [vmem:[%s4067_s11 + $0x40] ss:$16 sps:$4 sm:$0xff]  }
  0xa9   : > { %2298 = vmatpush1.bf16.msra.mxu0 %v3073_v19  ;;  %v3089_v30 = vld [vmem:[%s4067_s11 + $0x244] ss:$16 sps:$4 sm:$0xff]   ;;  %v3092_v32 = vld [vmem:[%s4067_s11 + $0x240] ss:$16 sps:$4 sm:$0xff]  }
  0xaa   : > { %2341 = vmatpush1.bf16.msra.mxu1 %v3074_v20  ;;  %2299 = vmatprep.subr.bf16.mxu0 %v3075_v21  ;;  %v3093_v33 = vld [vmem:[%s4067_s11 + $0x24] ss:$16 sps:$4 sm:$0xff]   ;;  %v3097_v35 = vld [vmem:[%s4067_s11 + $0x20] ss:$16 sps:$4 sm:$0xff]  }
  0xab   : > { %2342 = vmatprep.subr.bf16.mxu1 %v3077_v22  ;;  %v3095_v34 = vld [vmem:[%s4067_s11 + $0x224] ss:$16 sps:$4 sm:$0xff]   ;;  %v3098_v36 = vld [vmem:[%s4067_s11 + $0x220] ss:$16 sps:$4 sm:$0xff]  }
  0xac   : > { %v3099_v37 = vld [vmem:[%s4067_s11 + $0x4] ss:$16 sps:$4 sm:$0xff]   ;;  %v3103_v39 = vld [vmem:[%s4067_s11] ss:$16 sps:$4 sm:$0xff]  }
  0xad   : > { %2300 = vmatpush1.bf16.msra.mxu0 %v3079_v23  ;;  %v3101_v38 = vld [vmem:[%s4067_s11 + $0x204] ss:$16 sps:$4 sm:$0xff]   ;;  %v3104_v40 = vld [vmem:[%s4067_s11 + $0x200] ss:$16 sps:$4 sm:$0xff]  }
  0xae   : > { %2343 = vmatpush1.bf16.msra.mxu1 %v3080_v24  ;;  %2301 = vmatprep.subr.bf16.mxu0 %v3081_v25  ;;  %v3105_v41 = vld [vmem:[%s4067_s11 + $0x1e4] ss:$16 sps:$4 sm:$0xff]   ;;  %v3109_v43 = vld [vmem:[%s4067_s11 + $0x1e0] ss:$16 sps:$4 sm:$0xff]  }
  0xaf   : > { %2344 = vmatprep.subr.bf16.mxu1 %v3083_v26  ;;  %v3107_v42 = vld [vmem:[%s4067_s11 + $0x3e4] ss:$16 sps:$4 sm:$0xff]   ;;  %v3110_v44 = vld [vmem:[%s4067_s11 + $0x3e0] ss:$16 sps:$4 sm:$0xff]  }
  0xb0   : > { %v3111_v45 = vld [vmem:[%s4067_s11 + $0x1c4] ss:$16 sps:$4 sm:$0xff]   ;;  %v3115_v47 = vld [vmem:[%s4067_s11 + $0x1c0] ss:$16 sps:$4 sm:$0xff]  }
  0xb1   : > { %2302 = vmatpush1.bf16.msra.mxu0 %v3085_v27  ;;  %v3113_v46 = vld [vmem:[%s4067_s11 + $0x3c4] ss:$16 sps:$4 sm:$0xff]   ;;  %v3116_v48 = vld [vmem:[%s4067_s11 + $0x3c0] ss:$16 sps:$4 sm:$0xff]  }
  0xb2   : > { %2345 = vmatpush1.bf16.msra.mxu1 %v3086_v28  ;;  %2303 = vmatprep.subr.bf16.mxu0 %v3087_v29  ;;  %v3117_v49 = vld [vmem:[%s4067_s11 + $0x1a4] ss:$16 sps:$4 sm:$0xff]   ;;  %v3121_v51 = vld [vmem:[%s4067_s11 + $0x1a0] ss:$16 sps:$4 sm:$0xff]  }
  0xb3   : > { %2346 = vmatprep.subr.bf16.mxu1 %v3089_v30  ;;  %v3119_v50 = vld [vmem:[%s4067_s11 + $0x3a4] ss:$16 sps:$4 sm:$0xff]   ;;  %v3122_v52 = vld [vmem:[%s4067_s11 + $0x3a0] ss:$16 sps:$4 sm:$0xff]  }
  0xb4   : > { %v3123_v53 = vld [vmem:[%s4067_s11 + $0x184] ss:$16 sps:$4 sm:$0xff]   ;;  %v3127_v55 = vld [vmem:[%s4067_s11 + $0x180] ss:$16 sps:$4 sm:$0xff]  }
  0xb5   : > { %2304 = vmatpush1.bf16.msra.mxu0 %v3091_v31  ;;  %v3125_v54 = vld [vmem:[%s4067_s11 + $0x384] ss:$16 sps:$4 sm:$0xff]   ;;  %v3128_v56 = vld [vmem:[%s4067_s11 + $0x380] ss:$16 sps:$4 sm:$0xff]  }
  0xb6   : > { %2347 = vmatpush1.bf16.msra.mxu1 %v3092_v32  ;;  %2305 = vmatprep.subr.bf16.mxu0 %v3093_v33  ;;  %v3129_v57 = vld [vmem:[%s4067_s11 + $0x164] ss:$16 sps:$4 sm:$0xff]   ;;  %v3133_v59 = vld [vmem:[%s4067_s11 + $0x160] ss:$16 sps:$4 sm:$0xff]  }
  0xb7   : > { %2348 = vmatprep.subr.bf16.mxu1 %v3095_v34  ;;  %v3131_v58 = vld [vmem:[%s4067_s11 + $0x364] ss:$16 sps:$4 sm:$0xff]   ;;  %v3134_v60 = vld [vmem:[%s4067_s11 + $0x360] ss:$16 sps:$4 sm:$0xff]  }
  0xb8   : > { %v3135_v61 = vld [vmem:[%s4067_s11 + $0x144] ss:$16 sps:$4 sm:$0xff]   ;;  %v3139_v63 = vld [vmem:[%s4067_s11 + $0x140] ss:$16 sps:$4 sm:$0xff]  }
  0xb9   : > { %2306 = vmatpush1.bf16.msra.mxu0 %v3097_v35  ;;  %v3137_v62 = vld [vmem:[%s4067_s11 + $0x344] ss:$16 sps:$4 sm:$0xff]   ;;  %v3140_v0 = vld [vmem:[%s4067_s11 + $0x340] ss:$16 sps:$4 sm:$0xff]  }
  0xba   : > { %2349 = vmatpush1.bf16.msra.mxu1 %v3098_v36  ;;  %2307 = vmatprep.subr.bf16.mxu0 %v3099_v37  ;;  %v3141_v1 = vld [vmem:[%s4067_s11 + $0x124] ss:$16 sps:$4 sm:$0xff]   ;;  %v3145_v5 = vld [vmem:[%s4067_s11 + $0x120] ss:$16 sps:$4 sm:$0xff]  }
  0xbb   : > { %2350 = vmatprep.subr.bf16.mxu1 %v3101_v38  ;;  %v3143_v2 = vld [vmem:[%s4067_s11 + $0x324] ss:$16 sps:$4 sm:$0xff]   ;;  %v3146_v8 = vld [vmem:[%s4067_s11 + $0x320] ss:$16 sps:$4 sm:$0xff]   ;;  %v4177_v38 = vld [vmem:[%s4420_s0 + $0x18] sm:$0xff] }
  0xbc   : > { %v3147_v9 = vld [vmem:[%s4067_s11 + $0x104] ss:$16 sps:$4 sm:$0xff]   ;;  %v3151_v11 = vld [vmem:[%s4067_s11 + $0x100] ss:$16 sps:$4 sm:$0xff]  }
  0xbd   : > { %2308 = vmatpush1.bf16.msra.mxu0 %v3103_v39  ;;  %v3149_v10 = vld [vmem:[%s4067_s11 + $0x304] ss:$16 sps:$4 sm:$0xff]   ;;  %v3152_v12 = vld [vmem:[%s4067_s11 + $0x300] ss:$16 sps:$4 sm:$0xff]  }
  0xbe   : > { %2351 = vmatpush1.bf16.msra.mxu1 %v3104_v40  ;;  %2309 = vmatprep.subr.bf16.mxu0 %v3105_v41  ;;  %v3155_v13 = vld [vmem:[%s4067_s11 + $0x4e4] ss:$16 sps:$4 sm:$0xff]   ;;  %v3153_v17 = vld [vmem:[%s4067_s11 + $0x4e0] ss:$16 sps:$4 sm:$0xff]  }
  0xbf   : > { %2352 = vmatprep.subr.bf16.mxu1 %v3107_v42  ;;  %v3158_v14 = vld [vmem:[%s4067_s11 + $0x6e4] ss:$16 sps:$4 sm:$0xff]   ;;  %v3156_v18 = vld [vmem:[%s4067_s11 + $0x6e0] ss:$16 sps:$4 sm:$0xff]  }
  0xc0   : > { %v4140_v15 = vld [vmem:[%s4420_s0 + $0x10] sm:$0xff] }
  0xc1   : > { %2310 = vmatpush2.bf16.msra.mxu0 %v3109_v43  ;;  %v3161_v19 = vld [vmem:[%s4067_s11 + $0x4c4] ss:$16 sps:$4 sm:$0xff]   ;;  %v4153_v21 = vcombine.high %v4140_v15, %v4145_v16  ;;  %v3159_v22 = vld [vmem:[%s4067_s11 + $0x4c0] ss:$16 sps:$4 sm:$0xff]   ;;  %v4186_v43 = vld [vmem:[%s4420_s0 + $0x38] sm:$0xff] }
  0xc2   : > { %2353 = vmatpush2.bf16.msra.mxu1 %v3110_v44  ;;  %2311 = vmatprep.subr.bf16.mxu0 %v3111_v45  ;;  %v3164_v20 = vld [vmem:[%s4067_s11 + $0x6c4] ss:$16 sps:$4 sm:$0xff]   ;;  %v3162_v23 = vld [vmem:[%s4067_s11 + $0x6c0] ss:$16 sps:$4 sm:$0xff]   ;;  %v4190_v44 = vcombine.high %v4177_v38, %v4186_v43 }
  0xc3   : > { %2354 = vmatprep.subr.bf16.mxu1 %v3113_v46  ;;  %v3167_v24 = vld [vmem:[%s4067_s11 + $0x4a4] ss:$16 sps:$4 sm:$0xff]   ;;  %v3165_v26 = vld [vmem:[%s4067_s11 + $0x4a0] ss:$16 sps:$4 sm:$0xff]  }
  0xc4   : > { %v3170_v25 = vld [vmem:[%s4067_s11 + $0x6a4] ss:$16 sps:$4 sm:$0xff]   ;;  %v3168_v27 = vld [vmem:[%s4067_s11 + $0x6a0] ss:$16 sps:$4 sm:$0xff]  }
  0xc5   : > { %2312 = vmatpush2.bf16.msra.mxu0 %v3115_v47  ;;  %v3173_v28 = vld [vmem:[%s4067_s11 + $0x484] ss:$16 sps:$4 sm:$0xff]   ;;  %v3171_v30 = vld [vmem:[%s4067_s11 + $0x480] ss:$16 sps:$4 sm:$0xff]  }
  0xc6   : > { %2355 = vmatpush2.bf16.msra.mxu1 %v3116_v48  ;;  %2313 = vmatprep.subr.bf16.mxu0 %v3117_v49  ;;  %v3176_v29 = vld [vmem:[%s4067_s11 + $0x684] ss:$16 sps:$4 sm:$0xff]   ;;  %v3174_v31 = vld [vmem:[%s4067_s11 + $0x680] ss:$16 sps:$4 sm:$0xff]  }
  0xc7   : > { %2356 = vmatprep.subr.bf16.mxu1 %v3119_v50  ;;  %v3179_v32 = vld [vmem:[%s4067_s11 + $0x464] ss:$16 sps:$4 sm:$0xff]   ;;  %v3177_v34 = vld [vmem:[%s4067_s11 + $0x460] ss:$16 sps:$4 sm:$0xff]  }
  0xc8   : > { %v3182_v33 = vld [vmem:[%s4067_s11 + $0x664] ss:$16 sps:$4 sm:$0xff]   ;;  %v3180_v35 = vld [vmem:[%s4067_s11 + $0x660] ss:$16 sps:$4 sm:$0xff]  }
  0xc9   : > { %2314 = vmatpush2.bf16.msra.mxu0 %v3121_v51  ;;  %v3185_v36 = vld [vmem:[%s4067_s11 + $0x444] ss:$16 sps:$4 sm:$0xff]   ;;  %v3183_v39 = vld [vmem:[%s4067_s11 + $0x440] ss:$16 sps:$4 sm:$0xff]  }
  0xca   : > { %2357 = vmatpush2.bf16.msra.mxu1 %v3122_v52  ;;  %2315 = vmatprep.subr.bf16.mxu0 %v3123_v53  ;;  %v3188_v37 = vld [vmem:[%s4067_s11 + $0x644] ss:$16 sps:$4 sm:$0xff]   ;;  %v3186_v40 = vld [vmem:[%s4067_s11 + $0x640] ss:$16 sps:$4 sm:$0xff]  }
  0xcb   : > { %2358 = vmatprep.subr.bf16.mxu1 %v3125_v54  ;;  %v3191_v41 = vld [vmem:[%s4067_s11 + $0x424] ss:$16 sps:$4 sm:$0xff]   ;;  %v3189_v45 = vld [vmem:[%s4067_s11 + $0x420] ss:$16 sps:$4 sm:$0xff]  }
  0xcc   : > { %v3194_v42 = vld [vmem:[%s4067_s11 + $0x624] ss:$16 sps:$4 sm:$0xff]   ;;  %v3192_v46 = vld [vmem:[%s4067_s11 + $0x620] ss:$16 sps:$4 sm:$0xff]  }
  0xcd   : > { %2316 = vmatpush2.bf16.msra.mxu0 %v3127_v55  ;;  %v3197_v47 = vld [vmem:[%s4067_s11 + $0x404] ss:$16 sps:$4 sm:$0xff]   ;;  %v3195_v50 = vld [vmem:[%s4067_s11 + $0x400] ss:$16 sps:$4 sm:$0xff]   ;;  %v962_v55 = vld [vmem:[%s4421_s1 + $0x8] sm:$0xff] }
  0xce   : > { %2359 = vmatpush2.bf16.msra.mxu1 %v3128_v56  ;;  %2317 = vmatprep.subr.bf16.mxu0 %v3129_v57  ;;  %v3200_v48 = vld [vmem:[%s4067_s11 + $0x604] ss:$16 sps:$4 sm:$0xff]   ;;  %v3198_v51 = vld [vmem:[%s4067_s11 + $0x600] ss:$16 sps:$4 sm:$0xff]  }
  0xcf   : > { %2360 = vmatprep.subr.bf16.mxu1 %v3131_v58  ;;  %v961_v49 = vld [vmem:[%s4421_s1] sm:$0xff] }
  0xd0   : > { %v3203_v52 = vld [vmem:[%s4067_s11 + $0x5e4] ss:$16 sps:$4 sm:$0xff]   ;;  %965 = vperm.xlu0 %3056, %v961_v49   ;;  %v3201_v54 = vld [vmem:[%s4067_s11 + $0x5e0] ss:$16 sps:$4 sm:$0xff]   ;;  %v3279_v49 = vld [vmem:[%s4067_s11 + $0x48] ss:$16 sps:$4 sm:$0xff]  }
  0xd1   : > { %2318 = vmatpush2.bf16.msra.mxu0 %v3133_v59  ;;  %v3206_v53 = vld [vmem:[%s4067_s11 + $0x7e4] ss:$16 sps:$4 sm:$0xff]   ;;  %v3204_v56 = vld [vmem:[%s4067_s11 + $0x7e0] ss:$16 sps:$4 sm:$0xff]  }
  0xd2   : > { %2361 = vmatpush2.bf16.msra.mxu1 %v3134_v60  ;;  %2319 = vmatprep.subr.bf16.mxu0 %v3135_v61  ;;  %v3209_v57 = vld [vmem:[%s4067_s11 + $0x5c4] ss:$16 sps:$4 sm:$0xff]   ;;  %v3207_v59 = vld [vmem:[%s4067_s11 + $0x5c0] ss:$16 sps:$4 sm:$0xff]  }
  0xd3   : > { %2362 = vmatprep.subr.bf16.mxu1 %v3137_v62  ;;  %v3212_v58 = vld [vmem:[%s4067_s11 + $0x7c4] ss:$16 sps:$4 sm:$0xff]   ;;  %v3210_v60 = vld [vmem:[%s4067_s11 + $0x7c0] ss:$16 sps:$4 sm:$0xff]  }
  0xd4   : > { %970 = vperm.xlu0 %3056, %v962_v55   ;;  %v3215_v61 = vld [vmem:[%s4067_s11 + $0x5a4] ss:$16 sps:$4 sm:$0xff]   ;;  %v3293_v55 = vld [vmem:[%s4067_s11 + $0xc] ss:$16 sps:$4 sm:$0xff]  }
  0xd5   : > { %2320 = vmatpush2.bf16.msra.mxu0 %v3139_v63  ;;  %v3218_v62 = vld [vmem:[%s4067_s11 + $0x7a4] ss:$16 sps:$4 sm:$0xff]   ;;  %v3213_v63 = vld [vmem:[%s4067_s11 + $0x5a0] ss:$16 sps:$4 sm:$0xff]  }
  0xd6   : > { %2363 = vmatpush2.bf16.msra.mxu1 %v3140_v0  ;;  %2321 = vmatprep.subr.bf16.mxu0 %v3141_v1  ;;  %v3216_v0 = vld [vmem:[%s4067_s11 + $0x7a0] ss:$16 sps:$4 sm:$0xff]   ;;  %v3221_v1 = vld [vmem:[%s4067_s11 + $0x584] ss:$16 sps:$4 sm:$0xff]  }
  0xd7   : > { %2364 = vmatprep.subr.bf16.mxu1 %v3143_v2  ;;  %v3224_v2 = vld [vmem:[%s4067_s11 + $0x784] ss:$16 sps:$4 sm:$0xff]  }
  0xd9   : > { %2322 = vmatpush2.bf16.msra.mxu0 %v3145_v5  ;;  %v3219_v5 = vld [vmem:[%s4067_s11 + $0x580] ss:$16 sps:$4 sm:$0xff]  }
  0xda   : > { %2365 = vmatpush2.bf16.msra.mxu1 %v3146_v8  ;;  %2323 = vmatprep.subr.bf16.mxu0 %v3147_v9  ;;  %v3222_v8 = vld [vmem:[%s4067_s11 + $0x780] ss:$16 sps:$4 sm:$0xff]   ;;  %v3227_v9 = vld [vmem:[%s4067_s11 + $0x564] ss:$16 sps:$4 sm:$0xff]  }
  0xdb   : > { %2366 = vmatprep.subr.bf16.mxu1 %v3149_v10  ;;  %v3230_v10 = vld [vmem:[%s4067_s11 + $0x764] ss:$16 sps:$4 sm:$0xff]  }
  0xdd   : > { %2324 = vmatpush2.bf16.msra.mxu0 %v3151_v11  ;;  %v3225_v11 = vld [vmem:[%s4067_s11 + $0x560] ss:$16 sps:$4 sm:$0xff]  }
  0xde   : > { %2367 = vmatpush2.bf16.msra.mxu1 %v3152_v12  ;;  %2379 = vmatprep.subr.bf16.mxu0 %v3155_v13  ;;  %v3228_v12 = vld [vmem:[%s4067_s11 + $0x760] ss:$16 sps:$4 sm:$0xff]   ;;  %v3233_v13 = vld [vmem:[%s4067_s11 + $0x544] ss:$16 sps:$4 sm:$0xff]  }
  0xdf   : > { %2422 = vmatprep.subr.bf16.mxu1 %v3158_v14  ;;  %v3236_v14 = vld [vmem:[%s4067_s11 + $0x744] ss:$16 sps:$4 sm:$0xff]  }
  0xe0   : > { %2326 = vmatmul.mubr.bf16.vlgmr.msra.gmra.mxu0 %v4056_v3 }
  0xe1   : > { %2369 = vmatmul.mubr.bf16.vlgmr.msra.gmra.mxu1 %v4063_v6  ;;  %2380 = vmatpush1.bf16.msra.mxu0 %v3153_v17  ;;  %v3231_v17 = vld [vmem:[%s4067_s11 + $0x540] ss:$16 sps:$4 sm:$0xff]  }
  0xe2   : > { %2423 = vmatpush1.bf16.msra.mxu1 %v3156_v18  ;;  %2381 = vmatprep.subr.bf16.mxu0 %v3161_v19  ;;  %v3234_v18 = vld [vmem:[%s4067_s11 + $0x740] ss:$16 sps:$4 sm:$0xff]   ;;  %v3239_v19 = vld [vmem:[%s4067_s11 + $0x524] ss:$16 sps:$4 sm:$0xff]  }
  0xe3   : > { %2424 = vmatprep.subr.bf16.mxu1 %v3164_v20  ;;  %2411 = vmatprep.mubr.bf16.mxu0 %v4153_v21  ;;  %v3242_v20 = vld [vmem:[%s4067_s11 + $0x724] ss:$16 sps:$4 sm:$0xff]  }
  0xe4   : > { %2454 = vmatprep.mubr.bf16.mxu1 %v4190_v44 }
  0xe5   : > { %2382 = vmatpush1.bf16.msra.mxu0 %v3159_v22  ;;  %v3237_v22 = vld [vmem:[%s4067_s11 + $0x520] ss:$16 sps:$4 sm:$0xff]  }
  0xe6   : > { %2425 = vmatpush1.bf16.msra.mxu1 %v3162_v23  ;;  %2383 = vmatprep.subr.bf16.mxu0 %v3167_v24  ;;  %v3240_v23 = vld [vmem:[%s4067_s11 + $0x720] ss:$16 sps:$4 sm:$0xff]   ;;  %v3245_v24 = vld [vmem:[%s4067_s11 + $0x504] ss:$16 sps:$4 sm:$0xff]  }
  0xe7   : > { %2426 = vmatprep.subr.bf16.mxu1 %v3170_v25  ;;  %v3248_v25 = vld [vmem:[%s4067_s11 + $0x704] ss:$16 sps:$4 sm:$0xff]  }
  0xe9   : > { %2384 = vmatpush1.bf16.msra.mxu0 %v3165_v26  ;;  %v3243_v26 = vld [vmem:[%s4067_s11 + $0x500] ss:$16 sps:$4 sm:$0xff]  }
  0xea   : > { %2427 = vmatpush1.bf16.msra.mxu1 %v3168_v27  ;;  %2385 = vmatprep.subr.bf16.mxu0 %v3173_v28  ;;  %v3246_v27 = vld [vmem:[%s4067_s11 + $0x700] ss:$16 sps:$4 sm:$0xff]   ;;  %v3251_v28 = vld [vmem:[%s4067_s11 + $0xec] ss:$16 sps:$4 sm:$0xff]  }
  0xeb   : > { %2428 = vmatprep.subr.bf16.mxu1 %v3176_v29  ;;  %v3254_v29 = vld [vmem:[%s4067_s11 + $0x2ec] ss:$16 sps:$4 sm:$0xff]  }
  0xed   : > { %2386 = vmatpush1.bf16.msra.mxu0 %v3171_v30  ;;  %v4241_v30 = vcombine.low %v4140_v15, %v4145_v16  ;;  %v3255_v15 = vld [vmem:[%s4067_s11 + $0xc8] ss:$16 sps:$4 sm:$0xff]  }
  0xee   : > { %2429 = vmatpush1.bf16.msra.mxu1 %v3174_v31  ;;  %2387 = vmatprep.subr.bf16.mxu0 %v3179_v32  ;;  %v4245_v31 = vcombine.low %v4177_v38, %v4186_v43  ;;  %v3249_v32 = vld [vmem:[%s4067_s11 + $0xe8] ss:$16 sps:$4 sm:$0xff]   ;;  %v3278_v43 = vld [vmem:[%s4067_s11 + $0x26c] ss:$16 sps:$4 sm:$0xff]  }
  0xef   : > { %2430 = vmatprep.subr.bf16.mxu1 %v3182_v33  ;;  %v3252_v33 = vld [vmem:[%s4067_s11 + $0x2e8] ss:$16 sps:$4 sm:$0xff]  }
  0xf0   : > { %v3258_v16 = vld [vmem:[%s4067_s11 + $0x2c8] ss:$16 sps:$4 sm:$0xff]  }
  0xf1   : > { %2388 = vmatpush1.bf16.msra.mxu0 %v3177_v34  ;;  %v3257_v34 = vld [vmem:[%s4067_s11 + $0xcc] ss:$16 sps:$4 sm:$0xff]   ;;  %v3261_v38 = vld [vmem:[%s4067_s11 + $0xa8] ss:$16 sps:$4 sm:$0xff]  }
  0xf2   : > { %2431 = vmatpush1.bf16.msra.mxu1 %v3180_v35  ;;  %2389 = vmatprep.subr.bf16.mxu0 %v3185_v36  ;;  %v3260_v35 = vld [vmem:[%s4067_s11 + $0x2cc] ss:$16 sps:$4 sm:$0xff]  }
  0xf3   : > { %2432 = vmatprep.subr.bf16.mxu1 %v3188_v37  ;;  %v3263_v36 = vld [vmem:[%s4067_s11 + $0xac] ss:$16 sps:$4 sm:$0xff]  }
  0xf4   : > { %v3266_v37 = vld [vmem:[%s4067_s11 + $0x2ac] ss:$16 sps:$4 sm:$0xff]  }
  0xf5   : > { %2390 = vmatpush1.bf16.msra.mxu0 %v3183_v39  ;;  %v3264_v39 = vld [vmem:[%s4067_s11 + $0x2a8] ss:$16 sps:$4 sm:$0xff]  }
  0xf6   : > { %2433 = vmatpush1.bf16.msra.mxu1 %v3186_v40  ;;  %2391 = vmatprep.subr.bf16.mxu0 %v3191_v41  ;;  %v3269_v40 = vld [vmem:[%s4067_s11 + $0x8c] ss:$16 sps:$4 sm:$0xff]  }
  0xf7   : > { %2434 = vmatprep.subr.bf16.mxu1 %v3194_v42  ;;  %v3272_v41 = vld [vmem:[%s4067_s11 + $0x28c] ss:$16 sps:$4 sm:$0xff]   ;;  %v3267_v42 = vld [vmem:[%s4067_s11 + $0x88] ss:$16 sps:$4 sm:$0xff]  }
  0xf9   : > { %2392 = vmatpush1.bf16.msra.mxu0 %v3189_v45  ;;  %v3273_v45 = vld [vmem:[%s4067_s11 + $0x68] ss:$16 sps:$4 sm:$0xff]  }
  0xfa   : > { %2435 = vmatpush1.bf16.msra.mxu1 %v3192_v46  ;;  %2393 = vmatprep.subr.bf16.mxu0 %v3197_v47  ;;  %v3276_v46 = vld [vmem:[%s4067_s11 + $0x268] ss:$16 sps:$4 sm:$0xff]   ;;  %v3281_v47 = vld [vmem:[%s4067_s11 + $0x4c] ss:$16 sps:$4 sm:$0xff]  }
  0xfb   : > { %2436 = vmatprep.subr.bf16.mxu1 %v3200_v48  ;;  %v3284_v48 = vld [vmem:[%s4067_s11 + $0x24c] ss:$16 sps:$4 sm:$0xff]  }
  0xfd   : > { %2394 = vmatpush1.bf16.msra.mxu0 %v3195_v50  ;;  %v3282_v50 = vld [vmem:[%s4067_s11 + $0x248] ss:$16 sps:$4 sm:$0xff]  }
  0xfe   : > { %2437 = vmatpush1.bf16.msra.mxu1 %v3198_v51  ;;  %2395 = vmatprep.subr.bf16.mxu0 %v3203_v52  ;;  %v3287_v51 = vld [vmem:[%s4067_s11 + $0x2c] ss:$16 sps:$4 sm:$0xff]  }
  0xff   : > { %2438 = vmatprep.subr.bf16.mxu1 %v3206_v53  ;;  %v3290_v52 = vld [vmem:[%s4067_s11 + $0x22c] ss:$16 sps:$4 sm:$0xff]   ;;  %v3285_v53 = vld [vmem:[%s4067_s11 + $0x28] ss:$16 sps:$4 sm:$0xff]  }
 0x101   : > { %2396 = vmatpush2.bf16.msra.mxu0 %v3201_v54  ;;  %v3288_v54 = vld [vmem:[%s4067_s11 + $0x228] ss:$16 sps:$4 sm:$0xff]  }
 0x102   : > { %2439 = vmatpush2.bf16.msra.mxu1 %v3204_v56  ;;  %2397 = vmatprep.subr.bf16.mxu0 %v3209_v57  ;;  %v3296_v56 = vld [vmem:[%s4067_s11 + $0x20c] ss:$16 sps:$4 sm:$0xff]   ;;  %v3291_v57 = vld [vmem:[%s4067_s11 + $0x8] ss:$16 sps:$4 sm:$0xff]  }
 0x103   : > { %2440 = vmatprep.subr.bf16.mxu1 %v3212_v58  ;;  %v3294_v58 = vld [vmem:[%s4067_s11 + $0x208] ss:$16 sps:$4 sm:$0xff]  }
 0x105   : > { %2398 = vmatpush2.bf16.msra.mxu0 %v3207_v59  ;;  %v3299_v59 = vld [vmem:[%s4067_s11 + $0x1ec] ss:$16 sps:$4 sm:$0xff]  }
 0x106   : > { %2441 = vmatpush2.bf16.msra.mxu1 %v3210_v60  ;;  %2399 = vmatprep.subr.bf16.mxu0 %v3215_v61  ;;  %v3302_v60 = vld [vmem:[%s4067_s11 + $0x3ec] ss:$16 sps:$4 sm:$0xff]   ;;  %v3297_v61 = vld [vmem:[%s4067_s11 + $0x1e8] ss:$16 sps:$4 sm:$0xff]  }
 0x107   : > { %2442 = vmatprep.subr.bf16.mxu1 %v3218_v62  ;;  %v3300_v62 = vld [vmem:[%s4067_s11 + $0x3e8] ss:$16 sps:$4 sm:$0xff]  }
 0x109   : > { %2400 = vmatpush2.bf16.msra.mxu0 %v3213_v63  ;;  %v3305_v63 = vld [vmem:[%s4067_s11 + $0x1cc] ss:$16 sps:$4 sm:$0xff]  }
 0x10a   : > { %2443 = vmatpush2.bf16.msra.mxu1 %v3216_v0  ;;  %2401 = vmatprep.subr.bf16.mxu0 %v3221_v1  ;;  %v3308_v0 = vld [vmem:[%s4067_s11 + $0x3cc] ss:$16 sps:$4 sm:$0xff]   ;;  %v3303_v1 = vld [vmem:[%s4067_s11 + $0x1c8] ss:$16 sps:$4 sm:$0xff]  }
 0x10b   : > { %2444 = vmatprep.subr.bf16.mxu1 %v3224_v2  ;;  %v3306_v2 = vld [vmem:[%s4067_s11 + $0x3c8] ss:$16 sps:$4 sm:$0xff]  }
 0x10d   : > { %2402 = vmatpush2.bf16.msra.mxu0 %v3219_v5  ;;  %v3311_v5 = vld [vmem:[%s4067_s11 + $0x1ac] ss:$16 sps:$4 sm:$0xff]  }
 0x10e   : > { %2445 = vmatpush2.bf16.msra.mxu1 %v3222_v8  ;;  %2403 = vmatprep.subr.bf16.mxu0 %v3227_v9  ;;  %v3314_v8 = vld [vmem:[%s4067_s11 + $0x3ac] ss:$16 sps:$4 sm:$0xff]   ;;  %v3309_v9 = vld [vmem:[%s4067_s11 + $0x1a8] ss:$16 sps:$4 sm:$0xff]  }
 0x10f   : > { %2446 = vmatprep.subr.bf16.mxu1 %v3230_v10  ;;  %v3312_v10 = vld [vmem:[%s4067_s11 + $0x3a8] ss:$16 sps:$4 sm:$0xff]  }
 0x111   : > { %2404 = vmatpush2.bf16.msra.mxu0 %v3225_v11  ;;  %v3317_v11 = vld [vmem:[%s4067_s11 + $0x18c] ss:$16 sps:$4 sm:$0xff]  }
 0x112   : > { %2447 = vmatpush2.bf16.msra.mxu1 %v3228_v12  ;;  %2405 = vmatprep.subr.bf16.mxu0 %v3233_v13  ;;  %v3320_v12 = vld [vmem:[%s4067_s11 + $0x38c] ss:$16 sps:$4 sm:$0xff]   ;;  %v3315_v13 = vld [vmem:[%s4067_s11 + $0x188] ss:$16 sps:$4 sm:$0xff]  }
 0x113   : > { %2448 = vmatprep.subr.bf16.mxu1 %v3236_v14  ;;  %v3318_v14 = vld [vmem:[%s4067_s11 + $0x388] ss:$16 sps:$4 sm:$0xff]  }
 0x115   : > { %2406 = vmatpush2.bf16.msra.mxu0 %v3231_v17  ;;  %v3323_v17 = vld [vmem:[%s4067_s11 + $0x16c] ss:$16 sps:$4 sm:$0xff]  }
 0x116   : > { %2449 = vmatpush2.bf16.msra.mxu1 %v3234_v18  ;;  %2407 = vmatprep.subr.bf16.mxu0 %v3239_v19  ;;  %v3326_v18 = vld [vmem:[%s4067_s11 + $0x36c] ss:$16 sps:$4 sm:$0xff]   ;;  %v3321_v19 = vld [vmem:[%s4067_s11 + $0x168] ss:$16 sps:$4 sm:$0xff]  }
 0x117   : > { %2450 = vmatprep.subr.bf16.mxu1 %v3242_v20  ;;  %v3324_v20 = vld [vmem:[%s4067_s11 + $0x368] ss:$16 sps:$4 sm:$0xff]  }
 0x119   : > { %2408 = vmatpush2.bf16.msra.mxu0 %v3237_v22  ;;  %v3329_v22 = vld [vmem:[%s4067_s11 + $0x14c] ss:$16 sps:$4 sm:$0xff]  }
 0x11a   : > { %2451 = vmatpush2.bf16.msra.mxu1 %v3240_v23  ;;  %2409 = vmatprep.subr.bf16.mxu0 %v3245_v24  ;;  %v3332_v23 = vld [vmem:[%s4067_s11 + $0x34c] ss:$16 sps:$4 sm:$0xff]   ;;  %v3327_v24 = vld [vmem:[%s4067_s11 + $0x148] ss:$16 sps:$4 sm:$0xff]  }
 0x11b   : > { %2452 = vmatprep.subr.bf16.mxu1 %v3248_v25  ;;  %v3330_v25 = vld [vmem:[%s4067_s11 + $0x348] ss:$16 sps:$4 sm:$0xff]  }
 0x11d   : > { %2410 = vmatpush2.bf16.msra.mxu0 %v3243_v26  ;;  %v3335_v26 = vld [vmem:[%s4067_s11 + $0x12c] ss:$16 sps:$4 sm:$0xff]  }
 0x11e   : > { %2453 = vmatpush2.bf16.msra.mxu1 %v3246_v27  ;;  %2465 = vmatprep.subr.bf16.mxu0 %v3251_v28  ;;  %v3338_v27 = vld [vmem:[%s4067_s11 + $0x32c] ss:$16 sps:$4 sm:$0xff]   ;;  %v3333_v28 = vld [vmem:[%s4067_s11 + $0x128] ss:$16 sps:$4 sm:$0xff]  }
 0x11f   : > { %2508 = vmatprep.subr.bf16.mxu1 %v3254_v29  ;;  %v3336_v29 = vld [vmem:[%s4067_s11 + $0x328] ss:$16 sps:$4 sm:$0xff]  }
 0x120   : > { %2412 = vmatmul.mubr.bf16.vlgmr.msra.gmra.mxu0 %v4241_v30 }
 0x121   : > { %2455 = vmatmul.mubr.bf16.vlgmr.msra.gmra.mxu1 %v4245_v31  ;;  %2466 = vmatpush1.bf16.msra.mxu0 %v3249_v32  ;;  %v3341_v32 = vld [vmem:[%s4067_s11 + $0x10c] ss:$16 sps:$4 sm:$0xff]  }
 0x122   : > { %2509 = vmatpush1.bf16.msra.mxu1 %v3252_v33  ;;  %2467 = vmatprep.subr.bf16.mxu0 %v3257_v34  ;;  %v3344_v33 = vld [vmem:[%s4067_s11 + $0x30c] ss:$16 sps:$4 sm:$0xff]   ;;  %v3339_v34 = vld [vmem:[%s4067_s11 + $0x108] ss:$16 sps:$4 sm:$0xff]  }
 0x123   : > { %2510 = vmatprep.subr.bf16.mxu1 %v3260_v35  ;;  %2497 = vmatprep.mubr.bf16.mxu0 %v4058_v4  ;;  %v3270_v4 = vld [vmem:[%s4067_s11 + $0x288] ss:$16 sps:$4 sm:$0xff]  }
 0x124   : > { %2540 = vmatprep.mubr.bf16.mxu1 %v4065_v7  ;;  %v3275_v7 = vld [vmem:[%s4067_s11 + $0x6c] ss:$16 sps:$4 sm:$0xff]   ;;  %v3342_v35 = vld [vmem:[%s4067_s11 + $0x308] ss:$16 sps:$4 sm:$0xff]  }
 0x125   : > { %2468 = vmatpush1.bf16.msra.mxu0 %v3255_v15  ;;  %v3347_v15 = vld [vmem:[%s4067_s11 + $0x4ec] ss:$16 sps:$4 sm:$0xff]  }
 0x126   : > { %2511 = vmatpush1.bf16.msra.mxu1 %v3258_v16  ;;  %2469 = vmatprep.subr.bf16.mxu0 %v3263_v36  ;;  %v3350_v16 = vld [vmem:[%s4067_s11 + $0x6ec] ss:$16 sps:$4 sm:$0xff]   ;;  %v3345_v36 = vld [vmem:[%s4067_s11 + $0x4e8] ss:$16 sps:$4 sm:$0xff]  }
 0x127   : > { %2512 = vmatprep.subr.bf16.mxu1 %v3266_v37  ;;  %v3348_v37 = vld [vmem:[%s4067_s11 + $0x6e8] ss:$16 sps:$4 sm:$0xff]  }
 0x129   : > { %2470 = vmatpush1.bf16.msra.mxu0 %v3261_v38  ;;  %v3353_v38 = vld [vmem:[%s4067_s11 + $0x4cc] ss:$16 sps:$4 sm:$0xff]  }
 0x12a   : > { %2513 = vmatpush1.bf16.msra.mxu1 %v3264_v39  ;;  %2471 = vmatprep.subr.bf16.mxu0 %v3269_v40  ;;  %v3356_v39 = vld [vmem:[%s4067_s11 + $0x6cc] ss:$16 sps:$4 sm:$0xff]   ;;  %v3351_v40 = vld [vmem:[%s4067_s11 + $0x4c8] ss:$16 sps:$4 sm:$0xff]  }
 0x12b   : > { %2514 = vmatprep.subr.bf16.mxu1 %v3272_v41  ;;  %v3354_v41 = vld [vmem:[%s4067_s11 + $0x6c8] ss:$16 sps:$4 sm:$0xff]  }
 0x12d   : > { %2472 = vmatpush1.bf16.msra.mxu0 %v3267_v42  ;;  %v3359_v42 = vld [vmem:[%s4067_s11 + $0x4ac] ss:$16 sps:$4 sm:$0xff]  }
 0x12e   : > { %2515 = vmatpush1.bf16.msra.mxu1 %v3270_v4  ;;  %2473 = vmatprep.subr.bf16.mxu0 %v3275_v7  ;;  %v3362_v4 = vld [vmem:[%s4067_s11 + $0x6ac] ss:$16 sps:$4 sm:$0xff]  }
 0x12f   : > { %2516 = vmatprep.subr.bf16.mxu1 %v3278_v43  ;;  %v3365_v7 = vld [vmem:[%s4067_s11 + $0x48c] ss:$16 sps:$4 sm:$0xff]  }
 0x130   : > { %v3368_v43 = vld [vmem:[%s4067_s11 + $0x68c] ss:$16 sps:$4 sm:$0xff]  }
 0x131   : > { %2474 = vmatpush1.bf16.msra.mxu0 %v3273_v45  ;;  %v3363_v45 = vld [vmem:[%s4067_s11 + $0x488] ss:$16 sps:$4 sm:$0xff]  }
 0x132   : > { %2517 = vmatpush1.bf16.msra.mxu1 %v3276_v46  ;;  %2475 = vmatprep.subr.bf16.mxu0 %v3281_v47  ;;  %v3374_v46 = vld [vmem:[%s4067_s11 + $0x66c] ss:$16 sps:$4 sm:$0xff]   ;;  %v3369_v47 = vld [vmem:[%s4067_s11 + $0x468] ss:$16 sps:$4 sm:$0xff]  }
 0x133   : > { %2518 = vmatprep.subr.bf16.mxu1 %v3284_v48  ;;  %v3372_v48 = vld [vmem:[%s4067_s11 + $0x668] ss:$16 sps:$4 sm:$0xff]  }
 0x135   : > { %2476 = vmatpush1.bf16.msra.mxu0 %v3279_v49  ;;  %v3377_v49 = vld [vmem:[%s4067_s11 + $0x44c] ss:$16 sps:$4 sm:$0xff]  }
 0x136   : > { %2519 = vmatpush1.bf16.msra.mxu1 %v3282_v50  ;;  %2477 = vmatprep.subr.bf16.mxu0 %v3287_v51  ;;  %v3380_v50 = vld [vmem:[%s4067_s11 + $0x64c] ss:$16 sps:$4 sm:$0xff]   ;;  %v3375_v51 = vld [vmem:[%s4067_s11 + $0x448] ss:$16 sps:$4 sm:$0xff]  }
 0x137   : > { %2520 = vmatprep.subr.bf16.mxu1 %v3290_v52  ;;  %v3378_v52 = vld [vmem:[%s4067_s11 + $0x648] ss:$16 sps:$4 sm:$0xff]  }
 0x139   : > { %2478 = vmatpush1.bf16.msra.mxu0 %v3285_v53  ;;  %v3383_v53 = vld [vmem:[%s4067_s11 + $0x42c] ss:$16 sps:$4 sm:$0xff]  }
 0x13a   : > { %2521 = vmatpush1.bf16.msra.mxu1 %v3288_v54  ;;  %2479 = vmatprep.subr.bf16.mxu0 %v3293_v55  ;;  %v3386_v54 = vld [vmem:[%s4067_s11 + $0x62c] ss:$16 sps:$4 sm:$0xff]   ;;  %v3381_v55 = vld [vmem:[%s4067_s11 + $0x428] ss:$16 sps:$4 sm:$0xff]  }
 0x13b   : > { %2522 = vmatprep.subr.bf16.mxu1 %v3296_v56  ;;  %v3384_v56 = vld [vmem:[%s4067_s11 + $0x628] ss:$16 sps:$4 sm:$0xff]  }
 0x13d   : > { %2480 = vmatpush1.bf16.msra.mxu0 %v3291_v57  ;;  %v3389_v57 = vld [vmem:[%s4067_s11 + $0x40c] ss:$16 sps:$4 sm:$0xff]  }
 0x13e   : > { %2523 = vmatpush1.bf16.msra.mxu1 %v3294_v58  ;;  %2481 = vmatprep.subr.bf16.mxu0 %v3299_v59  ;;  %v3392_v58 = vld [vmem:[%s4067_s11 + $0x60c] ss:$16 sps:$4 sm:$0xff]   ;;  %v3387_v59 = vld [vmem:[%s4067_s11 + $0x408] ss:$16 sps:$4 sm:$0xff]  }
 0x13f   : > { %2524 = vmatprep.subr.bf16.mxu1 %v3302_v60  ;;  %v3390_v60 = vld [vmem:[%s4067_s11 + $0x608] ss:$16 sps:$4 sm:$0xff]  }
 0x141   : > { %2482 = vmatpush2.bf16.msra.mxu0 %v3297_v61  ;;  %v3395_v61 = vld [vmem:[%s4067_s11 + $0x5ec] ss:$16 sps:$4 sm:$0xff]  }
 0x142   : > { %2525 = vmatpush2.bf16.msra.mxu1 %v3300_v62  ;;  %2483 = vmatprep.subr.bf16.mxu0 %v3305_v63  ;;  %v3398_v62 = vld [vmem:[%s4067_s11 + $0x7ec] ss:$16 sps:$4 sm:$0xff]   ;;  %v3393_v63 = vld [vmem:[%s4067_s11 + $0x5e8] ss:$16 sps:$4 sm:$0xff]  }
 0x143   : > { %2526 = vmatprep.subr.bf16.mxu1 %v3308_v0  ;;  %v3396_v0 = vld [vmem:[%s4067_s11 + $0x7e8] ss:$16 sps:$4 sm:$0xff]  }
 0x145   : > { %2484 = vmatpush2.bf16.msra.mxu0 %v3303_v1  ;;  %v3401_v1 = vld [vmem:[%s4067_s11 + $0x5cc] ss:$16 sps:$4 sm:$0xff]  }
 0x146   : > { %2527 = vmatpush2.bf16.msra.mxu1 %v3306_v2  ;;  %2485 = vmatprep.subr.bf16.mxu0 %v3311_v5  ;;  %v3404_v2 = vld [vmem:[%s4067_s11 + $0x7cc] ss:$16 sps:$4 sm:$0xff]   ;;  %v3399_v5 = vld [vmem:[%s4067_s11 + $0x5c8] ss:$16 sps:$4 sm:$0xff]  }
 0x147   : > { %2528 = vmatprep.subr.bf16.mxu1 %v3314_v8  ;;  %v3402_v8 = vld [vmem:[%s4067_s11 + $0x7c8] ss:$16 sps:$4 sm:$0xff]  }
 0x149   : > { %2486 = vmatpush2.bf16.msra.mxu0 %v3309_v9  ;;  %v3407_v9 = vld [vmem:[%s4067_s11 + $0x5ac] ss:$16 sps:$4 sm:$0xff]  }
 0x14a   : > { %2529 = vmatpush2.bf16.msra.mxu1 %v3312_v10  ;;  %2487 = vmatprep.subr.bf16.mxu0 %v3317_v11  ;;  %v3410_v10 = vld [vmem:[%s4067_s11 + $0x7ac] ss:$16 sps:$4 sm:$0xff]   ;;  %v3405_v11 = vld [vmem:[%s4067_s11 + $0x5a8] ss:$16 sps:$4 sm:$0xff]  }
 0x14b   : > { %2530 = vmatprep.subr.bf16.mxu1 %v3320_v12  ;;  %v3408_v12 = vld [vmem:[%s4067_s11 + $0x7a8] ss:$16 sps:$4 sm:$0xff]  }
 0x14d   : > { %2488 = vmatpush2.bf16.msra.mxu0 %v3315_v13  ;;  %v3413_v13 = vld [vmem:[%s4067_s11 + $0x58c] ss:$16 sps:$4 sm:$0xff]  }
 0x14e   : > { %2531 = vmatpush2.bf16.msra.mxu1 %v3318_v14  ;;  %2489 = vmatprep.subr.bf16.mxu0 %v3323_v17  ;;  %v3416_v14 = vld [vmem:[%s4067_s11 + $0x78c] ss:$16 sps:$4 sm:$0xff]   ;;  %v3411_v17 = vld [vmem:[%s4067_s11 + $0x588] ss:$16 sps:$4 sm:$0xff]  }
 0x14f   : > { %2532 = vmatprep.subr.bf16.mxu1 %v3326_v18  ;;  %v3414_v18 = vld [vmem:[%s4067_s11 + $0x788] ss:$16 sps:$4 sm:$0xff]  }
 0x151   : > { %2490 = vmatpush2.bf16.msra.mxu0 %v3321_v19  ;;  %v3419_v19 = vld [vmem:[%s4067_s11 + $0x56c] ss:$16 sps:$4 sm:$0xff]  }
 0x152   : > { %2533 = vmatpush2.bf16.msra.mxu1 %v3324_v20  ;;  %2491 = vmatprep.subr.bf16.mxu0 %v3329_v22  ;;  %v3422_v20 = vld [vmem:[%s4067_s11 + $0x76c] ss:$16 sps:$4 sm:$0xff]   ;;  %v3417_v22 = vld [vmem:[%s4067_s11 + $0x568] ss:$16 sps:$4 sm:$0xff]  }
 0x153   : > { %2534 = vmatprep.subr.bf16.mxu1 %v3332_v23  ;;  %v3420_v23 = vld [vmem:[%s4067_s11 + $0x768] ss:$16 sps:$4 sm:$0xff]  }
 0x155   : > { %2492 = vmatpush2.bf16.msra.mxu0 %v3327_v24  ;;  %v3425_v24 = vld [vmem:[%s4067_s11 + $0x54c] ss:$16 sps:$4 sm:$0xff]  }
 0x156   : > { %2535 = vmatpush2.bf16.msra.mxu1 %v3330_v25  ;;  %2493 = vmatprep.subr.bf16.mxu0 %v3335_v26  ;;  %v3428_v25 = vld [vmem:[%s4067_s11 + $0x74c] ss:$16 sps:$4 sm:$0xff]   ;;  %v3423_v26 = vld [vmem:[%s4067_s11 + $0x548] ss:$16 sps:$4 sm:$0xff]  }
 0x157   : > { %2536 = vmatprep.subr.bf16.mxu1 %v3338_v27  ;;  %v3426_v27 = vld [vmem:[%s4067_s11 + $0x748] ss:$16 sps:$4 sm:$0xff]  }
 0x159   : > { %2494 = vmatpush2.bf16.msra.mxu0 %v3333_v28  ;;  %v3431_v28 = vld [vmem:[%s4067_s11 + $0x52c] ss:$16 sps:$4 sm:$0xff]  }
 0x15a   : > { %2537 = vmatpush2.bf16.msra.mxu1 %v3336_v29  ;;  %2495 = vmatprep.subr.bf16.mxu0 %v3341_v32  ;;  %v3434_v29 = vld [vmem:[%s4067_s11 + $0x72c] ss:$16 sps:$4 sm:$0xff]   ;;  %v3429_v32 = vld [vmem:[%s4067_s11 + $0x528] ss:$16 sps:$4 sm:$0xff]  }
 0x15b   : > { %2538 = vmatprep.subr.bf16.mxu1 %v3344_v33  ;;  %v3432_v33 = vld [vmem:[%s4067_s11 + $0x728] ss:$16 sps:$4 sm:$0xff]  }
 0x15d   : > { %2496 = vmatpush2.bf16.msra.mxu0 %v3339_v34  ;;  %v3437_v34 = vld [vmem:[%s4067_s11 + $0x50c] ss:$16 sps:$4 sm:$0xff]  }
 0x15e   : > { %2539 = vmatpush2.bf16.msra.mxu1 %v3342_v35  ;;  %2551 = vmatprep.subr.bf16.mxu0 %v3347_v15  ;;  %v3440_v35 = vld [vmem:[%s4067_s11 + $0x70c] ss:$16 sps:$4 sm:$0xff]   ;;  %v3435_v15 = vld [vmem:[%s4067_s11 + $0x508] ss:$16 sps:$4 sm:$0xff]  }
 0x15f   : > { %2594 = vmatprep.subr.bf16.mxu1 %v3350_v16  ;;  %v3438_v16 = vld [vmem:[%s4067_s11 + $0x708] ss:$16 sps:$4 sm:$0xff]  }
 0x160   : > { %2498 = vmatmul.mubr.bf16.vlgmr.msra.gmra.mxu0 %v4056_v3  ;;  %v3357_v3 = vld [vmem:[%s4067_s11 + $0x4a8] ss:$16 sps:$4 sm:$0xff]  }
 0x161   : > { %2541 = vmatmul.mubr.bf16.vlgmr.msra.gmra.mxu1 %v4063_v6  ;;  %2552 = vmatpush1.bf16.msra.mxu0 %v3345_v36  ;;  %v3360_v6 = vld [vmem:[%s4067_s11 + $0x6a8] ss:$16 sps:$4 sm:$0xff]  }
 0x162   : > { %2595 = vmatpush1.bf16.msra.mxu1 %v3348_v37  ;;  %2553 = vmatprep.subr.bf16.mxu0 %v3353_v38  ;;  %v966_v38 = vpop.permute.xlu0 %965 }
 0x163   : > { %2596 = vmatprep.subr.bf16.mxu1 %v3356_v39  ;;  %2583 = vmatprep.mubr.bf16.mxu0 %v4153_v21  ;;  %v3366_v21 = vld [vmem:[%s4067_s11 + $0x688] ss:$16 sps:$4 sm:$0xff]  }
 0x164   : > { %2626 = vmatprep.mubr.bf16.mxu1 %v4190_v44  ;;  %v3371_v44 = vld [vmem:[%s4067_s11 + $0x46c] ss:$16 sps:$4 sm:$0xff]  }
 0x165   : > { %2554 = vmatpush1.bf16.msra.mxu0 %v3351_v40 }
 0x166   : > { %2597 = vmatpush1.bf16.msra.mxu1 %v3354_v41  ;;  %2555 = vmatprep.subr.bf16.mxu0 %v3359_v42 }
 0x167   : > { %2598 = vmatprep.subr.bf16.mxu1 %v3362_v4 }
 0x169   : > { %2556 = vmatpush1.bf16.msra.mxu0 %v3357_v3  ;;  %v971_v3 = vpop.permute.xlu0 %970 }
 0x16a   : > { %2599 = vmatpush1.bf16.msra.mxu1 %v3360_v6  ;;  %2557 = vmatprep.subr.bf16.mxu0 %v3365_v7 }
 0x16b   : > { %2600 = vmatprep.subr.bf16.mxu1 %v3368_v43 }
 0x16d   : > { %2558 = vmatpush1.bf16.msra.mxu0 %v3363_v45 }
 0x16e   : > { %2601 = vmatpush1.bf16.msra.mxu1 %v3366_v21  ;;  %2559 = vmatprep.subr.bf16.mxu0 %v3371_v44 }
 0x16f   : > { %2602 = vmatprep.subr.bf16.mxu1 %v3374_v46 }
 0x171   : > { %2560 = vmatpush1.bf16.msra.mxu0 %v3369_v47 }
 0x172   : > { %2603 = vmatpush1.bf16.msra.mxu1 %v3372_v48  ;;  %2561 = vmatprep.subr.bf16.mxu0 %v3377_v49 }
 0x173   : > { %2604 = vmatprep.subr.bf16.mxu1 %v3380_v50 }
 0x175   : > { %2562 = vmatpush1.bf16.msra.mxu0 %v3375_v51 }
 0x176   : > { %2605 = vmatpush1.bf16.msra.mxu1 %v3378_v52  ;;  %2563 = vmatprep.subr.bf16.mxu0 %v3383_v53 }
 0x177   : > { %2606 = vmatprep.subr.bf16.mxu1 %v3386_v54 }
 0x179   : > { %2564 = vmatpush1.bf16.msra.mxu0 %v3381_v55 }
 0x17a   : > { %2607 = vmatpush1.bf16.msra.mxu1 %v3384_v56  ;;  %2565 = vmatprep.subr.bf16.mxu0 %v3389_v57 }
 0x17b   : > { %2608 = vmatprep.subr.bf16.mxu1 %v3392_v58 }
 0x17d   : > { %2566 = vmatpush1.bf16.msra.mxu0 %v3387_v59 }
 0x17e   : > { %2609 = vmatpush1.bf16.msra.mxu1 %v3390_v60  ;;  %2567 = vmatprep.subr.bf16.mxu0 %v3395_v61 }
 0x17f   : > { %2610 = vmatprep.subr.bf16.mxu1 %v3398_v62 }
 0x181   : > { %2568 = vmatpush2.bf16.msra.mxu0 %v3393_v63 }
 0x182   : > { %2611 = vmatpush2.bf16.msra.mxu1 %v3396_v0  ;;  %2569 = vmatprep.subr.bf16.mxu0 %v3401_v1 }
 0x183   : > { %2612 = vmatprep.subr.bf16.mxu1 %v3404_v2 }
 0x185   : > { %2570 = vmatpush2.bf16.msra.mxu0 %v3399_v5 }
 0x186   : > { %2613 = vmatpush2.bf16.msra.mxu1 %v3402_v8  ;;  %2571 = vmatprep.subr.bf16.mxu0 %v3407_v9 }
 0x187   : > { %2614 = vmatprep.subr.bf16.mxu1 %v3410_v10 }
 0x189   : > { %2572 = vmatpush2.bf16.msra.mxu0 %v3405_v11 }
 0x18a   : > { %2615 = vmatpush2.bf16.msra.mxu1 %v3408_v12  ;;  %2573 = vmatprep.subr.bf16.mxu0 %v3413_v13 }
 0x18b   : > { %2616 = vmatprep.subr.bf16.mxu1 %v3416_v14 }
 0x18d   : > { %2574 = vmatpush2.bf16.msra.mxu0 %v3411_v17 }
 0x18e   : > { %2617 = vmatpush2.bf16.msra.mxu1 %v3414_v18  ;;  %2575 = vmatprep.subr.bf16.mxu0 %v3419_v19 }
 0x18f   : > { %2618 = vmatprep.subr.bf16.mxu1 %v3422_v20 }
 0x191   : > { %2576 = vmatpush2.bf16.msra.mxu0 %v3417_v22 }
 0x192   : > { %2619 = vmatpush2.bf16.msra.mxu1 %v3420_v23  ;;  %2577 = vmatprep.subr.bf16.mxu0 %v3425_v24 }
 0x193   : > { %2620 = vmatprep.subr.bf16.mxu1 %v3428_v25 }
 0x195   : > { %2578 = vmatpush2.bf16.msra.mxu0 %v3423_v26 }
 0x196   : > { %2621 = vmatpush2.bf16.msra.mxu1 %v3426_v27  ;;  %2579 = vmatprep.subr.bf16.mxu0 %v3431_v28 }
 0x197   : > { %2622 = vmatprep.subr.bf16.mxu1 %v3434_v29 }
 0x199   : > { %2580 = vmatpush2.bf16.msra.mxu0 %v3429_v32 }
 0x19a   : > { %2623 = vmatpush2.bf16.msra.mxu1 %v3432_v33  ;;  %2581 = vmatprep.subr.bf16.mxu0 %v3437_v34 }
 0x19b   : > { %2624 = vmatprep.subr.bf16.mxu1 %v3440_v35 }
 0x19d   : > { %2582 = vmatpush2.bf16.msra.mxu0 %v3435_v15 }
 0x19e   : > { %2625 = vmatpush2.bf16.msra.mxu1 %v3438_v16 }
 0x1a0   : > { %2584 = vmatmul.mubr.bf16.vlgmr.msra.gmra.mxu0 %v4241_v30  ;;  %v2327_v36 = vpop.f32.mrf.mxu0 }
 0x1a1   : > { %2627 = vmatmul.mubr.bf16.vlgmr.msra.gmra.mxu1 %v4245_v31  ;;  %v2370_v37 = vpop.f32.mrf.mxu1  ;;  %v2328_v4 = vadd.f32 %v2327_v36, %v966_v38 }
 0x1a2   : > { %v2329_v39 = vpop.f32.mrf.mxu0 }
 0x1a3   : > { %v2372_v40 = vpop.f32.mrf.mxu1  ;;  %v2330_v6 = vadd.f32 %v2329_v39, %v966_v38  ;;  %v2371_v45 = vadd.f32 %v2370_v37, %v2328_v4 }
 0x1a4   : > { %v2331_v41 = vpop.f32.mrf.mxu0 }
 0x1a5   : > { %v2374_v42 = vpop.f32.mrf.mxu1  ;;  %v2332_v21 = vadd.f32 %v2331_v41, %v971_v3  ;;  %v2373_v30 = vadd.f32 %v2372_v40, %v2330_v6 }
 0x1a6   : > { %v2333_v7 = vpop.f32.mrf.mxu0 }
 0x1a7   : > { %v2376_v43 = vpop.f32.mrf.mxu1  ;;  %v2334_v47 = vadd.f32 %v2333_v7, %v971_v3  ;;  %v2375_v50 = vadd.f32 %v2374_v42, %v2332_v21 }
 0x1a9   : > { %v2377_v55 = vadd.f32 %v2376_v43, %v2334_v47 }
 0x1e0   : > { %v2413_v44 = vpop.f32.mrf.mxu0 }
 0x1e1   : > { %v2456_v46 = vpop.f32.mrf.mxu1  ;;  %v2414_v31 = vadd.f32 %v2413_v44, %v2371_v45 }
 0x1e2   : > { %v2415_v48 = vpop.f32.mrf.mxu0 }
 0x1e3   : > { %v2458_v49 = vpop.f32.mrf.mxu1  ;;  %v2457_v51 = vadd.f32 %v2456_v46, %v2414_v31  ;;  %v2416_v52 = vadd.f32 %v2415_v48, %v2373_v30 }
 0x1e4   : > { %v2417_v53 = vpop.f32.mrf.mxu0 }
 0x1e5   : > { %v2460_v54 = vpop.f32.mrf.mxu1  ;;  %v2637_v56 = vmax.f32 %v2457_v51, 0.0  ;;  %v2459_v57 = vadd.f32 %v2458_v49, %v2416_v52  ;;  %v2418_v58 = vadd.f32 %v2417_v53, %v2375_v50 }
 0x1e6   : > { %v2419_v59 = vpop.f32.mrf.mxu0 }
 0x1e7   : > { %2645 = vst [vmem:[%s4385_s6] sm:$0xff] %v2637_v56  ;;  %v2638_v60 = vmax.f32 %v2459_v57, 0.0  ;;  %v2461_v61 = vadd.f32 %v2460_v54, %v2418_v58  ;;  %v2420_v62 = vadd.f32 %v2419_v59, %v2377_v55  ;;  %v2462_v63 = vpop.f32.mrf.mxu1 }
 0x1e9   : > { %2646 = vst [vmem:[%s4385_s6 + $0x8] sm:$0xff] %v2638_v60  ;;  %v2641_v0 = vmax.f32 %v2461_v61, 0.0  ;;  %v2463_v1 = vadd.f32 %v2462_v63, %v2420_v62 }
 0x1eb   : > { %2649 = vst [vmem:[%s4385_s6 + $0x20] sm:$0xff] %v2641_v0  ;;  %v2642_v2 = vmax.f32 %v2463_v1, 0.0 }
 0x1ed   : > { %2650 = vst [vmem:[%s4385_s6 + $0x28] sm:$0xff] %v2642_v2 }
 0x1ee   : > { %v2675_v7 = vld [vmem:[%s4385_s6] sm:$0xff] (%p3516_p5) }
 0x1ef   : > { %2676 = vst [vmem:[%s2662_s8] sm:$0xff] (%p3516_p5), %v2675_v7 }
 0x1f0   : > { %v2677_v43 = vld [vmem:[%s4385_s6 + $0x8] sm:$0xff] (%p3516_p5) }
 0x1f1   : > { %2678 = vst [vmem:[%s2662_s8 + $0x8] sm:$0xff] (%p3516_p5), %v2677_v43 }
 0x1f2   : > { %v2683_v44 = vld [vmem:[%s4385_s6 + $0x20] sm:$0xff] (%p3516_p5) }
 0x1f3   : > { %2684 = vst [vmem:[%s2662_s8 + $0x80] sm:$0xff] (%p3516_p5), %v2683_v44 }
 0x1f4   : > { %v2685_v46 = vld [vmem:[%s4385_s6 + $0x28] sm:$0xff] (%p3516_p5) }
 0x1f5   : > { %2686 = vst [vmem:[%s2662_s8 + $0x88] sm:$0xff] (%p3516_p5), %v2685_v46 }
 0x220   : > { %v2499_v5 = vpop.f32.mrf.mxu0 }
 0x221   : > { %v2542_v8 = vpop.f32.mrf.mxu1  ;;  %v2500_v13 = vadd.f32 %v2499_v5, %v966_v38 }
 0x222   : > { %v2501_v9 = vpop.f32.mrf.mxu0 }
 0x223   : > { %v2544_v10 = vpop.f32.mrf.mxu1  ;;  %v2502_v14 = vadd.f32 %v2501_v9, %v966_v38  ;;  %v2543_v19 = vadd.f32 %v2542_v8, %v2500_v13 }
 0x224   : > { %v2503_v11 = vpop.f32.mrf.mxu0 }
 0x225   : > { %v2546_v12 = vpop.f32.mrf.mxu1  ;;  %v2504_v20 = vadd.f32 %v2503_v11, %v971_v3  ;;  %v2545_v24 = vadd.f32 %v2544_v10, %v2502_v14 }
 0x226   : > { %v2505_v17 = vpop.f32.mrf.mxu0 }
 0x227   : > { %v2548_v18 = vpop.f32.mrf.mxu1  ;;  %v2506_v25 = vadd.f32 %v2505_v17, %v971_v3  ;;  %v2547_v29 = vadd.f32 %v2546_v12, %v2504_v20 }
 0x229   : > { %v2549_v15 = vadd.f32 %v2548_v18, %v2506_v25 }
 0x260   : > { %v2585_v22 = vpop.f32.mrf.mxu0 }
 0x261   : > { %v2628_v23 = vpop.f32.mrf.mxu1  ;;  %v2586_v26 = vadd.f32 %v2585_v22, %v2543_v19 }
 0x262   : > { %v2587_v27 = vpop.f32.mrf.mxu0 }
 0x263   : > { %v2630_v28 = vpop.f32.mrf.mxu1  ;;  %v2629_v32 = vadd.f32 %v2628_v23, %v2586_v26  ;;  %v2588_v33 = vadd.f32 %v2587_v27, %v2545_v24 }
 0x264   : > { %v2589_v34 = vpop.f32.mrf.mxu0 }
 0x265   : > { %v2632_v35 = vpop.f32.mrf.mxu1  ;;  %v2639_v16 = vmax.f32 %v2629_v32, 0.0  ;;  %v2631_v36 = vadd.f32 %v2630_v28, %v2588_v33  ;;  %v2590_v37 = vadd.f32 %v2589_v34, %v2547_v29 }
 0x266   : > { %v2591_v38 = vpop.f32.mrf.mxu0 }
 0x267   : > { %2647 = vst [vmem:[%s4385_s6 + $0x10] sm:$0xff] %v2639_v16  ;;  %v2640_v39 = vmax.f32 %v2631_v36, 0.0  ;;  %v2633_v40 = vadd.f32 %v2632_v35, %v2590_v37  ;;  %v2592_v41 = vadd.f32 %v2591_v38, %v2549_v15  ;;  %v2634_v42 = vpop.f32.mrf.mxu1 }
 0x269   : > { %2648 = vst [vmem:[%s4385_s6 + $0x18] sm:$0xff] %v2640_v39  ;;  %v2643_v4 = vmax.f32 %v2633_v40, 0.0  ;;  %v2635_v3 = vadd.f32 %v2634_v42, %v2592_v41  ;;  %2659 = sbr.rel (!%p3516_p5) target bundleno = 630 (0x276), region = 59 }
 0x26b   : > { %2651 = vst [vmem:[%s4385_s6 + $0x30] sm:$0xff] %v2643_v4  ;;  %v2644_v6 = vmax.f32 %v2635_v3, 0.0 }
 0x26d   : > { %2652 = vst [vmem:[%s4385_s6 + $0x38] sm:$0xff] %v2644_v6 }
 0x26e   : > { %v2679_v45 = vld [vmem:[%s4385_s6 + $0x10] sm:$0xff] }
 0x26f   : > { %2680 = vst [vmem:[%s2662_s8 + $0x10] sm:$0xff] %v2679_v45 }
 0x270   : > { %v2681_v21 = vld [vmem:[%s4385_s6 + $0x18] sm:$0xff] }
 0x271   : > { %2682 = vst [vmem:[%s2662_s8 + $0x18] sm:$0xff] %v2681_v21 }
 0x272   : > { %v2687_v30 = vld [vmem:[%s4385_s6 + $0x30] sm:$0xff] }
 0x273   : > { %2688 = vst [vmem:[%s2662_s8 + $0x90] sm:$0xff] %v2687_v30 }
 0x274   : > { %v2689_v47 = vld [vmem:[%s4385_s6 + $0x38] sm:$0xff] }
 0x275   : > { %2690 = vst [vmem:[%s2662_s8 + $0x98] sm:$0xff] %v2689_v47 }
 0x276 PF: > { %p10_p10 = scmp.ge.s32.totalorder %s3503_s16, 6   ;;  %s4425_s12 = smov %s3459_s13 }
 0x277   : > { %s4426_s13 = smov %s3514_s19  ;;  %s4427_s14 = smov %s3503_s16 }
 0x278   :  { %12 = sbr.rel (!%p10_p10) target bundleno = 2 (0x2), region = 113 }

// kernel: encoder_forward_pallas.8
= control target key start
LH: loop header
LB: loop body
LE: loop exit
PB: predicated region body
PF: predicated region fallthrough
CT: control target
= control target key end

     0   :  { %s3486_s12 = smov 0   ;;  %s3488_s13 = smov 0   ;;  %s4420_s0 = inlined_call_operand.vmem [shape: bf16[16,1024], index: 0, kind: input, shape index: {}]   ;;  %s4421_s1 = inlined_call_operand.vmem [shape: f32[16,1], index: 1, kind: input, shape index: {}]   ;;  %s4422_s2 = inlined_call_operand.vmem [shape: bf16[1024,3072], index: 2, kind: input, shape index: {}]   ;;  %s4423_s3 = inlined_call_operand.vmem [shape: f32[16,3072], index: 3, kind: output, shape index: {}]  }
   0x1   :  { %s3490_s14 = smov 0  }
   0x2 LB: > { %s2750_s15 = sadd.s32 4294967295, %s3463_s14   ;;  %s3503_s16 = sadd.s32 1, %s3463_s14   ;;  %s3463_s14 = sphi %s3490_s14, %s4427_s14   ;;  %s3459_s13 = sphi %s3488_s13, %s4426_s13   ;;  %s3455_s12 = sphi %s3486_s12, %s4425_s12  }
   0x3   : > { %s59_s17 = ssub.s32 %s3463_s14, %s3503_s16  ;;  %s62_s18 = sadd.s32 1, %s3459_s13 }
   0x4   : > { %p60_p0 = scmp.eq.s32.totalorder %s59_s17, 0  ;;  %p69_p1 = scmp.ne.s32.totalorder %s3459_s13, %s3455_s12 }
   0x5   : > { %p70_p2 = scmp.eq.s32.totalorder %s3463_s14, 0  ;;  %p99_p3 = scmp.eq.s32.totalorder %s2750_s15, 5 }
   0x6   : > { %s3514_s19 = scalar_select %p60_p0, %s3459_s13, %s62_s18  }
   0x7   : > { %p71_p4 = por %p70_p2, %p69_p1  ;;  %p3516_p5 = por %p99_p3, %p69_p1 }
   0x8   : > { %p2753_p6 = scmp.ge.s32.totalorder %s3463_s14, 6 }
   0xa   : > { %127 = sbr.rel (%p2753_p6) target bundleno = 147 (0x93), region = 24 }
   0xf   : > { %130 = sbr.rel (!%p71_p4) target bundleno = 147 (0x93), region = 28  ;;  %s132_s21 = sand.u32 (%p71_p4), 1, %s3459_s13  }
  0x10   : > { %s3029_s22 = sshll.u32 (%p71_p4), %s3463_s14, 4  ;;  %s2754_s23 = sshll.u32 (%p71_p4), %s132_s21, 11 }
  0x11   : > { %s3526_s26 = scalar_lea.vmem (%p71_p4), %s4422_s2, %s3029_s22  ;;  %s3531_s27 = scalar_lea.vmem (%p71_p4), [#allocation2], %s2754_s23 }
  0x12   : > { %v150_v0 = vld [vmem:[%s3526_s26] sm:$0xff] (%p71_p4)  ;;  %v152_v1 = vld [vmem:[%s3526_s26 + $0x8] sm:$0xff] (%p71_p4) }
  0x13   : > { %v154_v2 = vld [vmem:[%s3526_s26 + $0x60] sm:$0xff] (%p71_p4)  ;;  %151 = vst [vmem:[%s3531_s27] sm:$0xff] (%p71_p4), %v150_v0  ;;  %153 = vst [vmem:[%s3531_s27 + $0x8] sm:$0xff] (%p71_p4), %v152_v1  ;;  %v156_v3 = vld [vmem:[%s3526_s26 + $0x68] sm:$0xff] (%p71_p4) }
  0x14   : > { %155 = vst [vmem:[%s3531_s27 + $0x10] sm:$0xff] %v154_v2  ;;  %v158_v4 = vld [vmem:[%s3526_s26 + $0xc0] sm:$0xff]  ;;  %v160_v5 = vld [vmem:[%s3526_s26 + $0xc8] sm:$0xff]  ;;  %157 = vst [vmem:[%s3531_s27 + $0x18] sm:$0xff] %v156_v3 }
  0x15   : > { %159 = vst [vmem:[%s3531_s27 + $0x20] sm:$0xff] %v158_v4  ;;  %161 = vst [vmem:[%s3531_s27 + $0x28] sm:$0xff] %v160_v5  ;;  %v162_v6 = vld [vmem:[%s3526_s26 + $0x120] sm:$0xff]  ;;  %v164_v7 = vld [vmem:[%s3526_s26 + $0x128] sm:$0xff] }
  0x16   : > { %v166_v8 = vld [vmem:[%s3526_s26 + $0x180] sm:$0xff]  ;;  %163 = vst [vmem:[%s3531_s27 + $0x30] sm:$0xff] %v162_v6  ;;  %165 = vst [vmem:[%s3531_s27 + $0x38] sm:$0xff] %v164_v7  ;;  %v168_v9 = vld [vmem:[%s3526_s26 + $0x188] sm:$0xff] }
  0x17   : > { %167 = vst [vmem:[%s3531_s27 + $0x40] sm:$0xff] %v166_v8  ;;  %v170_v10 = vld [vmem:[%s3526_s26 + $0x1e0] sm:$0xff]  ;;  %v172_v11 = vld [vmem:[%s3526_s26 + $0x1e8] sm:$0xff]  ;;  %169 = vst [vmem:[%s3531_s27 + $0x48] sm:$0xff] %v168_v9 }
  0x18   : > { %171 = vst [vmem:[%s3531_s27 + $0x50] sm:$0xff] %v170_v10  ;;  %173 = vst [vmem:[%s3531_s27 + $0x58] sm:$0xff] %v172_v11  ;;  %v174_v12 = vld [vmem:[%s3526_s26 + $0x240] sm:$0xff]  ;;  %v176_v13 = vld [vmem:[%s3526_s26 + $0x248] sm:$0xff] }
  0x19   : > { %v178_v14 = vld [vmem:[%s3526_s26 + $0x2a0] sm:$0xff]  ;;  %175 = vst [vmem:[%s3531_s27 + $0x60] sm:$0xff] %v174_v12  ;;  %177 = vst [vmem:[%s3531_s27 + $0x68] sm:$0xff] %v176_v13  ;;  %v180_v15 = vld [vmem:[%s3526_s26 + $0x2a8] sm:$0xff] }
  0x1a   : > { %179 = vst [vmem:[%s3531_s27 + $0x70] sm:$0xff] %v178_v14  ;;  %v182_v16 = vld [vmem:[%s3526_s26 + $0x300] sm:$0xff]  ;;  %v184_v17 = vld [vmem:[%s3526_s26 + $0x308] sm:$0xff]  ;;  %181 = vst [vmem:[%s3531_s27 + $0x78] sm:$0xff] %v180_v15 }
  0x1b   : > { %183 = vst [vmem:[%s3531_s27 + $0x80] sm:$0xff] %v182_v16  ;;  %185 = vst [vmem:[%s3531_s27 + $0x88] sm:$0xff] %v184_v17  ;;  %v186_v18 = vld [vmem:[%s3526_s26 + $0x360] sm:$0xff]  ;;  %v188_v19 = vld [vmem:[%s3526_s26 + $0x368] sm:$0xff] }
  0x1c   : > { %v190_v20 = vld [vmem:[%s3526_s26 + $0x3c0] sm:$0xff]  ;;  %187 = vst [vmem:[%s3531_s27 + $0x90] sm:$0xff] %v186_v18  ;;  %189 = vst [vmem:[%s3531_s27 + $0x98] sm:$0xff] %v188_v19  ;;  %v192_v21 = vld [vmem:[%s3526_s26 + $0x3c8] sm:$0xff] }
  0x1d   : > { %191 = vst [vmem:[%s3531_s27 + $0xa0] sm:$0xff] %v190_v20  ;;  %v194_v22 = vld [vmem:[%s3526_s26 + $0x420] sm:$0xff]  ;;  %v196_v23 = vld [vmem:[%s3526_s26 + $0x428] sm:$0xff]  ;;  %193 = vst [vmem:[%s3531_s27 + $0xa8] sm:$0xff] %v192_v21 }
  0x1e   : > { %195 = vst [vmem:[%s3531_s27 + $0xb0] sm:$0xff] %v194_v22  ;;  %197 = vst [vmem:[%s3531_s27 + $0xb8] sm:$0xff] %v196_v23  ;;  %v198_v24 = vld [vmem:[%s3526_s26 + $0x480] sm:$0xff]  ;;  %v200_v25 = vld [vmem:[%s3526_s26 + $0x488] sm:$0xff] }
  0x1f   : > { %v202_v26 = vld [vmem:[%s3526_s26 + $0x4e0] sm:$0xff]  ;;  %199 = vst [vmem:[%s3531_s27 + $0xc0] sm:$0xff] %v198_v24  ;;  %201 = vst [vmem:[%s3531_s27 + $0xc8] sm:$0xff] %v200_v25  ;;  %v204_v27 = vld [vmem:[%s3526_s26 + $0x4e8] sm:$0xff] }
  0x20   : > { %203 = vst [vmem:[%s3531_s27 + $0xd0] sm:$0xff] %v202_v26  ;;  %v206_v28 = vld [vmem:[%s3526_s26 + $0x540] sm:$0xff]  ;;  %v208_v29 = vld [vmem:[%s3526_s26 + $0x548] sm:$0xff]  ;;  %205 = vst [vmem:[%s3531_s27 + $0xd8] sm:$0xff] %v204_v27 }
  0x21   : > { %207 = vst [vmem:[%s3531_s27 + $0xe0] sm:$0xff] %v206_v28  ;;  %209 = vst [vmem:[%s3531_s27 + $0xe8] sm:$0xff] %v208_v29  ;;  %v210_v30 = vld [vmem:[%s3526_s26 + $0x5a0] sm:$0xff]  ;;  %v212_v31 = vld [vmem:[%s3526_s26 + $0x5a8] sm:$0xff] }
  0x22   : > { %v214_v32 = vld [vmem:[%s3526_s26 + $0x600] sm:$0xff]  ;;  %211 = vst [vmem:[%s3531_s27 + $0xf0] sm:$0xff] %v210_v30  ;;  %213 = vst [vmem:[%s3531_s27 + $0xf8] sm:$0xff] %v212_v31  ;;  %v216_v33 = vld [vmem:[%s3526_s26 + $0x608] sm:$0xff] }
  0x23   : > { %215 = vst [vmem:[%s3531_s27 + $0x100] sm:$0xff] %v214_v32  ;;  %v218_v34 = vld [vmem:[%s3526_s26 + $0x660] sm:$0xff]  ;;  %v220_v35 = vld [vmem:[%s3526_s26 + $0x668] sm:$0xff]  ;;  %217 = vst [vmem:[%s3531_s27 + $0x108] sm:$0xff] %v216_v33 }
  0x24   : > { %219 = vst [vmem:[%s3531_s27 + $0x110] sm:$0xff] %v218_v34  ;;  %221 = vst [vmem:[%s3531_s27 + $0x118] sm:$0xff] %v220_v35  ;;  %v222_v36 = vld [vmem:[%s3526_s26 + $0x6c0] sm:$0xff]  ;;  %v224_v37 = vld [vmem:[%s3526_s26 + $0x6c8] sm:$0xff] }
  0x25   : > { %v226_v38 = vld [vmem:[%s3526_s26 + $0x720] sm:$0xff]  ;;  %223 = vst [vmem:[%s3531_s27 + $0x120] sm:$0xff] %v222_v36  ;;  %225 = vst [vmem:[%s3531_s27 + $0x128] sm:$0xff] %v224_v37  ;;  %v228_v39 = vld [vmem:[%s3526_s26 + $0x728] sm:$0xff] }
  0x26   : > { %227 = vst [vmem:[%s3531_s27 + $0x130] sm:$0xff] %v226_v38  ;;  %v230_v40 = vld [vmem:[%s3526_s26 + $0x780] sm:$0xff]  ;;  %v232_v41 = vld [vmem:[%s3526_s26 + $0x788] sm:$0xff]  ;;  %229 = vst [vmem:[%s3531_s27 + $0x138] sm:$0xff] %v228_v39 }
  0x27   : > { %231 = vst [vmem:[%s3531_s27 + $0x140] sm:$0xff] %v230_v40  ;;  %233 = vst [vmem:[%s3531_s27 + $0x148] sm:$0xff] %v232_v41  ;;  %v234_v42 = vld [vmem:[%s3526_s26 + $0x7e0] sm:$0xff]  ;;  %v236_v43 = vld [vmem:[%s3526_s26 + $0x7e8] sm:$0xff] }
  0x28   : > { %v238_v44 = vld [vmem:[%s3526_s26 + $0x840] sm:$0xff]  ;;  %235 = vst [vmem:[%s3531_s27 + $0x150] sm:$0xff] %v234_v42  ;;  %237 = vst [vmem:[%s3531_s27 + $0x158] sm:$0xff] %v236_v43  ;;  %v240_v45 = vld [vmem:[%s3526_s26 + $0x848] sm:$0xff] }
  0x29   : > { %239 = vst [vmem:[%s3531_s27 + $0x160] sm:$0xff] %v238_v44  ;;  %v242_v46 = vld [vmem:[%s3526_s26 + $0x8a0] sm:$0xff]  ;;  %v244_v47 = vld [vmem:[%s3526_s26 + $0x8a8] sm:$0xff]  ;;  %241 = vst [vmem:[%s3531_s27 + $0x168] sm:$0xff] %v240_v45 }
  0x2a   : > { %243 = vst [vmem:[%s3531_s27 + $0x170] sm:$0xff] %v242_v46  ;;  %245 = vst [vmem:[%s3531_s27 + $0x178] sm:$0xff] %v244_v47  ;;  %v246_v48 = vld [vmem:[%s3526_s26 + $0x900] sm:$0xff]  ;;  %v248_v49 = vld [vmem:[%s3526_s26 + $0x908] sm:$0xff] }
  0x2b   : > { %v250_v50 = vld [vmem:[%s3526_s26 + $0x960] sm:$0xff]  ;;  %247 = vst [vmem:[%s3531_s27 + $0x180] sm:$0xff] %v246_v48  ;;  %249 = vst [vmem:[%s3531_s27 + $0x188] sm:$0xff] %v248_v49  ;;  %v252_v51 = vld [vmem:[%s3526_s26 + $0x968] sm:$0xff] }
  0x2c   : > { %251 = vst [vmem:[%s3531_s27 + $0x190] sm:$0xff] %v250_v50  ;;  %v254_v52 = vld [vmem:[%s3526_s26 + $0x9c0] sm:$0xff]  ;;  %v256_v53 = vld [vmem:[%s3526_s26 + $0x9c8] sm:$0xff]  ;;  %253 = vst [vmem:[%s3531_s27 + $0x198] sm:$0xff] %v252_v51 }
  0x2d   : > { %255 = vst [vmem:[%s3531_s27 + $0x1a0] sm:$0xff] %v254_v52  ;;  %257 = vst [vmem:[%s3531_s27 + $0x1a8] sm:$0xff] %v256_v53  ;;  %v258_v54 = vld [vmem:[%s3526_s26 + $0xa20] sm:$0xff]  ;;  %v260_v55 = vld [vmem:[%s3526_s26 + $0xa28] sm:$0xff] }
  0x2e   : > { %v262_v56 = vld [vmem:[%s3526_s26 + $0xa80] sm:$0xff]  ;;  %259 = vst [vmem:[%s3531_s27 + $0x1b0] sm:$0xff] %v258_v54  ;;  %261 = vst [vmem:[%s3531_s27 + $0x1b8] sm:$0xff] %v260_v55  ;;  %v264_v57 = vld [vmem:[%s3526_s26 + $0xa88] sm:$0xff] }
  0x2f   : > { %263 = vst [vmem:[%s3531_s27 + $0x1c0] sm:$0xff] %v262_v56  ;;  %v266_v58 = vld [vmem:[%s3526_s26 + $0xae0] sm:$0xff]  ;;  %v268_v59 = vld [vmem:[%s3526_s26 + $0xae8] sm:$0xff]  ;;  %265 = vst [vmem:[%s3531_s27 + $0x1c8] sm:$0xff] %v264_v57 }
  0x30   : > { %267 = vst [vmem:[%s3531_s27 + $0x1d0] sm:$0xff] %v266_v58  ;;  %269 = vst [vmem:[%s3531_s27 + $0x1d8] sm:$0xff] %v268_v59  ;;  %v270_v60 = vld [vmem:[%s3526_s26 + $0xb40] sm:$0xff]  ;;  %v272_v61 = vld [vmem:[%s3526_s26 + $0xb48] sm:$0xff] }
  0x31   : > { %v274_v62 = vld [vmem:[%s3526_s26 + $0xba0] sm:$0xff]  ;;  %271 = vst [vmem:[%s3531_s27 + $0x1e0] sm:$0xff] %v270_v60  ;;  %273 = vst [vmem:[%s3531_s27 + $0x1e8] sm:$0xff] %v272_v61  ;;  %v276_v63 = vld [vmem:[%s3526_s26 + $0xba8] sm:$0xff] }
  0x32   : > { %275 = vst [vmem:[%s3531_s27 + $0x1f0] sm:$0xff] %v274_v62  ;;  %v278_v0 = vld [vmem:[%s3526_s26 + $0xc00] sm:$0xff]  ;;  %v280_v1 = vld [vmem:[%s3526_s26 + $0xc08] sm:$0xff]  ;;  %277 = vst [vmem:[%s3531_s27 + $0x1f8] sm:$0xff] %v276_v63 }
  0x33   : > { %279 = vst [vmem:[%s3531_s27 + $0x200] sm:$0xff] %v278_v0  ;;  %281 = vst [vmem:[%s3531_s27 + $0x208] sm:$0xff] %v280_v1  ;;  %v282_v2 = vld [vmem:[%s3526_s26 + $0xc60] sm:$0xff]  ;;  %v284_v3 = vld [vmem:[%s3526_s26 + $0xc68] sm:$0xff] }
  0x34   : > { %v286_v4 = vld [vmem:[%s3526_s26 + $0xcc0] sm:$0xff]  ;;  %283 = vst [vmem:[%s3531_s27 + $0x210] sm:$0xff] %v282_v2  ;;  %285 = vst [vmem:[%s3531_s27 + $0x218] sm:$0xff] %v284_v3  ;;  %v288_v5 = vld [vmem:[%s3526_s26 + $0xcc8] sm:$0xff] }
  0x35   : > { %287 = vst [vmem:[%s3531_s27 + $0x220] sm:$0xff] %v286_v4  ;;  %v290_v6 = vld [vmem:[%s3526_s26 + $0xd20] sm:$0xff]  ;;  %v292_v7 = vld [vmem:[%s3526_s26 + $0xd28] sm:$0xff]  ;;  %289 = vst [vmem:[%s3531_s27 + $0x228] sm:$0xff] %v288_v5 }
  0x36   : > { %291 = vst [vmem:[%s3531_s27 + $0x230] sm:$0xff] %v290_v6  ;;  %293 = vst [vmem:[%s3531_s27 + $0x238] sm:$0xff] %v292_v7  ;;  %v294_v8 = vld [vmem:[%s3526_s26 + $0xd80] sm:$0xff]  ;;  %v296_v9 = vld [vmem:[%s3526_s26 + $0xd88] sm:$0xff] }
  0x37   : > { %v298_v10 = vld [vmem:[%s3526_s26 + $0xde0] sm:$0xff]  ;;  %295 = vst [vmem:[%s3531_s27 + $0x240] sm:$0xff] %v294_v8  ;;  %297 = vst [vmem:[%s3531_s27 + $0x248] sm:$0xff] %v296_v9  ;;  %v300_v11 = vld [vmem:[%s3526_s26 + $0xde8] sm:$0xff] }
  0x38   : > { %299 = vst [vmem:[%s3531_s27 + $0x250] sm:$0xff] %v298_v10  ;;  %v302_v12 = vld [vmem:[%s3526_s26 + $0xe40] sm:$0xff]  ;;  %v304_v13 = vld [vmem:[%s3526_s26 + $0xe48] sm:$0xff]  ;;  %301 = vst [vmem:[%s3531_s27 + $0x258] sm:$0xff] %v300_v11 }
  0x39   : > { %303 = vst [vmem:[%s3531_s27 + $0x260] sm:$0xff] %v302_v12  ;;  %305 = vst [vmem:[%s3531_s27 + $0x268] sm:$0xff] %v304_v13  ;;  %v306_v14 = vld [vmem:[%s3526_s26 + $0xea0] sm:$0xff]  ;;  %v308_v15 = vld [vmem:[%s3526_s26 + $0xea8] sm:$0xff] }
  0x3a   : > { %v310_v16 = vld [vmem:[%s3526_s26 + $0xf00] sm:$0xff]  ;;  %307 = vst [vmem:[%s3531_s27 + $0x270] sm:$0xff] %v306_v14  ;;  %309 = vst [vmem:[%s3531_s27 + $0x278] sm:$0xff] %v308_v15  ;;  %v312_v17 = vld [vmem:[%s3526_s26 + $0xf08] sm:$0xff] }
  0x3b   : > { %311 = vst [vmem:[%s3531_s27 + $0x280] sm:$0xff] %v310_v16  ;;  %v314_v18 = vld [vmem:[%s3526_s26 + $0xf60] sm:$0xff]  ;;  %v316_v19 = vld [vmem:[%s3526_s26 + $0xf68] sm:$0xff]  ;;  %313 = vst [vmem:[%s3531_s27 + $0x288] sm:$0xff] %v312_v17 }
  0x3c   : > { %315 = vst [vmem:[%s3531_s27 + $0x290] sm:$0xff] %v314_v18  ;;  %317 = vst [vmem:[%s3531_s27 + $0x298] sm:$0xff] %v316_v19  ;;  %v318_v20 = vld [vmem:[%s3526_s26 + $0xfc0] sm:$0xff]  ;;  %v320_v21 = vld [vmem:[%s3526_s26 + $0xfc8] sm:$0xff] }
  0x3d   : > { %v322_v22 = vld [vmem:[%s3526_s26 + $0x1020] sm:$0xff]  ;;  %319 = vst [vmem:[%s3531_s27 + $0x2a0] sm:$0xff] %v318_v20  ;;  %321 = vst [vmem:[%s3531_s27 + $0x2a8] sm:$0xff] %v320_v21  ;;  %v324_v23 = vld [vmem:[%s3526_s26 + $0x1028] sm:$0xff] }
  0x3e   : > { %323 = vst [vmem:[%s3531_s27 + $0x2b0] sm:$0xff] %v322_v22  ;;  %v326_v24 = vld [vmem:[%s3526_s26 + $0x1080] sm:$0xff]  ;;  %v328_v25 = vld [vmem:[%s3526_s26 + $0x1088] sm:$0xff]  ;;  %325 = vst [vmem:[%s3531_s27 + $0x2b8] sm:$0xff] %v324_v23 }
  0x3f   : > { %327 = vst [vmem:[%s3531_s27 + $0x2c0] sm:$0xff] %v326_v24  ;;  %329 = vst [vmem:[%s3531_s27 + $0x2c8] sm:$0xff] %v328_v25  ;;  %v330_v26 = vld [vmem:[%s3526_s26 + $0x10e0] sm:$0xff]  ;;  %v332_v27 = vld [vmem:[%s3526_s26 + $0x10e8] sm:$0xff] }
  0x40   : > { %v334_v28 = vld [vmem:[%s3526_s26 + $0x1140] sm:$0xff]  ;;  %331 = vst [vmem:[%s3531_s27 + $0x2d0] sm:$0xff] %v330_v26  ;;  %333 = vst [vmem:[%s3531_s27 + $0x2d8] sm:$0xff] %v332_v27  ;;  %v336_v29 = vld [vmem:[%s3526_s26 + $0x1148] sm:$0xff] }
  0x41   : > { %335 = vst [vmem:[%s3531_s27 + $0x2e0] sm:$0xff] %v334_v28  ;;  %v338_v30 = vld [vmem:[%s3526_s26 + $0x11a0] sm:$0xff]  ;;  %v340_v31 = vld [vmem:[%s3526_s26 + $0x11a8] sm:$0xff]  ;;  %337 = vst [vmem:[%s3531_s27 + $0x2e8] sm:$0xff] %v336_v29 }
  0x42   : > { %339 = vst [vmem:[%s3531_s27 + $0x2f0] sm:$0xff] %v338_v30  ;;  %341 = vst [vmem:[%s3531_s27 + $0x2f8] sm:$0xff] %v340_v31  ;;  %v342_v32 = vld [vmem:[%s3526_s26 + $0x1200] sm:$0xff]  ;;  %v344_v33 = vld [vmem:[%s3526_s26 + $0x1208] sm:$0xff] }
  0x43   : > { %v346_v34 = vld [vmem:[%s3526_s26 + $0x1260] sm:$0xff]  ;;  %343 = vst [vmem:[%s3531_s27 + $0x300] sm:$0xff] %v342_v32  ;;  %345 = vst [vmem:[%s3531_s27 + $0x308] sm:$0xff] %v344_v33  ;;  %v348_v35 = vld [vmem:[%s3526_s26 + $0x1268] sm:$0xff] }
  0x44   : > { %347 = vst [vmem:[%s3531_s27 + $0x310] sm:$0xff] %v346_v34  ;;  %v350_v36 = vld [vmem:[%s3526_s26 + $0x12c0] sm:$0xff]  ;;  %v352_v37 = vld [vmem:[%s3526_s26 + $0x12c8] sm:$0xff]  ;;  %349 = vst [vmem:[%s3531_s27 + $0x318] sm:$0xff] %v348_v35 }
  0x45   : > { %351 = vst [vmem:[%s3531_s27 + $0x320] sm:$0xff] %v350_v36  ;;  %353 = vst [vmem:[%s3531_s27 + $0x328] sm:$0xff] %v352_v37  ;;  %v354_v38 = vld [vmem:[%s3526_s26 + $0x1320] sm:$0xff]  ;;  %v356_v39 = vld [vmem:[%s3526_s26 + $0x1328] sm:$0xff] }
  0x46   : > { %v358_v40 = vld [vmem:[%s3526_s26 + $0x1380] sm:$0xff]  ;;  %355 = vst [vmem:[%s3531_s27 + $0x330] sm:$0xff] %v354_v38  ;;  %357 = vst [vmem:[%s3531_s27 + $0x338] sm:$0xff] %v356_v39  ;;  %v360_v41 = vld [vmem:[%s3526_s26 + $0x1388] sm:$0xff] }
  0x47   : > { %359 = vst [vmem:[%s3531_s27 + $0x340] sm:$0xff] %v358_v40  ;;  %v362_v42 = vld [vmem:[%s3526_s26 + $0x13e0] sm:$0xff]  ;;  %v364_v43 = vld [vmem:[%s3526_s26 + $0x13e8] sm:$0xff]  ;;  %361 = vst [vmem:[%s3531_s27 + $0x348] sm:$0xff] %v360_v41 }
  0x48   : > { %363 = vst [vmem:[%s3531_s27 + $0x350] sm:$0xff] %v362_v42  ;;  %365 = vst [vmem:[%s3531_s27 + $0x358] sm:$0xff] %v364_v43  ;;  %v366_v44 = vld [vmem:[%s3526_s26 + $0x1440] sm:$0xff]  ;;  %v368_v45 = vld [vmem:[%s3526_s26 + $0x1448] sm:$0xff] }
  0x49   : > { %v370_v46 = vld [vmem:[%s3526_s26 + $0x14a0] sm:$0xff]  ;;  %367 = vst [vmem:[%s3531_s27 + $0x360] sm:$0xff] %v366_v44  ;;  %369 = vst [vmem:[%s3531_s27 + $0x368] sm:$0xff] %v368_v45  ;;  %v372_v47 = vld [vmem:[%s3526_s26 + $0x14a8] sm:$0xff] }
  0x4a   : > { %371 = vst [vmem:[%s3531_s27 + $0x370] sm:$0xff] %v370_v46  ;;  %v374_v48 = vld [vmem:[%s3526_s26 + $0x1500] sm:$0xff]  ;;  %v376_v49 = vld [vmem:[%s3526_s26 + $0x1508] sm:$0xff]  ;;  %373 = vst [vmem:[%s3531_s27 + $0x378] sm:$0xff] %v372_v47 }
  0x4b   : > { %375 = vst [vmem:[%s3531_s27 + $0x380] sm:$0xff] %v374_v48  ;;  %377 = vst [vmem:[%s3531_s27 + $0x388] sm:$0xff] %v376_v49  ;;  %v378_v50 = vld [vmem:[%s3526_s26 + $0x1560] sm:$0xff]  ;;  %v380_v51 = vld [vmem:[%s3526_s26 + $0x1568] sm:$0xff] }
  0x4c   : > { %v382_v52 = vld [vmem:[%s3526_s26 + $0x15c0] sm:$0xff]  ;;  %379 = vst [vmem:[%s3531_s27 + $0x390] sm:$0xff] %v378_v50  ;;  %381 = vst [vmem:[%s3531_s27 + $0x398] sm:$0xff] %v380_v51  ;;  %v384_v53 = vld [vmem:[%s3526_s26 + $0x15c8] sm:$0xff] }
  0x4d   : > { %383 = vst [vmem:[%s3531_s27 + $0x3a0] sm:$0xff] %v382_v52  ;;  %v386_v54 = vld [vmem:[%s3526_s26 + $0x1620] sm:$0xff]  ;;  %v388_v55 = vld [vmem:[%s3526_s26 + $0x1628] sm:$0xff]  ;;  %385 = vst [vmem:[%s3531_s27 + $0x3a8] sm:$0xff] %v384_v53 }
  0x4e   : > { %387 = vst [vmem:[%s3531_s27 + $0x3b0] sm:$0xff] %v386_v54  ;;  %389 = vst [vmem:[%s3531_s27 + $0x3b8] sm:$0xff] %v388_v55  ;;  %v390_v56 = vld [vmem:[%s3526_s26 + $0x1680] sm:$0xff]  ;;  %v392_v57 = vld [vmem:[%s3526_s26 + $0x1688] sm:$0xff] }
  0x4f   : > { %v394_v58 = vld [vmem:[%s3526_s26 + $0x16e0] sm:$0xff]  ;;  %391 = vst [vmem:[%s3531_s27 + $0x3c0] sm:$0xff] %v390_v56  ;;  %393 = vst [vmem:[%s3531_s27 + $0x3c8] sm:$0xff] %v392_v57  ;;  %v396_v59 = vld [vmem:[%s3526_s26 + $0x16e8] sm:$0xff] }
  0x50   : > { %395 = vst [vmem:[%s3531_s27 + $0x3d0] sm:$0xff] %v394_v58  ;;  %v398_v60 = vld [vmem:[%s3526_s26 + $0x1740] sm:$0xff]  ;;  %v400_v61 = vld [vmem:[%s3526_s26 + $0x1748] sm:$0xff]  ;;  %397 = vst [vmem:[%s3531_s27 + $0x3d8] sm:$0xff] %v396_v59 }
  0x51   : > { %399 = vst [vmem:[%s3531_s27 + $0x3e0] sm:$0xff] %v398_v60  ;;  %401 = vst [vmem:[%s3531_s27 + $0x3e8] sm:$0xff] %v400_v61  ;;  %v402_v62 = vld [vmem:[%s3526_s26 + $0x17a0] sm:$0xff]  ;;  %v404_v63 = vld [vmem:[%s3526_s26 + $0x17a8] sm:$0xff] }
  0x52   : > { %v406_v0 = vld [vmem:[%s3526_s26 + $0x1800] sm:$0xff]  ;;  %403 = vst [vmem:[%s3531_s27 + $0x3f0] sm:$0xff] %v402_v62  ;;  %405 = vst [vmem:[%s3531_s27 + $0x3f8] sm:$0xff] %v404_v63  ;;  %v408_v1 = vld [vmem:[%s3526_s26 + $0x1808] sm:$0xff] }
  0x53   : > { %407 = vst [vmem:[%s3531_s27 + $0x400] sm:$0xff] %v406_v0  ;;  %v410_v2 = vld [vmem:[%s3526_s26 + $0x1860] sm:$0xff]  ;;  %v412_v3 = vld [vmem:[%s3526_s26 + $0x1868] sm:$0xff]  ;;  %409 = vst [vmem:[%s3531_s27 + $0x408] sm:$0xff] %v408_v1 }
  0x54   : > { %411 = vst [vmem:[%s3531_s27 + $0x410] sm:$0xff] %v410_v2  ;;  %413 = vst [vmem:[%s3531_s27 + $0x418] sm:$0xff] %v412_v3  ;;  %v414_v4 = vld [vmem:[%s3526_s26 + $0x18c0] sm:$0xff]  ;;  %v416_v5 = vld [vmem:[%s3526_s26 + $0x18c8] sm:$0xff] }
  0x55   : > { %v418_v6 = vld [vmem:[%s3526_s26 + $0x1920] sm:$0xff]  ;;  %415 = vst [vmem:[%s3531_s27 + $0x420] sm:$0xff] %v414_v4  ;;  %417 = vst [vmem:[%s3531_s27 + $0x428] sm:$0xff] %v416_v5  ;;  %v420_v7 = vld [vmem:[%s3526_s26 + $0x1928] sm:$0xff] }
  0x56   : > { %419 = vst [vmem:[%s3531_s27 + $0x430] sm:$0xff] %v418_v6  ;;  %v422_v8 = vld [vmem:[%s3526_s26 + $0x1980] sm:$0xff]  ;;  %v424_v9 = vld [vmem:[%s3526_s26 + $0x1988] sm:$0xff]  ;;  %421 = vst [vmem:[%s3531_s27 + $0x438] sm:$0xff] %v420_v7 }
  0x57   : > { %423 = vst [vmem:[%s3531_s27 + $0x440] sm:$0xff] %v422_v8  ;;  %425 = vst [vmem:[%s3531_s27 + $0x448] sm:$0xff] %v424_v9  ;;  %v426_v10 = vld [vmem:[%s3526_s26 + $0x19e0] sm:$0xff]  ;;  %v428_v11 = vld [vmem:[%s3526_s26 + $0x19e8] sm:$0xff] }
  0x58   : > { %v430_v12 = vld [vmem:[%s3526_s26 + $0x1a40] sm:$0xff]  ;;  %427 = vst [vmem:[%s3531_s27 + $0x450] sm:$0xff] %v426_v10  ;;  %429 = vst [vmem:[%s3531_s27 + $0x458] sm:$0xff] %v428_v11  ;;  %v432_v13 = vld [vmem:[%s3526_s26 + $0x1a48] sm:$0xff] }
  0x59   : > { %431 = vst [vmem:[%s3531_s27 + $0x460] sm:$0xff] %v430_v12  ;;  %v434_v14 = vld [vmem:[%s3526_s26 + $0x1aa0] sm:$0xff]  ;;  %v436_v15 = vld [vmem:[%s3526_s26 + $0x1aa8] sm:$0xff]  ;;  %433 = vst [vmem:[%s3531_s27 + $0x468] sm:$0xff] %v432_v13 }
  0x5a   : > { %435 = vst [vmem:[%s3531_s27 + $0x470] sm:$0xff] %v434_v14  ;;  %437 = vst [vmem:[%s3531_s27 + $0x478] sm:$0xff] %v436_v15  ;;  %v438_v16 = vld [vmem:[%s3526_s26 + $0x1b00] sm:$0xff]  ;;  %v440_v17 = vld [vmem:[%s3526_s26 + $0x1b08] sm:$0xff] }
  0x5b   : > { %v442_v18 = vld [vmem:[%s3526_s26 + $0x1b60] sm:$0xff]  ;;  %439 = vst [vmem:[%s3531_s27 + $0x480] sm:$0xff] %v438_v16  ;;  %441 = vst [vmem:[%s3531_s27 + $0x488] sm:$0xff] %v440_v17  ;;  %v444_v19 = vld [vmem:[%s3526_s26 + $0x1b68] sm:$0xff] }
  0x5c   : > { %443 = vst [vmem:[%s3531_s27 + $0x490] sm:$0xff] %v442_v18  ;;  %v446_v20 = vld [vmem:[%s3526_s26 + $0x1bc0] sm:$0xff]  ;;  %v448_v21 = vld [vmem:[%s3526_s26 + $0x1bc8] sm:$0xff]  ;;  %445 = vst [vmem:[%s3531_s27 + $0x498] sm:$0xff] %v444_v19 }
  0x5d   : > { %447 = vst [vmem:[%s3531_s27 + $0x4a0] sm:$0xff] %v446_v20  ;;  %449 = vst [vmem:[%s3531_s27 + $0x4a8] sm:$0xff] %v448_v21  ;;  %v450_v22 = vld [vmem:[%s3526_s26 + $0x1c20] sm:$0xff]  ;;  %v452_v23 = vld [vmem:[%s3526_s26 + $0x1c28] sm:$0xff] }
  0x5e   : > { %v454_v24 = vld [vmem:[%s3526_s26 + $0x1c80] sm:$0xff]  ;;  %451 = vst [vmem:[%s3531_s27 + $0x4b0] sm:$0xff] %v450_v22  ;;  %453 = vst [vmem:[%s3531_s27 + $0x4b8] sm:$0xff] %v452_v23  ;;  %v456_v25 = vld [vmem:[%s3526_s26 + $0x1c88] sm:$0xff] }
  0x5f   : > { %455 = vst [vmem:[%s3531_s27 + $0x4c0] sm:$0xff] %v454_v24  ;;  %v458_v26 = vld [vmem:[%s3526_s26 + $0x1ce0] sm:$0xff]  ;;  %v460_v27 = vld [vmem:[%s3526_s26 + $0x1ce8] sm:$0xff]  ;;  %457 = vst [vmem:[%s3531_s27 + $0x4c8] sm:$0xff] %v456_v25 }
  0x60   : > { %459 = vst [vmem:[%s3531_s27 + $0x4d0] sm:$0xff] %v458_v26  ;;  %461 = vst [vmem:[%s3531_s27 + $0x4d8] sm:$0xff] %v460_v27  ;;  %v462_v28 = vld [vmem:[%s3526_s26 + $0x1d40] sm:$0xff]  ;;  %v464_v29 = vld [vmem:[%s3526_s26 + $0x1d48] sm:$0xff] }
  0x61   : > { %v466_v30 = vld [vmem:[%s3526_s26 + $0x1da0] sm:$0xff]  ;;  %463 = vst [vmem:[%s3531_s27 + $0x4e0] sm:$0xff] %v462_v28  ;;  %465 = vst [vmem:[%s3531_s27 + $0x4e8] sm:$0xff] %v464_v29  ;;  %v468_v31 = vld [vmem:[%s3526_s26 + $0x1da8] sm:$0xff] }
  0x62   : > { %467 = vst [vmem:[%s3531_s27 + $0x4f0] sm:$0xff] %v466_v30  ;;  %v470_v32 = vld [vmem:[%s3526_s26 + $0x1e00] sm:$0xff]  ;;  %v472_v33 = vld [vmem:[%s3526_s26 + $0x1e08] sm:$0xff]  ;;  %469 = vst [vmem:[%s3531_s27 + $0x4f8] sm:$0xff] %v468_v31 }
  0x63   : > { %471 = vst [vmem:[%s3531_s27 + $0x500] sm:$0xff] %v470_v32  ;;  %473 = vst [vmem:[%s3531_s27 + $0x508] sm:$0xff] %v472_v33  ;;  %v474_v34 = vld [vmem:[%s3526_s26 + $0x1e60] sm:$0xff]  ;;  %v476_v35 = vld [vmem:[%s3526_s26 + $0x1e68] sm:$0xff] }
  0x64   : > { %v478_v36 = vld [vmem:[%s3526_s26 + $0x1ec0] sm:$0xff]  ;;  %475 = vst [vmem:[%s3531_s27 + $0x510] sm:$0xff] %v474_v34  ;;  %477 = vst [vmem:[%s3531_s27 + $0x518] sm:$0xff] %v476_v35  ;;  %v480_v37 = vld [vmem:[%s3526_s26 + $0x1ec8] sm:$0xff] }
  0x65   : > { %479 = vst [vmem:[%s3531_s27 + $0x520] sm:$0xff] %v478_v36  ;;  %v482_v38 = vld [vmem:[%s3526_s26 + $0x1f20] sm:$0xff]  ;;  %v484_v39 = vld [vmem:[%s3526_s26 + $0x1f28] sm:$0xff]  ;;  %481 = vst [vmem:[%s3531_s27 + $0x528] sm:$0xff] %v480_v37 }
  0x66   : > { %483 = vst [vmem:[%s3531_s27 + $0x530] sm:$0xff] %v482_v38  ;;  %485 = vst [vmem:[%s3531_s27 + $0x538] sm:$0xff] %v484_v39  ;;  %v486_v40 = vld [vmem:[%s3526_s26 + $0x1f80] sm:$0xff]  ;;  %v488_v41 = vld [vmem:[%s3526_s26 + $0x1f88] sm:$0xff] }
  0x67   : > { %v490_v42 = vld [vmem:[%s3526_s26 + $0x1fe0] sm:$0xff]  ;;  %487 = vst [vmem:[%s3531_s27 + $0x540] sm:$0xff] %v486_v40  ;;  %489 = vst [vmem:[%s3531_s27 + $0x548] sm:$0xff] %v488_v41  ;;  %v492_v43 = vld [vmem:[%s3526_s26 + $0x1fe8] sm:$0xff] }
  0x68   : > { %491 = vst [vmem:[%s3531_s27 + $0x550] sm:$0xff] %v490_v42  ;;  %v494_v44 = vld [vmem:[%s3526_s26 + $0x2040] sm:$0xff]  ;;  %v496_v45 = vld [vmem:[%s3526_s26 + $0x2048] sm:$0xff]  ;;  %493 = vst [vmem:[%s3531_s27 + $0x558] sm:$0xff] %v492_v43 }
  0x69   : > { %495 = vst [vmem:[%s3531_s27 + $0x560] sm:$0xff] %v494_v44  ;;  %497 = vst [vmem:[%s3531_s27 + $0x568] sm:$0xff] %v496_v45  ;;  %v498_v46 = vld [vmem:[%s3526_s26 + $0x20a0] sm:$0xff]  ;;  %v500_v47 = vld [vmem:[%s3526_s26 + $0x20a8] sm:$0xff] }
  0x6a   : > { %v502_v48 = vld [vmem:[%s3526_s26 + $0x2100] sm:$0xff]  ;;  %499 = vst [vmem:[%s3531_s27 + $0x570] sm:$0xff] %v498_v46  ;;  %501 = vst [vmem:[%s3531_s27 + $0x578] sm:$0xff] %v500_v47  ;;  %v504_v49 = vld [vmem:[%s3526_s26 + $0x2108] sm:$0xff] }
  0x6b   : > { %503 = vst [vmem:[%s3531_s27 + $0x580] sm:$0xff] %v502_v48  ;;  %v506_v50 = vld [vmem:[%s3526_s26 + $0x2160] sm:$0xff]  ;;  %v508_v51 = vld [vmem:[%s3526_s26 + $0x2168] sm:$0xff]  ;;  %505 = vst [vmem:[%s3531_s27 + $0x588] sm:$0xff] %v504_v49 }
  0x6c   : > { %507 = vst [vmem:[%s3531_s27 + $0x590] sm:$0xff] %v506_v50  ;;  %509 = vst [vmem:[%s3531_s27 + $0x598] sm:$0xff] %v508_v51  ;;  %v510_v52 = vld [vmem:[%s3526_s26 + $0x21c0] sm:$0xff]  ;;  %v512_v53 = vld [vmem:[%s3526_s26 + $0x21c8] sm:$0xff] }
  0x6d   : > { %v514_v54 = vld [vmem:[%s3526_s26 + $0x2220] sm:$0xff]  ;;  %511 = vst [vmem:[%s3531_s27 + $0x5a0] sm:$0xff] %v510_v52  ;;  %513 = vst [vmem:[%s3531_s27 + $0x5a8] sm:$0xff] %v512_v53  ;;  %v516_v55 = vld [vmem:[%s3526_s26 + $0x2228] sm:$0xff] }
  0x6e   : > { %515 = vst [vmem:[%s3531_s27 + $0x5b0] sm:$0xff] %v514_v54  ;;  %v518_v56 = vld [vmem:[%s3526_s26 + $0x2280] sm:$0xff]  ;;  %v520_v57 = vld [vmem:[%s3526_s26 + $0x2288] sm:$0xff]  ;;  %517 = vst [vmem:[%s3531_s27 + $0x5b8] sm:$0xff] %v516_v55 }
  0x6f   : > { %519 = vst [vmem:[%s3531_s27 + $0x5c0] sm:$0xff] %v518_v56  ;;  %521 = vst [vmem:[%s3531_s27 + $0x5c8] sm:$0xff] %v520_v57  ;;  %v522_v58 = vld [vmem:[%s3526_s26 + $0x22e0] sm:$0xff]  ;;  %v524_v59 = vld [vmem:[%s3526_s26 + $0x22e8] sm:$0xff] }
  0x70   : > { %v526_v60 = vld [vmem:[%s3526_s26 + $0x2340] sm:$0xff]  ;;  %523 = vst [vmem:[%s3531_s27 + $0x5d0] sm:$0xff] %v522_v58  ;;  %525 = vst [vmem:[%s3531_s27 + $0x5d8] sm:$0xff] %v524_v59  ;;  %v528_v61 = vld [vmem:[%s3526_s26 + $0x2348] sm:$0xff] }
  0x71   : > { %527 = vst [vmem:[%s3531_s27 + $0x5e0] sm:$0xff] %v526_v60  ;;  %v530_v62 = vld [vmem:[%s3526_s26 + $0x23a0] sm:$0xff]  ;;  %v532_v63 = vld [vmem:[%s3526_s26 + $0x23a8] sm:$0xff]  ;;  %529 = vst [vmem:[%s3531_s27 + $0x5e8] sm:$0xff] %v528_v61 }
  0x72   : > { %531 = vst [vmem:[%s3531_s27 + $0x5f0] sm:$0xff] %v530_v62  ;;  %533 = vst [vmem:[%s3531_s27 + $0x5f8] sm:$0xff] %v532_v63  ;;  %v534_v0 = vld [vmem:[%s3526_s26 + $0x2400] sm:$0xff]  ;;  %v536_v1 = vld [vmem:[%s3526_s26 + $0x2408] sm:$0xff] }
  0x73   : > { %v538_v2 = vld [vmem:[%s3526_s26 + $0x2460] sm:$0xff]  ;;  %535 = vst [vmem:[%s3531_s27 + $0x600] sm:$0xff] %v534_v0  ;;  %537 = vst [vmem:[%s3531_s27 + $0x608] sm:$0xff] %v536_v1  ;;  %v540_v3 = vld [vmem:[%s3526_s26 + $0x2468] sm:$0xff] }
  0x74   : > { %539 = vst [vmem:[%s3531_s27 + $0x610] sm:$0xff] %v538_v2  ;;  %v542_v4 = vld [vmem:[%s3526_s26 + $0x24c0] sm:$0xff]  ;;  %v544_v5 = vld [vmem:[%s3526_s26 + $0x24c8] sm:$0xff]  ;;  %541 = vst [vmem:[%s3531_s27 + $0x618] sm:$0xff] %v540_v3 }
  0x75   : > { %543 = vst [vmem:[%s3531_s27 + $0x620] sm:$0xff] %v542_v4  ;;  %545 = vst [vmem:[%s3531_s27 + $0x628] sm:$0xff] %v544_v5  ;;  %v546_v6 = vld [vmem:[%s3526_s26 + $0x2520] sm:$0xff]  ;;  %v548_v7 = vld [vmem:[%s3526_s26 + $0x2528] sm:$0xff] }
  0x76   : > { %v550_v8 = vld [vmem:[%s3526_s26 + $0x2580] sm:$0xff]  ;;  %547 = vst [vmem:[%s3531_s27 + $0x630] sm:$0xff] %v546_v6  ;;  %549 = vst [vmem:[%s3531_s27 + $0x638] sm:$0xff] %v548_v7  ;;  %v552_v9 = vld [vmem:[%s3526_s26 + $0x2588] sm:$0xff] }
  0x77   : > { %551 = vst [vmem:[%s3531_s27 + $0x640] sm:$0xff] %v550_v8  ;;  %v554_v10 = vld [vmem:[%s3526_s26 + $0x25e0] sm:$0xff]  ;;  %v556_v11 = vld [vmem:[%s3526_s26 + $0x25e8] sm:$0xff]  ;;  %553 = vst [vmem:[%s3531_s27 + $0x648] sm:$0xff] %v552_v9 }
  0x78   : > { %555 = vst [vmem:[%s3531_s27 + $0x650] sm:$0xff] %v554_v10  ;;  %557 = vst [vmem:[%s3531_s27 + $0x658] sm:$0xff] %v556_v11  ;;  %v558_v12 = vld [vmem:[%s3526_s26 + $0x2640] sm:$0xff]  ;;  %v560_v13 = vld [vmem:[%s3526_s26 + $0x2648] sm:$0xff] }
  0x79   : > { %v562_v14 = vld [vmem:[%s3526_s26 + $0x26a0] sm:$0xff]  ;;  %559 = vst [vmem:[%s3531_s27 + $0x660] sm:$0xff] %v558_v12  ;;  %561 = vst [vmem:[%s3531_s27 + $0x668] sm:$0xff] %v560_v13  ;;  %v564_v15 = vld [vmem:[%s3526_s26 + $0x26a8] sm:$0xff] }
  0x7a   : > { %563 = vst [vmem:[%s3531_s27 + $0x670] sm:$0xff] %v562_v14  ;;  %v566_v16 = vld [vmem:[%s3526_s26 + $0x2700] sm:$0xff]  ;;  %v568_v17 = vld [vmem:[%s3526_s26 + $0x2708] sm:$0xff]  ;;  %565 = vst [vmem:[%s3531_s27 + $0x678] sm:$0xff] %v564_v15 }
  0x7b   : > { %567 = vst [vmem:[%s3531_s27 + $0x680] sm:$0xff] %v566_v16  ;;  %569 = vst [vmem:[%s3531_s27 + $0x688] sm:$0xff] %v568_v17  ;;  %v570_v18 = vld [vmem:[%s3526_s26 + $0x2760] sm:$0xff]  ;;  %v572_v19 = vld [vmem:[%s3526_s26 + $0x2768] sm:$0xff] }
  0x7c   : > { %v574_v20 = vld [vmem:[%s3526_s26 + $0x27c0] sm:$0xff]  ;;  %571 = vst [vmem:[%s3531_s27 + $0x690] sm:$0xff] %v570_v18  ;;  %573 = vst [vmem:[%s3531_s27 + $0x698] sm:$0xff] %v572_v19  ;;  %v576_v21 = vld [vmem:[%s3526_s26 + $0x27c8] sm:$0xff] }
  0x7d   : > { %575 = vst [vmem:[%s3531_s27 + $0x6a0] sm:$0xff] %v574_v20  ;;  %v578_v22 = vld [vmem:[%s3526_s26 + $0x2820] sm:$0xff]  ;;  %v580_v23 = vld [vmem:[%s3526_s26 + $0x2828] sm:$0xff]  ;;  %577 = vst [vmem:[%s3531_s27 + $0x6a8] sm:$0xff] %v576_v21 }
  0x7e   : > { %579 = vst [vmem:[%s3531_s27 + $0x6b0] sm:$0xff] %v578_v22  ;;  %581 = vst [vmem:[%s3531_s27 + $0x6b8] sm:$0xff] %v580_v23  ;;  %v582_v24 = vld [vmem:[%s3526_s26 + $0x2880] sm:$0xff]  ;;  %v584_v25 = vld [vmem:[%s3526_s26 + $0x2888] sm:$0xff] }
  0x7f   : > { %v586_v26 = vld [vmem:[%s3526_s26 + $0x28e0] sm:$0xff]  ;;  %583 = vst [vmem:[%s3531_s27 + $0x6c0] sm:$0xff] %v582_v24  ;;  %585 = vst [vmem:[%s3531_s27 + $0x6c8] sm:$0xff] %v584_v25  ;;  %v588_v27 = vld [vmem:[%s3526_s26 + $0x28e8] sm:$0xff] }
  0x80   : > { %587 = vst [vmem:[%s3531_s27 + $0x6d0] sm:$0xff] %v586_v26  ;;  %v590_v28 = vld [vmem:[%s3526_s26 + $0x2940] sm:$0xff]  ;;  %v592_v29 = vld [vmem:[%s3526_s26 + $0x2948] sm:$0xff]  ;;  %589 = vst [vmem:[%s3531_s27 + $0x6d8] sm:$0xff] %v588_v27 }
  0x81   : > { %591 = vst [vmem:[%s3531_s27 + $0x6e0] sm:$0xff] %v590_v28  ;;  %593 = vst [vmem:[%s3531_s27 + $0x6e8] sm:$0xff] %v592_v29  ;;  %v594_v30 = vld [vmem:[%s3526_s26 + $0x29a0] sm:$0xff]  ;;  %v596_v31 = vld [vmem:[%s3526_s26 + $0x29a8] sm:$0xff] }
  0x82   : > { %v598_v32 = vld [vmem:[%s3526_s26 + $0x2a00] sm:$0xff]  ;;  %595 = vst [vmem:[%s3531_s27 + $0x6f0] sm:$0xff] %v594_v30  ;;  %597 = vst [vmem:[%s3531_s27 + $0x6f8] sm:$0xff] %v596_v31  ;;  %v600_v33 = vld [vmem:[%s3526_s26 + $0x2a08] sm:$0xff] }
  0x83   : > { %599 = vst [vmem:[%s3531_s27 + $0x700] sm:$0xff] %v598_v32  ;;  %v602_v34 = vld [vmem:[%s3526_s26 + $0x2a60] sm:$0xff]  ;;  %v604_v35 = vld [vmem:[%s3526_s26 + $0x2a68] sm:$0xff]  ;;  %601 = vst [vmem:[%s3531_s27 + $0x708] sm:$0xff] %v600_v33 }
  0x84   : > { %603 = vst [vmem:[%s3531_s27 + $0x710] sm:$0xff] %v602_v34  ;;  %605 = vst [vmem:[%s3531_s27 + $0x718] sm:$0xff] %v604_v35  ;;  %v606_v36 = vld [vmem:[%s3526_s26 + $0x2ac0] sm:$0xff]  ;;  %v608_v37 = vld [vmem:[%s3526_s26 + $0x2ac8] sm:$0xff] }
  0x85   : > { %v610_v38 = vld [vmem:[%s3526_s26 + $0x2b20] sm:$0xff]  ;;  %607 = vst [vmem:[%s3531_s27 + $0x720] sm:$0xff] %v606_v36  ;;  %609 = vst [vmem:[%s3531_s27 + $0x728] sm:$0xff] %v608_v37  ;;  %v612_v39 = vld [vmem:[%s3526_s26 + $0x2b28] sm:$0xff] }
  0x86   : > { %611 = vst [vmem:[%s3531_s27 + $0x730] sm:$0xff] %v610_v38  ;;  %v614_v40 = vld [vmem:[%s3526_s26 + $0x2b80] sm:$0xff]  ;;  %v616_v41 = vld [vmem:[%s3526_s26 + $0x2b88] sm:$0xff]  ;;  %613 = vst [vmem:[%s3531_s27 + $0x738] sm:$0xff] %v612_v39 }
  0x87   : > { %615 = vst [vmem:[%s3531_s27 + $0x740] sm:$0xff] %v614_v40  ;;  %617 = vst [vmem:[%s3531_s27 + $0x748] sm:$0xff] %v616_v41  ;;  %v618_v42 = vld [vmem:[%s3526_s26 + $0x2be0] sm:$0xff]  ;;  %v620_v43 = vld [vmem:[%s3526_s26 + $0x2be8] sm:$0xff] }
  0x88   : > { %v622_v44 = vld [vmem:[%s3526_s26 + $0x2c40] sm:$0xff]  ;;  %619 = vst [vmem:[%s3531_s27 + $0x750] sm:$0xff] %v618_v42  ;;  %621 = vst [vmem:[%s3531_s27 + $0x758] sm:$0xff] %v620_v43  ;;  %v624_v45 = vld [vmem:[%s3526_s26 + $0x2c48] sm:$0xff] }
  0x89   : > { %623 = vst [vmem:[%s3531_s27 + $0x760] sm:$0xff] %v622_v44  ;;  %v626_v46 = vld [vmem:[%s3526_s26 + $0x2ca0] sm:$0xff]  ;;  %v628_v47 = vld [vmem:[%s3526_s26 + $0x2ca8] sm:$0xff]  ;;  %625 = vst [vmem:[%s3531_s27 + $0x768] sm:$0xff] %v624_v45 }
  0x8a   : > { %627 = vst [vmem:[%s3531_s27 + $0x770] sm:$0xff] %v626_v46  ;;  %629 = vst [vmem:[%s3531_s27 + $0x778] sm:$0xff] %v628_v47  ;;  %v630_v48 = vld [vmem:[%s3526_s26 + $0x2d00] sm:$0xff]  ;;  %v632_v49 = vld [vmem:[%s3526_s26 + $0x2d08] sm:$0xff] }
  0x8b   : > { %v634_v50 = vld [vmem:[%s3526_s26 + $0x2d60] sm:$0xff]  ;;  %631 = vst [vmem:[%s3531_s27 + $0x780] sm:$0xff] %v630_v48  ;;  %633 = vst [vmem:[%s3531_s27 + $0x788] sm:$0xff] %v632_v49  ;;  %v636_v51 = vld [vmem:[%s3526_s26 + $0x2d68] sm:$0xff] }
  0x8c   : > { %635 = vst [vmem:[%s3531_s27 + $0x790] sm:$0xff] %v634_v50  ;;  %v638_v52 = vld [vmem:[%s3526_s26 + $0x2dc0] sm:$0xff]  ;;  %v640_v53 = vld [vmem:[%s3526_s26 + $0x2dc8] sm:$0xff]  ;;  %637 = vst [vmem:[%s3531_s27 + $0x798] sm:$0xff] %v636_v51 }
  0x8d   : > { %639 = vst [vmem:[%s3531_s27 + $0x7a0] sm:$0xff] %v638_v52  ;;  %641 = vst [vmem:[%s3531_s27 + $0x7a8] sm:$0xff] %v640_v53  ;;  %v642_v54 = vld [vmem:[%s3526_s26 + $0x2e20] sm:$0xff]  ;;  %v644_v55 = vld [vmem:[%s3526_s26 + $0x2e28] sm:$0xff] }
  0x8e   : > { %v646_v56 = vld [vmem:[%s3526_s26 + $0x2e80] sm:$0xff]  ;;  %643 = vst [vmem:[%s3531_s27 + $0x7b0] sm:$0xff] %v642_v54  ;;  %645 = vst [vmem:[%s3531_s27 + $0x7b8] sm:$0xff] %v644_v55  ;;  %v648_v57 = vld [vmem:[%s3526_s26 + $0x2e88] sm:$0xff] }
  0x8f   : > { %647 = vst [vmem:[%s3531_s27 + $0x7c0] sm:$0xff] %v646_v56  ;;  %v650_v58 = vld [vmem:[%s3526_s26 + $0x2ee0] sm:$0xff]  ;;  %v652_v59 = vld [vmem:[%s3526_s26 + $0x2ee8] sm:$0xff]  ;;  %649 = vst [vmem:[%s3531_s27 + $0x7c8] sm:$0xff] %v648_v57 }
  0x90   : > { %651 = vst [vmem:[%s3531_s27 + $0x7d0] sm:$0xff] %v650_v58  ;;  %653 = vst [vmem:[%s3531_s27 + $0x7d8] sm:$0xff] %v652_v59  ;;  %v654_v60 = vld [vmem:[%s3526_s26 + $0x2f40] sm:$0xff]  ;;  %v656_v61 = vld [vmem:[%s3526_s26 + $0x2f48] sm:$0xff] }
  0x91   : > { %v658_v62 = vld [vmem:[%s3526_s26 + $0x2fa0] sm:$0xff]  ;;  %655 = vst [vmem:[%s3531_s27 + $0x7e0] sm:$0xff] %v654_v60  ;;  %657 = vst [vmem:[%s3531_s27 + $0x7e8] sm:$0xff] %v656_v61  ;;  %v660_v63 = vld [vmem:[%s3526_s26 + $0x2fa8] sm:$0xff] }
  0x92   : > { %659 = vst [vmem:[%s3531_s27 + $0x7f0] sm:$0xff] %v658_v62  ;;  %661 = vst [vmem:[%s3531_s27 + $0x7f8] sm:$0xff] %v660_v63 }
  0x93 PF: > { %p2757_p7 = scmp.ge.s32.totalorder %s3463_s14, 1  ;;  %p666_p8 = scmp.lt.s32.totalorder %s3463_s14, 7 }
  0x95   : > { %p667_p9 = pnand %p2757_p7, %p666_p8 }
  0x96   : > { %s673_s28 = sand.u32 (!%p667_p9), 1, %s3455_s12  }
  0x97   : > { %670 = sbr.rel (%p667_p9) target bundleno = 630 (0x276), region = 51  ;;  %s2758_s8 = sshll.u32 (!%p667_p9), %s673_s28, 11 }
  0x98   : > { %s4067_s11 = scalar_lea.vmem (!%p667_p9), [#allocation2], %s2758_s8  ;;  %s2759_s5 = sshll.u32 (!%p667_p9), %s673_s28, 6 }
  0x99   : > { %s4385_s6 = scalar_lea.vmem (!%p667_p9), [#allocation3], %s2759_s5 }
  0x9c   : > { %v697_v0 = vld [vmem:[%s4420_s0] sm:$0xff]  ;;  %v698_v2 = vld [vmem:[%s4420_s0 + $0x8] sm:$0xff]  ;;  %v3465_v16 = vmov 0   ;;  %s3030_s12 = sshll.u32 (%p3516_p5), %s2750_s15, 5 }
  0x9d   : > { %v701_v1 = vld [vmem:[%s4420_s0 + $0x20] sm:$0xff]  ;;  %v702_v5 = vld [vmem:[%s4420_s0 + $0x28] sm:$0xff]  ;;  %3056 = vset.pattern.permute.xlu0 %v3465_v16  ;;  %v4145_v16 = vld [vmem:[%s4420_s0 + $0x30] sm:$0xff]  ;;  %s2662_s8 = scalar_lea.vmem (%p3516_p5), %s4423_s3, %s3030_s12 }
  0x9e   : > { %v4056_v3 = vcombine.low %v697_v0, %v701_v1  ;;  %v4058_v4 = vcombine.high %v697_v0, %v701_v1  ;;  %v4063_v6 = vcombine.low %v698_v2, %v702_v5  ;;  %v4065_v7 = vcombine.high %v698_v2, %v702_v5  ;;  %v3057_v8 = vld [vmem:[%s4067_s11 + $0xe4] ss:$16 sps:$4 sm:$0xff]   ;;  %v3061_v10 = vld [vmem:[%s4067_s11 + $0xe0] ss:$16 sps:$4 sm:$0xff]  }
  0x9f   : > { %v3059_v9 = vld [vmem:[%s4067_s11 + $0x2e4] ss:$16 sps:$4 sm:$0xff]   ;;  %2293 = vmatprep.subr.bf16.mxu0 %v3057_v8  ;;  %v3062_v11 = vld [vmem:[%s4067_s11 + $0x2e0] ss:$16 sps:$4 sm:$0xff]  }
  0xa0   : > { %2325 = vmatprep.mubr.bf16.mxu0 %v4058_v4  ;;  %2368 = vmatprep.mubr.bf16.mxu1 %v4065_v7  ;;  %v3063_v12 = vld [vmem:[%s4067_s11 + $0xc4] ss:$16 sps:$4 sm:$0xff]   ;;  %v3067_v14 = vld [vmem:[%s4067_s11 + $0xc0] ss:$16 sps:$4 sm:$0xff]  }
  0xa1   : > { %2336 = vmatprep.subr.bf16.mxu1 %v3059_v9  ;;  %2294 = vmatpush1.bf16.msra.mxu0 %v3061_v10  ;;  %v3065_v13 = vld [vmem:[%s4067_s11 + $0x2c4] ss:$16 sps:$4 sm:$0xff]   ;;  %v3068_v15 = vld [vmem:[%s4067_s11 + $0x2c0] ss:$16 sps:$4 sm:$0xff]  }
  0xa2   : > { %2337 = vmatpush1.bf16.msra.mxu1 %v3062_v11  ;;  %2295 = vmatprep.subr.bf16.mxu0 %v3063_v12  ;;  %v3069_v17 = vld [vmem:[%s4067_s11 + $0xa4] ss:$16 sps:$4 sm:$0xff]   ;;  %v3073_v19 = vld [vmem:[%s4067_s11 + $0xa0] ss:$16 sps:$4 sm:$0xff]  }
  0xa3   : > { %2338 = vmatprep.subr.bf16.mxu1 %v3065_v13  ;;  %v3071_v18 = vld [vmem:[%s4067_s11 + $0x2a4] ss:$16 sps:$4 sm:$0xff]   ;;  %v3074_v20 = vld [vmem:[%s4067_s11 + $0x2a0] ss:$16 sps:$4 sm:$0xff]  }
  0xa4   : > { %v3075_v21 = vld [vmem:[%s4067_s11 + $0x84] ss:$16 sps:$4 sm:$0xff]   ;;  %v3079_v23 = vld [vmem:[%s4067_s11 + $0x80] ss:$16 sps:$4 sm:$0xff]  }
  0xa5   : > { %2296 = vmatpush1.bf16.msra.mxu0 %v3067_v14  ;;  %v3077_v22 = vld [vmem:[%s4067_s11 + $0x284] ss:$16 sps:$4 sm:$0xff]   ;;  %v3080_v24 = vld [vmem:[%s4067_s11 + $0x280] ss:$16 sps:$4 sm:$0xff]  }
  0xa6   : > { %2339 = vmatpush1.bf16.msra.mxu1 %v3068_v15  ;;  %2297 = vmatprep.subr.bf16.mxu0 %v3069_v17  ;;  %v3081_v25 = vld [vmem:[%s4067_s11 + $0x64] ss:$16 sps:$4 sm:$0xff]   ;;  %v3085_v27 = vld [vmem:[%s4067_s11 + $0x60] ss:$16 sps:$4 sm:$0xff]  }
  0xa7   : > { %2340 = vmatprep.subr.bf16.mxu1 %v3071_v18  ;;  %v3083_v26 = vld [vmem:[%s4067_s11 + $0x264] ss:$16 sps:$4 sm:$0xff]   ;;  %v3086_v28 = vld [vmem:[%s4067_s11 + $0x260] ss:$16 sps:$4 sm:$0xff]  }
  0xa8   : > { %v3087_v29 = vld [vmem:[%s4067_s11 + $0x44] ss:$16 sps:$4 sm:$0xff]   ;;  %v3091_v31 = vld [vmem:[%s4067_s11 + $0x40] ss:$16 sps:$4 sm:$0xff]  }
  0xa9   : > { %2298 = vmatpush1.bf16.msra.mxu0 %v3073_v19  ;;  %v3089_v30 = vld [vmem:[%s4067_s11 + $0x244] ss:$16 sps:$4 sm:$0xff]   ;;  %v3092_v32 = vld [vmem:[%s4067_s11 + $0x240] ss:$16 sps:$4 sm:$0xff]  }
  0xaa   : > { %2341 = vmatpush1.bf16.msra.mxu1 %v3074_v20  ;;  %2299 = vmatprep.subr.bf16.mxu0 %v3075_v21  ;;  %v3093_v33 = vld [vmem:[%s4067_s11 + $0x24] ss:$16 sps:$4 sm:$0xff]   ;;  %v3097_v35 = vld [vmem:[%s4067_s11 + $0x20] ss:$16 sps:$4 sm:$0xff]  }
  0xab   : > { %2342 = vmatprep.subr.bf16.mxu1 %v3077_v22  ;;  %v3095_v34 = vld [vmem:[%s4067_s11 + $0x224] ss:$16 sps:$4 sm:$0xff]   ;;  %v3098_v36 = vld [vmem:[%s4067_s11 + $0x220] ss:$16 sps:$4 sm:$0xff]  }
  0xac   : > { %v3099_v37 = vld [vmem:[%s4067_s11 + $0x4] ss:$16 sps:$4 sm:$0xff]   ;;  %v3103_v39 = vld [vmem:[%s4067_s11] ss:$16 sps:$4 sm:$0xff]  }
  0xad   : > { %2300 = vmatpush1.bf16.msra.mxu0 %v3079_v23  ;;  %v3101_v38 = vld [vmem:[%s4067_s11 + $0x204] ss:$16 sps:$4 sm:$0xff]   ;;  %v3104_v40 = vld [vmem:[%s4067_s11 + $0x200] ss:$16 sps:$4 sm:$0xff]  }
  0xae   : > { %2343 = vmatpush1.bf16.msra.mxu1 %v3080_v24  ;;  %2301 = vmatprep.subr.bf16.mxu0 %v3081_v25  ;;  %v3105_v41 = vld [vmem:[%s4067_s11 + $0x1e4] ss:$16 sps:$4 sm:$0xff]   ;;  %v3109_v43 = vld [vmem:[%s4067_s11 + $0x1e0] ss:$16 sps:$4 sm:$0xff]  }
  0xaf   : > { %2344 = vmatprep.subr.bf16.mxu1 %v3083_v26  ;;  %v3107_v42 = vld [vmem:[%s4067_s11 + $0x3e4] ss:$16 sps:$4 sm:$0xff]   ;;  %v3110_v44 = vld [vmem:[%s4067_s11 + $0x3e0] ss:$16 sps:$4 sm:$0xff]  }
  0xb0   : > { %v3111_v45 = vld [vmem:[%s4067_s11 + $0x1c4] ss:$16 sps:$4 sm:$0xff]   ;;  %v3115_v47 = vld [vmem:[%s4067_s11 + $0x1c0] ss:$16 sps:$4 sm:$0xff]  }
  0xb1   : > { %2302 = vmatpush1.bf16.msra.mxu0 %v3085_v27  ;;  %v3113_v46 = vld [vmem:[%s4067_s11 + $0x3c4] ss:$16 sps:$4 sm:$0xff]   ;;  %v3116_v48 = vld [vmem:[%s4067_s11 + $0x3c0] ss:$16 sps:$4 sm:$0xff]  }
  0xb2   : > { %2345 = vmatpush1.bf16.msra.mxu1 %v3086_v28  ;;  %2303 = vmatprep.subr.bf16.mxu0 %v3087_v29  ;;  %v3117_v49 = vld [vmem:[%s4067_s11 + $0x1a4] ss:$16 sps:$4 sm:$0xff]   ;;  %v3121_v51 = vld [vmem:[%s4067_s11 + $0x1a0] ss:$16 sps:$4 sm:$0xff]  }
  0xb3   : > { %2346 = vmatprep.subr.bf16.mxu1 %v3089_v30  ;;  %v3119_v50 = vld [vmem:[%s4067_s11 + $0x3a4] ss:$16 sps:$4 sm:$0xff]   ;;  %v3122_v52 = vld [vmem:[%s4067_s11 + $0x3a0] ss:$16 sps:$4 sm:$0xff]  }
  0xb4   : > { %v3123_v53 = vld [vmem:[%s4067_s11 + $0x184] ss:$16 sps:$4 sm:$0xff]   ;;  %v3127_v55 = vld [vmem:[%s4067_s11 + $0x180] ss:$16 sps:$4 sm:$0xff]  }
  0xb5   : > { %2304 = vmatpush1.bf16.msra.mxu0 %v3091_v31  ;;  %v3125_v54 = vld [vmem:[%s4067_s11 + $0x384] ss:$16 sps:$4 sm:$0xff]   ;;  %v3128_v56 = vld [vmem:[%s4067_s11 + $0x380] ss:$16 sps:$4 sm:$0xff]  }
  0xb6   : > { %2347 = vmatpush1.bf16.msra.mxu1 %v3092_v32  ;;  %2305 = vmatprep.subr.bf16.mxu0 %v3093_v33  ;;  %v3129_v57 = vld [vmem:[%s4067_s11 + $0x164] ss:$16 sps:$4 sm:$0xff]   ;;  %v3133_v59 = vld [vmem:[%s4067_s11 + $0x160] ss:$16 sps:$4 sm:$0xff]  }
  0xb7   : > { %2348 = vmatprep.subr.bf16.mxu1 %v3095_v34  ;;  %v3131_v58 = vld [vmem:[%s4067_s11 + $0x364] ss:$16 sps:$4 sm:$0xff]   ;;  %v3134_v60 = vld [vmem:[%s4067_s11 + $0x360] ss:$16 sps:$4 sm:$0xff]  }
  0xb8   : > { %v3135_v61 = vld [vmem:[%s4067_s11 + $0x144] ss:$16 sps:$4 sm:$0xff]   ;;  %v3139_v63 = vld [vmem:[%s4067_s11 + $0x140] ss:$16 sps:$4 sm:$0xff]  }
  0xb9   : > { %2306 = vmatpush1.bf16.msra.mxu0 %v3097_v35  ;;  %v3137_v62 = vld [vmem:[%s4067_s11 + $0x344] ss:$16 sps:$4 sm:$0xff]   ;;  %v3140_v0 = vld [vmem:[%s4067_s11 + $0x340] ss:$16 sps:$4 sm:$0xff]  }
  0xba   : > { %2349 = vmatpush1.bf16.msra.mxu1 %v3098_v36  ;;  %2307 = vmatprep.subr.bf16.mxu0 %v3099_v37  ;;  %v3141_v1 = vld [vmem:[%s4067_s11 + $0x124] ss:$16 sps:$4 sm:$0xff]   ;;  %v3145_v5 = vld [vmem:[%s4067_s11 + $0x120] ss:$16 sps:$4 sm:$0xff]  }
  0xbb   : > { %2350 = vmatprep.subr.bf16.mxu1 %v3101_v38  ;;  %v3143_v2 = vld [vmem:[%s4067_s11 + $0x324] ss:$16 sps:$4 sm:$0xff]   ;;  %v3146_v8 = vld [vmem:[%s4067_s11 + $0x320] ss:$16 sps:$4 sm:$0xff]   ;;  %v4177_v38 = vld [vmem:[%s4420_s0 + $0x18] sm:$0xff] }
  0xbc   : > { %v3147_v9 = vld [vmem:[%s4067_s11 + $0x104] ss:$16 sps:$4 sm:$0xff]   ;;  %v3151_v11 = vld [vmem:[%s4067_s11 + $0x100] ss:$16 sps:$4 sm:$0xff]  }
  0xbd   : > { %2308 = vmatpush1.bf16.msra.mxu0 %v3103_v39  ;;  %v3149_v10 = vld [vmem:[%s4067_s11 + $0x304] ss:$16 sps:$4 sm:$0xff]   ;;  %v3152_v12 = vld [vmem:[%s4067_s11 + $0x300] ss:$16 sps:$4 sm:$0xff]  }
  0xbe   : > { %2351 = vmatpush1.bf16.msra.mxu1 %v3104_v40  ;;  %2309 = vmatprep.subr.bf16.mxu0 %v3105_v41  ;;  %v3155_v13 = vld [vmem:[%s4067_s11 + $0x4e4] ss:$16 sps:$4 sm:$0xff]   ;;  %v3153_v17 = vld [vmem:[%s4067_s11 + $0x4e0] ss:$16 sps:$4 sm:$0xff]  }
  0xbf   : > { %2352 = vmatprep.subr.bf16.mxu1 %v3107_v42  ;;  %v3158_v14 = vld [vmem:[%s4067_s11 + $0x6e4] ss:$16 sps:$4 sm:$0xff]   ;;  %v3156_v18 = vld [vmem:[%s4067_s11 + $0x6e0] ss:$16 sps:$4 sm:$0xff]  }
  0xc0   : > { %v4140_v15 = vld [vmem:[%s4420_s0 + $0x10] sm:$0xff] }
  0xc1   : > { %2310 = vmatpush2.bf16.msra.mxu0 %v3109_v43  ;;  %v3161_v19 = vld [vmem:[%s4067_s11 + $0x4c4] ss:$16 sps:$4 sm:$0xff]   ;;  %v4153_v21 = vcombine.high %v4140_v15, %v4145_v16  ;;  %v3159_v22 = vld [vmem:[%s4067_s11 + $0x4c0] ss:$16 sps:$4 sm:$0xff]   ;;  %v4186_v43 = vld [vmem:[%s4420_s0 + $0x38] sm:$0xff] }
  0xc2   : > { %2353 = vmatpush2.bf16.msra.mxu1 %v3110_v44  ;;  %2311 = vmatprep.subr.bf16.mxu0 %v3111_v45  ;;  %v3164_v20 = vld [vmem:[%s4067_s11 + $0x6c4] ss:$16 sps:$4 sm:$0xff]   ;;  %v3162_v23 = vld [vmem:[%s4067_s11 + $0x6c0] ss:$16 sps:$4 sm:$0xff]   ;;  %v4190_v44 = vcombine.high %v4177_v38, %v4186_v43 }
  0xc3   : > { %2354 = vmatprep.subr.bf16.mxu1 %v3113_v46  ;;  %v3167_v24 = vld [vmem:[%s4067_s11 + $0x4a4] ss:$16 sps:$4 sm:$0xff]   ;;  %v3165_v26 = vld [vmem:[%s4067_s11 + $0x4a0] ss:$16 sps:$4 sm:$0xff]  }
  0xc4   : > { %v3170_v25 = vld [vmem:[%s4067_s11 + $0x6a4] ss:$16 sps:$4 sm:$0xff]   ;;  %v3168_v27 = vld [vmem:[%s4067_s11 + $0x6a0] ss:$16 sps:$4 sm:$0xff]  }
  0xc5   : > { %2312 = vmatpush2.bf16.msra.mxu0 %v3115_v47  ;;  %v3173_v28 = vld [vmem:[%s4067_s11 + $0x484] ss:$16 sps:$4 sm:$0xff]   ;;  %v3171_v30 = vld [vmem:[%s4067_s11 + $0x480] ss:$16 sps:$4 sm:$0xff]  }
  0xc6   : > { %2355 = vmatpush2.bf16.msra.mxu1 %v3116_v48  ;;  %2313 = vmatprep.subr.bf16.mxu0 %v3117_v49  ;;  %v3176_v29 = vld [vmem:[%s4067_s11 + $0x684] ss:$16 sps:$4 sm:$0xff]   ;;  %v3174_v31 = vld [vmem:[%s4067_s11 + $0x680] ss:$16 sps:$4 sm:$0xff]  }
  0xc7   : > { %2356 = vmatprep.subr.bf16.mxu1 %v3119_v50  ;;  %v3179_v32 = vld [vmem:[%s4067_s11 + $0x464] ss:$16 sps:$4 sm:$0xff]   ;;  %v3177_v34 = vld [vmem:[%s4067_s11 + $0x460] ss:$16 sps:$4 sm:$0xff]  }
  0xc8   : > { %v3182_v33 = vld [vmem:[%s4067_s11 + $0x664] ss:$16 sps:$4 sm:$0xff]   ;;  %v3180_v35 = vld [vmem:[%s4067_s11 + $0x660] ss:$16 sps:$4 sm:$0xff]  }
  0xc9   : > { %2314 = vmatpush2.bf16.msra.mxu0 %v3121_v51  ;;  %v3185_v36 = vld [vmem:[%s4067_s11 + $0x444] ss:$16 sps:$4 sm:$0xff]   ;;  %v3183_v39 = vld [vmem:[%s4067_s11 + $0x440] ss:$16 sps:$4 sm:$0xff]  }
  0xca   : > { %2357 = vmatpush2.bf16.msra.mxu1 %v3122_v52  ;;  %2315 = vmatprep.subr.bf16.mxu0 %v3123_v53  ;;  %v3188_v37 = vld [vmem:[%s4067_s11 + $0x644] ss:$16 sps:$4 sm:$0xff]   ;;  %v3186_v40 = vld [vmem:[%s4067_s11 + $0x640] ss:$16 sps:$4 sm:$0xff]  }
  0xcb   : > { %2358 = vmatprep.subr.bf16.mxu1 %v3125_v54  ;;  %v3191_v41 = vld [vmem:[%s4067_s11 + $0x424] ss:$16 sps:$4 sm:$0xff]   ;;  %v3189_v45 = vld [vmem:[%s4067_s11 + $0x420] ss:$16 sps:$4 sm:$0xff]  }
  0xcc   : > { %v3194_v42 = vld [vmem:[%s4067_s11 + $0x624] ss:$16 sps:$4 sm:$0xff]   ;;  %v3192_v46 = vld [vmem:[%s4067_s11 + $0x620] ss:$16 sps:$4 sm:$0xff]  }
  0xcd   : > { %2316 = vmatpush2.bf16.msra.mxu0 %v3127_v55  ;;  %v3197_v47 = vld [vmem:[%s4067_s11 + $0x404] ss:$16 sps:$4 sm:$0xff]   ;;  %v3195_v50 = vld [vmem:[%s4067_s11 + $0x400] ss:$16 sps:$4 sm:$0xff]   ;;  %v962_v55 = vld [vmem:[%s4421_s1 + $0x8] sm:$0xff] }
  0xce   : > { %2359 = vmatpush2.bf16.msra.mxu1 %v3128_v56  ;;  %2317 = vmatprep.subr.bf16.mxu0 %v3129_v57  ;;  %v3200_v48 = vld [vmem:[%s4067_s11 + $0x604] ss:$16 sps:$4 sm:$0xff]   ;;  %v3198_v51 = vld [vmem:[%s4067_s11 + $0x600] ss:$16 sps:$4 sm:$0xff]  }
  0xcf   : > { %2360 = vmatprep.subr.bf16.mxu1 %v3131_v58  ;;  %v961_v49 = vld [vmem:[%s4421_s1] sm:$0xff] }
  0xd0   : > { %v3203_v52 = vld [vmem:[%s4067_s11 + $0x5e4] ss:$16 sps:$4 sm:$0xff]   ;;  %965 = vperm.xlu0 %3056, %v961_v49   ;;  %v3201_v54 = vld [vmem:[%s4067_s11 + $0x5e0] ss:$16 sps:$4 sm:$0xff]   ;;  %v3279_v49 = vld [vmem:[%s4067_s11 + $0x48] ss:$16 sps:$4 sm:$0xff]  }
  0xd1   : > { %2318 = vmatpush2.bf16.msra.mxu0 %v3133_v59  ;;  %v3206_v53 = vld [vmem:[%s4067_s11 + $0x7e4] ss:$16 sps:$4 sm:$0xff]   ;;  %v3204_v56 = vld [vmem:[%s4067_s11 + $0x7e0] ss:$16 sps:$4 sm:$0xff]  }
  0xd2   : > { %2361 = vmatpush2.bf16.msra.mxu1 %v3134_v60  ;;  %2319 = vmatprep.subr.bf16.mxu0 %v3135_v61  ;;  %v3209_v57 = vld [vmem:[%s4067_s11 + $0x5c4] ss:$16 sps:$4 sm:$0xff]   ;;  %v3207_v59 = vld [vmem:[%s4067_s11 + $0x5c0] ss:$16 sps:$4 sm:$0xff]  }
  0xd3   : > { %2362 = vmatprep.subr.bf16.mxu1 %v3137_v62  ;;  %v3212_v58 = vld [vmem:[%s4067_s11 + $0x7c4] ss:$16 sps:$4 sm:$0xff]   ;;  %v3210_v60 = vld [vmem:[%s4067_s11 + $0x7c0] ss:$16 sps:$4 sm:$0xff]  }
  0xd4   : > { %970 = vperm.xlu0 %3056, %v962_v55   ;;  %v3215_v61 = vld [vmem:[%s4067_s11 + $0x5a4] ss:$16 sps:$4 sm:$0xff]   ;;  %v3293_v55 = vld [vmem:[%s4067_s11 + $0xc] ss:$16 sps:$4 sm:$0xff]  }
  0xd5   : > { %2320 = vmatpush2.bf16.msra.mxu0 %v3139_v63  ;;  %v3218_v62 = vld [vmem:[%s4067_s11 + $0x7a4] ss:$16 sps:$4 sm:$0xff]   ;;  %v3213_v63 = vld [vmem:[%s4067_s11 + $0x5a0] ss:$16 sps:$4 sm:$0xff]  }
  0xd6   : > { %2363 = vmatpush2.bf16.msra.mxu1 %v3140_v0  ;;  %2321 = vmatprep.subr.bf16.mxu0 %v3141_v1  ;;  %v3216_v0 = vld [vmem:[%s4067_s11 + $0x7a0] ss:$16 sps:$4 sm:$0xff]   ;;  %v3221_v1 = vld [vmem:[%s4067_s11 + $0x584] ss:$16 sps:$4 sm:$0xff]  }
  0xd7   : > { %2364 = vmatprep.subr.bf16.mxu1 %v3143_v2  ;;  %v3224_v2 = vld [vmem:[%s4067_s11 + $0x784] ss:$16 sps:$4 sm:$0xff]  }
  0xd9   : > { %2322 = vmatpush2.bf16.msra.mxu0 %v3145_v5  ;;  %v3219_v5 = vld [vmem:[%s4067_s11 + $0x580] ss:$16 sps:$4 sm:$0xff]  }
  0xda   : > { %2365 = vmatpush2.bf16.msra.mxu1 %v3146_v8  ;;  %2323 = vmatprep.subr.bf16.mxu0 %v3147_v9  ;;  %v3222_v8 = vld [vmem:[%s4067_s11 + $0x780] ss:$16 sps:$4 sm:$0xff]   ;;  %v3227_v9 = vld [vmem:[%s4067_s11 + $0x564] ss:$16 sps:$4 sm:$0xff]  }
  0xdb   : > { %2366 = vmatprep.subr.bf16.mxu1 %v3149_v10  ;;  %v3230_v10 = vld [vmem:[%s4067_s11 + $0x764] ss:$16 sps:$4 sm:$0xff]  }
  0xdd   : > { %2324 = vmatpush2.bf16.msra.mxu0 %v3151_v11  ;;  %v3225_v11 = vld [vmem:[%s4067_s11 + $0x560] ss:$16 sps:$4 sm:$0xff]  }
  0xde   : > { %2367 = vmatpush2.bf16.msra.mxu1 %v3152_v12  ;;  %2379 = vmatprep.subr.bf16.mxu0 %v3155_v13  ;;  %v3228_v12 = vld [vmem:[%s4067_s11 + $0x760] ss:$16 sps:$4 sm:$0xff]   ;;  %v3233_v13 = vld [vmem:[%s4067_s11 + $0x544] ss:$16 sps:$4 sm:$0xff]  }
  0xdf   : > { %2422 = vmatprep.subr.bf16.mxu1 %v3158_v14  ;;  %v3236_v14 = vld [vmem:[%s4067_s11 + $0x744] ss:$16 sps:$4 sm:$0xff]  }
  0xe0   : > { %2326 = vmatmul.mubr.bf16.vlgmr.msra.gmra.mxu0 %v4056_v3 }
  0xe1   : > { %2369 = vmatmul.mubr.bf16.vlgmr.msra.gmra.mxu1 %v4063_v6  ;;  %2380 = vmatpush1.bf16.msra.mxu0 %v3153_v17  ;;  %v3231_v17 = vld [vmem:[%s4067_s11 + $0x540] ss:$16 sps:$4 sm:$0xff]  }
  0xe2   : > { %2423 = vmatpush1.bf16.msra.mxu1 %v3156_v18  ;;  %2381 = vmatprep.subr.bf16.mxu0 %v3161_v19  ;;  %v3234_v18 = vld [vmem:[%s4067_s11 + $0x740] ss:$16 sps:$4 sm:$0xff]   ;;  %v3239_v19 = vld [vmem:[%s4067_s11 + $0x524] ss:$16 sps:$4 sm:$0xff]  }
  0xe3   : > { %2424 = vmatprep.subr.bf16.mxu1 %v3164_v20  ;;  %2411 = vmatprep.mubr.bf16.mxu0 %v4153_v21  ;;  %v3242_v20 = vld [vmem:[%s4067_s11 + $0x724] ss:$16 sps:$4 sm:$0xff]  }
  0xe4   : > { %2454 = vmatprep.mubr.bf16.mxu1 %v4190_v44 }
  0xe5   : > { %2382 = vmatpush1.bf16.msra.mxu0 %v3159_v22  ;;  %v3237_v22 = vld [vmem:[%s4067_s11 + $0x520] ss:$16 sps:$4 sm:$0xff]  }
  0xe6   : > { %2425 = vmatpush1.bf16.msra.mxu1 %v3162_v23  ;;  %2383 = vmatprep.subr.bf16.mxu0 %v3167_v24  ;;  %v3240_v23 = vld [vmem:[%s4067_s11 + $0x720] ss:$16 sps:$4 sm:$0xff]   ;;  %v3245_v24 = vld [vmem:[%s4067_s11 + $0x504] ss:$16 sps:$4 sm:$0xff]  }
  0xe7   : > { %2426 = vmatprep.subr.bf16.mxu1 %v3170_v25  ;;  %v3248_v25 = vld [vmem:[%s4067_s11 + $0x704] ss:$16 sps:$4 sm:$0xff]  }
  0xe9   : > { %2384 = vmatpush1.bf16.msra.mxu0 %v3165_v26  ;;  %v3243_v26 = vld [vmem:[%s4067_s11 + $0x500] ss:$16 sps:$4 sm:$0xff]  }
  0xea   : > { %2427 = vmatpush1.bf16.msra.mxu1 %v3168_v27  ;;  %2385 = vmatprep.subr.bf16.mxu0 %v3173_v28  ;;  %v3246_v27 = vld [vmem:[%s4067_s11 + $0x700] ss:$16 sps:$4 sm:$0xff]   ;;  %v3251_v28 = vld [vmem:[%s4067_s11 + $0xec] ss:$16 sps:$4 sm:$0xff]  }
  0xeb   : > { %2428 = vmatprep.subr.bf16.mxu1 %v3176_v29  ;;  %v3254_v29 = vld [vmem:[%s4067_s11 + $0x2ec] ss:$16 sps:$4 sm:$0xff]  }
  0xed   : > { %2386 = vmatpush1.bf16.msra.mxu0 %v3171_v30  ;;  %v4241_v30 = vcombine.low %v4140_v15, %v4145_v16  ;;  %v3255_v15 = vld [vmem:[%s4067_s11 + $0xc8] ss:$16 sps:$4 sm:$0xff]  }
  0xee   : > { %2429 = vmatpush1.bf16.msra.mxu1 %v3174_v31  ;;  %2387 = vmatprep.subr.bf16.mxu0 %v3179_v32  ;;  %v4245_v31 = vcombine.low %v4177_v38, %v4186_v43  ;;  %v3249_v32 = vld [vmem:[%s4067_s11 + $0xe8] ss:$16 sps:$4 sm:$0xff]   ;;  %v3278_v43 = vld [vmem:[%s4067_s11 + $0x26c] ss:$16 sps:$4 sm:$0xff]  }
  0xef   : > { %2430 = vmatprep.subr.bf16.mxu1 %v3182_v33  ;;  %v3252_v33 = vld [vmem:[%s4067_s11 + $0x2e8] ss:$16 sps:$4 sm:$0xff]  }
  0xf0   : > { %v3258_v16 = vld [vmem:[%s4067_s11 + $0x2c8] ss:$16 sps:$4 sm:$0xff]  }
  0xf1   : > { %2388 = vmatpush1.bf16.msra.mxu0 %v3177_v34  ;;  %v3257_v34 = vld [vmem:[%s4067_s11 + $0xcc] ss:$16 sps:$4 sm:$0xff]   ;;  %v3261_v38 = vld [vmem:[%s4067_s11 + $0xa8] ss:$16 sps:$4 sm:$0xff]  }
  0xf2   : > { %2431 = vmatpush1.bf16.msra.mxu1 %v3180_v35  ;;  %2389 = vmatprep.subr.bf16.mxu0 %v3185_v36  ;;  %v3260_v35 = vld [vmem:[%s4067_s11 + $0x2cc] ss:$16 sps:$4 sm:$0xff]  }
  0xf3   : > { %2432 = vmatprep.subr.bf16.mxu1 %v3188_v37  ;;  %v3263_v36 = vld [vmem:[%s4067_s11 + $0xac] ss:$16 sps:$4 sm:$0xff]  }
  0xf4   : > { %v3266_v37 = vld [vmem:[%s4067_s11 + $0x2ac] ss:$16 sps:$4 sm:$0xff]  }
  0xf5   : > { %2390 = vmatpush1.bf16.msra.mxu0 %v3183_v39  ;;  %v3264_v39 = vld [vmem:[%s4067_s11 + $0x2a8] ss:$16 sps:$4 sm:$0xff]  }
  0xf6   : > { %2433 = vmatpush1.bf16.msra.mxu1 %v3186_v40  ;;  %2391 = vmatprep.subr.bf16.mxu0 %v3191_v41  ;;  %v3269_v40 = vld [vmem:[%s4067_s11 + $0x8c] ss:$16 sps:$4 sm:$0xff]  }
  0xf7   : > { %2434 = vmatprep.subr.bf16.mxu1 %v3194_v42  ;;  %v3272_v41 = vld [vmem:[%s4067_s11 + $0x28c] ss:$16 sps:$4 sm:$0xff]   ;;  %v3267_v42 = vld [vmem:[%s4067_s11 + $0x88] ss:$16 sps:$4 sm:$0xff]  }
  0xf9   : > { %2392 = vmatpush1.bf16.msra.mxu0 %v3189_v45  ;;  %v3273_v45 = vld [vmem:[%s4067_s11 + $0x68] ss:$16 sps:$4 sm:$0xff]  }
  0xfa   : > { %2435 = vmatpush1.bf16.msra.mxu1 %v3192_v46  ;;  %2393 = vmatprep.subr.bf16.mxu0 %v3197_v47  ;;  %v3276_v46 = vld [vmem:[%s4067_s11 + $0x268] ss:$16 sps:$4 sm:$0xff]   ;;  %v3281_v47 = vld [vmem:[%s4067_s11 + $0x4c] ss:$16 sps:$4 sm:$0xff]  }
  0xfb   : > { %2436 = vmatprep.subr.bf16.mxu1 %v3200_v48  ;;  %v3284_v48 = vld [vmem:[%s4067_s11 + $0x24c] ss:$16 sps:$4 sm:$0xff]  }
  0xfd   : > { %2394 = vmatpush1.bf16.msra.mxu0 %v3195_v50  ;;  %v3282_v50 = vld [vmem:[%s4067_s11 + $0x248] ss:$16 sps:$4 sm:$0xff]  }
  0xfe   : > { %2437 = vmatpush1.bf16.msra.mxu1 %v3198_v51  ;;  %2395 = vmatprep.subr.bf16.mxu0 %v3203_v52  ;;  %v3287_v51 = vld [vmem:[%s4067_s11 + $0x2c] ss:$16 sps:$4 sm:$0xff]  }
  0xff   : > { %2438 = vmatprep.subr.bf16.mxu1 %v3206_v53  ;;  %v3290_v52 = vld [vmem:[%s4067_s11 + $0x22c] ss:$16 sps:$4 sm:$0xff]   ;;  %v3285_v53 = vld [vmem:[%s4067_s11 + $0x28] ss:$16 sps:$4 sm:$0xff]  }
 0x101   : > { %2396 = vmatpush2.bf16.msra.mxu0 %v3201_v54  ;;  %v3288_v54 = vld [vmem:[%s4067_s11 + $0x228] ss:$16 sps:$4 sm:$0xff]  }
 0x102   : > { %2439 = vmatpush2.bf16.msra.mxu1 %v3204_v56  ;;  %2397 = vmatprep.subr.bf16.mxu0 %v3209_v57  ;;  %v3296_v56 = vld [vmem:[%s4067_s11 + $0x20c] ss:$16 sps:$4 sm:$0xff]   ;;  %v3291_v57 = vld [vmem:[%s4067_s11 + $0x8] ss:$16 sps:$4 sm:$0xff]  }
 0x103   : > { %2440 = vmatprep.subr.bf16.mxu1 %v3212_v58  ;;  %v3294_v58 = vld [vmem:[%s4067_s11 + $0x208] ss:$16 sps:$4 sm:$0xff]  }
 0x105   : > { %2398 = vmatpush2.bf16.msra.mxu0 %v3207_v59  ;;  %v3299_v59 = vld [vmem:[%s4067_s11 + $0x1ec] ss:$16 sps:$4 sm:$0xff]  }
 0x106   : > { %2441 = vmatpush2.bf16.msra.mxu1 %v3210_v60  ;;  %2399 = vmatprep.subr.bf16.mxu0 %v3215_v61  ;;  %v3302_v60 = vld [vmem:[%s4067_s11 + $0x3ec] ss:$16 sps:$4 sm:$0xff]   ;;  %v3297_v61 = vld [vmem:[%s4067_s11 + $0x1e8] ss:$16 sps:$4 sm:$0xff]  }
 0x107   : > { %2442 = vmatprep.subr.bf16.mxu1 %v3218_v62  ;;  %v3300_v62 = vld [vmem:[%s4067_s11 + $0x3e8] ss:$16 sps:$4 sm:$0xff]  }
 0x109   : > { %2400 = vmatpush2.bf16.msra.mxu0 %v3213_v63  ;;  %v3305_v63 = vld [vmem:[%s4067_s11 + $0x1cc] ss:$16 sps:$4 sm:$0xff]  }
 0x10a   : > { %2443 = vmatpush2.bf16.msra.mxu1 %v3216_v0  ;;  %2401 = vmatprep.subr.bf16.mxu0 %v3221_v1  ;;  %v3308_v0 = vld [vmem:[%s4067_s11 + $0x3cc] ss:$16 sps:$4 sm:$0xff]   ;;  %v3303_v1 = vld [vmem:[%s4067_s11 + $0x1c8] ss:$16 sps:$4 sm:$0xff]  }
 0x10b   : > { %2444 = vmatprep.subr.bf16.mxu1 %v3224_v2  ;;  %v3306_v2 = vld [vmem:[%s4067_s11 + $0x3c8] ss:$16 sps:$4 sm:$0xff]  }
 0x10d   : > { %2402 = vmatpush2.bf16.msra.mxu0 %v3219_v5  ;;  %v3311_v5 = vld [vmem:[%s4067_s11 + $0x1ac] ss:$16 sps:$4 sm:$0xff]  }
 0x10e   : > { %2445 = vmatpush2.bf16.msra.mxu1 %v3222_v8  ;;  %2403 = vmatprep.subr.bf16.mxu0 %v3227_v9  ;;  %v3314_v8 = vld [vmem:[%s4067_s11 + $0x3ac] ss:$16 sps:$4 sm:$0xff]   ;;  %v3309_v9 = vld [vmem:[%s4067_s11 + $0x1a8] ss:$16 sps:$4 sm:$0xff]  }
 0x10f   : > { %2446 = vmatprep.subr.bf16.mxu1 %v3230_v10  ;;  %v3312_v10 = vld [vmem:[%s4067_s11 + $0x3a8] ss:$16 sps:$4 sm:$0xff]  }
 0x111   : > { %2404 = vmatpush2.bf16.msra.mxu0 %v3225_v11  ;;  %v3317_v11 = vld [vmem:[%s4067_s11 + $0x18c] ss:$16 sps:$4 sm:$0xff]  }
 0x112   : > { %2447 = vmatpush2.bf16.msra.mxu1 %v3228_v12  ;;  %2405 = vmatprep.subr.bf16.mxu0 %v3233_v13  ;;  %v3320_v12 = vld [vmem:[%s4067_s11 + $0x38c] ss:$16 sps:$4 sm:$0xff]   ;;  %v3315_v13 = vld [vmem:[%s4067_s11 + $0x188] ss:$16 sps:$4 sm:$0xff]  }
 0x113   : > { %2448 = vmatprep.subr.bf16.mxu1 %v3236_v14  ;;  %v3318_v14 = vld [vmem:[%s4067_s11 + $0x388] ss:$16 sps:$4 sm:$0xff]  }
 0x115   : > { %2406 = vmatpush2.bf16.msra.mxu0 %v3231_v17  ;;  %v3323_v17 = vld [vmem:[%s4067_s11 + $0x16c] ss:$16 sps:$4 sm:$0xff]  }
 0x116   : > { %2449 = vmatpush2.bf16.msra.mxu1 %v3234_v18  ;;  %2407 = vmatprep.subr.bf16.mxu0 %v3239_v19  ;;  %v3326_v18 = vld [vmem:[%s4067_s11 + $0x36c] ss:$16 sps:$4 sm:$0xff]   ;;  %v3321_v19 = vld [vmem:[%s4067_s11 + $0x168] ss:$16 sps:$4 sm:$0xff]  }
 0x117   : > { %2450 = vmatprep.subr.bf16.mxu1 %v3242_v20  ;;  %v3324_v20 = vld [vmem:[%s4067_s11 + $0x368] ss:$16 sps:$4 sm:$0xff]  }
 0x119   : > { %2408 = vmatpush2.bf16.msra.mxu0 %v3237_v22  ;;  %v3329_v22 = vld [vmem:[%s4067_s11 + $0x14c] ss:$16 sps:$4 sm:$0xff]  }
 0x11a   : > { %2451 = vmatpush2.bf16.msra.mxu1 %v3240_v23  ;;  %2409 = vmatprep.subr.bf16.mxu0 %v3245_v24  ;;  %v3332_v23 = vld [vmem:[%s4067_s11 + $0x34c] ss:$16 sps:$4 sm:$0xff]   ;;  %v3327_v24 = vld [vmem:[%s4067_s11 + $0x148] ss:$16 sps:$4 sm:$0xff]  }
 0x11b   : > { %2452 = vmatprep.subr.bf16.mxu1 %v3248_v25  ;;  %v3330_v25 = vld [vmem:[%s4067_s11 + $0x348] ss:$16 sps:$4 sm:$0xff]  }
 0x11d   : > { %2410 = vmatpush2.bf16.msra.mxu0 %v3243_v26  ;;  %v3335_v26 = vld [vmem:[%s4067_s11 + $0x12c] ss:$16 sps:$4 sm:$0xff]  }
 0x11e   : > { %2453 = vmatpush2.bf16.msra.mxu1 %v3246_v27  ;;  %2465 = vmatprep.subr.bf16.mxu0 %v3251_v28  ;;  %v3338_v27 = vld [vmem:[%s4067_s11 + $0x32c] ss:$16 sps:$4 sm:$0xff]   ;;  %v3333_v28 = vld [vmem:[%s4067_s11 + $0x128] ss:$16 sps:$4 sm:$0xff]  }
 0x11f   : > { %2508 = vmatprep.subr.bf16.mxu1 %v3254_v29  ;;  %v3336_v29 = vld [vmem:[%s4067_s11 + $0x328] ss:$16 sps:$4 sm:$0xff]  }
 0x120   : > { %2412 = vmatmul.mubr.bf16.vlgmr.msra.gmra.mxu0 %v4241_v30 }
 0x121   : > { %2455 = vmatmul.mubr.bf16.vlgmr.msra.gmra.mxu1 %v4245_v31  ;;  %2466 = vmatpush1.bf16.msra.mxu0 %v3249_v32  ;;  %v3341_v32 = vld [vmem:[%s4067_s11 + $0x10c] ss:$16 sps:$4 sm:$0xff]  }
 0x122   : > { %2509 = vmatpush1.bf16.msra.mxu1 %v3252_v33  ;;  %2467 = vmatprep.subr.bf16.mxu0 %v3257_v34  ;;  %v3344_v33 = vld [vmem:[%s4067_s11 + $0x30c] ss:$16 sps:$4 sm:$0xff]   ;;  %v3339_v34 = vld [vmem:[%s4067_s11 + $0x108] ss:$16 sps:$4 sm:$0xff]  }
 0x123   : > { %2510 = vmatprep.subr.bf16.mxu1 %v3260_v35  ;;  %2497 = vmatprep.mubr.bf16.mxu0 %v4058_v4  ;;  %v3270_v4 = vld [vmem:[%s4067_s11 + $0x288] ss:$16 sps:$4 sm:$0xff]  }
 0x124   : > { %2540 = vmatprep.mubr.bf16.mxu1 %v4065_v7  ;;  %v3275_v7 = vld [vmem:[%s4067_s11 + $0x6c] ss:$16 sps:$4 sm:$0xff]   ;;  %v3342_v35 = vld [vmem:[%s4067_s11 + $0x308] ss:$16 sps:$4 sm:$0xff]  }
 0x125   : > { %2468 = vmatpush1.bf16.msra.mxu0 %v3255_v15  ;;  %v3347_v15 = vld [vmem:[%s4067_s11 + $0x4ec] ss:$16 sps:$4 sm:$0xff]  }
 0x126   : > { %2511 = vmatpush1.bf16.msra.mxu1 %v3258_v16  ;;  %2469 = vmatprep.subr.bf16.mxu0 %v3263_v36  ;;  %v3350_v16 = vld [vmem:[%s4067_s11 + $0x6ec] ss:$16 sps:$4 sm:$0xff]   ;;  %v3345_v36 = vld [vmem:[%s4067_s11 + $0x4e8] ss:$16 sps:$4 sm:$0xff]  }
 0x127   : > { %2512 = vmatprep.subr.bf16.mxu1 %v3266_v37  ;;  %v3348_v37 = vld [vmem:[%s4067_s11 + $0x6e8] ss:$16 sps:$4 sm:$0xff]  }
 0x129   : > { %2470 = vmatpush1.bf16.msra.mxu0 %v3261_v38  ;;  %v3353_v38 = vld [vmem:[%s4067_s11 + $0x4cc] ss:$16 sps:$4 sm:$0xff]  }
 0x12a   : > { %2513 = vmatpush1.bf16.msra.mxu1 %v3264_v39  ;;  %2471 = vmatprep.subr.bf16.mxu0 %v3269_v40  ;;  %v3356_v39 = vld [vmem:[%s4067_s11 + $0x6cc] ss:$16 sps:$4 sm:$0xff]   ;;  %v3351_v40 = vld [vmem:[%s4067_s11 + $0x4c8] ss:$16 sps:$4 sm:$0xff]  }
 0x12b   : > { %2514 = vmatprep.subr.bf16.mxu1 %v3272_v41  ;;  %v3354_v41 = vld [vmem:[%s4067_s11 + $0x6c8] ss:$16 sps:$4 sm:$0xff]  }
 0x12d   : > { %2472 = vmatpush1.bf16.msra.mxu0 %v3267_v42  ;;  %v3359_v42 = vld [vmem:[%s4067_s11 + $0x4ac] ss:$16 sps:$4 sm:$0xff]  }
 0x12e   : > { %2515 = vmatpush1.bf16.msra.mxu1 %v3270_v4  ;;  %2473 = vmatprep.subr.bf16.mxu0 %v3275_v7  ;;  %v3362_v4 = vld [vmem:[%s4067_s11 + $0x6ac] ss:$16 sps:$4 sm:$0xff]  }
 0x12f   : > { %2516 = vmatprep.subr.bf16.mxu1 %v3278_v43  ;;  %v3365_v7 = vld [vmem:[%s4067_s11 + $0x48c] ss:$16 sps:$4 sm:$0xff]  }
 0x130   : > { %v3368_v43 = vld [vmem:[%s4067_s11 + $0x68c] ss:$16 sps:$4 sm:$0xff]  }
 0x131   : > { %2474 = vmatpush1.bf16.msra.mxu0 %v3273_v45  ;;  %v3363_v45 = vld [vmem:[%s4067_s11 + $0x488] ss:$16 sps:$4 sm:$0xff]  }
 0x132   : > { %2517 = vmatpush1.bf16.msra.mxu1 %v3276_v46  ;;  %2475 = vmatprep.subr.bf16.mxu0 %v3281_v47  ;;  %v3374_v46 = vld [vmem:[%s4067_s11 + $0x66c] ss:$16 sps:$4 sm:$0xff]   ;;  %v3369_v47 = vld [vmem:[%s4067_s11 + $0x468] ss:$16 sps:$4 sm:$0xff]  }
 0x133   : > { %2518 = vmatprep.subr.bf16.mxu1 %v3284_v48  ;;  %v3372_v48 = vld [vmem:[%s4067_s11 + $0x668] ss:$16 sps:$4 sm:$0xff]  }
 0x135   : > { %2476 = vmatpush1.bf16.msra.mxu0 %v3279_v49  ;;  %v3377_v49 = vld [vmem:[%s4067_s11 + $0x44c] ss:$16 sps:$4 sm:$0xff]  }
 0x136   : > { %2519 = vmatpush1.bf16.msra.mxu1 %v3282_v50  ;;  %2477 = vmatprep.subr.bf16.mxu0 %v3287_v51  ;;  %v3380_v50 = vld [vmem:[%s4067_s11 + $0x64c] ss:$16 sps:$4 sm:$0xff]   ;;  %v3375_v51 = vld [vmem:[%s4067_s11 + $0x448] ss:$16 sps:$4 sm:$0xff]  }
 0x137   : > { %2520 = vmatprep.subr.bf16.mxu1 %v3290_v52  ;;  %v3378_v52 = vld [vmem:[%s4067_s11 + $0x648] ss:$16 sps:$4 sm:$0xff]  }
 0x139   : > { %2478 = vmatpush1.bf16.msra.mxu0 %v3285_v53  ;;  %v3383_v53 = vld [vmem:[%s4067_s11 + $0x42c] ss:$16 sps:$4 sm:$0xff]  }
 0x13a   : > { %2521 = vmatpush1.bf16.msra.mxu1 %v3288_v54  ;;  %2479 = vmatprep.subr.bf16.mxu0 %v3293_v55  ;;  %v3386_v54 = vld [vmem:[%s4067_s11 + $0x62c] ss:$16 sps:$4 sm:$0xff]   ;;  %v3381_v55 = vld [vmem:[%s4067_s11 + $0x428] ss:$16 sps:$4 sm:$0xff]  }
 0x13b   : > { %2522 = vmatprep.subr.bf16.mxu1 %v3296_v56  ;;  %v3384_v56 = vld [vmem:[%s4067_s11 + $0x628] ss:$16 sps:$4 sm:$0xff]  }
 0x13d   : > { %2480 = vmatpush1.bf16.msra.mxu0 %v3291_v57  ;;  %v3389_v57 = vld [vmem:[%s4067_s11 + $0x40c] ss:$16 sps:$4 sm:$0xff]  }
 0x13e   : > { %2523 = vmatpush1.bf16.msra.mxu1 %v3294_v58  ;;  %2481 = vmatprep.subr.bf16.mxu0 %v3299_v59  ;;  %v3392_v58 = vld [vmem:[%s4067_s11 + $0x60c] ss:$16 sps:$4 sm:$0xff]   ;;  %v3387_v59 = vld [vmem:[%s4067_s11 + $0x408] ss:$16 sps:$4 sm:$0xff]  }
 0x13f   : > { %2524 = vmatprep.subr.bf16.mxu1 %v3302_v60  ;;  %v3390_v60 = vld [vmem:[%s4067_s11 + $0x608] ss:$16 sps:$4 sm:$0xff]  }
 0x141   : > { %2482 = vmatpush2.bf16.msra.mxu0 %v3297_v61  ;;  %v3395_v61 = vld [vmem:[%s4067_s11 + $0x5ec] ss:$16 sps:$4 sm:$0xff]  }
 0x142   : > { %2525 = vmatpush2.bf16.msra.mxu1 %v3300_v62  ;;  %2483 = vmatprep.subr.bf16.mxu0 %v3305_v63  ;;  %v3398_v62 = vld [vmem:[%s4067_s11 + $0x7ec] ss:$16 sps:$4 sm:$0xff]   ;;  %v3393_v63 = vld [vmem:[%s4067_s11 + $0x5e8] ss:$16 sps:$4 sm:$0xff]  }
 0x143   : > { %2526 = vmatprep.subr.bf16.mxu1 %v3308_v0  ;;  %v3396_v0 = vld [vmem:[%s4067_s11 + $0x7e8] ss:$16 sps:$4 sm:$0xff]  }
 0x145   : > { %2484 = vmatpush2.bf16.msra.mxu0 %v3303_v1  ;;  %v3401_v1 = vld [vmem:[%s4067_s11 + $0x5cc] ss:$16 sps:$4 sm:$0xff]  }
 0x146   : > { %2527 = vmatpush2.bf16.msra.mxu1 %v3306_v2  ;;  %2485 = vmatprep.subr.bf16.mxu0 %v3311_v5  ;;  %v3404_v2 = vld [vmem:[%s4067_s11 + $0x7cc] ss:$16 sps:$4 sm:$0xff]   ;;  %v3399_v5 = vld [vmem:[%s4067_s11 + $0x5c8] ss:$16 sps:$4 sm:$0xff]  }
 0x147   : > { %2528 = vmatprep.subr.bf16.mxu1 %v3314_v8  ;;  %v3402_v8 = vld [vmem:[%s4067_s11 + $0x7c8] ss:$16 sps:$4 sm:$0xff]  }
 0x149   : > { %2486 = vmatpush2.bf16.msra.mxu0 %v3309_v9  ;;  %v3407_v9 = vld [vmem:[%s4067_s11 + $0x5ac] ss:$16 sps:$4 sm:$0xff]  }
 0x14a   : > { %2529 = vmatpush2.bf16.msra.mxu1 %v3312_v10  ;;  %2487 = vmatprep.subr.bf16.mxu0 %v3317_v11  ;;  %v3410_v10 = vld [vmem:[%s4067_s11 + $0x7ac] ss:$16 sps:$4 sm:$0xff]   ;;  %v3405_v11 = vld [vmem:[%s4067_s11 + $0x5a8] ss:$16 sps:$4 sm:$0xff]  }
 0x14b   : > { %2530 = vmatprep.subr.bf16.mxu1 %v3320_v12  ;;  %v3408_v12 = vld [vmem:[%s4067_s11 + $0x7a8] ss:$16 sps:$4 sm:$0xff]  }
 0x14d   : > { %2488 = vmatpush2.bf16.msra.mxu0 %v3315_v13  ;;  %v3413_v13 = vld [vmem:[%s4067_s11 + $0x58c] ss:$16 sps:$4 sm:$0xff]  }
 0x14e   : > { %2531 = vmatpush2.bf16.msra.mxu1 %v3318_v14  ;;  %2489 = vmatprep.subr.bf16.mxu0 %v3323_v17  ;;  %v3416_v14 = vld [vmem:[%s4067_s11 + $0x78c] ss:$16 sps:$4 sm:$0xff]   ;;  %v3411_v17 = vld [vmem:[%s4067_s11 + $0x588] ss:$16 sps:$4 sm:$0xff]  }
 0x14f   : > { %2532 = vmatprep.subr.bf16.mxu1 %v3326_v18  ;;  %v3414_v18 = vld [vmem:[%s4067_s11 + $0x788] ss:$16 sps:$4 sm:$0xff]  }
 0x151   : > { %2490 = vmatpush2.bf16.msra.mxu0 %v3321_v19  ;;  %v3419_v19 = vld [vmem:[%s4067_s11 + $0x56c] ss:$16 sps:$4 sm:$0xff]  }
 0x152   : > { %2533 = vmatpush2.bf16.msra.mxu1 %v3324_v20  ;;  %2491 = vmatprep.subr.bf16.mxu0 %v3329_v22  ;;  %v3422_v20 = vld [vmem:[%s4067_s11 + $0x76c] ss:$16 sps:$4 sm:$0xff]   ;;  %v3417_v22 = vld [vmem:[%s4067_s11 + $0x568] ss:$16 sps:$4 sm:$0xff]  }
 0x153   : > { %2534 = vmatprep.subr.bf16.mxu1 %v3332_v23  ;;  %v3420_v23 = vld [vmem:[%s4067_s11 + $0x768] ss:$16 sps:$4 sm:$0xff]  }
 0x155   : > { %2492 = vmatpush2.bf16.msra.mxu0 %v3327_v24  ;;  %v3425_v24 = vld [vmem:[%s4067_s11 + $0x54c] ss:$16 sps:$4 sm:$0xff]  }
 0x156   : > { %2535 = vmatpush2.bf16.msra.mxu1 %v3330_v25  ;;  %2493 = vmatprep.subr.bf16.mxu0 %v3335_v26  ;;  %v3428_v25 = vld [vmem:[%s4067_s11 + $0x74c] ss:$16 sps:$4 sm:$0xff]   ;;  %v3423_v26 = vld [vmem:[%s4067_s11 + $0x548] ss:$16 sps:$4 sm:$0xff]  }
 0x157   : > { %2536 = vmatprep.subr.bf16.mxu1 %v3338_v27  ;;  %v3426_v27 = vld [vmem:[%s4067_s11 + $0x748] ss:$16 sps:$4 sm:$0xff]  }
 0x159   : > { %2494 = vmatpush2.bf16.msra.mxu0 %v3333_v28  ;;  %v3431_v28 = vld [vmem:[%s4067_s11 + $0x52c] ss:$16 sps:$4 sm:$0xff]  }
 0x15a   : > { %2537 = vmatpush2.bf16.msra.mxu1 %v3336_v29  ;;  %2495 = vmatprep.subr.bf16.mxu0 %v3341_v32  ;;  %v3434_v29 = vld [vmem:[%s4067_s11 + $0x72c] ss:$16 sps:$4 sm:$0xff]   ;;  %v3429_v32 = vld [vmem:[%s4067_s11 + $0x528] ss:$16 sps:$4 sm:$0xff]  }
 0x15b   : > { %2538 = vmatprep.subr.bf16.mxu1 %v3344_v33  ;;  %v3432_v33 = vld [vmem:[%s4067_s11 + $0x728] ss:$16 sps:$4 sm:$0xff]  }
 0x15d   : > { %2496 = vmatpush2.bf16.msra.mxu0 %v3339_v34  ;;  %v3437_v34 = vld [vmem:[%s4067_s11 + $0x50c] ss:$16 sps:$4 sm:$0xff]  }
 0x15e   : > { %2539 = vmatpush2.bf16.msra.mxu1 %v3342_v35  ;;  %2551 = vmatprep.subr.bf16.mxu0 %v3347_v15  ;;  %v3440_v35 = vld [vmem:[%s4067_s11 + $0x70c] ss:$16 sps:$4 sm:$0xff]   ;;  %v3435_v15 = vld [vmem:[%s4067_s11 + $0x508] ss:$16 sps:$4 sm:$0xff]  }
 0x15f   : > { %2594 = vmatprep.subr.bf16.mxu1 %v3350_v16  ;;  %v3438_v16 = vld [vmem:[%s4067_s11 + $0x708] ss:$16 sps:$4 sm:$0xff]  }
 0x160   : > { %2498 = vmatmul.mubr.bf16.vlgmr.msra.gmra.mxu0 %v4056_v3  ;;  %v3357_v3 = vld [vmem:[%s4067_s11 + $0x4a8] ss:$16 sps:$4 sm:$0xff]  }
 0x161   : > { %2541 = vmatmul.mubr.bf16.vlgmr.msra.gmra.mxu1 %v4063_v6  ;;  %2552 = vmatpush1.bf16.msra.mxu0 %v3345_v36  ;;  %v3360_v6 = vld [vmem:[%s4067_s11 + $0x6a8] ss:$16 sps:$4 sm:$0xff]  }
 0x162   : > { %2595 = vmatpush1.bf16.msra.mxu1 %v3348_v37  ;;  %2553 = vmatprep.subr.bf16.mxu0 %v3353_v38  ;;  %v966_v38 = vpop.permute.xlu0 %965 }
 0x163   : > { %2596 = vmatprep.subr.bf16.mxu1 %v3356_v39  ;;  %2583 = vmatprep.mubr.bf16.mxu0 %v4153_v21  ;;  %v3366_v21 = vld [vmem:[%s4067_s11 + $0x688] ss:$16 sps:$4 sm:$0xff]  }
 0x164   : > { %2626 = vmatprep.mubr.bf16.mxu1 %v4190_v44  ;;  %v3371_v44 = vld [vmem:[%s4067_s11 + $0x46c] ss:$16 sps:$4 sm:$0xff]  }
 0x165   : > { %2554 = vmatpush1.bf16.msra.mxu0 %v3351_v40 }
 0x166   : > { %2597 = vmatpush1.bf16.msra.mxu1 %v3354_v41  ;;  %2555 = vmatprep.subr.bf16.mxu0 %v3359_v42 }
 0x167   : > { %2598 = vmatprep.subr.bf16.mxu1 %v3362_v4 }
 0x169   : > { %2556 = vmatpush1.bf16.msra.mxu0 %v3357_v3  ;;  %v971_v3 = vpop.permute.xlu0 %970 }
 0x16a   : > { %2599 = vmatpush1.bf16.msra.mxu1 %v3360_v6  ;;  %2557 = vmatprep.subr.bf16.mxu0 %v3365_v7 }
 0x16b   : > { %2600 = vmatprep.subr.bf16.mxu1 %v3368_v43 }
 0x16d   : > { %2558 = vmatpush1.bf16.msra.mxu0 %v3363_v45 }
 0x16e   : > { %2601 = vmatpush1.bf16.msra.mxu1 %v3366_v21  ;;  %2559 = vmatprep.subr.bf16.mxu0 %v3371_v44 }
 0x16f   : > { %2602 = vmatprep.subr.bf16.mxu1 %v3374_v46 }
 0x171   : > { %2560 = vmatpush1.bf16.msra.mxu0 %v3369_v47 }
 0x172   : > { %2603 = vmatpush1.bf16.msra.mxu1 %v3372_v48  ;;  %2561 = vmatprep.subr.bf16.mxu0 %v3377_v49 }
 0x173   : > { %2604 = vmatprep.subr.bf16.mxu1 %v3380_v50 }
 0x175   : > { %2562 = vmatpush1.bf16.msra.mxu0 %v3375_v51 }
 0x176   : > { %2605 = vmatpush1.bf16.msra.mxu1 %v3378_v52  ;;  %2563 = vmatprep.subr.bf16.mxu0 %v3383_v53 }
 0x177   : > { %2606 = vmatprep.subr.bf16.mxu1 %v3386_v54 }
 0x179   : > { %2564 = vmatpush1.bf16.msra.mxu0 %v3381_v55 }
 0x17a   : > { %2607 = vmatpush1.bf16.msra.mxu1 %v3384_v56  ;;  %2565 = vmatprep.subr.bf16.mxu0 %v3389_v57 }
 0x17b   : > { %2608 = vmatprep.subr.bf16.mxu1 %v3392_v58 }
 0x17d   : > { %2566 = vmatpush1.bf16.msra.mxu0 %v3387_v59 }
 0x17e   : > { %2609 = vmatpush1.bf16.msra.mxu1 %v3390_v60  ;;  %2567 = vmatprep.subr.bf16.mxu0 %v3395_v61 }
 0x17f   : > { %2610 = vmatprep.subr.bf16.mxu1 %v3398_v62 }
 0x181   : > { %2568 = vmatpush2.bf16.msra.mxu0 %v3393_v63 }
 0x182   : > { %2611 = vmatpush2.bf16.msra.mxu1 %v3396_v0  ;;  %2569 = vmatprep.subr.bf16.mxu0 %v3401_v1 }
 0x183   : > { %2612 = vmatprep.subr.bf16.mxu1 %v3404_v2 }
 0x185   : > { %2570 = vmatpush2.bf16.msra.mxu0 %v3399_v5 }
 0x186   : > { %2613 = vmatpush2.bf16.msra.mxu1 %v3402_v8  ;;  %2571 = vmatprep.subr.bf16.mxu0 %v3407_v9 }
 0x187   : > { %2614 = vmatprep.subr.bf16.mxu1 %v3410_v10 }
 0x189   : > { %2572 = vmatpush2.bf16.msra.mxu0 %v3405_v11 }
 0x18a   : > { %2615 = vmatpush2.bf16.msra.mxu1 %v3408_v12  ;;  %2573 = vmatprep.subr.bf16.mxu0 %v3413_v13 }
 0x18b   : > { %2616 = vmatprep.subr.bf16.mxu1 %v3416_v14 }
 0x18d   : > { %2574 = vmatpush2.bf16.msra.mxu0 %v3411_v17 }
 0x18e   : > { %2617 = vmatpush2.bf16.msra.mxu1 %v3414_v18  ;;  %2575 = vmatprep.subr.bf16.mxu0 %v3419_v19 }
 0x18f   : > { %2618 = vmatprep.subr.bf16.mxu1 %v3422_v20 }
 0x191   : > { %2576 = vmatpush2.bf16.msra.mxu0 %v3417_v22 }
 0x192   : > { %2619 = vmatpush2.bf16.msra.mxu1 %v3420_v23  ;;  %2577 = vmatprep.subr.bf16.mxu0 %v3425_v24 }
 0x193   : > { %2620 = vmatprep.subr.bf16.mxu1 %v3428_v25 }
 0x195   : > { %2578 = vmatpush2.bf16.msra.mxu0 %v3423_v26 }
 0x196   : > { %2621 = vmatpush2.bf16.msra.mxu1 %v3426_v27  ;;  %2579 = vmatprep.subr.bf16.mxu0 %v3431_v28 }
 0x197   : > { %2622 = vmatprep.subr.bf16.mxu1 %v3434_v29 }
 0x199   : > { %2580 = vmatpush2.bf16.msra.mxu0 %v3429_v32 }
 0x19a   : > { %2623 = vmatpush2.bf16.msra.mxu1 %v3432_v33  ;;  %2581 = vmatprep.subr.bf16.mxu0 %v3437_v34 }
 0x19b   : > { %2624 = vmatprep.subr.bf16.mxu1 %v3440_v35 }
 0x19d   : > { %2582 = vmatpush2.bf16.msra.mxu0 %v3435_v15 }
 0x19e   : > { %2625 = vmatpush2.bf16.msra.mxu1 %v3438_v16 }
 0x1a0   : > { %2584 = vmatmul.mubr.bf16.vlgmr.msra.gmra.mxu0 %v4241_v30  ;;  %v2327_v36 = vpop.f32.mrf.mxu0 }
 0x1a1   : > { %2627 = vmatmul.mubr.bf16.vlgmr.msra.gmra.mxu1 %v4245_v31  ;;  %v2370_v37 = vpop.f32.mrf.mxu1  ;;  %v2328_v4 = vadd.f32 %v2327_v36, %v966_v38 }
 0x1a2   : > { %v2329_v39 = vpop.f32.mrf.mxu0 }
 0x1a3   : > { %v2372_v40 = vpop.f32.mrf.mxu1  ;;  %v2330_v6 = vadd.f32 %v2329_v39, %v966_v38  ;;  %v2371_v45 = vadd.f32 %v2370_v37, %v2328_v4 }
 0x1a4   : > { %v2331_v41 = vpop.f32.mrf.mxu0 }
 0x1a5   : > { %v2374_v42 = vpop.f32.mrf.mxu1  ;;  %v2332_v21 = vadd.f32 %v2331_v41, %v971_v3  ;;  %v2373_v30 = vadd.f32 %v2372_v40, %v2330_v6 }
 0x1a6   : > { %v2333_v7 = vpop.f32.mrf.mxu0 }
 0x1a7   : > { %v2376_v43 = vpop.f32.mrf.mxu1  ;;  %v2334_v47 = vadd.f32 %v2333_v7, %v971_v3  ;;  %v2375_v50 = vadd.f32 %v2374_v42, %v2332_v21 }
 0x1a9   : > { %v2377_v55 = vadd.f32 %v2376_v43, %v2334_v47 }
 0x1e0   : > { %v2413_v44 = vpop.f32.mrf.mxu0 }
 0x1e1   : > { %v2456_v46 = vpop.f32.mrf.mxu1  ;;  %v2414_v31 = vadd.f32 %v2413_v44, %v2371_v45 }
 0x1e2   : > { %v2415_v48 = vpop.f32.mrf.mxu0 }
 0x1e3   : > { %v2458_v49 = vpop.f32.mrf.mxu1  ;;  %v2457_v51 = vadd.f32 %v2456_v46, %v2414_v31  ;;  %v2416_v52 = vadd.f32 %v2415_v48, %v2373_v30 }
 0x1e4   : > { %v2417_v53 = vpop.f32.mrf.mxu0 }
 0x1e5   : > { %v2460_v54 = vpop.f32.mrf.mxu1  ;;  %v2637_v56 = vmax.f32 %v2457_v51, 0.0  ;;  %v2459_v57 = vadd.f32 %v2458_v49, %v2416_v52  ;;  %v2418_v58 = vadd.f32 %v2417_v53, %v2375_v50 }
 0x1e6   : > { %v2419_v59 = vpop.f32.mrf.mxu0 }
 0x1e7   : > { %2645 = vst [vmem:[%s4385_s6] sm:$0xff] %v2637_v56  ;;  %v2638_v60 = vmax.f32 %v2459_v57, 0.0  ;;  %v2461_v61 = vadd.f32 %v2460_v54, %v2418_v58  ;;  %v2420_v62 = vadd.f32 %v2419_v59, %v2377_v55  ;;  %v2462_v63 = vpop.f32.mrf.mxu1 }
 0x1e9   : > { %2646 = vst [vmem:[%s4385_s6 + $0x8] sm:$0xff] %v2638_v60  ;;  %v2641_v0 = vmax.f32 %v2461_v61, 0.0  ;;  %v2463_v1 = vadd.f32 %v2462_v63, %v2420_v62 }
 0x1eb   : > { %2649 = vst [vmem:[%s4385_s6 + $0x20] sm:$0xff] %v2641_v0  ;;  %v2642_v2 = vmax.f32 %v2463_v1, 0.0 }
 0x1ed   : > { %2650 = vst [vmem:[%s4385_s6 + $0x28] sm:$0xff] %v2642_v2 }
 0x1ee   : > { %v2675_v7 = vld [vmem:[%s4385_s6] sm:$0xff] (%p3516_p5) }
 0x1ef   : > { %2676 = vst [vmem:[%s2662_s8] sm:$0xff] (%p3516_p5), %v2675_v7 }
 0x1f0   : > { %v2677_v43 = vld [vmem:[%s4385_s6 + $0x8] sm:$0xff] (%p3516_p5) }
 0x1f1   : > { %2678 = vst [vmem:[%s2662_s8 + $0x8] sm:$0xff] (%p3516_p5), %v2677_v43 }
 0x1f2   : > { %v2683_v44 = vld [vmem:[%s4385_s6 + $0x20] sm:$0xff] (%p3516_p5) }
 0x1f3   : > { %2684 = vst [vmem:[%s2662_s8 + $0xc0] sm:$0xff] (%p3516_p5), %v2683_v44 }
 0x1f4   : > { %v2685_v46 = vld [vmem:[%s4385_s6 + $0x28] sm:$0xff] (%p3516_p5) }
 0x1f5   : > { %2686 = vst [vmem:[%s2662_s8 + $0xc8] sm:$0xff] (%p3516_p5), %v2685_v46 }
 0x220   : > { %v2499_v5 = vpop.f32.mrf.mxu0 }
 0x221   : > { %v2542_v8 = vpop.f32.mrf.mxu1  ;;  %v2500_v13 = vadd.f32 %v2499_v5, %v966_v38 }
 0x222   : > { %v2501_v9 = vpop.f32.mrf.mxu0 }
 0x223   : > { %v2544_v10 = vpop.f32.mrf.mxu1  ;;  %v2502_v14 = vadd.f32 %v2501_v9, %v966_v38  ;;  %v2543_v19 = vadd.f32 %v2542_v8, %v2500_v13 }
 0x224   : > { %v2503_v11 = vpop.f32.mrf.mxu0 }
 0x225   : > { %v2546_v12 = vpop.f32.mrf.mxu1  ;;  %v2504_v20 = vadd.f32 %v2503_v11, %v971_v3  ;;  %v2545_v24 = vadd.f32 %v2544_v10, %v2502_v14 }
 0x226   : > { %v2505_v17 = vpop.f32.mrf.mxu0 }
 0x227   : > { %v2548_v18 = vpop.f32.mrf.mxu1  ;;  %v2506_v25 = vadd.f32 %v2505_v17, %v971_v3  ;;  %v2547_v29 = vadd.f32 %v2546_v12, %v2504_v20 }
 0x229   : > { %v2549_v15 = vadd.f32 %v2548_v18, %v2506_v25 }
 0x260   : > { %v2585_v22 = vpop.f32.mrf.mxu0 }
 0x261   : > { %v2628_v23 = vpop.f32.mrf.mxu1  ;;  %v2586_v26 = vadd.f32 %v2585_v22, %v2543_v19 }
 0x262   : > { %v2587_v27 = vpop.f32.mrf.mxu0 }
 0x263   : > { %v2630_v28 = vpop.f32.mrf.mxu1  ;;  %v2629_v32 = vadd.f32 %v2628_v23, %v2586_v26  ;;  %v2588_v33 = vadd.f32 %v2587_v27, %v2545_v24 }
 0x264   : > { %v2589_v34 = vpop.f32.mrf.mxu0 }
 0x265   : > { %v2632_v35 = vpop.f32.mrf.mxu1  ;;  %v2639_v16 = vmax.f32 %v2629_v32, 0.0  ;;  %v2631_v36 = vadd.f32 %v2630_v28, %v2588_v33  ;;  %v2590_v37 = vadd.f32 %v2589_v34, %v2547_v29 }
 0x266   : > { %v2591_v38 = vpop.f32.mrf.mxu0 }
 0x267   : > { %2647 = vst [vmem:[%s4385_s6 + $0x10] sm:$0xff] %v2639_v16  ;;  %v2640_v39 = vmax.f32 %v2631_v36, 0.0  ;;  %v2633_v40 = vadd.f32 %v2632_v35, %v2590_v37  ;;  %v2592_v41 = vadd.f32 %v2591_v38, %v2549_v15  ;;  %v2634_v42 = vpop.f32.mrf.mxu1 }
 0x269   : > { %2648 = vst [vmem:[%s4385_s6 + $0x18] sm:$0xff] %v2640_v39  ;;  %v2643_v4 = vmax.f32 %v2633_v40, 0.0  ;;  %v2635_v3 = vadd.f32 %v2634_v42, %v2592_v41  ;;  %2659 = sbr.rel (!%p3516_p5) target bundleno = 630 (0x276), region = 59 }
 0x26b   : > { %2651 = vst [vmem:[%s4385_s6 + $0x30] sm:$0xff] %v2643_v4  ;;  %v2644_v6 = vmax.f32 %v2635_v3, 0.0 }
 0x26d   : > { %2652 = vst [vmem:[%s4385_s6 + $0x38] sm:$0xff] %v2644_v6 }
 0x26e   : > { %v2679_v45 = vld [vmem:[%s4385_s6 + $0x10] sm:$0xff] }
 0x26f   : > { %2680 = vst [vmem:[%s2662_s8 + $0x10] sm:$0xff] %v2679_v45 }
 0x270   : > { %v2681_v21 = vld [vmem:[%s4385_s6 + $0x18] sm:$0xff] }
 0x271   : > { %2682 = vst [vmem:[%s2662_s8 + $0x18] sm:$0xff] %v2681_v21 }
 0x272   : > { %v2687_v30 = vld [vmem:[%s4385_s6 + $0x30] sm:$0xff] }
 0x273   : > { %2688 = vst [vmem:[%s2662_s8 + $0xd0] sm:$0xff] %v2687_v30 }
 0x274   : > { %v2689_v47 = vld [vmem:[%s4385_s6 + $0x38] sm:$0xff] }
 0x275   : > { %2690 = vst [vmem:[%s2662_s8 + $0xd8] sm:$0xff] %v2689_v47 }
 0x276 PF: > { %p10_p10 = scmp.ge.s32.totalorder %s3503_s16, 8   ;;  %s4425_s12 = smov %s3459_s13 }
 0x277   : > { %s4426_s13 = smov %s3514_s19  ;;  %s4427_s14 = smov %s3503_s16 }
 0x278   :  { %12 = sbr.rel (!%p10_p10) target bundleno = 2 (0x2), region = 113 }

// kernel: encoder_forward_pallas.10
= control target key start
LH: loop header
LB: loop body
LE: loop exit
PB: predicated region body
PF: predicated region fallthrough
CT: control target
= control target key end

     0   :  { %s3486_s12 = smov 0   ;;  %s3488_s13 = smov 0   ;;  %s4420_s0 = inlined_call_operand.vmem [shape: bf16[16,1024], index: 0, kind: input, shape index: {}]   ;;  %s4421_s1 = inlined_call_operand.vmem [shape: f32[16,1], index: 1, kind: input, shape index: {}]   ;;  %s4422_s2 = inlined_call_operand.vmem [shape: bf16[1024,1536], index: 2, kind: input, shape index: {}]   ;;  %s4423_s3 = inlined_call_operand.vmem [shape: f32[16,1536], index: 3, kind: output, shape index: {}]  }
   0x1   :  { %s3490_s14 = smov 0  }
   0x2 LB: > { %s2750_s15 = sadd.s32 4294967295, %s3463_s14   ;;  %s3503_s16 = sadd.s32 1, %s3463_s14   ;;  %s3463_s14 = sphi %s3490_s14, %s4427_s14   ;;  %s3459_s13 = sphi %s3488_s13, %s4426_s13   ;;  %s3455_s12 = sphi %s3486_s12, %s4425_s12  }
   0x3   : > { %s59_s17 = ssub.s32 %s3463_s14, %s3503_s16  ;;  %s62_s18 = sadd.s32 1, %s3459_s13 }
   0x4   : > { %p60_p0 = scmp.eq.s32.totalorder %s59_s17, 0  ;;  %p69_p1 = scmp.ne.s32.totalorder %s3459_s13, %s3455_s12 }
   0x5   : > { %p70_p2 = scmp.eq.s32.totalorder %s3463_s14, 0  ;;  %p99_p3 = scmp.eq.s32.totalorder %s2750_s15, 2 }
   0x6   : > { %s3514_s19 = scalar_select %p60_p0, %s3459_s13, %s62_s18  }
   0x7   : > { %p71_p4 = por %p70_p2, %p69_p1  ;;  %p3516_p5 = por %p99_p3, %p69_p1 }
   0x8   : > { %p2753_p6 = scmp.ge.s32.totalorder %s3463_s14, 3 }
   0xa   : > { %127 = sbr.rel (%p2753_p6) target bundleno = 147 (0x93), region = 24 }
   0xf   : > { %130 = sbr.rel (!%p71_p4) target bundleno = 147 (0x93), region = 28  ;;  %s132_s21 = sand.u32 (%p71_p4), 1, %s3459_s13  }
  0x10   : > { %s3029_s22 = sshll.u32 (%p71_p4), %s3463_s14, 4  ;;  %s2754_s23 = sshll.u32 (%p71_p4), %s132_s21, 11 }
  0x11   : > { %s3526_s26 = scalar_lea.vmem (%p71_p4), %s4422_s2, %s3029_s22  ;;  %s3531_s27 = scalar_lea.vmem (%p71_p4), [#allocation2], %s2754_s23 }
  0x12   : > { %v150_v0 = vld [vmem:[%s3526_s26] sm:$0xff] (%p71_p4)  ;;  %v152_v1 = vld [vmem:[%s3526_s26 + $0x8] sm:$0xff] (%p71_p4)  ;;  %v154_v2 = vld [vmem:[%s3526_s26 + $0x30] sm:$0xff] (%p71_p4) }
  0x13   : > { %151 = vst [vmem:[%s3531_s27] sm:$0xff] (%p71_p4), %v150_v0  ;;  %153 = vst [vmem:[%s3531_s27 + $0x8] sm:$0xff] (%p71_p4), %v152_v1  ;;  %v156_v3 = vld [vmem:[%s3526_s26 + $0x38] sm:$0xff] (%p71_p4)  ;;  %v158_v4 = vld [vmem:[%s3526_s26 + $0x60] sm:$0xff] (%p71_p4) }
  0x14   : > { %155 = vst [vmem:[%s3531_s27 + $0x10] sm:$0xff] %v154_v2  ;;  %v160_v5 = vld [vmem:[%s3526_s26 + $0x68] sm:$0xff]  ;;  %157 = vst [vmem:[%s3531_s27 + $0x18] sm:$0xff] %v156_v3  ;;  %v162_v6 = vld [vmem:[%s3526_s26 + $0x90] sm:$0xff] }
  0x15   : > { %159 = vst [vmem:[%s3531_s27 + $0x20] sm:$0xff] %v158_v4  ;;  %161 = vst [vmem:[%s3531_s27 + $0x28] sm:$0xff] %v160_v5  ;;  %v164_v7 = vld [vmem:[%s3526_s26 + $0x98] sm:$0xff]  ;;  %v166_v8 = vld [vmem:[%s3526_s26 + $0xc0] sm:$0xff] }
  0x16   : > { %163 = vst [vmem:[%s3531_s27 + $0x30] sm:$0xff] %v162_v6  ;;  %165 = vst [vmem:[%s3531_s27 + $0x38] sm:$0xff] %v164_v7  ;;  %v168_v9 = vld [vmem:[%s3526_s26 + $0xc8] sm:$0xff]  ;;  %v170_v10 = vld [vmem:[%s3526_s26 + $0xf0] sm:$0xff] }
  0x17   : > { %167 = vst [vmem:[%s3531_s27 + $0x40] sm:$0xff] %v166_v8  ;;  %v172_v11 = vld [vmem:[%s3526_s26 + $0xf8] sm:$0xff]  ;;  %169 = vst [vmem:[%s3531_s27 + $0x48] sm:$0xff] %v168_v9  ;;  %v174_v12 = vld [vmem:[%s3526_s26 + $0x120] sm:$0xff] }
  0x18   : > { %171 = vst [vmem:[%s3531_s27 + $0x50] sm:$0xff] %v170_v10  ;;  %173 = vst [vmem:[%s3531_s27 + $0x58] sm:$0xff] %v172_v11  ;;  %v176_v13 = vld [vmem:[%s3526_s26 + $0x128] sm:$0xff]  ;;  %v178_v14 = vld [vmem:[%s3526_s26 + $0x150] sm:$0xff] }
  0x19   : > { %175 = vst [vmem:[%s3531_s27 + $0x60] sm:$0xff] %v174_v12  ;;  %177 = vst [vmem:[%s3531_s27 + $0x68] sm:$0xff] %v176_v13  ;;  %v180_v15 = vld [vmem:[%s3526_s26 + $0x158] sm:$0xff]  ;;  %v182_v16 = vld [vmem:[%s3526_s26 + $0x180] sm:$0xff] }
  0x1a   : > { %179 = vst [vmem:[%s3531_s27 + $0x70] sm:$0xff] %v178_v14  ;;  %v184_v17 = vld [vmem:[%s3526_s26 + $0x188] sm:$0xff]  ;;  %181 = vst [vmem:[%s3531_s27 + $0x78] sm:$0xff] %v180_v15  ;;  %v186_v18 = vld [vmem:[%s3526_s26 + $0x1b0] sm:$0xff] }
  0x1b   : > { %183 = vst [vmem:[%s3531_s27 + $0x80] sm:$0xff] %v182_v16  ;;  %185 = vst [vmem:[%s3531_s27 + $0x88] sm:$0xff] %v184_v17  ;;  %v188_v19 = vld [vmem:[%s3526_s26 + $0x1b8] sm:$0xff]  ;;  %v190_v20 = vld [vmem:[%s3526_s26 + $0x1e0] sm:$0xff] }
  0x1c   : > { %187 = vst [vmem:[%s3531_s27 + $0x90] sm:$0xff] %v186_v18  ;;  %189 = vst [vmem:[%s3531_s27 + $0x98] sm:$0xff] %v188_v19  ;;  %v192_v21 = vld [vmem:[%s3526_s26 + $0x1e8] sm:$0xff]  ;;  %v194_v22 = vld [vmem:[%s3526_s26 + $0x210] sm:$0xff] }
  0x1d   : > { %191 = vst [vmem:[%s3531_s27 + $0xa0] sm:$0xff] %v190_v20  ;;  %v196_v23 = vld [vmem:[%s3526_s26 + $0x218] sm:$0xff]  ;;  %193 = vst [vmem:[%s3531_s27 + $0xa8] sm:$0xff] %v192_v21  ;;  %v198_v24 = vld [vmem:[%s3526_s26 + $0x240] sm:$0xff] }
  0x1e   : > { %195 = vst [vmem:[%s3531_s27 + $0xb0] sm:$0xff] %v194_v22  ;;  %197 = vst [vmem:[%s3531_s27 + $0xb8] sm:$0xff] %v196_v23  ;;  %v200_v25 = vld [vmem:[%s3526_s26 + $0x248] sm:$0xff]  ;;  %v202_v26 = vld [vmem:[%s3526_s26 + $0x270] sm:$0xff] }
  0x1f   : > { %199 = vst [vmem:[%s3531_s27 + $0xc0] sm:$0xff] %v198_v24  ;;  %201 = vst [vmem:[%s3531_s27 + $0xc8] sm:$0xff] %v200_v25  ;;  %v204_v27 = vld [vmem:[%s3526_s26 + $0x278] sm:$0xff]  ;;  %v206_v28 = vld [vmem:[%s3526_s26 + $0x2a0] sm:$0xff] }
  0x20   : > { %203 = vst [vmem:[%s3531_s27 + $0xd0] sm:$0xff] %v202_v26  ;;  %v208_v29 = vld [vmem:[%s3526_s26 + $0x2a8] sm:$0xff]  ;;  %205 = vst [vmem:[%s3531_s27 + $0xd8] sm:$0xff] %v204_v27  ;;  %v210_v30 = vld [vmem:[%s3526_s26 + $0x2d0] sm:$0xff] }
  0x21   : > { %207 = vst [vmem:[%s3531_s27 + $0xe0] sm:$0xff] %v206_v28  ;;  %209 = vst [vmem:[%s3531_s27 + $0xe8] sm:$0xff] %v208_v29  ;;  %v212_v31 = vld [vmem:[%s3526_s26 + $0x2d8] sm:$0xff]  ;;  %v214_v32 = vld [vmem:[%s3526_s26 + $0x300] sm:$0xff] }
  0x22   : > { %211 = vst [vmem:[%s3531_s27 + $0xf0] sm:$0xff] %v210_v30  ;;  %213 = vst [vmem:[%s3531_s27 + $0xf8] sm:$0xff] %v212_v31  ;;  %v216_v33 = vld [vmem:[%s3526_s26 + $0x308] sm:$0xff]  ;;  %v218_v34 = vld [vmem:[%s3526_s26 + $0x330] sm:$0xff] }
  0x23   : > { %215 = vst [vmem:[%s3531_s27 + $0x100] sm:$0xff] %v214_v32  ;;  %v220_v35 = vld [vmem:[%s3526_s26 + $0x338] sm:$0xff]  ;;  %217 = vst [vmem:[%s3531_s27 + $0x108] sm:$0xff] %v216_v33  ;;  %v222_v36 = vld [vmem:[%s3526_s26 + $0x360] sm:$0xff] }
  0x24   : > { %219 = vst [vmem:[%s3531_s27 + $0x110] sm:$0xff] %v218_v34  ;;  %221 = vst [vmem:[%s3531_s27 + $0x118] sm:$0xff] %v220_v35  ;;  %v224_v37 = vld [vmem:[%s3526_s26 + $0x368] sm:$0xff]  ;;  %v226_v38 = vld [vmem:[%s3526_s26 + $0x390] sm:$0xff] }
  0x25   : > { %223 = vst [vmem:[%s3531_s27 + $0x120] sm:$0xff] %v222_v36  ;;  %225 = vst [vmem:[%s3531_s27 + $0x128] sm:$0xff] %v224_v37  ;;  %v228_v39 = vld [vmem:[%s3526_s26 + $0x398] sm:$0xff]  ;;  %v230_v40 = vld [vmem:[%s3526_s26 + $0x3c0] sm:$0xff] }
  0x26   : > { %227 = vst [vmem:[%s3531_s27 + $0x130] sm:$0xff] %v226_v38  ;;  %v232_v41 = vld [vmem:[%s3526_s26 + $0x3c8] sm:$0xff]  ;;  %229 = vst [vmem:[%s3531_s27 + $0x138] sm:$0xff] %v228_v39  ;;  %v234_v42 = vld [vmem:[%s3526_s26 + $0x3f0] sm:$0xff] }
  0x27   : > { %231 = vst [vmem:[%s3531_s27 + $0x140] sm:$0xff] %v230_v40  ;;  %233 = vst [vmem:[%s3531_s27 + $0x148] sm:$0xff] %v232_v41  ;;  %v236_v43 = vld [vmem:[%s3526_s26 + $0x3f8] sm:$0xff]  ;;  %v238_v44 = vld [vmem:[%s3526_s26 + $0x420] sm:$0xff] }
  0x28   : > { %235 = vst [vmem:[%s3531_s27 + $0x150] sm:$0xff] %v234_v42  ;;  %237 = vst [vmem:[%s3531_s27 + $0x158] sm:$0xff] %v236_v43  ;;  %v240_v45 = vld [vmem:[%s3526_s26 + $0x428] sm:$0xff]  ;;  %v242_v46 = vld [vmem:[%s3526_s26 + $0x450] sm:$0xff] }
  0x29   : > { %239 = vst [vmem:[%s3531_s27 + $0x160] sm:$0xff] %v238_v44  ;;  %v244_v47 = vld [vmem:[%s3526_s26 + $0x458] sm:$0xff]  ;;  %241 = vst [vmem:[%s3531_s27 + $0x168] sm:$0xff] %v240_v45  ;;  %v246_v48 = vld [vmem:[%s3526_s26 + $0x480] sm:$0xff] }
  0x2a   : > { %243 = vst [vmem:[%s3531_s27 + $0x170] sm:$0xff] %v242_v46  ;;  %245 = vst [vmem:[%s3531_s27 + $0x178] sm:$0xff] %v244_v47  ;;  %v248_v49 = vld [vmem:[%s3526_s26 + $0x488] sm:$0xff]  ;;  %v250_v50 = vld [vmem:[%s3526_s26 + $0x4b0] sm:$0xff] }
  0x2b   : > { %247 = vst [vmem:[%s3531_s27 + $0x180] sm:$0xff] %v246_v48  ;;  %249 = vst [vmem:[%s3531_s27 + $0x188] sm:$0xff] %v248_v49  ;;  %v252_v51 = vld [vmem:[%s3526_s26 + $0x4b8] sm:$0xff]  ;;  %v254_v52 = vld [vmem:[%s3526_s26 + $0x4e0] sm:$0xff] }
  0x2c   : > { %251 = vst [vmem:[%s3531_s27 + $0x190] sm:$0xff] %v250_v50  ;;  %v256_v53 = vld [vmem:[%s3526_s26 + $0x4e8] sm:$0xff]  ;;  %253 = vst [vmem:[%s3531_s27 + $0x198] sm:$0xff] %v252_v51  ;;  %v258_v54 = vld [vmem:[%s3526_s26 + $0x510] sm:$0xff] }
  0x2d   : > { %255 = vst [vmem:[%s3531_s27 + $0x1a0] sm:$0xff] %v254_v52  ;;  %257 = vst [vmem:[%s3531_s27 + $0x1a8] sm:$0xff] %v256_v53  ;;  %v260_v55 = vld [vmem:[%s3526_s26 + $0x518] sm:$0xff]  ;;  %v262_v56 = vld [vmem:[%s3526_s26 + $0x540] sm:$0xff] }
  0x2e   : > { %259 = vst [vmem:[%s3531_s27 + $0x1b0] sm:$0xff] %v258_v54  ;;  %261 = vst [vmem:[%s3531_s27 + $0x1b8] sm:$0xff] %v260_v55  ;;  %v264_v57 = vld [vmem:[%s3526_s26 + $0x548] sm:$0xff]  ;;  %v266_v58 = vld [vmem:[%s3526_s26 + $0x570] sm:$0xff] }
  0x2f   : > { %263 = vst [vmem:[%s3531_s27 + $0x1c0] sm:$0xff] %v262_v56  ;;  %v268_v59 = vld [vmem:[%s3526_s26 + $0x578] sm:$0xff]  ;;  %265 = vst [vmem:[%s3531_s27 + $0x1c8] sm:$0xff] %v264_v57  ;;  %v270_v60 = vld [vmem:[%s3526_s26 + $0x5a0] sm:$0xff] }
  0x30   : > { %267 = vst [vmem:[%s3531_s27 + $0x1d0] sm:$0xff] %v266_v58  ;;  %269 = vst [vmem:[%s3531_s27 + $0x1d8] sm:$0xff] %v268_v59  ;;  %v272_v61 = vld [vmem:[%s3526_s26 + $0x5a8] sm:$0xff]  ;;  %v274_v62 = vld [vmem:[%s3526_s26 + $0x5d0] sm:$0xff] }
  0x31   : > { %271 = vst [vmem:[%s3531_s27 + $0x1e0] sm:$0xff] %v270_v60  ;;  %273 = vst [vmem:[%s3531_s27 + $0x1e8] sm:$0xff] %v272_v61  ;;  %v276_v63 = vld [vmem:[%s3526_s26 + $0x5d8] sm:$0xff]  ;;  %v278_v0 = vld [vmem:[%s3526_s26 + $0x600] sm:$0xff] }
  0x32   : > { %275 = vst [vmem:[%s3531_s27 + $0x1f0] sm:$0xff] %v274_v62  ;;  %v280_v1 = vld [vmem:[%s3526_s26 + $0x608] sm:$0xff]  ;;  %277 = vst [vmem:[%s3531_s27 + $0x1f8] sm:$0xff] %v276_v63  ;;  %v282_v2 = vld [vmem:[%s3526_s26 + $0x630] sm:$0xff] }
  0x33   : > { %279 = vst [vmem:[%s3531_s27 + $0x200] sm:$0xff] %v278_v0  ;;  %281 = vst [vmem:[%s3531_s27 + $0x208] sm:$0xff] %v280_v1  ;;  %v284_v3 = vld [vmem:[%s3526_s26 + $0x638] sm:$0xff]  ;;  %v286_v4 = vld [vmem:[%s3526_s26 + $0x660] sm:$0xff] }
  0x34   : > { %283 = vst [vmem:[%s3531_s27 + $0x210] sm:$0xff] %v282_v2  ;;  %285 = vst [vmem:[%s3531_s27 + $0x218] sm:$0xff] %v284_v3  ;;  %v288_v5 = vld [vmem:[%s3526_s26 + $0x668] sm:$0xff]  ;;  %v290_v6 = vld [vmem:[%s3526_s26 + $0x690] sm:$0xff] }
  0x35   : > { %287 = vst [vmem:[%s3531_s27 + $0x220] sm:$0xff] %v286_v4  ;;  %v292_v7 = vld [vmem:[%s3526_s26 + $0x698] sm:$0xff]  ;;  %289 = vst [vmem:[%s3531_s27 + $0x228] sm:$0xff] %v288_v5  ;;  %v294_v8 = vld [vmem:[%s3526_s26 + $0x6c0] sm:$0xff] }
  0x36   : > { %291 = vst [vmem:[%s3531_s27 + $0x230] sm:$0xff] %v290_v6  ;;  %293 = vst [vmem:[%s3531_s27 + $0x238] sm:$0xff] %v292_v7  ;;  %v296_v9 = vld [vmem:[%s3526_s26 + $0x6c8] sm:$0xff]  ;;  %v298_v10 = vld [vmem:[%s3526_s26 + $0x6f0] sm:$0xff] }
  0x37   : > { %295 = vst [vmem:[%s3531_s27 + $0x240] sm:$0xff] %v294_v8  ;;  %297 = vst [vmem:[%s3531_s27 + $0x248] sm:$0xff] %v296_v9  ;;  %v300_v11 = vld [vmem:[%s3526_s26 + $0x6f8] sm:$0xff]  ;;  %v302_v12 = vld [vmem:[%s3526_s26 + $0x720] sm:$0xff] }
  0x38   : > { %299 = vst [vmem:[%s3531_s27 + $0x250] sm:$0xff] %v298_v10  ;;  %v304_v13 = vld [vmem:[%s3526_s26 + $0x728] sm:$0xff]  ;;  %301 = vst [vmem:[%s3531_s27 + $0x258] sm:$0xff] %v300_v11  ;;  %v306_v14 = vld [vmem:[%s3526_s26 + $0x750] sm:$0xff] }
  0x39   : > { %303 = vst [vmem:[%s3531_s27 + $0x260] sm:$0xff] %v302_v12  ;;  %305 = vst [vmem:[%s3531_s27 + $0x268] sm:$0xff] %v304_v13  ;;  %v308_v15 = vld [vmem:[%s3526_s26 + $0x758] sm:$0xff]  ;;  %v310_v16 = vld [vmem:[%s3526_s26 + $0x780] sm:$0xff] }
  0x3a   : > { %307 = vst [vmem:[%s3531_s27 + $0x270] sm:$0xff] %v306_v14  ;;  %309 = vst [vmem:[%s3531_s27 + $0x278] sm:$0xff] %v308_v15  ;;  %v312_v17 = vld [vmem:[%s3526_s26 + $0x788] sm:$0xff]  ;;  %v314_v18 = vld [vmem:[%s3526_s26 + $0x7b0] sm:$0xff] }
  0x3b   : > { %311 = vst [vmem:[%s3531_s27 + $0x280] sm:$0xff] %v310_v16  ;;  %v316_v19 = vld [vmem:[%s3526_s26 + $0x7b8] sm:$0xff]  ;;  %313 = vst [vmem:[%s3531_s27 + $0x288] sm:$0xff] %v312_v17  ;;  %v318_v20 = vld [vmem:[%s3526_s26 + $0x7e0] sm:$0xff] }
  0x3c   : > { %315 = vst [vmem:[%s3531_s27 + $0x290] sm:$0xff] %v314_v18  ;;  %317 = vst [vmem:[%s3531_s27 + $0x298] sm:$0xff] %v316_v19  ;;  %v320_v21 = vld [vmem:[%s3526_s26 + $0x7e8] sm:$0xff]  ;;  %v322_v22 = vld [vmem:[%s3526_s26 + $0x810] sm:$0xff] }
  0x3d   : > { %319 = vst [vmem:[%s3531_s27 + $0x2a0] sm:$0xff] %v318_v20  ;;  %321 = vst [vmem:[%s3531_s27 + $0x2a8] sm:$0xff] %v320_v21  ;;  %v324_v23 = vld [vmem:[%s3526_s26 + $0x818] sm:$0xff]  ;;  %v326_v24 = vld [vmem:[%s3526_s26 + $0x840] sm:$0xff] }
  0x3e   : > { %323 = vst [vmem:[%s3531_s27 + $0x2b0] sm:$0xff] %v322_v22  ;;  %v328_v25 = vld [vmem:[%s3526_s26 + $0x848] sm:$0xff]  ;;  %325 = vst [vmem:[%s3531_s27 + $0x2b8] sm:$0xff] %v324_v23  ;;  %v330_v26 = vld [vmem:[%s3526_s26 + $0x870] sm:$0xff] }
  0x3f   : > { %327 = vst [vmem:[%s3531_s27 + $0x2c0] sm:$0xff] %v326_v24  ;;  %329 = vst [vmem:[%s3531_s27 + $0x2c8] sm:$0xff] %v328_v25  ;;  %v332_v27 = vld [vmem:[%s3526_s26 + $0x878] sm:$0xff]  ;;  %v334_v28 = vld [vmem:[%s3526_s26 + $0x8a0] sm:$0xff] }
  0x40   : > { %331 = vst [vmem:[%s3531_s27 + $0x2d0] sm:$0xff] %v330_v26  ;;  %333 = vst [vmem:[%s3531_s27 + $0x2d8] sm:$0xff] %v332_v27  ;;  %v336_v29 = vld [vmem:[%s3526_s26 + $0x8a8] sm:$0xff]  ;;  %v338_v30 = vld [vmem:[%s3526_s26 + $0x8d0] sm:$0xff] }
  0x41   : > { %335 = vst [vmem:[%s3531_s27 + $0x2e0] sm:$0xff] %v334_v28  ;;  %v340_v31 = vld [vmem:[%s3526_s26 + $0x8d8] sm:$0xff]  ;;  %337 = vst [vmem:[%s3531_s27 + $0x2e8] sm:$0xff] %v336_v29  ;;  %v342_v32 = vld [vmem:[%s3526_s26 + $0x900] sm:$0xff] }
  0x42   : > { %339 = vst [vmem:[%s3531_s27 + $0x2f0] sm:$0xff] %v338_v30  ;;  %341 = vst [vmem:[%s3531_s27 + $0x2f8] sm:$0xff] %v340_v31  ;;  %v344_v33 = vld [vmem:[%s3526_s26 + $0x908] sm:$0xff]  ;;  %v346_v34 = vld [vmem:[%s3526_s26 + $0x930] sm:$0xff] }
  0x43   : > { %343 = vst [vmem:[%s3531_s27 + $0x300] sm:$0xff] %v342_v32  ;;  %345 = vst [vmem:[%s3531_s27 + $0x308] sm:$0xff] %v344_v33  ;;  %v348_v35 = vld [vmem:[%s3526_s26 + $0x938] sm:$0xff]  ;;  %v350_v36 = vld [vmem:[%s3526_s26 + $0x960] sm:$0xff] }
  0x44   : > { %347 = vst [vmem:[%s3531_s27 + $0x310] sm:$0xff] %v346_v34  ;;  %v352_v37 = vld [vmem:[%s3526_s26 + $0x968] sm:$0xff]  ;;  %349 = vst [vmem:[%s3531_s27 + $0x318] sm:$0xff] %v348_v35  ;;  %v354_v38 = vld [vmem:[%s3526_s26 + $0x990] sm:$0xff] }
  0x45   : > { %351 = vst [vmem:[%s3531_s27 + $0x320] sm:$0xff] %v350_v36  ;;  %353 = vst [vmem:[%s3531_s27 + $0x328] sm:$0xff] %v352_v37  ;;  %v356_v39 = vld [vmem:[%s3526_s26 + $0x998] sm:$0xff]  ;;  %v358_v40 = vld [vmem:[%s3526_s26 + $0x9c0] sm:$0xff] }
  0x46   : > { %355 = vst [vmem:[%s3531_s27 + $0x330] sm:$0xff] %v354_v38  ;;  %357 = vst [vmem:[%s3531_s27 + $0x338] sm:$0xff] %v356_v39  ;;  %v360_v41 = vld [vmem:[%s3526_s26 + $0x9c8] sm:$0xff]  ;;  %v362_v42 = vld [vmem:[%s3526_s26 + $0x9f0] sm:$0xff] }
  0x47   : > { %359 = vst [vmem:[%s3531_s27 + $0x340] sm:$0xff] %v358_v40  ;;  %v364_v43 = vld [vmem:[%s3526_s26 + $0x9f8] sm:$0xff]  ;;  %361 = vst [vmem:[%s3531_s27 + $0x348] sm:$0xff] %v360_v41  ;;  %v366_v44 = vld [vmem:[%s3526_s26 + $0xa20] sm:$0xff] }
  0x48   : > { %363 = vst [vmem:[%s3531_s27 + $0x350] sm:$0xff] %v362_v42  ;;  %365 = vst [vmem:[%s3531_s27 + $0x358] sm:$0xff] %v364_v43  ;;  %v368_v45 = vld [vmem:[%s3526_s26 + $0xa28] sm:$0xff]  ;;  %v370_v46 = vld [vmem:[%s3526_s26 + $0xa50] sm:$0xff] }
  0x49   : > { %367 = vst [vmem:[%s3531_s27 + $0x360] sm:$0xff] %v366_v44  ;;  %369 = vst [vmem:[%s3531_s27 + $0x368] sm:$0xff] %v368_v45  ;;  %v372_v47 = vld [vmem:[%s3526_s26 + $0xa58] sm:$0xff]  ;;  %v374_v48 = vld [vmem:[%s3526_s26 + $0xa80] sm:$0xff] }
  0x4a   : > { %371 = vst [vmem:[%s3531_s27 + $0x370] sm:$0xff] %v370_v46  ;;  %v376_v49 = vld [vmem:[%s3526_s26 + $0xa88] sm:$0xff]  ;;  %373 = vst [vmem:[%s3531_s27 + $0x378] sm:$0xff] %v372_v47  ;;  %v378_v50 = vld [vmem:[%s3526_s26 + $0xab0] sm:$0xff] }
  0x4b   : > { %375 = vst [vmem:[%s3531_s27 + $0x380] sm:$0xff] %v374_v48  ;;  %377 = vst [vmem:[%s3531_s27 + $0x388] sm:$0xff] %v376_v49  ;;  %v380_v51 = vld [vmem:[%s3526_s26 + $0xab8] sm:$0xff]  ;;  %v382_v52 = vld [vmem:[%s3526_s26 + $0xae0] sm:$0xff] }
  0x4c   : > { %379 = vst [vmem:[%s3531_s27 + $0x390] sm:$0xff] %v378_v50  ;;  %381 = vst [vmem:[%s3531_s27 + $0x398] sm:$0xff] %v380_v51  ;;  %v384_v53 = vld [vmem:[%s3526_s26 + $0xae8] sm:$0xff]  ;;  %v386_v54 = vld [vmem:[%s3526_s26 + $0xb10] sm:$0xff] }
  0x4d   : > { %383 = vst [vmem:[%s3531_s27 + $0x3a0] sm:$0xff] %v382_v52  ;;  %v388_v55 = vld [vmem:[%s3526_s26 + $0xb18] sm:$0xff]  ;;  %385 = vst [vmem:[%s3531_s27 + $0x3a8] sm:$0xff] %v384_v53  ;;  %v390_v56 = vld [vmem:[%s3526_s26 + $0xb40] sm:$0xff] }
  0x4e   : > { %387 = vst [vmem:[%s3531_s27 + $0x3b0] sm:$0xff] %v386_v54  ;;  %389 = vst [vmem:[%s3531_s27 + $0x3b8] sm:$0xff] %v388_v55  ;;  %v392_v57 = vld [vmem:[%s3526_s26 + $0xb48] sm:$0xff]  ;;  %v394_v58 = vld [vmem:[%s3526_s26 + $0xb70] sm:$0xff] }
  0x4f   : > { %391 = vst [vmem:[%s3531_s27 + $0x3c0] sm:$0xff] %v390_v56  ;;  %393 = vst [vmem:[%s3531_s27 + $0x3c8] sm:$0xff] %v392_v57  ;;  %v396_v59 = vld [vmem:[%s3526_s26 + $0xb78] sm:$0xff]  ;;  %v398_v60 = vld [vmem:[%s3526_s26 + $0xba0] sm:$0xff] }
  0x50   : > { %395 = vst [vmem:[%s3531_s27 + $0x3d0] sm:$0xff] %v394_v58  ;;  %v400_v61 = vld [vmem:[%s3526_s26 + $0xba8] sm:$0xff]  ;;  %397 = vst [vmem:[%s3531_s27 + $0x3d8] sm:$0xff] %v396_v59  ;;  %v402_v62 = vld [vmem:[%s3526_s26 + $0xbd0] sm:$0xff] }
  0x51   : > { %399 = vst [vmem:[%s3531_s27 + $0x3e0] sm:$0xff] %v398_v60  ;;  %401 = vst [vmem:[%s3531_s27 + $0x3e8] sm:$0xff] %v400_v61  ;;  %v404_v63 = vld [vmem:[%s3526_s26 + $0xbd8] sm:$0xff]  ;;  %v406_v0 = vld [vmem:[%s3526_s26 + $0xc00] sm:$0xff] }
  0x52   : > { %403 = vst [vmem:[%s3531_s27 + $0x3f0] sm:$0xff] %v402_v62  ;;  %405 = vst [vmem:[%s3531_s27 + $0x3f8] sm:$0xff] %v404_v63  ;;  %v408_v1 = vld [vmem:[%s3526_s26 + $0xc08] sm:$0xff]  ;;  %v410_v2 = vld [vmem:[%s3526_s26 + $0xc30] sm:$0xff] }
  0x53   : > { %407 = vst [vmem:[%s3531_s27 + $0x400] sm:$0xff] %v406_v0  ;;  %v412_v3 = vld [vmem:[%s3526_s26 + $0xc38] sm:$0xff]  ;;  %409 = vst [vmem:[%s3531_s27 + $0x408] sm:$0xff] %v408_v1  ;;  %v414_v4 = vld [vmem:[%s3526_s26 + $0xc60] sm:$0xff] }
  0x54   : > { %411 = vst [vmem:[%s3531_s27 + $0x410] sm:$0xff] %v410_v2  ;;  %413 = vst [vmem:[%s3531_s27 + $0x418] sm:$0xff] %v412_v3  ;;  %v416_v5 = vld [vmem:[%s3526_s26 + $0xc68] sm:$0xff]  ;;  %v418_v6 = vld [vmem:[%s3526_s26 + $0xc90] sm:$0xff] }
  0x55   : > { %415 = vst [vmem:[%s3531_s27 + $0x420] sm:$0xff] %v414_v4  ;;  %417 = vst [vmem:[%s3531_s27 + $0x428] sm:$0xff] %v416_v5  ;;  %v420_v7 = vld [vmem:[%s3526_s26 + $0xc98] sm:$0xff]  ;;  %v422_v8 = vld [vmem:[%s3526_s26 + $0xcc0] sm:$0xff] }
  0x56   : > { %419 = vst [vmem:[%s3531_s27 + $0x430] sm:$0xff] %v418_v6  ;;  %v424_v9 = vld [vmem:[%s3526_s26 + $0xcc8] sm:$0xff]  ;;  %421 = vst [vmem:[%s3531_s27 + $0x438] sm:$0xff] %v420_v7  ;;  %v426_v10 = vld [vmem:[%s3526_s26 + $0xcf0] sm:$0xff] }
  0x57   : > { %423 = vst [vmem:[%s3531_s27 + $0x440] sm:$0xff] %v422_v8  ;;  %425 = vst [vmem:[%s3531_s27 + $0x448] sm:$0xff] %v424_v9  ;;  %v428_v11 = vld [vmem:[%s3526_s26 + $0xcf8] sm:$0xff]  ;;  %v430_v12 = vld [vmem:[%s3526_s26 + $0xd20] sm:$0xff] }
  0x58   : > { %427 = vst [vmem:[%s3531_s27 + $0x450] sm:$0xff] %v426_v10  ;;  %429 = vst [vmem:[%s3531_s27 + $0x458] sm:$0xff] %v428_v11  ;;  %v432_v13 = vld [vmem:[%s3526_s26 + $0xd28] sm:$0xff]  ;;  %v434_v14 = vld [vmem:[%s3526_s26 + $0xd50] sm:$0xff] }
  0x59   : > { %431 = vst [vmem:[%s3531_s27 + $0x460] sm:$0xff] %v430_v12  ;;  %v436_v15 = vld [vmem:[%s3526_s26 + $0xd58] sm:$0xff]  ;;  %433 = vst [vmem:[%s3531_s27 + $0x468] sm:$0xff] %v432_v13  ;;  %v438_v16 = vld [vmem:[%s3526_s26 + $0xd80] sm:$0xff] }
  0x5a   : > { %435 = vst [vmem:[%s3531_s27 + $0x470] sm:$0xff] %v434_v14  ;;  %437 = vst [vmem:[%s3531_s27 + $0x478] sm:$0xff] %v436_v15  ;;  %v440_v17 = vld [vmem:[%s3526_s26 + $0xd88] sm:$0xff]  ;;  %v442_v18 = vld [vmem:[%s3526_s26 + $0xdb0] sm:$0xff] }
  0x5b   : > { %439 = vst [vmem:[%s3531_s27 + $0x480] sm:$0xff] %v438_v16  ;;  %441 = vst [vmem:[%s3531_s27 + $0x488] sm:$0xff] %v440_v17  ;;  %v444_v19 = vld [vmem:[%s3526_s26 + $0xdb8] sm:$0xff]  ;;  %v446_v20 = vld [vmem:[%s3526_s26 + $0xde0] sm:$0xff] }
  0x5c   : > { %443 = vst [vmem:[%s3531_s27 + $0x490] sm:$0xff] %v442_v18  ;;  %v448_v21 = vld [vmem:[%s3526_s26 + $0xde8] sm:$0xff]  ;;  %445 = vst [vmem:[%s3531_s27 + $0x498] sm:$0xff] %v444_v19  ;;  %v450_v22 = vld [vmem:[%s3526_s26 + $0xe10] sm:$0xff] }
  0x5d   : > { %447 = vst [vmem:[%s3531_s27 + $0x4a0] sm:$0xff] %v446_v20  ;;  %449 = vst [vmem:[%s3531_s27 + $0x4a8] sm:$0xff] %v448_v21  ;;  %v452_v23 = vld [vmem:[%s3526_s26 + $0xe18] sm:$0xff]  ;;  %v454_v24 = vld [vmem:[%s3526_s26 + $0xe40] sm:$0xff] }
  0x5e   : > { %451 = vst [vmem:[%s3531_s27 + $0x4b0] sm:$0xff] %v450_v22  ;;  %453 = vst [vmem:[%s3531_s27 + $0x4b8] sm:$0xff] %v452_v23  ;;  %v456_v25 = vld [vmem:[%s3526_s26 + $0xe48] sm:$0xff]  ;;  %v458_v26 = vld [vmem:[%s3526_s26 + $0xe70] sm:$0xff] }
  0x5f   : > { %455 = vst [vmem:[%s3531_s27 + $0x4c0] sm:$0xff] %v454_v24  ;;  %v460_v27 = vld [vmem:[%s3526_s26 + $0xe78] sm:$0xff]  ;;  %457 = vst [vmem:[%s3531_s27 + $0x4c8] sm:$0xff] %v456_v25  ;;  %v462_v28 = vld [vmem:[%s3526_s26 + $0xea0] sm:$0xff] }
  0x60   : > { %459 = vst [vmem:[%s3531_s27 + $0x4d0] sm:$0xff] %v458_v26  ;;  %461 = vst [vmem:[%s3531_s27 + $0x4d8] sm:$0xff] %v460_v27  ;;  %v464_v29 = vld [vmem:[%s3526_s26 + $0xea8] sm:$0xff]  ;;  %v466_v30 = vld [vmem:[%s3526_s26 + $0xed0] sm:$0xff] }
  0x61   : > { %463 = vst [vmem:[%s3531_s27 + $0x4e0] sm:$0xff] %v462_v28  ;;  %465 = vst [vmem:[%s3531_s27 + $0x4e8] sm:$0xff] %v464_v29  ;;  %v468_v31 = vld [vmem:[%s3526_s26 + $0xed8] sm:$0xff]  ;;  %v470_v32 = vld [vmem:[%s3526_s26 + $0xf00] sm:$0xff] }
  0x62   : > { %467 = vst [vmem:[%s3531_s27 + $0x4f0] sm:$0xff] %v466_v30  ;;  %v472_v33 = vld [vmem:[%s3526_s26 + $0xf08] sm:$0xff]  ;;  %469 = vst [vmem:[%s3531_s27 + $0x4f8] sm:$0xff] %v468_v31  ;;  %v474_v34 = vld [vmem:[%s3526_s26 + $0xf30] sm:$0xff] }
  0x63   : > { %471 = vst [vmem:[%s3531_s27 + $0x500] sm:$0xff] %v470_v32  ;;  %473 = vst [vmem:[%s3531_s27 + $0x508] sm:$0xff] %v472_v33  ;;  %v476_v35 = vld [vmem:[%s3526_s26 + $0xf38] sm:$0xff]  ;;  %v478_v36 = vld [vmem:[%s3526_s26 + $0xf60] sm:$0xff] }
  0x64   : > { %475 = vst [vmem:[%s3531_s27 + $0x510] sm:$0xff] %v474_v34  ;;  %477 = vst [vmem:[%s3531_s27 + $0x518] sm:$0xff] %v476_v35  ;;  %v480_v37 = vld [vmem:[%s3526_s26 + $0xf68] sm:$0xff]  ;;  %v482_v38 = vld [vmem:[%s3526_s26 + $0xf90] sm:$0xff] }
  0x65   : > { %479 = vst [vmem:[%s3531_s27 + $0x520] sm:$0xff] %v478_v36  ;;  %v484_v39 = vld [vmem:[%s3526_s26 + $0xf98] sm:$0xff]  ;;  %481 = vst [vmem:[%s3531_s27 + $0x528] sm:$0xff] %v480_v37  ;;  %v486_v40 = vld [vmem:[%s3526_s26 + $0xfc0] sm:$0xff] }
  0x66   : > { %483 = vst [vmem:[%s3531_s27 + $0x530] sm:$0xff] %v482_v38  ;;  %485 = vst [vmem:[%s3531_s27 + $0x538] sm:$0xff] %v484_v39  ;;  %v488_v41 = vld [vmem:[%s3526_s26 + $0xfc8] sm:$0xff]  ;;  %v490_v42 = vld [vmem:[%s3526_s26 + $0xff0] sm:$0xff] }
  0x67   : > { %487 = vst [vmem:[%s3531_s27 + $0x540] sm:$0xff] %v486_v40  ;;  %489 = vst [vmem:[%s3531_s27 + $0x548] sm:$0xff] %v488_v41  ;;  %v492_v43 = vld [vmem:[%s3526_s26 + $0xff8] sm:$0xff]  ;;  %v494_v44 = vld [vmem:[%s3526_s26 + $0x1020] sm:$0xff] }
  0x68   : > { %491 = vst [vmem:[%s3531_s27 + $0x550] sm:$0xff] %v490_v42  ;;  %v496_v45 = vld [vmem:[%s3526_s26 + $0x1028] sm:$0xff]  ;;  %493 = vst [vmem:[%s3531_s27 + $0x558] sm:$0xff] %v492_v43  ;;  %v498_v46 = vld [vmem:[%s3526_s26 + $0x1050] sm:$0xff] }
  0x69   : > { %495 = vst [vmem:[%s3531_s27 + $0x560] sm:$0xff] %v494_v44  ;;  %497 = vst [vmem:[%s3531_s27 + $0x568] sm:$0xff] %v496_v45  ;;  %v500_v47 = vld [vmem:[%s3526_s26 + $0x1058] sm:$0xff]  ;;  %v502_v48 = vld [vmem:[%s3526_s26 + $0x1080] sm:$0xff] }
  0x6a   : > { %499 = vst [vmem:[%s3531_s27 + $0x570] sm:$0xff] %v498_v46  ;;  %501 = vst [vmem:[%s3531_s27 + $0x578] sm:$0xff] %v500_v47  ;;  %v504_v49 = vld [vmem:[%s3526_s26 + $0x1088] sm:$0xff]  ;;  %v506_v50 = vld [vmem:[%s3526_s26 + $0x10b0] sm:$0xff] }
  0x6b   : > { %503 = vst [vmem:[%s3531_s27 + $0x580] sm:$0xff] %v502_v48  ;;  %v508_v51 = vld [vmem:[%s3526_s26 + $0x10b8] sm:$0xff]  ;;  %505 = vst [vmem:[%s3531_s27 + $0x588] sm:$0xff] %v504_v49  ;;  %v510_v52 = vld [vmem:[%s3526_s26 + $0x10e0] sm:$0xff] }
  0x6c   : > { %507 = vst [vmem:[%s3531_s27 + $0x590] sm:$0xff] %v506_v50  ;;  %509 = vst [vmem:[%s3531_s27 + $0x598] sm:$0xff] %v508_v51  ;;  %v512_v53 = vld [vmem:[%s3526_s26 + $0x10e8] sm:$0xff]  ;;  %v514_v54 = vld [vmem:[%s3526_s26 + $0x1110] sm:$0xff] }
  0x6d   : > { %511 = vst [vmem:[%s3531_s27 + $0x5a0] sm:$0xff] %v510_v52  ;;  %513 = vst [vmem:[%s3531_s27 + $0x5a8] sm:$0xff] %v512_v53  ;;  %v516_v55 = vld [vmem:[%s3526_s26 + $0x1118] sm:$0xff]  ;;  %v518_v56 = vld [vmem:[%s3526_s26 + $0x1140] sm:$0xff] }
  0x6e   : > { %515 = vst [vmem:[%s3531_s27 + $0x5b0] sm:$0xff] %v514_v54  ;;  %v520_v57 = vld [vmem:[%s3526_s26 + $0x1148] sm:$0xff]  ;;  %517 = vst [vmem:[%s3531_s27 + $0x5b8] sm:$0xff] %v516_v55  ;;  %v522_v58 = vld [vmem:[%s3526_s26 + $0x1170] sm:$0xff] }
  0x6f   : > { %519 = vst [vmem:[%s3531_s27 + $0x5c0] sm:$0xff] %v518_v56  ;;  %521 = vst [vmem:[%s3531_s27 + $0x5c8] sm:$0xff] %v520_v57  ;;  %v524_v59 = vld [vmem:[%s3526_s26 + $0x1178] sm:$0xff]  ;;  %v526_v60 = vld [vmem:[%s3526_s26 + $0x11a0] sm:$0xff] }
  0x70   : > { %523 = vst [vmem:[%s3531_s27 + $0x5d0] sm:$0xff] %v522_v58  ;;  %525 = vst [vmem:[%s3531_s27 + $0x5d8] sm:$0xff] %v524_v59  ;;  %v528_v61 = vld [vmem:[%s3526_s26 + $0x11a8] sm:$0xff]  ;;  %v530_v62 = vld [vmem:[%s3526_s26 + $0x11d0] sm:$0xff] }
  0x71   : > { %527 = vst [vmem:[%s3531_s27 + $0x5e0] sm:$0xff] %v526_v60  ;;  %v532_v63 = vld [vmem:[%s3526_s26 + $0x11d8] sm:$0xff]  ;;  %529 = vst [vmem:[%s3531_s27 + $0x5e8] sm:$0xff] %v528_v61  ;;  %v534_v0 = vld [vmem:[%s3526_s26 + $0x1200] sm:$0xff] }
  0x72   : > { %531 = vst [vmem:[%s3531_s27 + $0x5f0] sm:$0xff] %v530_v62  ;;  %533 = vst [vmem:[%s3531_s27 + $0x5f8] sm:$0xff] %v532_v63  ;;  %v536_v1 = vld [vmem:[%s3526_s26 + $0x1208] sm:$0xff]  ;;  %v538_v2 = vld [vmem:[%s3526_s26 + $0x1230] sm:$0xff] }
  0x73   : > { %535 = vst [vmem:[%s3531_s27 + $0x600] sm:$0xff] %v534_v0  ;;  %537 = vst [vmem:[%s3531_s27 + $0x608] sm:$0xff] %v536_v1  ;;  %v540_v3 = vld [vmem:[%s3526_s26 + $0x1238] sm:$0xff]  ;;  %v542_v4 = vld [vmem:[%s3526_s26 + $0x1260] sm:$0xff] }
  0x74   : > { %539 = vst [vmem:[%s3531_s27 + $0x610] sm:$0xff] %v538_v2  ;;  %v544_v5 = vld [vmem:[%s3526_s26 + $0x1268] sm:$0xff]  ;;  %541 = vst [vmem:[%s3531_s27 + $0x618] sm:$0xff] %v540_v3  ;;  %v546_v6 = vld [vmem:[%s3526_s26 + $0x1290] sm:$0xff] }
  0x75   : > { %543 = vst [vmem:[%s3531_s27 + $0x620] sm:$0xff] %v542_v4  ;;  %545 = vst [vmem:[%s3531_s27 + $0x628] sm:$0xff] %v544_v5  ;;  %v548_v7 = vld [vmem:[%s3526_s26 + $0x1298] sm:$0xff]  ;;  %v550_v8 = vld [vmem:[%s3526_s26 + $0x12c0] sm:$0xff] }
  0x76   : > { %547 = vst [vmem:[%s3531_s27 + $0x630] sm:$0xff] %v546_v6  ;;  %549 = vst [vmem:[%s3531_s27 + $0x638] sm:$0xff] %v548_v7  ;;  %v552_v9 = vld [vmem:[%s3526_s26 + $0x12c8] sm:$0xff]  ;;  %v554_v10 = vld [vmem:[%s3526_s26 + $0x12f0] sm:$0xff] }
  0x77   : > { %551 = vst [vmem:[%s3531_s27 + $0x640] sm:$0xff] %v550_v8  ;;  %v556_v11 = vld [vmem:[%s3526_s26 + $0x12f8] sm:$0xff]  ;;  %553 = vst [vmem:[%s3531_s27 + $0x648] sm:$0xff] %v552_v9  ;;  %v558_v12 = vld [vmem:[%s3526_s26 + $0x1320] sm:$0xff] }
  0x78   : > { %555 = vst [vmem:[%s3531_s27 + $0x650] sm:$0xff] %v554_v10  ;;  %557 = vst [vmem:[%s3531_s27 + $0x658] sm:$0xff] %v556_v11  ;;  %v560_v13 = vld [vmem:[%s3526_s26 + $0x1328] sm:$0xff]  ;;  %v562_v14 = vld [vmem:[%s3526_s26 + $0x1350] sm:$0xff] }
  0x79   : > { %559 = vst [vmem:[%s3531_s27 + $0x660] sm:$0xff] %v558_v12  ;;  %561 = vst [vmem:[%s3531_s27 + $0x668] sm:$0xff] %v560_v13  ;;  %v564_v15 = vld [vmem:[%s3526_s26 + $0x1358] sm:$0xff]  ;;  %v566_v16 = vld [vmem:[%s3526_s26 + $0x1380] sm:$0xff] }
  0x7a   : > { %563 = vst [vmem:[%s3531_s27 + $0x670] sm:$0xff] %v562_v14  ;;  %v568_v17 = vld [vmem:[%s3526_s26 + $0x1388] sm:$0xff]  ;;  %565 = vst [vmem:[%s3531_s27 + $0x678] sm:$0xff] %v564_v15  ;;  %v570_v18 = vld [vmem:[%s3526_s26 + $0x13b0] sm:$0xff] }
  0x7b   : > { %567 = vst [vmem:[%s3531_s27 + $0x680] sm:$0xff] %v566_v16  ;;  %569 = vst [vmem:[%s3531_s27 + $0x688] sm:$0xff] %v568_v17  ;;  %v572_v19 = vld [vmem:[%s3526_s26 + $0x13b8] sm:$0xff]  ;;  %v574_v20 = vld [vmem:[%s3526_s26 + $0x13e0] sm:$0xff] }
  0x7c   : > { %571 = vst [vmem:[%s3531_s27 + $0x690] sm:$0xff] %v570_v18  ;;  %573 = vst [vmem:[%s3531_s27 + $0x698] sm:$0xff] %v572_v19  ;;  %v576_v21 = vld [vmem:[%s3526_s26 + $0x13e8] sm:$0xff]  ;;  %v578_v22 = vld [vmem:[%s3526_s26 + $0x1410] sm:$0xff] }
  0x7d   : > { %575 = vst [vmem:[%s3531_s27 + $0x6a0] sm:$0xff] %v574_v20  ;;  %v580_v23 = vld [vmem:[%s3526_s26 + $0x1418] sm:$0xff]  ;;  %577 = vst [vmem:[%s3531_s27 + $0x6a8] sm:$0xff] %v576_v21  ;;  %v582_v24 = vld [vmem:[%s3526_s26 + $0x1440] sm:$0xff] }
  0x7e   : > { %579 = vst [vmem:[%s3531_s27 + $0x6b0] sm:$0xff] %v578_v22  ;;  %581 = vst [vmem:[%s3531_s27 + $0x6b8] sm:$0xff] %v580_v23  ;;  %v584_v25 = vld [vmem:[%s3526_s26 + $0x1448] sm:$0xff]  ;;  %v586_v26 = vld [vmem:[%s3526_s26 + $0x1470] sm:$0xff] }
  0x7f   : > { %583 = vst [vmem:[%s3531_s27 + $0x6c0] sm:$0xff] %v582_v24  ;;  %585 = vst [vmem:[%s3531_s27 + $0x6c8] sm:$0xff] %v584_v25  ;;  %v588_v27 = vld [vmem:[%s3526_s26 + $0x1478] sm:$0xff]  ;;  %v590_v28 = vld [vmem:[%s3526_s26 + $0x14a0] sm:$0xff] }
  0x80   : > { %587 = vst [vmem:[%s3531_s27 + $0x6d0] sm:$0xff] %v586_v26  ;;  %v592_v29 = vld [vmem:[%s3526_s26 + $0x14a8] sm:$0xff]  ;;  %589 = vst [vmem:[%s3531_s27 + $0x6d8] sm:$0xff] %v588_v27  ;;  %v594_v30 = vld [vmem:[%s3526_s26 + $0x14d0] sm:$0xff] }
  0x81   : > { %591 = vst [vmem:[%s3531_s27 + $0x6e0] sm:$0xff] %v590_v28  ;;  %593 = vst [vmem:[%s3531_s27 + $0x6e8] sm:$0xff] %v592_v29  ;;  %v596_v31 = vld [vmem:[%s3526_s26 + $0x14d8] sm:$0xff]  ;;  %v598_v32 = vld [vmem:[%s3526_s26 + $0x1500] sm:$0xff] }
  0x82   : > { %595 = vst [vmem:[%s3531_s27 + $0x6f0] sm:$0xff] %v594_v30  ;;  %597 = vst [vmem:[%s3531_s27 + $0x6f8] sm:$0xff] %v596_v31  ;;  %v600_v33 = vld [vmem:[%s3526_s26 + $0x1508] sm:$0xff]  ;;  %v602_v34 = vld [vmem:[%s3526_s26 + $0x1530] sm:$0xff] }
  0x83   : > { %599 = vst [vmem:[%s3531_s27 + $0x700] sm:$0xff] %v598_v32  ;;  %v604_v35 = vld [vmem:[%s3526_s26 + $0x1538] sm:$0xff]  ;;  %601 = vst [vmem:[%s3531_s27 + $0x708] sm:$0xff] %v600_v33  ;;  %v606_v36 = vld [vmem:[%s3526_s26 + $0x1560] sm:$0xff] }
  0x84   : > { %603 = vst [vmem:[%s3531_s27 + $0x710] sm:$0xff] %v602_v34  ;;  %605 = vst [vmem:[%s3531_s27 + $0x718] sm:$0xff] %v604_v35  ;;  %v608_v37 = vld [vmem:[%s3526_s26 + $0x1568] sm:$0xff]  ;;  %v610_v38 = vld [vmem:[%s3526_s26 + $0x1590] sm:$0xff] }
  0x85   : > { %607 = vst [vmem:[%s3531_s27 + $0x720] sm:$0xff] %v606_v36  ;;  %609 = vst [vmem:[%s3531_s27 + $0x728] sm:$0xff] %v608_v37  ;;  %v612_v39 = vld [vmem:[%s3526_s26 + $0x1598] sm:$0xff]  ;;  %v614_v40 = vld [vmem:[%s3526_s26 + $0x15c0] sm:$0xff] }
  0x86   : > { %611 = vst [vmem:[%s3531_s27 + $0x730] sm:$0xff] %v610_v38  ;;  %v616_v41 = vld [vmem:[%s3526_s26 + $0x15c8] sm:$0xff]  ;;  %613 = vst [vmem:[%s3531_s27 + $0x738] sm:$0xff] %v612_v39  ;;  %v618_v42 = vld [vmem:[%s3526_s26 + $0x15f0] sm:$0xff] }
  0x87   : > { %615 = vst [vmem:[%s3531_s27 + $0x740] sm:$0xff] %v614_v40  ;;  %617 = vst [vmem:[%s3531_s27 + $0x748] sm:$0xff] %v616_v41  ;;  %v620_v43 = vld [vmem:[%s3526_s26 + $0x15f8] sm:$0xff]  ;;  %v622_v44 = vld [vmem:[%s3526_s26 + $0x1620] sm:$0xff] }
  0x88   : > { %619 = vst [vmem:[%s3531_s27 + $0x750] sm:$0xff] %v618_v42  ;;  %621 = vst [vmem:[%s3531_s27 + $0x758] sm:$0xff] %v620_v43  ;;  %v624_v45 = vld [vmem:[%s3526_s26 + $0x1628] sm:$0xff]  ;;  %v626_v46 = vld [vmem:[%s3526_s26 + $0x1650] sm:$0xff] }
  0x89   : > { %623 = vst [vmem:[%s3531_s27 + $0x760] sm:$0xff] %v622_v44  ;;  %v628_v47 = vld [vmem:[%s3526_s26 + $0x1658] sm:$0xff]  ;;  %625 = vst [vmem:[%s3531_s27 + $0x768] sm:$0xff] %v624_v45  ;;  %v630_v48 = vld [vmem:[%s3526_s26 + $0x1680] sm:$0xff] }
  0x8a   : > { %627 = vst [vmem:[%s3531_s27 + $0x770] sm:$0xff] %v626_v46  ;;  %629 = vst [vmem:[%s3531_s27 + $0x778] sm:$0xff] %v628_v47  ;;  %v632_v49 = vld [vmem:[%s3526_s26 + $0x1688] sm:$0xff]  ;;  %v634_v50 = vld [vmem:[%s3526_s26 + $0x16b0] sm:$0xff] }
  0x8b   : > { %631 = vst [vmem:[%s3531_s27 + $0x780] sm:$0xff] %v630_v48  ;;  %633 = vst [vmem:[%s3531_s27 + $0x788] sm:$0xff] %v632_v49  ;;  %v636_v51 = vld [vmem:[%s3526_s26 + $0x16b8] sm:$0xff]  ;;  %v638_v52 = vld [vmem:[%s3526_s26 + $0x16e0] sm:$0xff] }
  0x8c   : > { %635 = vst [vmem:[%s3531_s27 + $0x790] sm:$0xff] %v634_v50  ;;  %v640_v53 = vld [vmem:[%s3526_s26 + $0x16e8] sm:$0xff]  ;;  %637 = vst [vmem:[%s3531_s27 + $0x798] sm:$0xff] %v636_v51  ;;  %v642_v54 = vld [vmem:[%s3526_s26 + $0x1710] sm:$0xff] }
  0x8d   : > { %639 = vst [vmem:[%s3531_s27 + $0x7a0] sm:$0xff] %v638_v52  ;;  %641 = vst [vmem:[%s3531_s27 + $0x7a8] sm:$0xff] %v640_v53  ;;  %v644_v55 = vld [vmem:[%s3526_s26 + $0x1718] sm:$0xff]  ;;  %v646_v56 = vld [vmem:[%s3526_s26 + $0x1740] sm:$0xff] }
  0x8e   : > { %643 = vst [vmem:[%s3531_s27 + $0x7b0] sm:$0xff] %v642_v54  ;;  %645 = vst [vmem:[%s3531_s27 + $0x7b8] sm:$0xff] %v644_v55  ;;  %v648_v57 = vld [vmem:[%s3526_s26 + $0x1748] sm:$0xff]  ;;  %v650_v58 = vld [vmem:[%s3526_s26 + $0x1770] sm:$0xff] }
  0x8f   : > { %647 = vst [vmem:[%s3531_s27 + $0x7c0] sm:$0xff] %v646_v56  ;;  %v652_v59 = vld [vmem:[%s3526_s26 + $0x1778] sm:$0xff]  ;;  %649 = vst [vmem:[%s3531_s27 + $0x7c8] sm:$0xff] %v648_v57  ;;  %v654_v60 = vld [vmem:[%s3526_s26 + $0x17a0] sm:$0xff] }
  0x90   : > { %651 = vst [vmem:[%s3531_s27 + $0x7d0] sm:$0xff] %v650_v58  ;;  %653 = vst [vmem:[%s3531_s27 + $0x7d8] sm:$0xff] %v652_v59  ;;  %v656_v61 = vld [vmem:[%s3526_s26 + $0x17a8] sm:$0xff]  ;;  %v658_v62 = vld [vmem:[%s3526_s26 + $0x17d0] sm:$0xff] }
  0x91   : > { %655 = vst [vmem:[%s3531_s27 + $0x7e0] sm:$0xff] %v654_v60  ;;  %657 = vst [vmem:[%s3531_s27 + $0x7e8] sm:$0xff] %v656_v61  ;;  %v660_v63 = vld [vmem:[%s3526_s26 + $0x17d8] sm:$0xff] }
  0x92   : > { %659 = vst [vmem:[%s3531_s27 + $0x7f0] sm:$0xff] %v658_v62  ;;  %661 = vst [vmem:[%s3531_s27 + $0x7f8] sm:$0xff] %v660_v63 }
  0x93 PF: > { %p2757_p7 = scmp.ge.s32.totalorder %s3463_s14, 1  ;;  %p666_p8 = scmp.lt.s32.totalorder %s3463_s14, 4 }
  0x95   : > { %p667_p9 = pnand %p2757_p7, %p666_p8 }
  0x96   : > { %s673_s28 = sand.u32 (!%p667_p9), 1, %s3455_s12  }
  0x97   : > { %670 = sbr.rel (%p667_p9) target bundleno = 630 (0x276), region = 51  ;;  %s2758_s8 = sshll.u32 (!%p667_p9), %s673_s28, 11 }
  0x98   : > { %s4067_s11 = scalar_lea.vmem (!%p667_p9), [#allocation2], %s2758_s8  ;;  %s2759_s5 = sshll.u32 (!%p667_p9), %s673_s28, 6 }
  0x99   : > { %s4385_s6 = scalar_lea.vmem (!%p667_p9), [#allocation3], %s2759_s5 }
  0x9c   : > { %v697_v0 = vld [vmem:[%s4420_s0] sm:$0xff]  ;;  %v698_v2 = vld [vmem:[%s4420_s0 + $0x8] sm:$0xff]  ;;  %v3465_v16 = vmov 0   ;;  %s3030_s12 = sshll.u32 (%p3516_p5), %s2750_s15, 5 }
  0x9d   : > { %v701_v1 = vld [vmem:[%s4420_s0 + $0x20] sm:$0xff]  ;;  %v702_v5 = vld [vmem:[%s4420_s0 + $0x28] sm:$0xff]  ;;  %3056 = vset.pattern.permute.xlu0 %v3465_v16  ;;  %v4145_v16 = vld [vmem:[%s4420_s0 + $0x30] sm:$0xff]  ;;  %s2662_s8 = scalar_lea.vmem (%p3516_p5), %s4423_s3, %s3030_s12 }
  0x9e   : > { %v4056_v3 = vcombine.low %v697_v0, %v701_v1  ;;  %v4058_v4 = vcombine.high %v697_v0, %v701_v1  ;;  %v4063_v6 = vcombine.low %v698_v2, %v702_v5  ;;  %v4065_v7 = vcombine.high %v698_v2, %v702_v5  ;;  %v3057_v8 = vld [vmem:[%s4067_s11 + $0xe4] ss:$16 sps:$4 sm:$0xff]   ;;  %v3061_v10 = vld [vmem:[%s4067_s11 + $0xe0] ss:$16 sps:$4 sm:$0xff]  }
  0x9f   : > { %v3059_v9 = vld [vmem:[%s4067_s11 + $0x2e4] ss:$16 sps:$4 sm:$0xff]   ;;  %2293 = vmatprep.subr.bf16.mxu0 %v3057_v8  ;;  %v3062_v11 = vld [vmem:[%s4067_s11 + $0x2e0] ss:$16 sps:$4 sm:$0xff]  }
  0xa0   : > { %2325 = vmatprep.mubr.bf16.mxu0 %v4058_v4  ;;  %2368 = vmatprep.mubr.bf16.mxu1 %v4065_v7  ;;  %v3063_v12 = vld [vmem:[%s4067_s11 + $0xc4] ss:$16 sps:$4 sm:$0xff]   ;;  %v3067_v14 = vld [vmem:[%s4067_s11 + $0xc0] ss:$16 sps:$4 sm:$0xff]  }
  0xa1   : > { %2336 = vmatprep.subr.bf16.mxu1 %v3059_v9  ;;  %2294 = vmatpush1.bf16.msra.mxu0 %v3061_v10  ;;  %v3065_v13 = vld [vmem:[%s4067_s11 + $0x2c4] ss:$16 sps:$4 sm:$0xff]   ;;  %v3068_v15 = vld [vmem:[%s4067_s11 + $0x2c0] ss:$16 sps:$4 sm:$0xff]  }
  0xa2   : > { %2337 = vmatpush1.bf16.msra.mxu1 %v3062_v11  ;;  %2295 = vmatprep.subr.bf16.mxu0 %v3063_v12  ;;  %v3069_v17 = vld [vmem:[%s4067_s11 + $0xa4] ss:$16 sps:$4 sm:$0xff]   ;;  %v3073_v19 = vld [vmem:[%s4067_s11 + $0xa0] ss:$16 sps:$4 sm:$0xff]  }
  0xa3   : > { %2338 = vmatprep.subr.bf16.mxu1 %v3065_v13  ;;  %v3071_v18 = vld [vmem:[%s4067_s11 + $0x2a4] ss:$16 sps:$4 sm:$0xff]   ;;  %v3074_v20 = vld [vmem:[%s4067_s11 + $0x2a0] ss:$16 sps:$4 sm:$0xff]  }
  0xa4   : > { %v3075_v21 = vld [vmem:[%s4067_s11 + $0x84] ss:$16 sps:$4 sm:$0xff]   ;;  %v3079_v23 = vld [vmem:[%s4067_s11 + $0x80] ss:$16 sps:$4 sm:$0xff]  }
  0xa5   : > { %2296 = vmatpush1.bf16.msra.mxu0 %v3067_v14  ;;  %v3077_v22 = vld [vmem:[%s4067_s11 + $0x284] ss:$16 sps:$4 sm:$0xff]   ;;  %v3080_v24 = vld [vmem:[%s4067_s11 + $0x280] ss:$16 sps:$4 sm:$0xff]  }
  0xa6   : > { %2339 = vmatpush1.bf16.msra.mxu1 %v3068_v15  ;;  %2297 = vmatprep.subr.bf16.mxu0 %v3069_v17  ;;  %v3081_v25 = vld [vmem:[%s4067_s11 + $0x64] ss:$16 sps:$4 sm:$0xff]   ;;  %v3085_v27 = vld [vmem:[%s4067_s11 + $0x60] ss:$16 sps:$4 sm:$0xff]  }
  0xa7   : > { %2340 = vmatprep.subr.bf16.mxu1 %v3071_v18  ;;  %v3083_v26 = vld [vmem:[%s4067_s11 + $0x264] ss:$16 sps:$4 sm:$0xff]   ;;  %v3086_v28 = vld [vmem:[%s4067_s11 + $0x260] ss:$16 sps:$4 sm:$0xff]  }
  0xa8   : > { %v3087_v29 = vld [vmem:[%s4067_s11 + $0x44] ss:$16 sps:$4 sm:$0xff]   ;;  %v3091_v31 = vld [vmem:[%s4067_s11 + $0x40] ss:$16 sps:$4 sm:$0xff]  }
  0xa9   : > { %2298 = vmatpush1.bf16.msra.mxu0 %v3073_v19  ;;  %v3089_v30 = vld [vmem:[%s4067_s11 + $0x244] ss:$16 sps:$4 sm:$0xff]   ;;  %v3092_v32 = vld [vmem:[%s4067_s11 + $0x240] ss:$16 sps:$4 sm:$0xff]  }
  0xaa   : > { %2341 = vmatpush1.bf16.msra.mxu1 %v3074_v20  ;;  %2299 = vmatprep.subr.bf16.mxu0 %v3075_v21  ;;  %v3093_v33 = vld [vmem:[%s4067_s11 + $0x24] ss:$16 sps:$4 sm:$0xff]   ;;  %v3097_v35 = vld [vmem:[%s4067_s11 + $0x20] ss:$16 sps:$4 sm:$0xff]  }
  0xab   : > { %2342 = vmatprep.subr.bf16.mxu1 %v3077_v22  ;;  %v3095_v34 = vld [vmem:[%s4067_s11 + $0x224] ss:$16 sps:$4 sm:$0xff]   ;;  %v3098_v36 = vld [vmem:[%s4067_s11 + $0x220] ss:$16 sps:$4 sm:$0xff]  }
  0xac   : > { %v3099_v37 = vld [vmem:[%s4067_s11 + $0x4] ss:$16 sps:$4 sm:$0xff]   ;;  %v3103_v39 = vld [vmem:[%s4067_s11] ss:$16 sps:$4 sm:$0xff]  }
  0xad   : > { %2300 = vmatpush1.bf16.msra.mxu0 %v3079_v23  ;;  %v3101_v38 = vld [vmem:[%s4067_s11 + $0x204] ss:$16 sps:$4 sm:$0xff]   ;;  %v3104_v40 = vld [vmem:[%s4067_s11 + $0x200] ss:$16 sps:$4 sm:$0xff]  }
  0xae   : > { %2343 = vmatpush1.bf16.msra.mxu1 %v3080_v24  ;;  %2301 = vmatprep.subr.bf16.mxu0 %v3081_v25  ;;  %v3105_v41 = vld [vmem:[%s4067_s11 + $0x1e4] ss:$16 sps:$4 sm:$0xff]   ;;  %v3109_v43 = vld [vmem:[%s4067_s11 + $0x1e0] ss:$16 sps:$4 sm:$0xff]  }
  0xaf   : > { %2344 = vmatprep.subr.bf16.mxu1 %v3083_v26  ;;  %v3107_v42 = vld [vmem:[%s4067_s11 + $0x3e4] ss:$16 sps:$4 sm:$0xff]   ;;  %v3110_v44 = vld [vmem:[%s4067_s11 + $0x3e0] ss:$16 sps:$4 sm:$0xff]  }
  0xb0   : > { %v3111_v45 = vld [vmem:[%s4067_s11 + $0x1c4] ss:$16 sps:$4 sm:$0xff]   ;;  %v3115_v47 = vld [vmem:[%s4067_s11 + $0x1c0] ss:$16 sps:$4 sm:$0xff]  }
  0xb1   : > { %2302 = vmatpush1.bf16.msra.mxu0 %v3085_v27  ;;  %v3113_v46 = vld [vmem:[%s4067_s11 + $0x3c4] ss:$16 sps:$4 sm:$0xff]   ;;  %v3116_v48 = vld [vmem:[%s4067_s11 + $0x3c0] ss:$16 sps:$4 sm:$0xff]  }
  0xb2   : > { %2345 = vmatpush1.bf16.msra.mxu1 %v3086_v28  ;;  %2303 = vmatprep.subr.bf16.mxu0 %v3087_v29  ;;  %v3117_v49 = vld [vmem:[%s4067_s11 + $0x1a4] ss:$16 sps:$4 sm:$0xff]   ;;  %v3121_v51 = vld [vmem:[%s4067_s11 + $0x1a0] ss:$16 sps:$4 sm:$0xff]  }
  0xb3   : > { %2346 = vmatprep.subr.bf16.mxu1 %v3089_v30  ;;  %v3119_v50 = vld [vmem:[%s4067_s11 + $0x3a4] ss:$16 sps:$4 sm:$0xff]   ;;  %v3122_v52 = vld [vmem:[%s4067_s11 + $0x3a0] ss:$16 sps:$4 sm:$0xff]  }
  0xb4   : > { %v3123_v53 = vld [vmem:[%s4067_s11 + $0x184] ss:$16 sps:$4 sm:$0xff]   ;;  %v3127_v55 = vld [vmem:[%s4067_s11 + $0x180] ss:$16 sps:$4 sm:$0xff]  }
  0xb5   : > { %2304 = vmatpush1.bf16.msra.mxu0 %v3091_v31  ;;  %v3125_v54 = vld [vmem:[%s4067_s11 + $0x384] ss:$16 sps:$4 sm:$0xff]   ;;  %v3128_v56 = vld [vmem:[%s4067_s11 + $0x380] ss:$16 sps:$4 sm:$0xff]  }
  0xb6   : > { %2347 = vmatpush1.bf16.msra.mxu1 %v3092_v32  ;;  %2305 = vmatprep.subr.bf16.mxu0 %v3093_v33  ;;  %v3129_v57 = vld [vmem:[%s4067_s11 + $0x164] ss:$16 sps:$4 sm:$0xff]   ;;  %v3133_v59 = vld [vmem:[%s4067_s11 + $0x160] ss:$16 sps:$4 sm:$0xff]  }
  0xb7   : > { %2348 = vmatprep.subr.bf16.mxu1 %v3095_v34  ;;  %v3131_v58 = vld [vmem:[%s4067_s11 + $0x364] ss:$16 sps:$4 sm:$0xff]   ;;  %v3134_v60 = vld [vmem:[%s4067_s11 + $0x360] ss:$16 sps:$4 sm:$0xff]  }
  0xb8   : > { %v3135_v61 = vld [vmem:[%s4067_s11 + $0x144] ss:$16 sps:$4 sm:$0xff]   ;;  %v3139_v63 = vld [vmem:[%s4067_s11 + $0x140] ss:$16 sps:$4 sm:$0xff]  }
  0xb9   : > { %2306 = vmatpush1.bf16.msra.mxu0 %v3097_v35  ;;  %v3137_v62 = vld [vmem:[%s4067_s11 + $0x344] ss:$16 sps:$4 sm:$0xff]   ;;  %v3140_v0 = vld [vmem:[%s4067_s11 + $0x340] ss:$16 sps:$4 sm:$0xff]  }
  0xba   : > { %2349 = vmatpush1.bf16.msra.mxu1 %v3098_v36  ;;  %2307 = vmatprep.subr.bf16.mxu0 %v3099_v37  ;;  %v3141_v1 = vld [vmem:[%s4067_s11 + $0x124] ss:$16 sps:$4 sm:$0xff]   ;;  %v3145_v5 = vld [vmem:[%s4067_s11 + $0x120] ss:$16 sps:$4 sm:$0xff]  }
  0xbb   : > { %2350 = vmatprep.subr.bf16.mxu1 %v3101_v38  ;;  %v3143_v2 = vld [vmem:[%s4067_s11 + $0x324] ss:$16 sps:$4 sm:$0xff]   ;;  %v3146_v8 = vld [vmem:[%s4067_s11 + $0x320] ss:$16 sps:$4 sm:$0xff]   ;;  %v4177_v38 = vld [vmem:[%s4420_s0 + $0x18] sm:$0xff] }
  0xbc   : > { %v3147_v9 = vld [vmem:[%s4067_s11 + $0x104] ss:$16 sps:$4 sm:$0xff]   ;;  %v3151_v11 = vld [vmem:[%s4067_s11 + $0x100] ss:$16 sps:$4 sm:$0xff]  }
  0xbd   : > { %2308 = vmatpush1.bf16.msra.mxu0 %v3103_v39  ;;  %v3149_v10 = vld [vmem:[%s4067_s11 + $0x304] ss:$16 sps:$4 sm:$0xff]   ;;  %v3152_v12 = vld [vmem:[%s4067_s11 + $0x300] ss:$16 sps:$4 sm:$0xff]  }
  0xbe   : > { %2351 = vmatpush1.bf16.msra.mxu1 %v3104_v40  ;;  %2309 = vmatprep.subr.bf16.mxu0 %v3105_v41  ;;  %v3155_v13 = vld [vmem:[%s4067_s11 + $0x4e4] ss:$16 sps:$4 sm:$0xff]   ;;  %v3153_v17 = vld [vmem:[%s4067_s11 + $0x4e0] ss:$16 sps:$4 sm:$0xff]  }
  0xbf   : > { %2352 = vmatprep.subr.bf16.mxu1 %v3107_v42  ;;  %v3158_v14 = vld [vmem:[%s4067_s11 + $0x6e4] ss:$16 sps:$4 sm:$0xff]   ;;  %v3156_v18 = vld [vmem:[%s4067_s11 + $0x6e0] ss:$16 sps:$4 sm:$0xff]  }
  0xc0   : > { %v4140_v15 = vld [vmem:[%s4420_s0 + $0x10] sm:$0xff] }
  0xc1   : > { %2310 = vmatpush2.bf16.msra.mxu0 %v3109_v43  ;;  %v3161_v19 = vld [vmem:[%s4067_s11 + $0x4c4] ss:$16 sps:$4 sm:$0xff]   ;;  %v4153_v21 = vcombine.high %v4140_v15, %v4145_v16  ;;  %v3159_v22 = vld [vmem:[%s4067_s11 + $0x4c0] ss:$16 sps:$4 sm:$0xff]   ;;  %v4186_v43 = vld [vmem:[%s4420_s0 + $0x38] sm:$0xff] }
  0xc2   : > { %2353 = vmatpush2.bf16.msra.mxu1 %v3110_v44  ;;  %2311 = vmatprep.subr.bf16.mxu0 %v3111_v45  ;;  %v3164_v20 = vld [vmem:[%s4067_s11 + $0x6c4] ss:$16 sps:$4 sm:$0xff]   ;;  %v3162_v23 = vld [vmem:[%s4067_s11 + $0x6c0] ss:$16 sps:$4 sm:$0xff]   ;;  %v4190_v44 = vcombine.high %v4177_v38, %v4186_v43 }
  0xc3   : > { %2354 = vmatprep.subr.bf16.mxu1 %v3113_v46  ;;  %v3167_v24 = vld [vmem:[%s4067_s11 + $0x4a4] ss:$16 sps:$4 sm:$0xff]   ;;  %v3165_v26 = vld [vmem:[%s4067_s11 + $0x4a0] ss:$16 sps:$4 sm:$0xff]  }
  0xc4   : > { %v3170_v25 = vld [vmem:[%s4067_s11 + $0x6a4] ss:$16 sps:$4 sm:$0xff]   ;;  %v3168_v27 = vld [vmem:[%s4067_s11 + $0x6a0] ss:$16 sps:$4 sm:$0xff]  }
  0xc5   : > { %2312 = vmatpush2.bf16.msra.mxu0 %v3115_v47  ;;  %v3173_v28 = vld [vmem:[%s4067_s11 + $0x484] ss:$16 sps:$4 sm:$0xff]   ;;  %v3171_v30 = vld [vmem:[%s4067_s11 + $0x480] ss:$16 sps:$4 sm:$0xff]  }
  0xc6   : > { %2355 = vmatpush2.bf16.msra.mxu1 %v3116_v48  ;;  %2313 = vmatprep.subr.bf16.mxu0 %v3117_v49  ;;  %v3176_v29 = vld [vmem:[%s4067_s11 + $0x684] ss:$16 sps:$4 sm:$0xff]   ;;  %v3174_v31 = vld [vmem:[%s4067_s11 + $0x680] ss:$16 sps:$4 sm:$0xff]  }
  0xc7   : > { %2356 = vmatprep.subr.bf16.mxu1 %v3119_v50  ;;  %v3179_v32 = vld [vmem:[%s4067_s11 + $0x464] ss:$16 sps:$4 sm:$0xff]   ;;  %v3177_v34 = vld [vmem:[%s4067_s11 + $0x460] ss:$16 sps:$4 sm:$0xff]  }
  0xc8   : > { %v3182_v33 = vld [vmem:[%s4067_s11 + $0x664] ss:$16 sps:$4 sm:$0xff]   ;;  %v3180_v35 = vld [vmem:[%s4067_s11 + $0x660] ss:$16 sps:$4 sm:$0xff]  }
  0xc9   : > { %2314 = vmatpush2.bf16.msra.mxu0 %v3121_v51  ;;  %v3185_v36 = vld [vmem:[%s4067_s11 + $0x444] ss:$16 sps:$4 sm:$0xff]   ;;  %v3183_v39 = vld [vmem:[%s4067_s11 + $0x440] ss:$16 sps:$4 sm:$0xff]  }
  0xca   : > { %2357 = vmatpush2.bf16.msra.mxu1 %v3122_v52  ;;  %2315 = vmatprep.subr.bf16.mxu0 %v3123_v53  ;;  %v3188_v37 = vld [vmem:[%s4067_s11 + $0x644] ss:$16 sps:$4 sm:$0xff]   ;;  %v3186_v40 = vld [vmem:[%s4067_s11 + $0x640] ss:$16 sps:$4 sm:$0xff]  }
  0xcb   : > { %2358 = vmatprep.subr.bf16.mxu1 %v3125_v54  ;;  %v3191_v41 = vld [vmem:[%s4067_s11 + $0x424] ss:$16 sps:$4 sm:$0xff]   ;;  %v3189_v45 = vld [vmem:[%s4067_s11 + $0x420] ss:$16 sps:$4 sm:$0xff]  }
  0xcc   : > { %v3194_v42 = vld [vmem:[%s4067_s11 + $0x624] ss:$16 sps:$4 sm:$0xff]   ;;  %v3192_v46 = vld [vmem:[%s4067_s11 + $0x620] ss:$16 sps:$4 sm:$0xff]  }
  0xcd   : > { %2316 = vmatpush2.bf16.msra.mxu0 %v3127_v55  ;;  %v3197_v47 = vld [vmem:[%s4067_s11 + $0x404] ss:$16 sps:$4 sm:$0xff]   ;;  %v3195_v50 = vld [vmem:[%s4067_s11 + $0x400] ss:$16 sps:$4 sm:$0xff]   ;;  %v962_v55 = vld [vmem:[%s4421_s1 + $0x8] sm:$0xff] }
  0xce   : > { %2359 = vmatpush2.bf16.msra.mxu1 %v3128_v56  ;;  %2317 = vmatprep.subr.bf16.mxu0 %v3129_v57  ;;  %v3200_v48 = vld [vmem:[%s4067_s11 + $0x604] ss:$16 sps:$4 sm:$0xff]   ;;  %v3198_v51 = vld [vmem:[%s4067_s11 + $0x600] ss:$16 sps:$4 sm:$0xff]  }
  0xcf   : > { %2360 = vmatprep.subr.bf16.mxu1 %v3131_v58  ;;  %v961_v49 = vld [vmem:[%s4421_s1] sm:$0xff] }
  0xd0   : > { %v3203_v52 = vld [vmem:[%s4067_s11 + $0x5e4] ss:$16 sps:$4 sm:$0xff]   ;;  %965 = vperm.xlu0 %3056, %v961_v49   ;;  %v3201_v54 = vld [vmem:[%s4067_s11 + $0x5e0] ss:$16 sps:$4 sm:$0xff]   ;;  %v3279_v49 = vld [vmem:[%s4067_s11 + $0x48] ss:$16 sps:$4 sm:$0xff]  }
  0xd1   : > { %2318 = vmatpush2.bf16.msra.mxu0 %v3133_v59  ;;  %v3206_v53 = vld [vmem:[%s4067_s11 + $0x7e4] ss:$16 sps:$4 sm:$0xff]   ;;  %v3204_v56 = vld [vmem:[%s4067_s11 + $0x7e0] ss:$16 sps:$4 sm:$0xff]  }
  0xd2   : > { %2361 = vmatpush2.bf16.msra.mxu1 %v3134_v60  ;;  %2319 = vmatprep.subr.bf16.mxu0 %v3135_v61  ;;  %v3209_v57 = vld [vmem:[%s4067_s11 + $0x5c4] ss:$16 sps:$4 sm:$0xff]   ;;  %v3207_v59 = vld [vmem:[%s4067_s11 + $0x5c0] ss:$16 sps:$4 sm:$0xff]  }
  0xd3   : > { %2362 = vmatprep.subr.bf16.mxu1 %v3137_v62  ;;  %v3212_v58 = vld [vmem:[%s4067_s11 + $0x7c4] ss:$16 sps:$4 sm:$0xff]   ;;  %v3210_v60 = vld [vmem:[%s4067_s11 + $0x7c0] ss:$16 sps:$4 sm:$0xff]  }
  0xd4   : > { %970 = vperm.xlu0 %3056, %v962_v55   ;;  %v3215_v61 = vld [vmem:[%s4067_s11 + $0x5a4] ss:$16 sps:$4 sm:$0xff]   ;;  %v3293_v55 = vld [vmem:[%s4067_s11 + $0xc] ss:$16 sps:$4 sm:$0xff]  }
  0xd5   : > { %2320 = vmatpush2.bf16.msra.mxu0 %v3139_v63  ;;  %v3218_v62 = vld [vmem:[%s4067_s11 + $0x7a4] ss:$16 sps:$4 sm:$0xff]   ;;  %v3213_v63 = vld [vmem:[%s4067_s11 + $0x5a0] ss:$16 sps:$4 sm:$0xff]  }
  0xd6   : > { %2363 = vmatpush2.bf16.msra.mxu1 %v3140_v0  ;;  %2321 = vmatprep.subr.bf16.mxu0 %v3141_v1  ;;  %v3216_v0 = vld [vmem:[%s4067_s11 + $0x7a0] ss:$16 sps:$4 sm:$0xff]   ;;  %v3221_v1 = vld [vmem:[%s4067_s11 + $0x584] ss:$16 sps:$4 sm:$0xff]  }
  0xd7   : > { %2364 = vmatprep.subr.bf16.mxu1 %v3143_v2  ;;  %v3224_v2 = vld [vmem:[%s4067_s11 + $0x784] ss:$16 sps:$4 sm:$0xff]  }
  0xd9   : > { %2322 = vmatpush2.bf16.msra.mxu0 %v3145_v5  ;;  %v3219_v5 = vld [vmem:[%s4067_s11 + $0x580] ss:$16 sps:$4 sm:$0xff]  }
  0xda   : > { %2365 = vmatpush2.bf16.msra.mxu1 %v3146_v8  ;;  %2323 = vmatprep.subr.bf16.mxu0 %v3147_v9  ;;  %v3222_v8 = vld [vmem:[%s4067_s11 + $0x780] ss:$16 sps:$4 sm:$0xff]   ;;  %v3227_v9 = vld [vmem:[%s4067_s11 + $0x564] ss:$16 sps:$4 sm:$0xff]  }
  0xdb   : > { %2366 = vmatprep.subr.bf16.mxu1 %v3149_v10  ;;  %v3230_v10 = vld [vmem:[%s4067_s11 + $0x764] ss:$16 sps:$4 sm:$0xff]  }
  0xdd   : > { %2324 = vmatpush2.bf16.msra.mxu0 %v3151_v11  ;;  %v3225_v11 = vld [vmem:[%s4067_s11 + $0x560] ss:$16 sps:$4 sm:$0xff]  }
  0xde   : > { %2367 = vmatpush2.bf16.msra.mxu1 %v3152_v12  ;;  %2379 = vmatprep.subr.bf16.mxu0 %v3155_v13  ;;  %v3228_v12 = vld [vmem:[%s4067_s11 + $0x760] ss:$16 sps:$4 sm:$0xff]   ;;  %v3233_v13 = vld [vmem:[%s4067_s11 + $0x544] ss:$16 sps:$4 sm:$0xff]  }
  0xdf   : > { %2422 = vmatprep.subr.bf16.mxu1 %v3158_v14  ;;  %v3236_v14 = vld [vmem:[%s4067_s11 + $0x744] ss:$16 sps:$4 sm:$0xff]  }
  0xe0   : > { %2326 = vmatmul.mubr.bf16.vlgmr.msra.gmra.mxu0 %v4056_v3 }
  0xe1   : > { %2369 = vmatmul.mubr.bf16.vlgmr.msra.gmra.mxu1 %v4063_v6  ;;  %2380 = vmatpush1.bf16.msra.mxu0 %v3153_v17  ;;  %v3231_v17 = vld [vmem:[%s4067_s11 + $0x540] ss:$16 sps:$4 sm:$0xff]  }
  0xe2   : > { %2423 = vmatpush1.bf16.msra.mxu1 %v3156_v18  ;;  %2381 = vmatprep.subr.bf16.mxu0 %v3161_v19  ;;  %v3234_v18 = vld [vmem:[%s4067_s11 + $0x740] ss:$16 sps:$4 sm:$0xff]   ;;  %v3239_v19 = vld [vmem:[%s4067_s11 + $0x524] ss:$16 sps:$4 sm:$0xff]  }
  0xe3   : > { %2424 = vmatprep.subr.bf16.mxu1 %v3164_v20  ;;  %2411 = vmatprep.mubr.bf16.mxu0 %v4153_v21  ;;  %v3242_v20 = vld [vmem:[%s4067_s11 + $0x724] ss:$16 sps:$4 sm:$0xff]  }
  0xe4   : > { %2454 = vmatprep.mubr.bf16.mxu1 %v4190_v44 }
  0xe5   : > { %2382 = vmatpush1.bf16.msra.mxu0 %v3159_v22  ;;  %v3237_v22 = vld [vmem:[%s4067_s11 + $0x520] ss:$16 sps:$4 sm:$0xff]  }
  0xe6   : > { %2425 = vmatpush1.bf16.msra.mxu1 %v3162_v23  ;;  %2383 = vmatprep.subr.bf16.mxu0 %v3167_v24  ;;  %v3240_v23 = vld [vmem:[%s4067_s11 + $0x720] ss:$16 sps:$4 sm:$0xff]   ;;  %v3245_v24 = vld [vmem:[%s4067_s11 + $0x504] ss:$16 sps:$4 sm:$0xff]  }
  0xe7   : > { %2426 = vmatprep.subr.bf16.mxu1 %v3170_v25  ;;  %v3248_v25 = vld [vmem:[%s4067_s11 + $0x704] ss:$16 sps:$4 sm:$0xff]  }
  0xe9   : > { %2384 = vmatpush1.bf16.msra.mxu0 %v3165_v26  ;;  %v3243_v26 = vld [vmem:[%s4067_s11 + $0x500] ss:$16 sps:$4 sm:$0xff]  }
  0xea   : > { %2427 = vmatpush1.bf16.msra.mxu1 %v3168_v27  ;;  %2385 = vmatprep.subr.bf16.mxu0 %v3173_v28  ;;  %v3246_v27 = vld [vmem:[%s4067_s11 + $0x700] ss:$16 sps:$4 sm:$0xff]   ;;  %v3251_v28 = vld [vmem:[%s4067_s11 + $0xec] ss:$16 sps:$4 sm:$0xff]  }
  0xeb   : > { %2428 = vmatprep.subr.bf16.mxu1 %v3176_v29  ;;  %v3254_v29 = vld [vmem:[%s4067_s11 + $0x2ec] ss:$16 sps:$4 sm:$0xff]  }
  0xed   : > { %2386 = vmatpush1.bf16.msra.mxu0 %v3171_v30  ;;  %v4241_v30 = vcombine.low %v4140_v15, %v4145_v16  ;;  %v3255_v15 = vld [vmem:[%s4067_s11 + $0xc8] ss:$16 sps:$4 sm:$0xff]  }
  0xee   : > { %2429 = vmatpush1.bf16.msra.mxu1 %v3174_v31  ;;  %2387 = vmatprep.subr.bf16.mxu0 %v3179_v32  ;;  %v4245_v31 = vcombine.low %v4177_v38, %v4186_v43  ;;  %v3249_v32 = vld [vmem:[%s4067_s11 + $0xe8] ss:$16 sps:$4 sm:$0xff]   ;;  %v3278_v43 = vld [vmem:[%s4067_s11 + $0x26c] ss:$16 sps:$4 sm:$0xff]  }
  0xef   : > { %2430 = vmatprep.subr.bf16.mxu1 %v3182_v33  ;;  %v3252_v33 = vld [vmem:[%s4067_s11 + $0x2e8] ss:$16 sps:$4 sm:$0xff]  }
  0xf0   : > { %v3258_v16 = vld [vmem:[%s4067_s11 + $0x2c8] ss:$16 sps:$4 sm:$0xff]  }
  0xf1   : > { %2388 = vmatpush1.bf16.msra.mxu0 %v3177_v34  ;;  %v3257_v34 = vld [vmem:[%s4067_s11 + $0xcc] ss:$16 sps:$4 sm:$0xff]   ;;  %v3261_v38 = vld [vmem:[%s4067_s11 + $0xa8] ss:$16 sps:$4 sm:$0xff]  }
  0xf2   : > { %2431 = vmatpush1.bf16.msra.mxu1 %v3180_v35  ;;  %2389 = vmatprep.subr.bf16.mxu0 %v3185_v36  ;;  %v3260_v35 = vld [vmem:[%s4067_s11 + $0x2cc] ss:$16 sps:$4 sm:$0xff]  }
  0xf3   : > { %2432 = vmatprep.subr.bf16.mxu1 %v3188_v37  ;;  %v3263_v36 = vld [vmem:[%s4067_s11 + $0xac] ss:$16 sps:$4 sm:$0xff]  }
  0xf4   : > { %v3266_v37 = vld [vmem:[%s4067_s11 + $0x2ac] ss:$16 sps:$4 sm:$0xff]  }
  0xf5   : > { %2390 = vmatpush1.bf16.msra.mxu0 %v3183_v39  ;;  %v3264_v39 = vld [vmem:[%s4067_s11 + $0x2a8] ss:$16 sps:$4 sm:$0xff]  }
  0xf6   : > { %2433 = vmatpush1.bf16.msra.mxu1 %v3186_v40  ;;  %2391 = vmatprep.subr.bf16.mxu0 %v3191_v41  ;;  %v3269_v40 = vld [vmem:[%s4067_s11 + $0x8c] ss:$16 sps:$4 sm:$0xff]  }
  0xf7   : > { %2434 = vmatprep.subr.bf16.mxu1 %v3194_v42  ;;  %v3272_v41 = vld [vmem:[%s4067_s11 + $0x28c] ss:$16 sps:$4 sm:$0xff]   ;;  %v3267_v42 = vld [vmem:[%s4067_s11 + $0x88] ss:$16 sps:$4 sm:$0xff]  }
  0xf9   : > { %2392 = vmatpush1.bf16.msra.mxu0 %v3189_v45  ;;  %v3273_v45 = vld [vmem:[%s4067_s11 + $0x68] ss:$16 sps:$4 sm:$0xff]  }
  0xfa   : > { %2435 = vmatpush1.bf16.msra.mxu1 %v3192_v46  ;;  %2393 = vmatprep.subr.bf16.mxu0 %v3197_v47  ;;  %v3276_v46 = vld [vmem:[%s4067_s11 + $0x268] ss:$16 sps:$4 sm:$0xff]   ;;  %v3281_v47 = vld [vmem:[%s4067_s11 + $0x4c] ss:$16 sps:$4 sm:$0xff]  }
  0xfb   : > { %2436 = vmatprep.subr.bf16.mxu1 %v3200_v48  ;;  %v3284_v48 = vld [vmem:[%s4067_s11 + $0x24c] ss:$16 sps:$4 sm:$0xff]  }
  0xfd   : > { %2394 = vmatpush1.bf16.msra.mxu0 %v3195_v50  ;;  %v3282_v50 = vld [vmem:[%s4067_s11 + $0x248] ss:$16 sps:$4 sm:$0xff]  }
  0xfe   : > { %2437 = vmatpush1.bf16.msra.mxu1 %v3198_v51  ;;  %2395 = vmatprep.subr.bf16.mxu0 %v3203_v52  ;;  %v3287_v51 = vld [vmem:[%s4067_s11 + $0x2c] ss:$16 sps:$4 sm:$0xff]  }
  0xff   : > { %2438 = vmatprep.subr.bf16.mxu1 %v3206_v53  ;;  %v3290_v52 = vld [vmem:[%s4067_s11 + $0x22c] ss:$16 sps:$4 sm:$0xff]   ;;  %v3285_v53 = vld [vmem:[%s4067_s11 + $0x28] ss:$16 sps:$4 sm:$0xff]  }
 0x101   : > { %2396 = vmatpush2.bf16.msra.mxu0 %v3201_v54  ;;  %v3288_v54 = vld [vmem:[%s4067_s11 + $0x228] ss:$16 sps:$4 sm:$0xff]  }
 0x102   : > { %2439 = vmatpush2.bf16.msra.mxu1 %v3204_v56  ;;  %2397 = vmatprep.subr.bf16.mxu0 %v3209_v57  ;;  %v3296_v56 = vld [vmem:[%s4067_s11 + $0x20c] ss:$16 sps:$4 sm:$0xff]   ;;  %v3291_v57 = vld [vmem:[%s4067_s11 + $0x8] ss:$16 sps:$4 sm:$0xff]  }
 0x103   : > { %2440 = vmatprep.subr.bf16.mxu1 %v3212_v58  ;;  %v3294_v58 = vld [vmem:[%s4067_s11 + $0x208] ss:$16 sps:$4 sm:$0xff]  }
 0x105   : > { %2398 = vmatpush2.bf16.msra.mxu0 %v3207_v59  ;;  %v3299_v59 = vld [vmem:[%s4067_s11 + $0x1ec] ss:$16 sps:$4 sm:$0xff]  }
 0x106   : > { %2441 = vmatpush2.bf16.msra.mxu1 %v3210_v60  ;;  %2399 = vmatprep.subr.bf16.mxu0 %v3215_v61  ;;  %v3302_v60 = vld [vmem:[%s4067_s11 + $0x3ec] ss:$16 sps:$4 sm:$0xff]   ;;  %v3297_v61 = vld [vmem:[%s4067_s11 + $0x1e8] ss:$16 sps:$4 sm:$0xff]  }
 0x107   : > { %2442 = vmatprep.subr.bf16.mxu1 %v3218_v62  ;;  %v3300_v62 = vld [vmem:[%s4067_s11 + $0x3e8] ss:$16 sps:$4 sm:$0xff]  }
 0x109   : > { %2400 = vmatpush2.bf16.msra.mxu0 %v3213_v63  ;;  %v3305_v63 = vld [vmem:[%s4067_s11 + $0x1cc] ss:$16 sps:$4 sm:$0xff]  }
 0x10a   : > { %2443 = vmatpush2.bf16.msra.mxu1 %v3216_v0  ;;  %2401 = vmatprep.subr.bf16.mxu0 %v3221_v1  ;;  %v3308_v0 = vld [vmem:[%s4067_s11 + $0x3cc] ss:$16 sps:$4 sm:$0xff]   ;;  %v3303_v1 = vld [vmem:[%s4067_s11 + $0x1c8] ss:$16 sps:$4 sm:$0xff]  }
 0x10b   : > { %2444 = vmatprep.subr.bf16.mxu1 %v3224_v2  ;;  %v3306_v2 = vld [vmem:[%s4067_s11 + $0x3c8] ss:$16 sps:$4 sm:$0xff]  }
 0x10d   : > { %2402 = vmatpush2.bf16.msra.mxu0 %v3219_v5  ;;  %v3311_v5 = vld [vmem:[%s4067_s11 + $0x1ac] ss:$16 sps:$4 sm:$0xff]  }
 0x10e   : > { %2445 = vmatpush2.bf16.msra.mxu1 %v3222_v8  ;;  %2403 = vmatprep.subr.bf16.mxu0 %v3227_v9  ;;  %v3314_v8 = vld [vmem:[%s4067_s11 + $0x3ac] ss:$16 sps:$4 sm:$0xff]   ;;  %v3309_v9 = vld [vmem:[%s4067_s11 + $0x1a8] ss:$16 sps:$4 sm:$0xff]  }
 0x10f   : > { %2446 = vmatprep.subr.bf16.mxu1 %v3230_v10  ;;  %v3312_v10 = vld [vmem:[%s4067_s11 + $0x3a8] ss:$16 sps:$4 sm:$0xff]  }
 0x111   : > { %2404 = vmatpush2.bf16.msra.mxu0 %v3225_v11  ;;  %v3317_v11 = vld [vmem:[%s4067_s11 + $0x18c] ss:$16 sps:$4 sm:$0xff]  }
 0x112   : > { %2447 = vmatpush2.bf16.msra.mxu1 %v3228_v12  ;;  %2405 = vmatprep.subr.bf16.mxu0 %v3233_v13  ;;  %v3320_v12 = vld [vmem:[%s4067_s11 + $0x38c] ss:$16 sps:$4 sm:$0xff]   ;;  %v3315_v13 = vld [vmem:[%s4067_s11 + $0x188] ss:$16 sps:$4 sm:$0xff]  }
 0x113   : > { %2448 = vmatprep.subr.bf16.mxu1 %v3236_v14  ;;  %v3318_v14 = vld [vmem:[%s4067_s11 + $0x388] ss:$16 sps:$4 sm:$0xff]  }
 0x115   : > { %2406 = vmatpush2.bf16.msra.mxu0 %v3231_v17  ;;  %v3323_v17 = vld [vmem:[%s4067_s11 + $0x16c] ss:$16 sps:$4 sm:$0xff]  }
 0x116   : > { %2449 = vmatpush2.bf16.msra.mxu1 %v3234_v18  ;;  %2407 = vmatprep.subr.bf16.mxu0 %v3239_v19  ;;  %v3326_v18 = vld [vmem:[%s4067_s11 + $0x36c] ss:$16 sps:$4 sm:$0xff]   ;;  %v3321_v19 = vld [vmem:[%s4067_s11 + $0x168] ss:$16 sps:$4 sm:$0xff]  }
 0x117   : > { %2450 = vmatprep.subr.bf16.mxu1 %v3242_v20  ;;  %v3324_v20 = vld [vmem:[%s4067_s11 + $0x368] ss:$16 sps:$4 sm:$0xff]  }
 0x119   : > { %2408 = vmatpush2.bf16.msra.mxu0 %v3237_v22  ;;  %v3329_v22 = vld [vmem:[%s4067_s11 + $0x14c] ss:$16 sps:$4 sm:$0xff]  }
 0x11a   : > { %2451 = vmatpush2.bf16.msra.mxu1 %v3240_v23  ;;  %2409 = vmatprep.subr.bf16.mxu0 %v3245_v24  ;;  %v3332_v23 = vld [vmem:[%s4067_s11 + $0x34c] ss:$16 sps:$4 sm:$0xff]   ;;  %v3327_v24 = vld [vmem:[%s4067_s11 + $0x148] ss:$16 sps:$4 sm:$0xff]  }
 0x11b   : > { %2452 = vmatprep.subr.bf16.mxu1 %v3248_v25  ;;  %v3330_v25 = vld [vmem:[%s4067_s11 + $0x348] ss:$16 sps:$4 sm:$0xff]  }
 0x11d   : > { %2410 = vmatpush2.bf16.msra.mxu0 %v3243_v26  ;;  %v3335_v26 = vld [vmem:[%s4067_s11 + $0x12c] ss:$16 sps:$4 sm:$0xff]  }
 0x11e   : > { %2453 = vmatpush2.bf16.msra.mxu1 %v3246_v27  ;;  %2465 = vmatprep.subr.bf16.mxu0 %v3251_v28  ;;  %v3338_v27 = vld [vmem:[%s4067_s11 + $0x32c] ss:$16 sps:$4 sm:$0xff]   ;;  %v3333_v28 = vld [vmem:[%s4067_s11 + $0x128] ss:$16 sps:$4 sm:$0xff]  }
 0x11f   : > { %2508 = vmatprep.subr.bf16.mxu1 %v3254_v29  ;;  %v3336_v29 = vld [vmem:[%s4067_s11 + $0x328] ss:$16 sps:$4 sm:$0xff]  }
 0x120   : > { %2412 = vmatmul.mubr.bf16.vlgmr.msra.gmra.mxu0 %v4241_v30 }
 0x121   : > { %2455 = vmatmul.mubr.bf16.vlgmr.msra.gmra.mxu1 %v4245_v31  ;;  %2466 = vmatpush1.bf16.msra.mxu0 %v3249_v32  ;;  %v3341_v32 = vld [vmem:[%s4067_s11 + $0x10c] ss:$16 sps:$4 sm:$0xff]  }
 0x122   : > { %2509 = vmatpush1.bf16.msra.mxu1 %v3252_v33  ;;  %2467 = vmatprep.subr.bf16.mxu0 %v3257_v34  ;;  %v3344_v33 = vld [vmem:[%s4067_s11 + $0x30c] ss:$16 sps:$4 sm:$0xff]   ;;  %v3339_v34 = vld [vmem:[%s4067_s11 + $0x108] ss:$16 sps:$4 sm:$0xff]  }
 0x123   : > { %2510 = vmatprep.subr.bf16.mxu1 %v3260_v35  ;;  %2497 = vmatprep.mubr.bf16.mxu0 %v4058_v4  ;;  %v3270_v4 = vld [vmem:[%s4067_s11 + $0x288] ss:$16 sps:$4 sm:$0xff]  }
 0x124   : > { %2540 = vmatprep.mubr.bf16.mxu1 %v4065_v7  ;;  %v3275_v7 = vld [vmem:[%s4067_s11 + $0x6c] ss:$16 sps:$4 sm:$0xff]   ;;  %v3342_v35 = vld [vmem:[%s4067_s11 + $0x308] ss:$16 sps:$4 sm:$0xff]  }
 0x125   : > { %2468 = vmatpush1.bf16.msra.mxu0 %v3255_v15  ;;  %v3347_v15 = vld [vmem:[%s4067_s11 + $0x4ec] ss:$16 sps:$4 sm:$0xff]  }
 0x126   : > { %2511 = vmatpush1.bf16.msra.mxu1 %v3258_v16  ;;  %2469 = vmatprep.subr.bf16.mxu0 %v3263_v36  ;;  %v3350_v16 = vld [vmem:[%s4067_s11 + $0x6ec] ss:$16 sps:$4 sm:$0xff]   ;;  %v3345_v36 = vld [vmem:[%s4067_s11 + $0x4e8] ss:$16 sps:$4 sm:$0xff]  }
 0x127   : > { %2512 = vmatprep.subr.bf16.mxu1 %v3266_v37  ;;  %v3348_v37 = vld [vmem:[%s4067_s11 + $0x6e8] ss:$16 sps:$4 sm:$0xff]  }
 0x129   : > { %2470 = vmatpush1.bf16.msra.mxu0 %v3261_v38  ;;  %v3353_v38 = vld [vmem:[%s4067_s11 + $0x4cc] ss:$16 sps:$4 sm:$0xff]  }
 0x12a   : > { %2513 = vmatpush1.bf16.msra.mxu1 %v3264_v39  ;;  %2471 = vmatprep.subr.bf16.mxu0 %v3269_v40  ;;  %v3356_v39 = vld [vmem:[%s4067_s11 + $0x6cc] ss:$16 sps:$4 sm:$0xff]   ;;  %v3351_v40 = vld [vmem:[%s4067_s11 + $0x4c8] ss:$16 sps:$4 sm:$0xff]  }
 0x12b   : > { %2514 = vmatprep.subr.bf16.mxu1 %v3272_v41  ;;  %v3354_v41 = vld [vmem:[%s4067_s11 + $0x6c8] ss:$16 sps:$4 sm:$0xff]  }
 0x12d   : > { %2472 = vmatpush1.bf16.msra.mxu0 %v3267_v42  ;;  %v3359_v42 = vld [vmem:[%s4067_s11 + $0x4ac] ss:$16 sps:$4 sm:$0xff]  }
 0x12e   : > { %2515 = vmatpush1.bf16.msra.mxu1 %v3270_v4  ;;  %2473 = vmatprep.subr.bf16.mxu0 %v3275_v7  ;;  %v3362_v4 = vld [vmem:[%s4067_s11 + $0x6ac] ss:$16 sps:$4 sm:$0xff]  }
 0x12f   : > { %2516 = vmatprep.subr.bf16.mxu1 %v3278_v43  ;;  %v3365_v7 = vld [vmem:[%s4067_s11 + $0x48c] ss:$16 sps:$4 sm:$0xff]  }
 0x130   : > { %v3368_v43 = vld [vmem:[%s4067_s11 + $0x68c] ss:$16 sps:$4 sm:$0xff]  }
 0x131   : > { %2474 = vmatpush1.bf16.msra.mxu0 %v3273_v45  ;;  %v3363_v45 = vld [vmem:[%s4067_s11 + $0x488] ss:$16 sps:$4 sm:$0xff]  }
 0x132   : > { %2517 = vmatpush1.bf16.msra.mxu1 %v3276_v46  ;;  %2475 = vmatprep.subr.bf16.mxu0 %v3281_v47  ;;  %v3374_v46 = vld [vmem:[%s4067_s11 + $0x66c] ss:$16 sps:$4 sm:$0xff]   ;;  %v3369_v47 = vld [vmem:[%s4067_s11 + $0x468] ss:$16 sps:$4 sm:$0xff]  }
 0x133   : > { %2518 = vmatprep.subr.bf16.mxu1 %v3284_v48  ;;  %v3372_v48 = vld [vmem:[%s4067_s11 + $0x668] ss:$16 sps:$4 sm:$0xff]  }
 0x135   : > { %2476 = vmatpush1.bf16.msra.mxu0 %v3279_v49  ;;  %v3377_v49 = vld [vmem:[%s4067_s11 + $0x44c] ss:$16 sps:$4 sm:$0xff]  }
 0x136   : > { %2519 = vmatpush1.bf16.msra.mxu1 %v3282_v50  ;;  %2477 = vmatprep.subr.bf16.mxu0 %v3287_v51  ;;  %v3380_v50 = vld [vmem:[%s4067_s11 + $0x64c] ss:$16 sps:$4 sm:$0xff]   ;;  %v3375_v51 = vld [vmem:[%s4067_s11 + $0x448] ss:$16 sps:$4 sm:$0xff]  }
 0x137   : > { %2520 = vmatprep.subr.bf16.mxu1 %v3290_v52  ;;  %v3378_v52 = vld [vmem:[%s4067_s11 + $0x648] ss:$16 sps:$4 sm:$0xff]  }
 0x139   : > { %2478 = vmatpush1.bf16.msra.mxu0 %v3285_v53  ;;  %v3383_v53 = vld [vmem:[%s4067_s11 + $0x42c] ss:$16 sps:$4 sm:$0xff]  }
 0x13a   : > { %2521 = vmatpush1.bf16.msra.mxu1 %v3288_v54  ;;  %2479 = vmatprep.subr.bf16.mxu0 %v3293_v55  ;;  %v3386_v54 = vld [vmem:[%s4067_s11 + $0x62c] ss:$16 sps:$4 sm:$0xff]   ;;  %v3381_v55 = vld [vmem:[%s4067_s11 + $0x428] ss:$16 sps:$4 sm:$0xff]  }
 0x13b   : > { %2522 = vmatprep.subr.bf16.mxu1 %v3296_v56  ;;  %v3384_v56 = vld [vmem:[%s4067_s11 + $0x628] ss:$16 sps:$4 sm:$0xff]  }
 0x13d   : > { %2480 = vmatpush1.bf16.msra.mxu0 %v3291_v57  ;;  %v3389_v57 = vld [vmem:[%s4067_s11 + $0x40c] ss:$16 sps:$4 sm:$0xff]  }
 0x13e   : > { %2523 = vmatpush1.bf16.msra.mxu1 %v3294_v58  ;;  %2481 = vmatprep.subr.bf16.mxu0 %v3299_v59  ;;  %v3392_v58 = vld [vmem:[%s4067_s11 + $0x60c] ss:$16 sps:$4 sm:$0xff]   ;;  %v3387_v59 = vld [vmem:[%s4067_s11 + $0x408] ss:$16 sps:$4 sm:$0xff]  }
 0x13f   : > { %2524 = vmatprep.subr.bf16.mxu1 %v3302_v60  ;;  %v3390_v60 = vld [vmem:[%s4067_s11 + $0x608] ss:$16 sps:$4 sm:$0xff]  }
 0x141   : > { %2482 = vmatpush2.bf16.msra.mxu0 %v3297_v61  ;;  %v3395_v61 = vld [vmem:[%s4067_s11 + $0x5ec] ss:$16 sps:$4 sm:$0xff]  }
 0x142   : > { %2525 = vmatpush2.bf16.msra.mxu1 %v3300_v62  ;;  %2483 = vmatprep.subr.bf16.mxu0 %v3305_v63  ;;  %v3398_v62 = vld [vmem:[%s4067_s11 + $0x7ec] ss:$16 sps:$4 sm:$0xff]   ;;  %v3393_v63 = vld [vmem:[%s4067_s11 + $0x5e8] ss:$16 sps:$4 sm:$0xff]  }
 0x143   : > { %2526 = vmatprep.subr.bf16.mxu1 %v3308_v0  ;;  %v3396_v0 = vld [vmem:[%s4067_s11 + $0x7e8] ss:$16 sps:$4 sm:$0xff]  }
 0x145   : > { %2484 = vmatpush2.bf16.msra.mxu0 %v3303_v1  ;;  %v3401_v1 = vld [vmem:[%s4067_s11 + $0x5cc] ss:$16 sps:$4 sm:$0xff]  }
 0x146   : > { %2527 = vmatpush2.bf16.msra.mxu1 %v3306_v2  ;;  %2485 = vmatprep.subr.bf16.mxu0 %v3311_v5  ;;  %v3404_v2 = vld [vmem:[%s4067_s11 + $0x7cc] ss:$16 sps:$4 sm:$0xff]   ;;  %v3399_v5 = vld [vmem:[%s4067_s11 + $0x5c8] ss:$16 sps:$4 sm:$0xff]  }
 0x147   : > { %2528 = vmatprep.subr.bf16.mxu1 %v3314_v8  ;;  %v3402_v8 = vld [vmem:[%s4067_s11 + $0x7c8] ss:$16 sps:$4 sm:$0xff]  }
 0x149   : > { %2486 = vmatpush2.bf16.msra.mxu0 %v3309_v9  ;;  %v3407_v9 = vld [vmem:[%s4067_s11 + $0x5ac] ss:$16 sps:$4 sm:$0xff]  }
 0x14a   : > { %2529 = vmatpush2.bf16.msra.mxu1 %v3312_v10  ;;  %2487 = vmatprep.subr.bf16.mxu0 %v3317_v11  ;;  %v3410_v10 = vld [vmem:[%s4067_s11 + $0x7ac] ss:$16 sps:$4 sm:$0xff]   ;;  %v3405_v11 = vld [vmem:[%s4067_s11 + $0x5a8] ss:$16 sps:$4 sm:$0xff]  }
 0x14b   : > { %2530 = vmatprep.subr.bf16.mxu1 %v3320_v12  ;;  %v3408_v12 = vld [vmem:[%s4067_s11 + $0x7a8] ss:$16 sps:$4 sm:$0xff]  }
 0x14d   : > { %2488 = vmatpush2.bf16.msra.mxu0 %v3315_v13  ;;  %v3413_v13 = vld [vmem:[%s4067_s11 + $0x58c] ss:$16 sps:$4 sm:$0xff]  }
 0x14e   : > { %2531 = vmatpush2.bf16.msra.mxu1 %v3318_v14  ;;  %2489 = vmatprep.subr.bf16.mxu0 %v3323_v17  ;;  %v3416_v14 = vld [vmem:[%s4067_s11 + $0x78c] ss:$16 sps:$4 sm:$0xff]   ;;  %v3411_v17 = vld [vmem:[%s4067_s11 + $0x588] ss:$16 sps:$4 sm:$0xff]  }
 0x14f   : > { %2532 = vmatprep.subr.bf16.mxu1 %v3326_v18  ;;  %v3414_v18 = vld [vmem:[%s4067_s11 + $0x788] ss:$16 sps:$4 sm:$0xff]  }
 0x151   : > { %2490 = vmatpush2.bf16.msra.mxu0 %v3321_v19  ;;  %v3419_v19 = vld [vmem:[%s4067_s11 + $0x56c] ss:$16 sps:$4 sm:$0xff]  }
 0x152   : > { %2533 = vmatpush2.bf16.msra.mxu1 %v3324_v20  ;;  %2491 = vmatprep.subr.bf16.mxu0 %v3329_v22  ;;  %v3422_v20 = vld [vmem:[%s4067_s11 + $0x76c] ss:$16 sps:$4 sm:$0xff]   ;;  %v3417_v22 = vld [vmem:[%s4067_s11 + $0x568] ss:$16 sps:$4 sm:$0xff]  }
 0x153   : > { %2534 = vmatprep.subr.bf16.mxu1 %v3332_v23  ;;  %v3420_v23 = vld [vmem:[%s4067_s11 + $0x768] ss:$16 sps:$4 sm:$0xff]  }
 0x155   : > { %2492 = vmatpush2.bf16.msra.mxu0 %v3327_v24  ;;  %v3425_v24 = vld [vmem:[%s4067_s11 + $0x54c] ss:$16 sps:$4 sm:$0xff]  }
 0x156   : > { %2535 = vmatpush2.bf16.msra.mxu1 %v3330_v25  ;;  %2493 = vmatprep.subr.bf16.mxu0 %v3335_v26  ;;  %v3428_v25 = vld [vmem:[%s4067_s11 + $0x74c] ss:$16 sps:$4 sm:$0xff]   ;;  %v3423_v26 = vld [vmem:[%s4067_s11 + $0x548] ss:$16 sps:$4 sm:$0xff]  }
 0x157   : > { %2536 = vmatprep.subr.bf16.mxu1 %v3338_v27  ;;  %v3426_v27 = vld [vmem:[%s4067_s11 + $0x748] ss:$16 sps:$4 sm:$0xff]  }
 0x159   : > { %2494 = vmatpush2.bf16.msra.mxu0 %v3333_v28  ;;  %v3431_v28 = vld [vmem:[%s4067_s11 + $0x52c] ss:$16 sps:$4 sm:$0xff]  }
 0x15a   : > { %2537 = vmatpush2.bf16.msra.mxu1 %v3336_v29  ;;  %2495 = vmatprep.subr.bf16.mxu0 %v3341_v32  ;;  %v3434_v29 = vld [vmem:[%s4067_s11 + $0x72c] ss:$16 sps:$4 sm:$0xff]   ;;  %v3429_v32 = vld [vmem:[%s4067_s11 + $0x528] ss:$16 sps:$4 sm:$0xff]  }
 0x15b   : > { %2538 = vmatprep.subr.bf16.mxu1 %v3344_v33  ;;  %v3432_v33 = vld [vmem:[%s4067_s11 + $0x728] ss:$16 sps:$4 sm:$0xff]  }
 0x15d   : > { %2496 = vmatpush2.bf16.msra.mxu0 %v3339_v34  ;;  %v3437_v34 = vld [vmem:[%s4067_s11 + $0x50c] ss:$16 sps:$4 sm:$0xff]  }
 0x15e   : > { %2539 = vmatpush2.bf16.msra.mxu1 %v3342_v35  ;;  %2551 = vmatprep.subr.bf16.mxu0 %v3347_v15  ;;  %v3440_v35 = vld [vmem:[%s4067_s11 + $0x70c] ss:$16 sps:$4 sm:$0xff]   ;;  %v3435_v15 = vld [vmem:[%s4067_s11 + $0x508] ss:$16 sps:$4 sm:$0xff]  }
 0x15f   : > { %2594 = vmatprep.subr.bf16.mxu1 %v3350_v16  ;;  %v3438_v16 = vld [vmem:[%s4067_s11 + $0x708] ss:$16 sps:$4 sm:$0xff]  }
 0x160   : > { %2498 = vmatmul.mubr.bf16.vlgmr.msra.gmra.mxu0 %v4056_v3  ;;  %v3357_v3 = vld [vmem:[%s4067_s11 + $0x4a8] ss:$16 sps:$4 sm:$0xff]  }
 0x161   : > { %2541 = vmatmul.mubr.bf16.vlgmr.msra.gmra.mxu1 %v4063_v6  ;;  %2552 = vmatpush1.bf16.msra.mxu0 %v3345_v36  ;;  %v3360_v6 = vld [vmem:[%s4067_s11 + $0x6a8] ss:$16 sps:$4 sm:$0xff]  }
 0x162   : > { %2595 = vmatpush1.bf16.msra.mxu1 %v3348_v37  ;;  %2553 = vmatprep.subr.bf16.mxu0 %v3353_v38  ;;  %v966_v38 = vpop.permute.xlu0 %965 }
 0x163   : > { %2596 = vmatprep.subr.bf16.mxu1 %v3356_v39  ;;  %2583 = vmatprep.mubr.bf16.mxu0 %v4153_v21  ;;  %v3366_v21 = vld [vmem:[%s4067_s11 + $0x688] ss:$16 sps:$4 sm:$0xff]  }
 0x164   : > { %2626 = vmatprep.mubr.bf16.mxu1 %v4190_v44  ;;  %v3371_v44 = vld [vmem:[%s4067_s11 + $0x46c] ss:$16 sps:$4 sm:$0xff]  }
 0x165   : > { %2554 = vmatpush1.bf16.msra.mxu0 %v3351_v40 }
 0x166   : > { %2597 = vmatpush1.bf16.msra.mxu1 %v3354_v41  ;;  %2555 = vmatprep.subr.bf16.mxu0 %v3359_v42 }
 0x167   : > { %2598 = vmatprep.subr.bf16.mxu1 %v3362_v4 }
 0x169   : > { %2556 = vmatpush1.bf16.msra.mxu0 %v3357_v3  ;;  %v971_v3 = vpop.permute.xlu0 %970 }
 0x16a   : > { %2599 = vmatpush1.bf16.msra.mxu1 %v3360_v6  ;;  %2557 = vmatprep.subr.bf16.mxu0 %v3365_v7 }
 0x16b   : > { %2600 = vmatprep.subr.bf16.mxu1 %v3368_v43 }
 0x16d   : > { %2558 = vmatpush1.bf16.msra.mxu0 %v3363_v45 }
 0x16e   : > { %2601 = vmatpush1.bf16.msra.mxu1 %v3366_v21  ;;  %2559 = vmatprep.subr.bf16.mxu0 %v3371_v44 }
 0x16f   : > { %2602 = vmatprep.subr.bf16.mxu1 %v3374_v46 }
 0x171   : > { %2560 = vmatpush1.bf16.msra.mxu0 %v3369_v47 }
 0x172   : > { %2603 = vmatpush1.bf16.msra.mxu1 %v3372_v48  ;;  %2561 = vmatprep.subr.bf16.mxu0 %v3377_v49 }
 0x173   : > { %2604 = vmatprep.subr.bf16.mxu1 %v3380_v50 }
 0x175   : > { %2562 = vmatpush1.bf16.msra.mxu0 %v3375_v51 }
 0x176   : > { %2605 = vmatpush1.bf16.msra.mxu1 %v3378_v52  ;;  %2563 = vmatprep.subr.bf16.mxu0 %v3383_v53 }
 0x177   : > { %2606 = vmatprep.subr.bf16.mxu1 %v3386_v54 }
 0x179   : > { %2564 = vmatpush1.bf16.msra.mxu0 %v3381_v55 }
 0x17a   : > { %2607 = vmatpush1.bf16.msra.mxu1 %v3384_v56  ;;  %2565 = vmatprep.subr.bf16.mxu0 %v3389_v57 }
 0x17b   : > { %2608 = vmatprep.subr.bf16.mxu1 %v3392_v58 }
 0x17d   : > { %2566 = vmatpush1.bf16.msra.mxu0 %v3387_v59 }
 0x17e   : > { %2609 = vmatpush1.bf16.msra.mxu1 %v3390_v60  ;;  %2567 = vmatprep.subr.bf16.mxu0 %v3395_v61 }
 0x17f   : > { %2610 = vmatprep.subr.bf16.mxu1 %v3398_v62 }
 0x181   : > { %2568 = vmatpush2.bf16.msra.mxu0 %v3393_v63 }
 0x182   : > { %2611 = vmatpush2.bf16.msra.mxu1 %v3396_v0  ;;  %2569 = vmatprep.subr.bf16.mxu0 %v3401_v1 }
 0x183   : > { %2612 = vmatprep.subr.bf16.mxu1 %v3404_v2 }
 0x185   : > { %2570 = vmatpush2.bf16.msra.mxu0 %v3399_v5 }
 0x186   : > { %2613 = vmatpush2.bf16.msra.mxu1 %v3402_v8  ;;  %2571 = vmatprep.subr.bf16.mxu0 %v3407_v9 }
 0x187   : > { %2614 = vmatprep.subr.bf16.mxu1 %v3410_v10 }
 0x189   : > { %2572 = vmatpush2.bf16.msra.mxu0 %v3405_v11 }
 0x18a   : > { %2615 = vmatpush2.bf16.msra.mxu1 %v3408_v12  ;;  %2573 = vmatprep.subr.bf16.mxu0 %v3413_v13 }
 0x18b   : > { %2616 = vmatprep.subr.bf16.mxu1 %v3416_v14 }
 0x18d   : > { %2574 = vmatpush2.bf16.msra.mxu0 %v3411_v17 }
 0x18e   : > { %2617 = vmatpush2.bf16.msra.mxu1 %v3414_v18  ;;  %2575 = vmatprep.subr.bf16.mxu0 %v3419_v19 }
 0x18f   : > { %2618 = vmatprep.subr.bf16.mxu1 %v3422_v20 }
 0x191   : > { %2576 = vmatpush2.bf16.msra.mxu0 %v3417_v22 }
 0x192   : > { %2619 = vmatpush2.bf16.msra.mxu1 %v3420_v23  ;;  %2577 = vmatprep.subr.bf16.mxu0 %v3425_v24 }
 0x193   : > { %2620 = vmatprep.subr.bf16.mxu1 %v3428_v25 }
 0x195   : > { %2578 = vmatpush2.bf16.msra.mxu0 %v3423_v26 }
 0x196   : > { %2621 = vmatpush2.bf16.msra.mxu1 %v3426_v27  ;;  %2579 = vmatprep.subr.bf16.mxu0 %v3431_v28 }
 0x197   : > { %2622 = vmatprep.subr.bf16.mxu1 %v3434_v29 }
 0x199   : > { %2580 = vmatpush2.bf16.msra.mxu0 %v3429_v32 }
 0x19a   : > { %2623 = vmatpush2.bf16.msra.mxu1 %v3432_v33  ;;  %2581 = vmatprep.subr.bf16.mxu0 %v3437_v34 }
 0x19b   : > { %2624 = vmatprep.subr.bf16.mxu1 %v3440_v35 }
 0x19d   : > { %2582 = vmatpush2.bf16.msra.mxu0 %v3435_v15 }
 0x19e   : > { %2625 = vmatpush2.bf16.msra.mxu1 %v3438_v16 }
 0x1a0   : > { %2584 = vmatmul.mubr.bf16.vlgmr.msra.gmra.mxu0 %v4241_v30  ;;  %v2327_v36 = vpop.f32.mrf.mxu0 }
 0x1a1   : > { %2627 = vmatmul.mubr.bf16.vlgmr.msra.gmra.mxu1 %v4245_v31  ;;  %v2370_v37 = vpop.f32.mrf.mxu1  ;;  %v2328_v4 = vadd.f32 %v2327_v36, %v966_v38 }
 0x1a2   : > { %v2329_v39 = vpop.f32.mrf.mxu0 }
 0x1a3   : > { %v2372_v40 = vpop.f32.mrf.mxu1  ;;  %v2330_v6 = vadd.f32 %v2329_v39, %v966_v38  ;;  %v2371_v45 = vadd.f32 %v2370_v37, %v2328_v4 }
 0x1a4   : > { %v2331_v41 = vpop.f32.mrf.mxu0 }
 0x1a5   : > { %v2374_v42 = vpop.f32.mrf.mxu1  ;;  %v2332_v21 = vadd.f32 %v2331_v41, %v971_v3  ;;  %v2373_v30 = vadd.f32 %v2372_v40, %v2330_v6 }
 0x1a6   : > { %v2333_v7 = vpop.f32.mrf.mxu0 }
 0x1a7   : > { %v2376_v43 = vpop.f32.mrf.mxu1  ;;  %v2334_v47 = vadd.f32 %v2333_v7, %v971_v3  ;;  %v2375_v50 = vadd.f32 %v2374_v42, %v2332_v21 }
 0x1a9   : > { %v2377_v55 = vadd.f32 %v2376_v43, %v2334_v47 }
 0x1e0   : > { %v2413_v44 = vpop.f32.mrf.mxu0 }
 0x1e1   : > { %v2456_v46 = vpop.f32.mrf.mxu1  ;;  %v2414_v31 = vadd.f32 %v2413_v44, %v2371_v45 }
 0x1e2   : > { %v2415_v48 = vpop.f32.mrf.mxu0 }
 0x1e3   : > { %v2458_v49 = vpop.f32.mrf.mxu1  ;;  %v2457_v51 = vadd.f32 %v2456_v46, %v2414_v31  ;;  %v2416_v52 = vadd.f32 %v2415_v48, %v2373_v30 }
 0x1e4   : > { %v2417_v53 = vpop.f32.mrf.mxu0 }
 0x1e5   : > { %v2460_v54 = vpop.f32.mrf.mxu1  ;;  %v2637_v56 = vmax.f32 %v2457_v51, 0.0  ;;  %v2459_v57 = vadd.f32 %v2458_v49, %v2416_v52  ;;  %v2418_v58 = vadd.f32 %v2417_v53, %v2375_v50 }
 0x1e6   : > { %v2419_v59 = vpop.f32.mrf.mxu0 }
 0x1e7   : > { %2645 = vst [vmem:[%s4385_s6] sm:$0xff] %v2637_v56  ;;  %v2638_v60 = vmax.f32 %v2459_v57, 0.0  ;;  %v2461_v61 = vadd.f32 %v2460_v54, %v2418_v58  ;;  %v2420_v62 = vadd.f32 %v2419_v59, %v2377_v55  ;;  %v2462_v63 = vpop.f32.mrf.mxu1 }
 0x1e9   : > { %2646 = vst [vmem:[%s4385_s6 + $0x8] sm:$0xff] %v2638_v60  ;;  %v2641_v0 = vmax.f32 %v2461_v61, 0.0  ;;  %v2463_v1 = vadd.f32 %v2462_v63, %v2420_v62 }
 0x1eb   : > { %2649 = vst [vmem:[%s4385_s6 + $0x20] sm:$0xff] %v2641_v0  ;;  %v2642_v2 = vmax.f32 %v2463_v1, 0.0 }
 0x1ed   : > { %2650 = vst [vmem:[%s4385_s6 + $0x28] sm:$0xff] %v2642_v2 }
 0x1ee   : > { %v2675_v7 = vld [vmem:[%s4385_s6] sm:$0xff] (%p3516_p5) }
 0x1ef   : > { %2676 = vst [vmem:[%s2662_s8] sm:$0xff] (%p3516_p5), %v2675_v7 }
 0x1f0   : > { %v2677_v43 = vld [vmem:[%s4385_s6 + $0x8] sm:$0xff] (%p3516_p5) }
 0x1f1   : > { %2678 = vst [vmem:[%s2662_s8 + $0x8] sm:$0xff] (%p3516_p5), %v2677_v43 }
 0x1f2   : > { %v2683_v44 = vld [vmem:[%s4385_s6 + $0x20] sm:$0xff] (%p3516_p5) }
 0x1f3   : > { %2684 = vst [vmem:[%s2662_s8 + $0x60] sm:$0xff] (%p3516_p5), %v2683_v44 }
 0x1f4   : > { %v2685_v46 = vld [vmem:[%s4385_s6 + $0x28] sm:$0xff] (%p3516_p5) }
 0x1f5   : > { %2686 = vst [vmem:[%s2662_s8 + $0x68] sm:$0xff] (%p3516_p5), %v2685_v46 }
 0x220   : > { %v2499_v5 = vpop.f32.mrf.mxu0 }
 0x221   : > { %v2542_v8 = vpop.f32.mrf.mxu1  ;;  %v2500_v13 = vadd.f32 %v2499_v5, %v966_v38 }
 0x222   : > { %v2501_v9 = vpop.f32.mrf.mxu0 }
 0x223   : > { %v2544_v10 = vpop.f32.mrf.mxu1  ;;  %v2502_v14 = vadd.f32 %v2501_v9, %v966_v38  ;;  %v2543_v19 = vadd.f32 %v2542_v8, %v2500_v13 }
 0x224   : > { %v2503_v11 = vpop.f32.mrf.mxu0 }
 0x225   : > { %v2546_v12 = vpop.f32.mrf.mxu1  ;;  %v2504_v20 = vadd.f32 %v2503_v11, %v971_v3  ;;  %v2545_v24 = vadd.f32 %v2544_v10, %v2502_v14 }
 0x226   : > { %v2505_v17 = vpop.f32.mrf.mxu0 }
 0x227   : > { %v2548_v18 = vpop.f32.mrf.mxu1  ;;  %v2506_v25 = vadd.f32 %v2505_v17, %v971_v3  ;;  %v2547_v29 = vadd.f32 %v2546_v12, %v2504_v20 }
 0x229   : > { %v2549_v15 = vadd.f32 %v2548_v18, %v2506_v25 }
 0x260   : > { %v2585_v22 = vpop.f32.mrf.mxu0 }
 0x261   : > { %v2628_v23 = vpop.f32.mrf.mxu1  ;;  %v2586_v26 = vadd.f32 %v2585_v22, %v2543_v19 }
 0x262   : > { %v2587_v27 = vpop.f32.mrf.mxu0 }
 0x263   : > { %v2630_v28 = vpop.f32.mrf.mxu1  ;;  %v2629_v32 = vadd.f32 %v2628_v23, %v2586_v26  ;;  %v2588_v33 = vadd.f32 %v2587_v27, %v2545_v24 }
 0x264   : > { %v2589_v34 = vpop.f32.mrf.mxu0 }
 0x265   : > { %v2632_v35 = vpop.f32.mrf.mxu1  ;;  %v2639_v16 = vmax.f32 %v2629_v32, 0.0  ;;  %v2631_v36 = vadd.f32 %v2630_v28, %v2588_v33  ;;  %v2590_v37 = vadd.f32 %v2589_v34, %v2547_v29 }
 0x266   : > { %v2591_v38 = vpop.f32.mrf.mxu0 }
 0x267   : > { %2647 = vst [vmem:[%s4385_s6 + $0x10] sm:$0xff] %v2639_v16  ;;  %v2640_v39 = vmax.f32 %v2631_v36, 0.0  ;;  %v2633_v40 = vadd.f32 %v2632_v35, %v2590_v37  ;;  %v2592_v41 = vadd.f32 %v2591_v38, %v2549_v15  ;;  %v2634_v42 = vpop.f32.mrf.mxu1 }
 0x269   : > { %2648 = vst [vmem:[%s4385_s6 + $0x18] sm:$0xff] %v2640_v39  ;;  %v2643_v4 = vmax.f32 %v2633_v40, 0.0  ;;  %v2635_v3 = vadd.f32 %v2634_v42, %v2592_v41  ;;  %2659 = sbr.rel (!%p3516_p5) target bundleno = 630 (0x276), region = 59 }
 0x26b   : > { %2651 = vst [vmem:[%s4385_s6 + $0x30] sm:$0xff] %v2643_v4  ;;  %v2644_v6 = vmax.f32 %v2635_v3, 0.0 }
 0x26d   : > { %2652 = vst [vmem:[%s4385_s6 + $0x38] sm:$0xff] %v2644_v6 }
 0x26e   : > { %v2679_v45 = vld [vmem:[%s4385_s6 + $0x10] sm:$0xff] }
 0x26f   : > { %2680 = vst [vmem:[%s2662_s8 + $0x10] sm:$0xff] %v2679_v45 }
 0x270   : > { %v2681_v21 = vld [vmem:[%s4385_s6 + $0x18] sm:$0xff] }
 0x271   : > { %2682 = vst [vmem:[%s2662_s8 + $0x18] sm:$0xff] %v2681_v21 }
 0x272   : > { %v2687_v30 = vld [vmem:[%s4385_s6 + $0x30] sm:$0xff] }
 0x273   : > { %2688 = vst [vmem:[%s2662_s8 + $0x70] sm:$0xff] %v2687_v30 }
 0x274   : > { %v2689_v47 = vld [vmem:[%s4385_s6 + $0x38] sm:$0xff] }
 0x275   : > { %2690 = vst [vmem:[%s2662_s8 + $0x78] sm:$0xff] %v2689_v47 }
 0x276 PF: > { %p10_p10 = scmp.ge.s32.totalorder %s3503_s16, 5   ;;  %s4425_s12 = smov %s3459_s13 }
 0x277   : > { %s4426_s13 = smov %s3514_s19  ;;  %s4427_s14 = smov %s3503_s16 }
 0x278   :  { %12 = sbr.rel (!%p10_p10) target bundleno = 2 (0x2), region = 113 }

// kernel: encoder_forward_pallas.11
= control target key start
LH: loop header
LB: loop body
LE: loop exit
PB: predicated region body
PF: predicated region fallthrough
CT: control target
= control target key end

     0   :  { %s3416_s12 = smov 0   ;;  %s3418_s13 = smov 0   ;;  %s4319_s0 = inlined_call_operand.vmem [shape: bf16[8,1024], index: 0, kind: input, shape index: {}]   ;;  %s4320_s1 = inlined_call_operand.vmem [shape: f32[8,1], index: 1, kind: input, shape index: {}]   ;;  %s4321_s2 = inlined_call_operand.vmem [shape: bf16[1024,1024], index: 2, kind: input, shape index: {}]   ;;  %s4322_s3 = inlined_call_operand.vmem [shape: f32[8,1024], index: 3, kind: output, shape index: {}]  }
   0x1   :  { %s3420_s14 = smov 0  }
   0x2 LB: > { %s2675_s15 = sadd.s32 4294967295, %s3393_s14   ;;  %s3433_s16 = sadd.s32 1, %s3393_s14   ;;  %s3393_s14 = sphi %s3420_s14, %s4325_s14   ;;  %s3389_s13 = sphi %s3418_s13, %s4324_s13   ;;  %s3385_s12 = sphi %s3416_s12, %s4323_s12  }
   0x3   : > { %s59_s17 = ssub.s32 %s3393_s14, %s3433_s16  ;;  %s62_s18 = sadd.s32 1, %s3389_s13 }
   0x4   : > { %p60_p0 = scmp.eq.s32.totalorder %s59_s17, 0  ;;  %p69_p1 = scmp.ne.s32.totalorder %s3389_s13, %s3385_s12 }
   0x5   : > { %p70_p2 = scmp.eq.s32.totalorder %s3393_s14, 0  ;;  %p2678_p4 = scmp.ge.s32.totalorder %s3393_s14, 2 }
   0x6   : > { %s3442_s19 = scalar_select %p60_p0, %s3389_s13, %s62_s18  }
   0x7   : > { %p71_p3 = por %p70_p2, %p69_p1  ;;  %127 = sbr.rel (%p2678_p4) target bundleno = 144 (0x90), region = 24 }
   0xc   : > { %130 = sbr.rel (!%p71_p3) target bundleno = 144 (0x90), region = 28  ;;  %s132_s20 = sand.u32 (%p71_p3), 1, %s3389_s13  }
   0xd   : > { %s2952_s21 = sshll.u32 (%p71_p3), %s3393_s14, 4  ;;  %s2679_s22 = sshll.u32 (%p71_p3), %s132_s20, 11 }
   0xe   : > { %s3450_s25 = scalar_lea.vmem (%p71_p3), %s4321_s2, %s2952_s21  ;;  %s3455_s26 = scalar_lea.vmem (%p71_p3), [#allocation2], %s2679_s22 }
   0xf   : > { %v150_v0 = vld [vmem:[%s3450_s25] sm:$0xff] (%p71_p3)  ;;  %v152_v1 = vld [vmem:[%s3450_s25 + $0x8] sm:$0xff] (%p71_p3) }
  0x10   : > { %v154_v2 = vld [vmem:[%s3450_s25 + $0x20] sm:$0xff] (%p71_p3)  ;;  %151 = vst [vmem:[%s3455_s26] sm:$0xff] (%p71_p3), %v150_v0  ;;  %153 = vst [vmem:[%s3455_s26 + $0x8] sm:$0xff] (%p71_p3), %v152_v1  ;;  %v156_v3 = vld [vmem:[%s3450_s25 + $0x28] sm:$0xff] (%p71_p3) }
  0x11   : > { %155 = vst [vmem:[%s3455_s26 + $0x10] sm:$0xff] %v154_v2  ;;  %v158_v4 = vld [vmem:[%s3450_s25 + $0x40] sm:$0xff]  ;;  %v160_v5 = vld [vmem:[%s3450_s25 + $0x48] sm:$0xff]  ;;  %157 = vst [vmem:[%s3455_s26 + $0x18] sm:$0xff] %v156_v3 }
  0x12   : > { %159 = vst [vmem:[%s3455_s26 + $0x20] sm:$0xff] %v158_v4  ;;  %161 = vst [vmem:[%s3455_s26 + $0x28] sm:$0xff] %v160_v5  ;;  %v162_v6 = vld [vmem:[%s3450_s25 + $0x60] sm:$0xff]  ;;  %v164_v7 = vld [vmem:[%s3450_s25 + $0x68] sm:$0xff] }
  0x13   : > { %v166_v8 = vld [vmem:[%s3450_s25 + $0x80] sm:$0xff]  ;;  %163 = vst [vmem:[%s3455_s26 + $0x30] sm:$0xff] %v162_v6  ;;  %165 = vst [vmem:[%s3455_s26 + $0x38] sm:$0xff] %v164_v7  ;;  %v168_v9 = vld [vmem:[%s3450_s25 + $0x88] sm:$0xff] }
  0x14   : > { %167 = vst [vmem:[%s3455_s26 + $0x40] sm:$0xff] %v166_v8  ;;  %v170_v10 = vld [vmem:[%s3450_s25 + $0xa0] sm:$0xff]  ;;  %v172_v11 = vld [vmem:[%s3450_s25 + $0xa8] sm:$0xff]  ;;  %169 = vst [vmem:[%s3455_s26 + $0x48] sm:$0xff] %v168_v9 }
  0x15   : > { %171 = vst [vmem:[%s3455_s26 + $0x50] sm:$0xff] %v170_v10  ;;  %173 = vst [vmem:[%s3455_s26 + $0x58] sm:$0xff] %v172_v11  ;;  %v174_v12 = vld [vmem:[%s3450_s25 + $0xc0] sm:$0xff]  ;;  %v176_v13 = vld [vmem:[%s3450_s25 + $0xc8] sm:$0xff] }
  0x16   : > { %v178_v14 = vld [vmem:[%s3450_s25 + $0xe0] sm:$0xff]  ;;  %175 = vst [vmem:[%s3455_s26 + $0x60] sm:$0xff] %v174_v12  ;;  %177 = vst [vmem:[%s3455_s26 + $0x68] sm:$0xff] %v176_v13  ;;  %v180_v15 = vld [vmem:[%s3450_s25 + $0xe8] sm:$0xff] }
  0x17   : > { %179 = vst [vmem:[%s3455_s26 + $0x70] sm:$0xff] %v178_v14  ;;  %v182_v16 = vld [vmem:[%s3450_s25 + $0x100] sm:$0xff]  ;;  %v184_v17 = vld [vmem:[%s3450_s25 + $0x108] sm:$0xff]  ;;  %181 = vst [vmem:[%s3455_s26 + $0x78] sm:$0xff] %v180_v15 }
  0x18   : > { %183 = vst [vmem:[%s3455_s26 + $0x80] sm:$0xff] %v182_v16  ;;  %185 = vst [vmem:[%s3455_s26 + $0x88] sm:$0xff] %v184_v17  ;;  %v186_v18 = vld [vmem:[%s3450_s25 + $0x120] sm:$0xff]  ;;  %v188_v19 = vld [vmem:[%s3450_s25 + $0x128] sm:$0xff] }
  0x19   : > { %v190_v20 = vld [vmem:[%s3450_s25 + $0x140] sm:$0xff]  ;;  %187 = vst [vmem:[%s3455_s26 + $0x90] sm:$0xff] %v186_v18  ;;  %189 = vst [vmem:[%s3455_s26 + $0x98] sm:$0xff] %v188_v19  ;;  %v192_v21 = vld [vmem:[%s3450_s25 + $0x148] sm:$0xff] }
  0x1a   : > { %191 = vst [vmem:[%s3455_s26 + $0xa0] sm:$0xff] %v190_v20  ;;  %v194_v22 = vld [vmem:[%s3450_s25 + $0x160] sm:$0xff]  ;;  %v196_v23 = vld [vmem:[%s3450_s25 + $0x168] sm:$0xff]  ;;  %193 = vst [vmem:[%s3455_s26 + $0xa8] sm:$0xff] %v192_v21 }
  0x1b   : > { %195 = vst [vmem:[%s3455_s26 + $0xb0] sm:$0xff] %v194_v22  ;;  %197 = vst [vmem:[%s3455_s26 + $0xb8] sm:$0xff] %v196_v23  ;;  %v198_v24 = vld [vmem:[%s3450_s25 + $0x180] sm:$0xff]  ;;  %v200_v25 = vld [vmem:[%s3450_s25 + $0x188] sm:$0xff] }
  0x1c   : > { %v202_v26 = vld [vmem:[%s3450_s25 + $0x1a0] sm:$0xff]  ;;  %199 = vst [vmem:[%s3455_s26 + $0xc0] sm:$0xff] %v198_v24  ;;  %201 = vst [vmem:[%s3455_s26 + $0xc8] sm:$0xff] %v200_v25  ;;  %v204_v27 = vld [vmem:[%s3450_s25 + $0x1a8] sm:$0xff] }
  0x1d   : > { %203 = vst [vmem:[%s3455_s26 + $0xd0] sm:$0xff] %v202_v26  ;;  %v206_v28 = vld [vmem:[%s3450_s25 + $0x1c0] sm:$0xff]  ;;  %v208_v29 = vld [vmem:[%s3450_s25 + $0x1c8] sm:$0xff]  ;;  %205 = vst [vmem:[%s3455_s26 + $0xd8] sm:$0xff] %v204_v27 }
  0x1e   : > { %207 = vst [vmem:[%s3455_s26 + $0xe0] sm:$0xff] %v206_v28  ;;  %209 = vst [vmem:[%s3455_s26 + $0xe8] sm:$0xff] %v208_v29  ;;  %v210_v30 = vld [vmem:[%s3450_s25 + $0x1e0] sm:$0xff]  ;;  %v212_v31 = vld [vmem:[%s3450_s25 + $0x1e8] sm:$0xff] }
  0x1f   : > { %v214_v32 = vld [vmem:[%s3450_s25 + $0x200] sm:$0xff]  ;;  %211 = vst [vmem:[%s3455_s26 + $0xf0] sm:$0xff] %v210_v30  ;;  %213 = vst [vmem:[%s3455_s26 + $0xf8] sm:$0xff] %v212_v31  ;;  %v216_v33 = vld [vmem:[%s3450_s25 + $0x208] sm:$0xff] }
  0x20   : > { %215 = vst [vmem:[%s3455_s26 + $0x100] sm:$0xff] %v214_v32  ;;  %v218_v34 = vld [vmem:[%s3450_s25 + $0x220] sm:$0xff]  ;;  %v220_v35 = vld [vmem:[%s3450_s25 + $0x228] sm:$0xff]  ;;  %217 = vst [vmem:[%s3455_s26 + $0x108] sm:$0xff] %v216_v33 }
  0x21   : > { %219 = vst [vmem:[%s3455_s26 + $0x110] sm:$0xff] %v218_v34  ;;  %221 = vst [vmem:[%s3455_s26 + $0x118] sm:$0xff] %v220_v35  ;;  %v222_v36 = vld [vmem:[%s3450_s25 + $0x240] sm:$0xff]  ;;  %v224_v37 = vld [vmem:[%s3450_s25 + $0x248] sm:$0xff] }
  0x22   : > { %v226_v38 = vld [vmem:[%s3450_s25 + $0x260] sm:$0xff]  ;;  %223 = vst [vmem:[%s3455_s26 + $0x120] sm:$0xff] %v222_v36  ;;  %225 = vst [vmem:[%s3455_s26 + $0x128] sm:$0xff] %v224_v37  ;;  %v228_v39 = vld [vmem:[%s3450_s25 + $0x268] sm:$0xff] }
  0x23   : > { %227 = vst [vmem:[%s3455_s26 + $0x130] sm:$0xff] %v226_v38  ;;  %v230_v40 = vld [vmem:[%s3450_s25 + $0x280] sm:$0xff]  ;;  %v232_v41 = vld [vmem:[%s3450_s25 + $0x288] sm:$0xff]  ;;  %229 = vst [vmem:[%s3455_s26 + $0x138] sm:$0xff] %v228_v39 }
  0x24   : > { %231 = vst [vmem:[%s3455_s26 + $0x140] sm:$0xff] %v230_v40  ;;  %233 = vst [vmem:[%s3455_s26 + $0x148] sm:$0xff] %v232_v41  ;;  %v234_v42 = vld [vmem:[%s3450_s25 + $0x2a0] sm:$0xff]  ;;  %v236_v43 = vld [vmem:[%s3450_s25 + $0x2a8] sm:$0xff] }
  0x25   : > { %v238_v44 = vld [vmem:[%s3450_s25 + $0x2c0] sm:$0xff]  ;;  %235 = vst [vmem:[%s3455_s26 + $0x150] sm:$0xff] %v234_v42  ;;  %237 = vst [vmem:[%s3455_s26 + $0x158] sm:$0xff] %v236_v43  ;;  %v240_v45 = vld [vmem:[%s3450_s25 + $0x2c8] sm:$0xff] }
  0x26   : > { %239 = vst [vmem:[%s3455_s26 + $0x160] sm:$0xff] %v238_v44  ;;  %v242_v46 = vld [vmem:[%s3450_s25 + $0x2e0] sm:$0xff]  ;;  %v244_v47 = vld [vmem:[%s3450_s25 + $0x2e8] sm:$0xff]  ;;  %241 = vst [vmem:[%s3455_s26 + $0x168] sm:$0xff] %v240_v45 }
  0x27   : > { %243 = vst [vmem:[%s3455_s26 + $0x170] sm:$0xff] %v242_v46  ;;  %245 = vst [vmem:[%s3455_s26 + $0x178] sm:$0xff] %v244_v47  ;;  %v246_v48 = vld [vmem:[%s3450_s25 + $0x300] sm:$0xff]  ;;  %v248_v49 = vld [vmem:[%s3450_s25 + $0x308] sm:$0xff] }
  0x28   : > { %v250_v50 = vld [vmem:[%s3450_s25 + $0x320] sm:$0xff]  ;;  %247 = vst [vmem:[%s3455_s26 + $0x180] sm:$0xff] %v246_v48  ;;  %249 = vst [vmem:[%s3455_s26 + $0x188] sm:$0xff] %v248_v49  ;;  %v252_v51 = vld [vmem:[%s3450_s25 + $0x328] sm:$0xff] }
  0x29   : > { %251 = vst [vmem:[%s3455_s26 + $0x190] sm:$0xff] %v250_v50  ;;  %v254_v52 = vld [vmem:[%s3450_s25 + $0x340] sm:$0xff]  ;;  %v256_v53 = vld [vmem:[%s3450_s25 + $0x348] sm:$0xff]  ;;  %253 = vst [vmem:[%s3455_s26 + $0x198] sm:$0xff] %v252_v51 }
  0x2a   : > { %255 = vst [vmem:[%s3455_s26 + $0x1a0] sm:$0xff] %v254_v52  ;;  %257 = vst [vmem:[%s3455_s26 + $0x1a8] sm:$0xff] %v256_v53  ;;  %v258_v54 = vld [vmem:[%s3450_s25 + $0x360] sm:$0xff]  ;;  %v260_v55 = vld [vmem:[%s3450_s25 + $0x368] sm:$0xff] }
  0x2b   : > { %v262_v56 = vld [vmem:[%s3450_s25 + $0x380] sm:$0xff]  ;;  %259 = vst [vmem:[%s3455_s26 + $0x1b0] sm:$0xff] %v258_v54  ;;  %261 = vst [vmem:[%s3455_s26 + $0x1b8] sm:$0xff] %v260_v55  ;;  %v264_v57 = vld [vmem:[%s3450_s25 + $0x388] sm:$0xff] }
  0x2c   : > { %263 = vst [vmem:[%s3455_s26 + $0x1c0] sm:$0xff] %v262_v56  ;;  %v266_v58 = vld [vmem:[%s3450_s25 + $0x3a0] sm:$0xff]  ;;  %v268_v59 = vld [vmem:[%s3450_s25 + $0x3a8] sm:$0xff]  ;;  %265 = vst [vmem:[%s3455_s26 + $0x1c8] sm:$0xff] %v264_v57 }
  0x2d   : > { %267 = vst [vmem:[%s3455_s26 + $0x1d0] sm:$0xff] %v266_v58  ;;  %269 = vst [vmem:[%s3455_s26 + $0x1d8] sm:$0xff] %v268_v59  ;;  %v270_v60 = vld [vmem:[%s3450_s25 + $0x3c0] sm:$0xff]  ;;  %v272_v61 = vld [vmem:[%s3450_s25 + $0x3c8] sm:$0xff] }
  0x2e   : > { %v274_v62 = vld [vmem:[%s3450_s25 + $0x3e0] sm:$0xff]  ;;  %271 = vst [vmem:[%s3455_s26 + $0x1e0] sm:$0xff] %v270_v60  ;;  %273 = vst [vmem:[%s3455_s26 + $0x1e8] sm:$0xff] %v272_v61  ;;  %v276_v63 = vld [vmem:[%s3450_s25 + $0x3e8] sm:$0xff] }
  0x2f   : > { %275 = vst [vmem:[%s3455_s26 + $0x1f0] sm:$0xff] %v274_v62  ;;  %v278_v0 = vld [vmem:[%s3450_s25 + $0x400] sm:$0xff]  ;;  %v280_v1 = vld [vmem:[%s3450_s25 + $0x408] sm:$0xff]  ;;  %277 = vst [vmem:[%s3455_s26 + $0x1f8] sm:$0xff] %v276_v63 }
  0x30   : > { %279 = vst [vmem:[%s3455_s26 + $0x200] sm:$0xff] %v278_v0  ;;  %281 = vst [vmem:[%s3455_s26 + $0x208] sm:$0xff] %v280_v1  ;;  %v282_v2 = vld [vmem:[%s3450_s25 + $0x420] sm:$0xff]  ;;  %v284_v3 = vld [vmem:[%s3450_s25 + $0x428] sm:$0xff] }
  0x31   : > { %v286_v4 = vld [vmem:[%s3450_s25 + $0x440] sm:$0xff]  ;;  %283 = vst [vmem:[%s3455_s26 + $0x210] sm:$0xff] %v282_v2  ;;  %285 = vst [vmem:[%s3455_s26 + $0x218] sm:$0xff] %v284_v3  ;;  %v288_v5 = vld [vmem:[%s3450_s25 + $0x448] sm:$0xff] }
  0x32   : > { %287 = vst [vmem:[%s3455_s26 + $0x220] sm:$0xff] %v286_v4  ;;  %v290_v6 = vld [vmem:[%s3450_s25 + $0x460] sm:$0xff]  ;;  %v292_v7 = vld [vmem:[%s3450_s25 + $0x468] sm:$0xff]  ;;  %289 = vst [vmem:[%s3455_s26 + $0x228] sm:$0xff] %v288_v5 }
  0x33   : > { %291 = vst [vmem:[%s3455_s26 + $0x230] sm:$0xff] %v290_v6  ;;  %293 = vst [vmem:[%s3455_s26 + $0x238] sm:$0xff] %v292_v7  ;;  %v294_v8 = vld [vmem:[%s3450_s25 + $0x480] sm:$0xff]  ;;  %v296_v9 = vld [vmem:[%s3450_s25 + $0x488] sm:$0xff] }
  0x34   : > { %v298_v10 = vld [vmem:[%s3450_s25 + $0x4a0] sm:$0xff]  ;;  %295 = vst [vmem:[%s3455_s26 + $0x240] sm:$0xff] %v294_v8  ;;  %297 = vst [vmem:[%s3455_s26 + $0x248] sm:$0xff] %v296_v9  ;;  %v300_v11 = vld [vmem:[%s3450_s25 + $0x4a8] sm:$0xff] }
  0x35   : > { %299 = vst [vmem:[%s3455_s26 + $0x250] sm:$0xff] %v298_v10  ;;  %v302_v12 = vld [vmem:[%s3450_s25 + $0x4c0] sm:$0xff]  ;;  %v304_v13 = vld [vmem:[%s3450_s25 + $0x4c8] sm:$0xff]  ;;  %301 = vst [vmem:[%s3455_s26 + $0x258] sm:$0xff] %v300_v11 }
  0x36   : > { %303 = vst [vmem:[%s3455_s26 + $0x260] sm:$0xff] %v302_v12  ;;  %305 = vst [vmem:[%s3455_s26 + $0x268] sm:$0xff] %v304_v13  ;;  %v306_v14 = vld [vmem:[%s3450_s25 + $0x4e0] sm:$0xff]  ;;  %v308_v15 = vld [vmem:[%s3450_s25 + $0x4e8] sm:$0xff] }
  0x37   : > { %v310_v16 = vld [vmem:[%s3450_s25 + $0x500] sm:$0xff]  ;;  %307 = vst [vmem:[%s3455_s26 + $0x270] sm:$0xff] %v306_v14  ;;  %309 = vst [vmem:[%s3455_s26 + $0x278] sm:$0xff] %v308_v15  ;;  %v312_v17 = vld [vmem:[%s3450_s25 + $0x508] sm:$0xff] }
  0x38   : > { %311 = vst [vmem:[%s3455_s26 + $0x280] sm:$0xff] %v310_v16  ;;  %v314_v18 = vld [vmem:[%s3450_s25 + $0x520] sm:$0xff]  ;;  %v316_v19 = vld [vmem:[%s3450_s25 + $0x528] sm:$0xff]  ;;  %313 = vst [vmem:[%s3455_s26 + $0x288] sm:$0xff] %v312_v17 }
  0x39   : > { %315 = vst [vmem:[%s3455_s26 + $0x290] sm:$0xff] %v314_v18  ;;  %317 = vst [vmem:[%s3455_s26 + $0x298] sm:$0xff] %v316_v19  ;;  %v318_v20 = vld [vmem:[%s3450_s25 + $0x540] sm:$0xff]  ;;  %v320_v21 = vld [vmem:[%s3450_s25 + $0x548] sm:$0xff] }
  0x3a   : > { %v322_v22 = vld [vmem:[%s3450_s25 + $0x560] sm:$0xff]  ;;  %319 = vst [vmem:[%s3455_s26 + $0x2a0] sm:$0xff] %v318_v20  ;;  %321 = vst [vmem:[%s3455_s26 + $0x2a8] sm:$0xff] %v320_v21  ;;  %v324_v23 = vld [vmem:[%s3450_s25 + $0x568] sm:$0xff] }
  0x3b   : > { %323 = vst [vmem:[%s3455_s26 + $0x2b0] sm:$0xff] %v322_v22  ;;  %v326_v24 = vld [vmem:[%s3450_s25 + $0x580] sm:$0xff]  ;;  %v328_v25 = vld [vmem:[%s3450_s25 + $0x588] sm:$0xff]  ;;  %325 = vst [vmem:[%s3455_s26 + $0x2b8] sm:$0xff] %v324_v23 }
  0x3c   : > { %327 = vst [vmem:[%s3455_s26 + $0x2c0] sm:$0xff] %v326_v24  ;;  %329 = vst [vmem:[%s3455_s26 + $0x2c8] sm:$0xff] %v328_v25  ;;  %v330_v26 = vld [vmem:[%s3450_s25 + $0x5a0] sm:$0xff]  ;;  %v332_v27 = vld [vmem:[%s3450_s25 + $0x5a8] sm:$0xff] }
  0x3d   : > { %v334_v28 = vld [vmem:[%s3450_s25 + $0x5c0] sm:$0xff]  ;;  %331 = vst [vmem:[%s3455_s26 + $0x2d0] sm:$0xff] %v330_v26  ;;  %333 = vst [vmem:[%s3455_s26 + $0x2d8] sm:$0xff] %v332_v27  ;;  %v336_v29 = vld [vmem:[%s3450_s25 + $0x5c8] sm:$0xff] }
  0x3e   : > { %335 = vst [vmem:[%s3455_s26 + $0x2e0] sm:$0xff] %v334_v28  ;;  %v338_v30 = vld [vmem:[%s3450_s25 + $0x5e0] sm:$0xff]  ;;  %v340_v31 = vld [vmem:[%s3450_s25 + $0x5e8] sm:$0xff]  ;;  %337 = vst [vmem:[%s3455_s26 + $0x2e8] sm:$0xff] %v336_v29 }
  0x3f   : > { %339 = vst [vmem:[%s3455_s26 + $0x2f0] sm:$0xff] %v338_v30  ;;  %341 = vst [vmem:[%s3455_s26 + $0x2f8] sm:$0xff] %v340_v31  ;;  %v342_v32 = vld [vmem:[%s3450_s25 + $0x600] sm:$0xff]  ;;  %v344_v33 = vld [vmem:[%s3450_s25 + $0x608] sm:$0xff] }
  0x40   : > { %v346_v34 = vld [vmem:[%s3450_s25 + $0x620] sm:$0xff]  ;;  %343 = vst [vmem:[%s3455_s26 + $0x300] sm:$0xff] %v342_v32  ;;  %345 = vst [vmem:[%s3455_s26 + $0x308] sm:$0xff] %v344_v33  ;;  %v348_v35 = vld [vmem:[%s3450_s25 + $0x628] sm:$0xff] }
  0x41   : > { %347 = vst [vmem:[%s3455_s26 + $0x310] sm:$0xff] %v346_v34  ;;  %v350_v36 = vld [vmem:[%s3450_s25 + $0x640] sm:$0xff]  ;;  %v352_v37 = vld [vmem:[%s3450_s25 + $0x648] sm:$0xff]  ;;  %349 = vst [vmem:[%s3455_s26 + $0x318] sm:$0xff] %v348_v35 }
  0x42   : > { %351 = vst [vmem:[%s3455_s26 + $0x320] sm:$0xff] %v350_v36  ;;  %353 = vst [vmem:[%s3455_s26 + $0x328] sm:$0xff] %v352_v37  ;;  %v354_v38 = vld [vmem:[%s3450_s25 + $0x660] sm:$0xff]  ;;  %v356_v39 = vld [vmem:[%s3450_s25 + $0x668] sm:$0xff] }
  0x43   : > { %v358_v40 = vld [vmem:[%s3450_s25 + $0x680] sm:$0xff]  ;;  %355 = vst [vmem:[%s3455_s26 + $0x330] sm:$0xff] %v354_v38  ;;  %357 = vst [vmem:[%s3455_s26 + $0x338] sm:$0xff] %v356_v39  ;;  %v360_v41 = vld [vmem:[%s3450_s25 + $0x688] sm:$0xff] }
  0x44   : > { %359 = vst [vmem:[%s3455_s26 + $0x340] sm:$0xff] %v358_v40  ;;  %v362_v42 = vld [vmem:[%s3450_s25 + $0x6a0] sm:$0xff]  ;;  %v364_v43 = vld [vmem:[%s3450_s25 + $0x6a8] sm:$0xff]  ;;  %361 = vst [vmem:[%s3455_s26 + $0x348] sm:$0xff] %v360_v41 }
  0x45   : > { %363 = vst [vmem:[%s3455_s26 + $0x350] sm:$0xff] %v362_v42  ;;  %365 = vst [vmem:[%s3455_s26 + $0x358] sm:$0xff] %v364_v43  ;;  %v366_v44 = vld [vmem:[%s3450_s25 + $0x6c0] sm:$0xff]  ;;  %v368_v45 = vld [vmem:[%s3450_s25 + $0x6c8] sm:$0xff] }
  0x46   : > { %v370_v46 = vld [vmem:[%s3450_s25 + $0x6e0] sm:$0xff]  ;;  %367 = vst [vmem:[%s3455_s26 + $0x360] sm:$0xff] %v366_v44  ;;  %369 = vst [vmem:[%s3455_s26 + $0x368] sm:$0xff] %v368_v45  ;;  %v372_v47 = vld [vmem:[%s3450_s25 + $0x6e8] sm:$0xff] }
  0x47   : > { %371 = vst [vmem:[%s3455_s26 + $0x370] sm:$0xff] %v370_v46  ;;  %v374_v48 = vld [vmem:[%s3450_s25 + $0x700] sm:$0xff]  ;;  %v376_v49 = vld [vmem:[%s3450_s25 + $0x708] sm:$0xff]  ;;  %373 = vst [vmem:[%s3455_s26 + $0x378] sm:$0xff] %v372_v47 }
  0x48   : > { %375 = vst [vmem:[%s3455_s26 + $0x380] sm:$0xff] %v374_v48  ;;  %377 = vst [vmem:[%s3455_s26 + $0x388] sm:$0xff] %v376_v49  ;;  %v378_v50 = vld [vmem:[%s3450_s25 + $0x720] sm:$0xff]  ;;  %v380_v51 = vld [vmem:[%s3450_s25 + $0x728] sm:$0xff] }
  0x49   : > { %v382_v52 = vld [vmem:[%s3450_s25 + $0x740] sm:$0xff]  ;;  %379 = vst [vmem:[%s3455_s26 + $0x390] sm:$0xff] %v378_v50  ;;  %381 = vst [vmem:[%s3455_s26 + $0x398] sm:$0xff] %v380_v51  ;;  %v384_v53 = vld [vmem:[%s3450_s25 + $0x748] sm:$0xff] }
  0x4a   : > { %383 = vst [vmem:[%s3455_s26 + $0x3a0] sm:$0xff] %v382_v52  ;;  %v386_v54 = vld [vmem:[%s3450_s25 + $0x760] sm:$0xff]  ;;  %v388_v55 = vld [vmem:[%s3450_s25 + $0x768] sm:$0xff]  ;;  %385 = vst [vmem:[%s3455_s26 + $0x3a8] sm:$0xff] %v384_v53 }
  0x4b   : > { %387 = vst [vmem:[%s3455_s26 + $0x3b0] sm:$0xff] %v386_v54  ;;  %389 = vst [vmem:[%s3455_s26 + $0x3b8] sm:$0xff] %v388_v55  ;;  %v390_v56 = vld [vmem:[%s3450_s25 + $0x780] sm:$0xff]  ;;  %v392_v57 = vld [vmem:[%s3450_s25 + $0x788] sm:$0xff] }
  0x4c   : > { %v394_v58 = vld [vmem:[%s3450_s25 + $0x7a0] sm:$0xff]  ;;  %391 = vst [vmem:[%s3455_s26 + $0x3c0] sm:$0xff] %v390_v56  ;;  %393 = vst [vmem:[%s3455_s26 + $0x3c8] sm:$0xff] %v392_v57  ;;  %v396_v59 = vld [vmem:[%s3450_s25 + $0x7a8] sm:$0xff] }
  0x4d   : > { %395 = vst [vmem:[%s3455_s26 + $0x3d0] sm:$0xff] %v394_v58  ;;  %v398_v60 = vld [vmem:[%s3450_s25 + $0x7c0] sm:$0xff]  ;;  %v400_v61 = vld [vmem:[%s3450_s25 + $0x7c8] sm:$0xff]  ;;  %397 = vst [vmem:[%s3455_s26 + $0x3d8] sm:$0xff] %v396_v59 }
  0x4e   : > { %399 = vst [vmem:[%s3455_s26 + $0x3e0] sm:$0xff] %v398_v60  ;;  %401 = vst [vmem:[%s3455_s26 + $0x3e8] sm:$0xff] %v400_v61  ;;  %v402_v62 = vld [vmem:[%s3450_s25 + $0x7e0] sm:$0xff]  ;;  %v404_v63 = vld [vmem:[%s3450_s25 + $0x7e8] sm:$0xff] }
  0x4f   : > { %v406_v0 = vld [vmem:[%s3450_s25 + $0x800] sm:$0xff]  ;;  %403 = vst [vmem:[%s3455_s26 + $0x3f0] sm:$0xff] %v402_v62  ;;  %405 = vst [vmem:[%s3455_s26 + $0x3f8] sm:$0xff] %v404_v63  ;;  %v408_v1 = vld [vmem:[%s3450_s25 + $0x808] sm:$0xff] }
  0x50   : > { %407 = vst [vmem:[%s3455_s26 + $0x400] sm:$0xff] %v406_v0  ;;  %v410_v2 = vld [vmem:[%s3450_s25 + $0x820] sm:$0xff]  ;;  %v412_v3 = vld [vmem:[%s3450_s25 + $0x828] sm:$0xff]  ;;  %409 = vst [vmem:[%s3455_s26 + $0x408] sm:$0xff] %v408_v1 }
  0x51   : > { %411 = vst [vmem:[%s3455_s26 + $0x410] sm:$0xff] %v410_v2  ;;  %413 = vst [vmem:[%s3455_s26 + $0x418] sm:$0xff] %v412_v3  ;;  %v414_v4 = vld [vmem:[%s3450_s25 + $0x840] sm:$0xff]  ;;  %v416_v5 = vld [vmem:[%s3450_s25 + $0x848] sm:$0xff] }
  0x52   : > { %v418_v6 = vld [vmem:[%s3450_s25 + $0x860] sm:$0xff]  ;;  %415 = vst [vmem:[%s3455_s26 + $0x420] sm:$0xff] %v414_v4  ;;  %417 = vst [vmem:[%s3455_s26 + $0x428] sm:$0xff] %v416_v5  ;;  %v420_v7 = vld [vmem:[%s3450_s25 + $0x868] sm:$0xff] }
  0x53   : > { %419 = vst [vmem:[%s3455_s26 + $0x430] sm:$0xff] %v418_v6  ;;  %v422_v8 = vld [vmem:[%s3450_s25 + $0x880] sm:$0xff]  ;;  %v424_v9 = vld [vmem:[%s3450_s25 + $0x888] sm:$0xff]  ;;  %421 = vst [vmem:[%s3455_s26 + $0x438] sm:$0xff] %v420_v7 }
  0x54   : > { %423 = vst [vmem:[%s3455_s26 + $0x440] sm:$0xff] %v422_v8  ;;  %425 = vst [vmem:[%s3455_s26 + $0x448] sm:$0xff] %v424_v9  ;;  %v426_v10 = vld [vmem:[%s3450_s25 + $0x8a0] sm:$0xff]  ;;  %v428_v11 = vld [vmem:[%s3450_s25 + $0x8a8] sm:$0xff] }
  0x55   : > { %v430_v12 = vld [vmem:[%s3450_s25 + $0x8c0] sm:$0xff]  ;;  %427 = vst [vmem:[%s3455_s26 + $0x450] sm:$0xff] %v426_v10  ;;  %429 = vst [vmem:[%s3455_s26 + $0x458] sm:$0xff] %v428_v11  ;;  %v432_v13 = vld [vmem:[%s3450_s25 + $0x8c8] sm:$0xff] }
  0x56   : > { %431 = vst [vmem:[%s3455_s26 + $0x460] sm:$0xff] %v430_v12  ;;  %v434_v14 = vld [vmem:[%s3450_s25 + $0x8e0] sm:$0xff]  ;;  %v436_v15 = vld [vmem:[%s3450_s25 + $0x8e8] sm:$0xff]  ;;  %433 = vst [vmem:[%s3455_s26 + $0x468] sm:$0xff] %v432_v13 }
  0x57   : > { %435 = vst [vmem:[%s3455_s26 + $0x470] sm:$0xff] %v434_v14  ;;  %437 = vst [vmem:[%s3455_s26 + $0x478] sm:$0xff] %v436_v15  ;;  %v438_v16 = vld [vmem:[%s3450_s25 + $0x900] sm:$0xff]  ;;  %v440_v17 = vld [vmem:[%s3450_s25 + $0x908] sm:$0xff] }
  0x58   : > { %v442_v18 = vld [vmem:[%s3450_s25 + $0x920] sm:$0xff]  ;;  %439 = vst [vmem:[%s3455_s26 + $0x480] sm:$0xff] %v438_v16  ;;  %441 = vst [vmem:[%s3455_s26 + $0x488] sm:$0xff] %v440_v17  ;;  %v444_v19 = vld [vmem:[%s3450_s25 + $0x928] sm:$0xff] }
  0x59   : > { %443 = vst [vmem:[%s3455_s26 + $0x490] sm:$0xff] %v442_v18  ;;  %v446_v20 = vld [vmem:[%s3450_s25 + $0x940] sm:$0xff]  ;;  %v448_v21 = vld [vmem:[%s3450_s25 + $0x948] sm:$0xff]  ;;  %445 = vst [vmem:[%s3455_s26 + $0x498] sm:$0xff] %v444_v19 }
  0x5a   : > { %447 = vst [vmem:[%s3455_s26 + $0x4a0] sm:$0xff] %v446_v20  ;;  %449 = vst [vmem:[%s3455_s26 + $0x4a8] sm:$0xff] %v448_v21  ;;  %v450_v22 = vld [vmem:[%s3450_s25 + $0x960] sm:$0xff]  ;;  %v452_v23 = vld [vmem:[%s3450_s25 + $0x968] sm:$0xff] }
  0x5b   : > { %v454_v24 = vld [vmem:[%s3450_s25 + $0x980] sm:$0xff]  ;;  %451 = vst [vmem:[%s3455_s26 + $0x4b0] sm:$0xff] %v450_v22  ;;  %453 = vst [vmem:[%s3455_s26 + $0x4b8] sm:$0xff] %v452_v23  ;;  %v456_v25 = vld [vmem:[%s3450_s25 + $0x988] sm:$0xff] }
  0x5c   : > { %455 = vst [vmem:[%s3455_s26 + $0x4c0] sm:$0xff] %v454_v24  ;;  %v458_v26 = vld [vmem:[%s3450_s25 + $0x9a0] sm:$0xff]  ;;  %v460_v27 = vld [vmem:[%s3450_s25 + $0x9a8] sm:$0xff]  ;;  %457 = vst [vmem:[%s3455_s26 + $0x4c8] sm:$0xff] %v456_v25 }
  0x5d   : > { %459 = vst [vmem:[%s3455_s26 + $0x4d0] sm:$0xff] %v458_v26  ;;  %461 = vst [vmem:[%s3455_s26 + $0x4d8] sm:$0xff] %v460_v27  ;;  %v462_v28 = vld [vmem:[%s3450_s25 + $0x9c0] sm:$0xff]  ;;  %v464_v29 = vld [vmem:[%s3450_s25 + $0x9c8] sm:$0xff] }
  0x5e   : > { %v466_v30 = vld [vmem:[%s3450_s25 + $0x9e0] sm:$0xff]  ;;  %463 = vst [vmem:[%s3455_s26 + $0x4e0] sm:$0xff] %v462_v28  ;;  %465 = vst [vmem:[%s3455_s26 + $0x4e8] sm:$0xff] %v464_v29  ;;  %v468_v31 = vld [vmem:[%s3450_s25 + $0x9e8] sm:$0xff] }
  0x5f   : > { %467 = vst [vmem:[%s3455_s26 + $0x4f0] sm:$0xff] %v466_v30  ;;  %v470_v32 = vld [vmem:[%s3450_s25 + $0xa00] sm:$0xff]  ;;  %v472_v33 = vld [vmem:[%s3450_s25 + $0xa08] sm:$0xff]  ;;  %469 = vst [vmem:[%s3455_s26 + $0x4f8] sm:$0xff] %v468_v31 }
  0x60   : > { %471 = vst [vmem:[%s3455_s26 + $0x500] sm:$0xff] %v470_v32  ;;  %473 = vst [vmem:[%s3455_s26 + $0x508] sm:$0xff] %v472_v33  ;;  %v474_v34 = vld [vmem:[%s3450_s25 + $0xa20] sm:$0xff]  ;;  %v476_v35 = vld [vmem:[%s3450_s25 + $0xa28] sm:$0xff] }
  0x61   : > { %v478_v36 = vld [vmem:[%s3450_s25 + $0xa40] sm:$0xff]  ;;  %475 = vst [vmem:[%s3455_s26 + $0x510] sm:$0xff] %v474_v34  ;;  %477 = vst [vmem:[%s3455_s26 + $0x518] sm:$0xff] %v476_v35  ;;  %v480_v37 = vld [vmem:[%s3450_s25 + $0xa48] sm:$0xff] }
  0x62   : > { %479 = vst [vmem:[%s3455_s26 + $0x520] sm:$0xff] %v478_v36  ;;  %v482_v38 = vld [vmem:[%s3450_s25 + $0xa60] sm:$0xff]  ;;  %v484_v39 = vld [vmem:[%s3450_s25 + $0xa68] sm:$0xff]  ;;  %481 = vst [vmem:[%s3455_s26 + $0x528] sm:$0xff] %v480_v37 }
  0x63   : > { %483 = vst [vmem:[%s3455_s26 + $0x530] sm:$0xff] %v482_v38  ;;  %485 = vst [vmem:[%s3455_s26 + $0x538] sm:$0xff] %v484_v39  ;;  %v486_v40 = vld [vmem:[%s3450_s25 + $0xa80] sm:$0xff]  ;;  %v488_v41 = vld [vmem:[%s3450_s25 + $0xa88] sm:$0xff] }
  0x64   : > { %v490_v42 = vld [vmem:[%s3450_s25 + $0xaa0] sm:$0xff]  ;;  %487 = vst [vmem:[%s3455_s26 + $0x540] sm:$0xff] %v486_v40  ;;  %489 = vst [vmem:[%s3455_s26 + $0x548] sm:$0xff] %v488_v41  ;;  %v492_v43 = vld [vmem:[%s3450_s25 + $0xaa8] sm:$0xff] }
  0x65   : > { %491 = vst [vmem:[%s3455_s26 + $0x550] sm:$0xff] %v490_v42  ;;  %v494_v44 = vld [vmem:[%s3450_s25 + $0xac0] sm:$0xff]  ;;  %v496_v45 = vld [vmem:[%s3450_s25 + $0xac8] sm:$0xff]  ;;  %493 = vst [vmem:[%s3455_s26 + $0x558] sm:$0xff] %v492_v43 }
  0x66   : > { %495 = vst [vmem:[%s3455_s26 + $0x560] sm:$0xff] %v494_v44  ;;  %497 = vst [vmem:[%s3455_s26 + $0x568] sm:$0xff] %v496_v45  ;;  %v498_v46 = vld [vmem:[%s3450_s25 + $0xae0] sm:$0xff]  ;;  %v500_v47 = vld [vmem:[%s3450_s25 + $0xae8] sm:$0xff] }
  0x67   : > { %v502_v48 = vld [vmem:[%s3450_s25 + $0xb00] sm:$0xff]  ;;  %499 = vst [vmem:[%s3455_s26 + $0x570] sm:$0xff] %v498_v46  ;;  %501 = vst [vmem:[%s3455_s26 + $0x578] sm:$0xff] %v500_v47  ;;  %v504_v49 = vld [vmem:[%s3450_s25 + $0xb08] sm:$0xff] }
  0x68   : > { %503 = vst [vmem:[%s3455_s26 + $0x580] sm:$0xff] %v502_v48  ;;  %v506_v50 = vld [vmem:[%s3450_s25 + $0xb20] sm:$0xff]  ;;  %v508_v51 = vld [vmem:[%s3450_s25 + $0xb28] sm:$0xff]  ;;  %505 = vst [vmem:[%s3455_s26 + $0x588] sm:$0xff] %v504_v49 }
  0x69   : > { %507 = vst [vmem:[%s3455_s26 + $0x590] sm:$0xff] %v506_v50  ;;  %509 = vst [vmem:[%s3455_s26 + $0x598] sm:$0xff] %v508_v51  ;;  %v510_v52 = vld [vmem:[%s3450_s25 + $0xb40] sm:$0xff]  ;;  %v512_v53 = vld [vmem:[%s3450_s25 + $0xb48] sm:$0xff] }
  0x6a   : > { %v514_v54 = vld [vmem:[%s3450_s25 + $0xb60] sm:$0xff]  ;;  %511 = vst [vmem:[%s3455_s26 + $0x5a0] sm:$0xff] %v510_v52  ;;  %513 = vst [vmem:[%s3455_s26 + $0x5a8] sm:$0xff] %v512_v53  ;;  %v516_v55 = vld [vmem:[%s3450_s25 + $0xb68] sm:$0xff] }
  0x6b   : > { %515 = vst [vmem:[%s3455_s26 + $0x5b0] sm:$0xff] %v514_v54  ;;  %v518_v56 = vld [vmem:[%s3450_s25 + $0xb80] sm:$0xff]  ;;  %v520_v57 = vld [vmem:[%s3450_s25 + $0xb88] sm:$0xff]  ;;  %517 = vst [vmem:[%s3455_s26 + $0x5b8] sm:$0xff] %v516_v55 }
  0x6c   : > { %519 = vst [vmem:[%s3455_s26 + $0x5c0] sm:$0xff] %v518_v56  ;;  %521 = vst [vmem:[%s3455_s26 + $0x5c8] sm:$0xff] %v520_v57  ;;  %v522_v58 = vld [vmem:[%s3450_s25 + $0xba0] sm:$0xff]  ;;  %v524_v59 = vld [vmem:[%s3450_s25 + $0xba8] sm:$0xff] }
  0x6d   : > { %v526_v60 = vld [vmem:[%s3450_s25 + $0xbc0] sm:$0xff]  ;;  %523 = vst [vmem:[%s3455_s26 + $0x5d0] sm:$0xff] %v522_v58  ;;  %525 = vst [vmem:[%s3455_s26 + $0x5d8] sm:$0xff] %v524_v59  ;;  %v528_v61 = vld [vmem:[%s3450_s25 + $0xbc8] sm:$0xff] }
  0x6e   : > { %527 = vst [vmem:[%s3455_s26 + $0x5e0] sm:$0xff] %v526_v60  ;;  %v530_v62 = vld [vmem:[%s3450_s25 + $0xbe0] sm:$0xff]  ;;  %v532_v63 = vld [vmem:[%s3450_s25 + $0xbe8] sm:$0xff]  ;;  %529 = vst [vmem:[%s3455_s26 + $0x5e8] sm:$0xff] %v528_v61 }
  0x6f   : > { %531 = vst [vmem:[%s3455_s26 + $0x5f0] sm:$0xff] %v530_v62  ;;  %533 = vst [vmem:[%s3455_s26 + $0x5f8] sm:$0xff] %v532_v63  ;;  %v534_v0 = vld [vmem:[%s3450_s25 + $0xc00] sm:$0xff]  ;;  %v536_v1 = vld [vmem:[%s3450_s25 + $0xc08] sm:$0xff] }
  0x70   : > { %v538_v2 = vld [vmem:[%s3450_s25 + $0xc20] sm:$0xff]  ;;  %535 = vst [vmem:[%s3455_s26 + $0x600] sm:$0xff] %v534_v0  ;;  %537 = vst [vmem:[%s3455_s26 + $0x608] sm:$0xff] %v536_v1  ;;  %v540_v3 = vld [vmem:[%s3450_s25 + $0xc28] sm:$0xff] }
  0x71   : > { %539 = vst [vmem:[%s3455_s26 + $0x610] sm:$0xff] %v538_v2  ;;  %v542_v4 = vld [vmem:[%s3450_s25 + $0xc40] sm:$0xff]  ;;  %v544_v5 = vld [vmem:[%s3450_s25 + $0xc48] sm:$0xff]  ;;  %541 = vst [vmem:[%s3455_s26 + $0x618] sm:$0xff] %v540_v3 }
  0x72   : > { %543 = vst [vmem:[%s3455_s26 + $0x620] sm:$0xff] %v542_v4  ;;  %545 = vst [vmem:[%s3455_s26 + $0x628] sm:$0xff] %v544_v5  ;;  %v546_v6 = vld [vmem:[%s3450_s25 + $0xc60] sm:$0xff]  ;;  %v548_v7 = vld [vmem:[%s3450_s25 + $0xc68] sm:$0xff] }
  0x73   : > { %v550_v8 = vld [vmem:[%s3450_s25 + $0xc80] sm:$0xff]  ;;  %547 = vst [vmem:[%s3455_s26 + $0x630] sm:$0xff] %v546_v6  ;;  %549 = vst [vmem:[%s3455_s26 + $0x638] sm:$0xff] %v548_v7  ;;  %v552_v9 = vld [vmem:[%s3450_s25 + $0xc88] sm:$0xff] }
  0x74   : > { %551 = vst [vmem:[%s3455_s26 + $0x640] sm:$0xff] %v550_v8  ;;  %v554_v10 = vld [vmem:[%s3450_s25 + $0xca0] sm:$0xff]  ;;  %v556_v11 = vld [vmem:[%s3450_s25 + $0xca8] sm:$0xff]  ;;  %553 = vst [vmem:[%s3455_s26 + $0x648] sm:$0xff] %v552_v9 }
  0x75   : > { %555 = vst [vmem:[%s3455_s26 + $0x650] sm:$0xff] %v554_v10  ;;  %557 = vst [vmem:[%s3455_s26 + $0x658] sm:$0xff] %v556_v11  ;;  %v558_v12 = vld [vmem:[%s3450_s25 + $0xcc0] sm:$0xff]  ;;  %v560_v13 = vld [vmem:[%s3450_s25 + $0xcc8] sm:$0xff] }
  0x76   : > { %v562_v14 = vld [vmem:[%s3450_s25 + $0xce0] sm:$0xff]  ;;  %559 = vst [vmem:[%s3455_s26 + $0x660] sm:$0xff] %v558_v12  ;;  %561 = vst [vmem:[%s3455_s26 + $0x668] sm:$0xff] %v560_v13  ;;  %v564_v15 = vld [vmem:[%s3450_s25 + $0xce8] sm:$0xff] }
  0x77   : > { %563 = vst [vmem:[%s3455_s26 + $0x670] sm:$0xff] %v562_v14  ;;  %v566_v16 = vld [vmem:[%s3450_s25 + $0xd00] sm:$0xff]  ;;  %v568_v17 = vld [vmem:[%s3450_s25 + $0xd08] sm:$0xff]  ;;  %565 = vst [vmem:[%s3455_s26 + $0x678] sm:$0xff] %v564_v15 }
  0x78   : > { %567 = vst [vmem:[%s3455_s26 + $0x680] sm:$0xff] %v566_v16  ;;  %569 = vst [vmem:[%s3455_s26 + $0x688] sm:$0xff] %v568_v17  ;;  %v570_v18 = vld [vmem:[%s3450_s25 + $0xd20] sm:$0xff]  ;;  %v572_v19 = vld [vmem:[%s3450_s25 + $0xd28] sm:$0xff] }
  0x79   : > { %v574_v20 = vld [vmem:[%s3450_s25 + $0xd40] sm:$0xff]  ;;  %571 = vst [vmem:[%s3455_s26 + $0x690] sm:$0xff] %v570_v18  ;;  %573 = vst [vmem:[%s3455_s26 + $0x698] sm:$0xff] %v572_v19  ;;  %v576_v21 = vld [vmem:[%s3450_s25 + $0xd48] sm:$0xff] }
  0x7a   : > { %575 = vst [vmem:[%s3455_s26 + $0x6a0] sm:$0xff] %v574_v20  ;;  %v578_v22 = vld [vmem:[%s3450_s25 + $0xd60] sm:$0xff]  ;;  %v580_v23 = vld [vmem:[%s3450_s25 + $0xd68] sm:$0xff]  ;;  %577 = vst [vmem:[%s3455_s26 + $0x6a8] sm:$0xff] %v576_v21 }
  0x7b   : > { %579 = vst [vmem:[%s3455_s26 + $0x6b0] sm:$0xff] %v578_v22  ;;  %581 = vst [vmem:[%s3455_s26 + $0x6b8] sm:$0xff] %v580_v23  ;;  %v582_v24 = vld [vmem:[%s3450_s25 + $0xd80] sm:$0xff]  ;;  %v584_v25 = vld [vmem:[%s3450_s25 + $0xd88] sm:$0xff] }
  0x7c   : > { %v586_v26 = vld [vmem:[%s3450_s25 + $0xda0] sm:$0xff]  ;;  %583 = vst [vmem:[%s3455_s26 + $0x6c0] sm:$0xff] %v582_v24  ;;  %585 = vst [vmem:[%s3455_s26 + $0x6c8] sm:$0xff] %v584_v25  ;;  %v588_v27 = vld [vmem:[%s3450_s25 + $0xda8] sm:$0xff] }
  0x7d   : > { %587 = vst [vmem:[%s3455_s26 + $0x6d0] sm:$0xff] %v586_v26  ;;  %v590_v28 = vld [vmem:[%s3450_s25 + $0xdc0] sm:$0xff]  ;;  %v592_v29 = vld [vmem:[%s3450_s25 + $0xdc8] sm:$0xff]  ;;  %589 = vst [vmem:[%s3455_s26 + $0x6d8] sm:$0xff] %v588_v27 }
  0x7e   : > { %591 = vst [vmem:[%s3455_s26 + $0x6e0] sm:$0xff] %v590_v28  ;;  %593 = vst [vmem:[%s3455_s26 + $0x6e8] sm:$0xff] %v592_v29  ;;  %v594_v30 = vld [vmem:[%s3450_s25 + $0xde0] sm:$0xff]  ;;  %v596_v31 = vld [vmem:[%s3450_s25 + $0xde8] sm:$0xff] }
  0x7f   : > { %v598_v32 = vld [vmem:[%s3450_s25 + $0xe00] sm:$0xff]  ;;  %595 = vst [vmem:[%s3455_s26 + $0x6f0] sm:$0xff] %v594_v30  ;;  %597 = vst [vmem:[%s3455_s26 + $0x6f8] sm:$0xff] %v596_v31  ;;  %v600_v33 = vld [vmem:[%s3450_s25 + $0xe08] sm:$0xff] }
  0x80   : > { %599 = vst [vmem:[%s3455_s26 + $0x700] sm:$0xff] %v598_v32  ;;  %v602_v34 = vld [vmem:[%s3450_s25 + $0xe20] sm:$0xff]  ;;  %v604_v35 = vld [vmem:[%s3450_s25 + $0xe28] sm:$0xff]  ;;  %601 = vst [vmem:[%s3455_s26 + $0x708] sm:$0xff] %v600_v33 }
  0x81   : > { %603 = vst [vmem:[%s3455_s26 + $0x710] sm:$0xff] %v602_v34  ;;  %605 = vst [vmem:[%s3455_s26 + $0x718] sm:$0xff] %v604_v35  ;;  %v606_v36 = vld [vmem:[%s3450_s25 + $0xe40] sm:$0xff]  ;;  %v608_v37 = vld [vmem:[%s3450_s25 + $0xe48] sm:$0xff] }
  0x82   : > { %v610_v38 = vld [vmem:[%s3450_s25 + $0xe60] sm:$0xff]  ;;  %607 = vst [vmem:[%s3455_s26 + $0x720] sm:$0xff] %v606_v36  ;;  %609 = vst [vmem:[%s3455_s26 + $0x728] sm:$0xff] %v608_v37  ;;  %v612_v39 = vld [vmem:[%s3450_s25 + $0xe68] sm:$0xff] }
  0x83   : > { %611 = vst [vmem:[%s3455_s26 + $0x730] sm:$0xff] %v610_v38  ;;  %v614_v40 = vld [vmem:[%s3450_s25 + $0xe80] sm:$0xff]  ;;  %v616_v41 = vld [vmem:[%s3450_s25 + $0xe88] sm:$0xff]  ;;  %613 = vst [vmem:[%s3455_s26 + $0x738] sm:$0xff] %v612_v39 }
  0x84   : > { %615 = vst [vmem:[%s3455_s26 + $0x740] sm:$0xff] %v614_v40  ;;  %617 = vst [vmem:[%s3455_s26 + $0x748] sm:$0xff] %v616_v41  ;;  %v618_v42 = vld [vmem:[%s3450_s25 + $0xea0] sm:$0xff]  ;;  %v620_v43 = vld [vmem:[%s3450_s25 + $0xea8] sm:$0xff] }
  0x85   : > { %v622_v44 = vld [vmem:[%s3450_s25 + $0xec0] sm:$0xff]  ;;  %619 = vst [vmem:[%s3455_s26 + $0x750] sm:$0xff] %v618_v42  ;;  %621 = vst [vmem:[%s3455_s26 + $0x758] sm:$0xff] %v620_v43  ;;  %v624_v45 = vld [vmem:[%s3450_s25 + $0xec8] sm:$0xff] }
  0x86   : > { %623 = vst [vmem:[%s3455_s26 + $0x760] sm:$0xff] %v622_v44  ;;  %v626_v46 = vld [vmem:[%s3450_s25 + $0xee0] sm:$0xff]  ;;  %v628_v47 = vld [vmem:[%s3450_s25 + $0xee8] sm:$0xff]  ;;  %625 = vst [vmem:[%s3455_s26 + $0x768] sm:$0xff] %v624_v45 }
  0x87   : > { %627 = vst [vmem:[%s3455_s26 + $0x770] sm:$0xff] %v626_v46  ;;  %629 = vst [vmem:[%s3455_s26 + $0x778] sm:$0xff] %v628_v47  ;;  %v630_v48 = vld [vmem:[%s3450_s25 + $0xf00] sm:$0xff]  ;;  %v632_v49 = vld [vmem:[%s3450_s25 + $0xf08] sm:$0xff] }
  0x88   : > { %v634_v50 = vld [vmem:[%s3450_s25 + $0xf20] sm:$0xff]  ;;  %631 = vst [vmem:[%s3455_s26 + $0x780] sm:$0xff] %v630_v48  ;;  %633 = vst [vmem:[%s3455_s26 + $0x788] sm:$0xff] %v632_v49  ;;  %v636_v51 = vld [vmem:[%s3450_s25 + $0xf28] sm:$0xff] }
  0x89   : > { %635 = vst [vmem:[%s3455_s26 + $0x790] sm:$0xff] %v634_v50  ;;  %v638_v52 = vld [vmem:[%s3450_s25 + $0xf40] sm:$0xff]  ;;  %v640_v53 = vld [vmem:[%s3450_s25 + $0xf48] sm:$0xff]  ;;  %637 = vst [vmem:[%s3455_s26 + $0x798] sm:$0xff] %v636_v51 }
  0x8a   : > { %639 = vst [vmem:[%s3455_s26 + $0x7a0] sm:$0xff] %v638_v52  ;;  %641 = vst [vmem:[%s3455_s26 + $0x7a8] sm:$0xff] %v640_v53  ;;  %v642_v54 = vld [vmem:[%s3450_s25 + $0xf60] sm:$0xff]  ;;  %v644_v55 = vld [vmem:[%s3450_s25 + $0xf68] sm:$0xff] }
  0x8b   : > { %v646_v56 = vld [vmem:[%s3450_s25 + $0xf80] sm:$0xff]  ;;  %643 = vst [vmem:[%s3455_s26 + $0x7b0] sm:$0xff] %v642_v54  ;;  %645 = vst [vmem:[%s3455_s26 + $0x7b8] sm:$0xff] %v644_v55  ;;  %v648_v57 = vld [vmem:[%s3450_s25 + $0xf88] sm:$0xff] }
  0x8c   : > { %647 = vst [vmem:[%s3455_s26 + $0x7c0] sm:$0xff] %v646_v56  ;;  %v650_v58 = vld [vmem:[%s3450_s25 + $0xfa0] sm:$0xff]  ;;  %v652_v59 = vld [vmem:[%s3450_s25 + $0xfa8] sm:$0xff]  ;;  %649 = vst [vmem:[%s3455_s26 + $0x7c8] sm:$0xff] %v648_v57 }
  0x8d   : > { %651 = vst [vmem:[%s3455_s26 + $0x7d0] sm:$0xff] %v650_v58  ;;  %653 = vst [vmem:[%s3455_s26 + $0x7d8] sm:$0xff] %v652_v59  ;;  %v654_v60 = vld [vmem:[%s3450_s25 + $0xfc0] sm:$0xff]  ;;  %v656_v61 = vld [vmem:[%s3450_s25 + $0xfc8] sm:$0xff] }
  0x8e   : > { %v658_v62 = vld [vmem:[%s3450_s25 + $0xfe0] sm:$0xff]  ;;  %655 = vst [vmem:[%s3455_s26 + $0x7e0] sm:$0xff] %v654_v60  ;;  %657 = vst [vmem:[%s3455_s26 + $0x7e8] sm:$0xff] %v656_v61  ;;  %v660_v63 = vld [vmem:[%s3450_s25 + $0xfe8] sm:$0xff] }
  0x8f   : > { %659 = vst [vmem:[%s3455_s26 + $0x7f0] sm:$0xff] %v658_v62  ;;  %661 = vst [vmem:[%s3455_s26 + $0x7f8] sm:$0xff] %v660_v63 }
  0x90 PF: > { %p2682_p5 = scmp.ge.s32.totalorder %s3393_s14, 1  ;;  %p666_p6 = scmp.lt.s32.totalorder %s3393_s14, 3 }
  0x92   : > { %p667_p7 = pnand %p2682_p5, %p666_p6 }
  0x93   : > { %s673_s27 = sand.u32 (!%p667_p7), 1, %s3385_s12   ;;  %s2684_s17 = sshll.u32 (!%p667_p7), %s2675_s15, 2 }
  0x94   : > { %670 = sbr.rel (%p667_p7) target bundleno = 614 (0x266), region = 51  ;;  %s2683_s5 = sshll.u32 (!%p667_p7), %s673_s27, 11 }
  0x95   : > { %s3987_s6 = scalar_lea.vmem (!%p667_p7), [#allocation2], %s2683_s5  ;;  %p698_p8 = scmp.lt.s32.totalorder (!%p667_p7), %s2684_s17, 7 }
  0x99   : > { %v3972_v0 = vld [vmem:[%s4319_s0] sm:$0xff]  ;;  %v3977_v1 = vld [vmem:[%s4319_s0 + $0x8] sm:$0xff]  ;;  %v3395_v13 = vmov 0   ;;  %s4327_s17 = smov (!%p698_p8, %s2684_s17), 7 }
  0x9a   : > { %v3981_v2 = vcombine.high %v3972_v0, %v3972_v0  ;;  %v3985_v3 = vcombine.high %v3977_v1, %v3977_v1  ;;  %v2979_v4 = vld [vmem:[%s3987_s6 + $0xe4] ss:$16 sps:$4 sm:$0xff]   ;;  %v2983_v6 = vld [vmem:[%s3987_s6 + $0xe0] ss:$16 sps:$4 sm:$0xff]   ;;  %2978 = vset.pattern.permute.xlu0 %v3395_v13  ;;  %v4069_v13 = vcombine.low %v3972_v0, %v3972_v0  ;;  %s2685_s18 = sshll.u32 %s4327_s17, 3 }
  0x9b   : > { %v2981_v5 = vld [vmem:[%s3987_s6 + $0x2e4] ss:$16 sps:$4 sm:$0xff]   ;;  %2277 = vmatprep.subr.bf16.mxu0 %v2979_v4  ;;  %v2984_v7 = vld [vmem:[%s3987_s6 + $0x2e0] ss:$16 sps:$4 sm:$0xff]   ;;  %s4303_s14 = scalar_lea.vmem %s4322_s3, %s2685_s18 }
  0x9c   : > { %2309 = vmatprep.mubr.bf16.mxu0 %v3981_v2  ;;  %2350 = vmatprep.mubr.bf16.mxu1 %v3985_v3  ;;  %v2985_v8 = vld [vmem:[%s3987_s6 + $0xc4] ss:$16 sps:$4 sm:$0xff]   ;;  %v2989_v10 = vld [vmem:[%s3987_s6 + $0xc0] ss:$16 sps:$4 sm:$0xff]  }
  0x9d   : > { %2318 = vmatprep.subr.bf16.mxu1 %v2981_v5  ;;  %2278 = vmatpush1.bf16.msra.mxu0 %v2983_v6  ;;  %v2987_v9 = vld [vmem:[%s3987_s6 + $0x2c4] ss:$16 sps:$4 sm:$0xff]   ;;  %v2990_v11 = vld [vmem:[%s3987_s6 + $0x2c0] ss:$16 sps:$4 sm:$0xff]  }
  0x9e   : > { %2319 = vmatpush1.bf16.msra.mxu1 %v2984_v7  ;;  %2279 = vmatprep.subr.bf16.mxu0 %v2985_v8  ;;  %v2991_v12 = vld [vmem:[%s3987_s6 + $0xa4] ss:$16 sps:$4 sm:$0xff]   ;;  %v2995_v15 = vld [vmem:[%s3987_s6 + $0xa0] ss:$16 sps:$4 sm:$0xff]  }
  0x9f   : > { %2320 = vmatprep.subr.bf16.mxu1 %v2987_v9  ;;  %v2993_v14 = vld [vmem:[%s3987_s6 + $0x2a4] ss:$16 sps:$4 sm:$0xff]   ;;  %v2996_v16 = vld [vmem:[%s3987_s6 + $0x2a0] ss:$16 sps:$4 sm:$0xff]  }
  0xa0   : > { %v2997_v17 = vld [vmem:[%s3987_s6 + $0x84] ss:$16 sps:$4 sm:$0xff]   ;;  %v3001_v19 = vld [vmem:[%s3987_s6 + $0x80] ss:$16 sps:$4 sm:$0xff]  }
  0xa1   : > { %2280 = vmatpush1.bf16.msra.mxu0 %v2989_v10  ;;  %v2999_v18 = vld [vmem:[%s3987_s6 + $0x284] ss:$16 sps:$4 sm:$0xff]   ;;  %v3002_v20 = vld [vmem:[%s3987_s6 + $0x280] ss:$16 sps:$4 sm:$0xff]  }
  0xa2   : > { %2321 = vmatpush1.bf16.msra.mxu1 %v2990_v11  ;;  %2281 = vmatprep.subr.bf16.mxu0 %v2991_v12  ;;  %v3003_v21 = vld [vmem:[%s3987_s6 + $0x64] ss:$16 sps:$4 sm:$0xff]   ;;  %v3007_v23 = vld [vmem:[%s3987_s6 + $0x60] ss:$16 sps:$4 sm:$0xff]   ;;  %v4065_v12 = vld [vmem:[%s4319_s0 + $0x18] sm:$0xff] }
  0xa3   : > { %2322 = vmatprep.subr.bf16.mxu1 %v2993_v14  ;;  %v3005_v22 = vld [vmem:[%s3987_s6 + $0x264] ss:$16 sps:$4 sm:$0xff]   ;;  %v3008_v24 = vld [vmem:[%s3987_s6 + $0x260] ss:$16 sps:$4 sm:$0xff]   ;;  %v4073_v14 = vcombine.low %v3977_v1, %v3977_v1  ;;  %v4085_v1 = vcombine.high %v4065_v12, %v4065_v12 }
  0xa4   : > { %v3009_v25 = vld [vmem:[%s3987_s6 + $0x44] ss:$16 sps:$4 sm:$0xff]   ;;  %v3013_v27 = vld [vmem:[%s3987_s6 + $0x40] ss:$16 sps:$4 sm:$0xff]  }
  0xa5   : > { %2282 = vmatpush1.bf16.msra.mxu0 %v2995_v15  ;;  %v3011_v26 = vld [vmem:[%s3987_s6 + $0x244] ss:$16 sps:$4 sm:$0xff]   ;;  %v3014_v28 = vld [vmem:[%s3987_s6 + $0x240] ss:$16 sps:$4 sm:$0xff]  }
  0xa6   : > { %2323 = vmatpush1.bf16.msra.mxu1 %v2996_v16  ;;  %2283 = vmatprep.subr.bf16.mxu0 %v2997_v17  ;;  %v3015_v29 = vld [vmem:[%s3987_s6 + $0x24] ss:$16 sps:$4 sm:$0xff]   ;;  %v3019_v31 = vld [vmem:[%s3987_s6 + $0x20] ss:$16 sps:$4 sm:$0xff]  }
  0xa7   : > { %2324 = vmatprep.subr.bf16.mxu1 %v2999_v18  ;;  %v3017_v30 = vld [vmem:[%s3987_s6 + $0x224] ss:$16 sps:$4 sm:$0xff]   ;;  %v3020_v32 = vld [vmem:[%s3987_s6 + $0x220] ss:$16 sps:$4 sm:$0xff]  }
  0xa8   : > { %v3021_v33 = vld [vmem:[%s3987_s6 + $0x4] ss:$16 sps:$4 sm:$0xff]   ;;  %v3025_v35 = vld [vmem:[%s3987_s6] ss:$16 sps:$4 sm:$0xff]  }
  0xa9   : > { %2284 = vmatpush1.bf16.msra.mxu0 %v3001_v19  ;;  %v3023_v34 = vld [vmem:[%s3987_s6 + $0x204] ss:$16 sps:$4 sm:$0xff]   ;;  %v3026_v36 = vld [vmem:[%s3987_s6 + $0x200] ss:$16 sps:$4 sm:$0xff]  }
  0xaa   : > { %2325 = vmatpush1.bf16.msra.mxu1 %v3002_v20  ;;  %2285 = vmatprep.subr.bf16.mxu0 %v3003_v21  ;;  %v3027_v37 = vld [vmem:[%s3987_s6 + $0x1e4] ss:$16 sps:$4 sm:$0xff]   ;;  %v3031_v39 = vld [vmem:[%s3987_s6 + $0x1e0] ss:$16 sps:$4 sm:$0xff]  }
  0xab   : > { %2326 = vmatprep.subr.bf16.mxu1 %v3005_v22  ;;  %v3029_v38 = vld [vmem:[%s3987_s6 + $0x3e4] ss:$16 sps:$4 sm:$0xff]   ;;  %v3032_v40 = vld [vmem:[%s3987_s6 + $0x3e0] ss:$16 sps:$4 sm:$0xff]  }
  0xac   : > { %v3033_v41 = vld [vmem:[%s3987_s6 + $0x1c4] ss:$16 sps:$4 sm:$0xff]   ;;  %v3037_v43 = vld [vmem:[%s3987_s6 + $0x1c0] ss:$16 sps:$4 sm:$0xff]  }
  0xad   : > { %2286 = vmatpush1.bf16.msra.mxu0 %v3007_v23  ;;  %v3035_v42 = vld [vmem:[%s3987_s6 + $0x3c4] ss:$16 sps:$4 sm:$0xff]   ;;  %v3038_v44 = vld [vmem:[%s3987_s6 + $0x3c0] ss:$16 sps:$4 sm:$0xff]  }
  0xae   : > { %2327 = vmatpush1.bf16.msra.mxu1 %v3008_v24  ;;  %2287 = vmatprep.subr.bf16.mxu0 %v3009_v25  ;;  %v3039_v45 = vld [vmem:[%s3987_s6 + $0x1a4] ss:$16 sps:$4 sm:$0xff]   ;;  %v3043_v47 = vld [vmem:[%s3987_s6 + $0x1a0] ss:$16 sps:$4 sm:$0xff]  }
  0xaf   : > { %2328 = vmatprep.subr.bf16.mxu1 %v3011_v26  ;;  %v3041_v46 = vld [vmem:[%s3987_s6 + $0x3a4] ss:$16 sps:$4 sm:$0xff]   ;;  %v3044_v48 = vld [vmem:[%s3987_s6 + $0x3a0] ss:$16 sps:$4 sm:$0xff]  }
  0xb0   : > { %v3045_v49 = vld [vmem:[%s3987_s6 + $0x184] ss:$16 sps:$4 sm:$0xff]   ;;  %v3049_v51 = vld [vmem:[%s3987_s6 + $0x180] ss:$16 sps:$4 sm:$0xff]  }
  0xb1   : > { %2288 = vmatpush1.bf16.msra.mxu0 %v3013_v27  ;;  %v3047_v50 = vld [vmem:[%s3987_s6 + $0x384] ss:$16 sps:$4 sm:$0xff]   ;;  %v3050_v52 = vld [vmem:[%s3987_s6 + $0x380] ss:$16 sps:$4 sm:$0xff]  }
  0xb2   : > { %2329 = vmatpush1.bf16.msra.mxu1 %v3014_v28  ;;  %2289 = vmatprep.subr.bf16.mxu0 %v3015_v29  ;;  %v3051_v53 = vld [vmem:[%s3987_s6 + $0x164] ss:$16 sps:$4 sm:$0xff]   ;;  %v3055_v55 = vld [vmem:[%s3987_s6 + $0x160] ss:$16 sps:$4 sm:$0xff]  }
  0xb3   : > { %2330 = vmatprep.subr.bf16.mxu1 %v3017_v30  ;;  %v3053_v54 = vld [vmem:[%s3987_s6 + $0x364] ss:$16 sps:$4 sm:$0xff]   ;;  %v3056_v56 = vld [vmem:[%s3987_s6 + $0x360] ss:$16 sps:$4 sm:$0xff]  }
  0xb4   : > { %v3057_v57 = vld [vmem:[%s3987_s6 + $0x144] ss:$16 sps:$4 sm:$0xff]   ;;  %v3061_v59 = vld [vmem:[%s3987_s6 + $0x140] ss:$16 sps:$4 sm:$0xff]  }
  0xb5   : > { %2290 = vmatpush1.bf16.msra.mxu0 %v3019_v31  ;;  %v3059_v58 = vld [vmem:[%s3987_s6 + $0x344] ss:$16 sps:$4 sm:$0xff]   ;;  %v3062_v60 = vld [vmem:[%s3987_s6 + $0x340] ss:$16 sps:$4 sm:$0xff]  }
  0xb6   : > { %2331 = vmatpush1.bf16.msra.mxu1 %v3020_v32  ;;  %2291 = vmatprep.subr.bf16.mxu0 %v3021_v33  ;;  %v3063_v61 = vld [vmem:[%s3987_s6 + $0x124] ss:$16 sps:$4 sm:$0xff]   ;;  %v3067_v63 = vld [vmem:[%s3987_s6 + $0x120] ss:$16 sps:$4 sm:$0xff]  }
  0xb7   : > { %2332 = vmatprep.subr.bf16.mxu1 %v3023_v34  ;;  %v3065_v62 = vld [vmem:[%s3987_s6 + $0x324] ss:$16 sps:$4 sm:$0xff]   ;;  %v3068_v4 = vld [vmem:[%s3987_s6 + $0x320] ss:$16 sps:$4 sm:$0xff]  }
  0xb8   : > { %v3069_v5 = vld [vmem:[%s3987_s6 + $0x104] ss:$16 sps:$4 sm:$0xff]   ;;  %v3073_v7 = vld [vmem:[%s3987_s6 + $0x100] ss:$16 sps:$4 sm:$0xff]  }
  0xb9   : > { %2292 = vmatpush1.bf16.msra.mxu0 %v3025_v35  ;;  %v3071_v6 = vld [vmem:[%s3987_s6 + $0x304] ss:$16 sps:$4 sm:$0xff]   ;;  %v3074_v8 = vld [vmem:[%s3987_s6 + $0x300] ss:$16 sps:$4 sm:$0xff]  }
  0xba   : > { %2333 = vmatpush1.bf16.msra.mxu1 %v3026_v36  ;;  %2293 = vmatprep.subr.bf16.mxu0 %v3027_v37  ;;  %v3081_v9 = vld [vmem:[%s3987_s6 + $0x4e4] ss:$16 sps:$4 sm:$0xff]   ;;  %v3079_v15 = vld [vmem:[%s3987_s6 + $0x4e0] ss:$16 sps:$4 sm:$0xff]  }
  0xbb   : > { %2334 = vmatprep.subr.bf16.mxu1 %v3029_v38  ;;  %v3084_v10 = vld [vmem:[%s3987_s6 + $0x6e4] ss:$16 sps:$4 sm:$0xff]   ;;  %v3082_v16 = vld [vmem:[%s3987_s6 + $0x6e0] ss:$16 sps:$4 sm:$0xff]  }
  0xbc   : > { %v4060_v11 = vld [vmem:[%s4319_s0 + $0x10] sm:$0xff] }
  0xbd   : > { %2294 = vmatpush2.bf16.msra.mxu0 %v3031_v39  ;;  %v3087_v17 = vld [vmem:[%s3987_s6 + $0x4c4] ss:$16 sps:$4 sm:$0xff]   ;;  %v4081_v0 = vcombine.high %v4060_v11, %v4060_v11  ;;  %v3085_v19 = vld [vmem:[%s3987_s6 + $0x4c0] ss:$16 sps:$4 sm:$0xff]  }
  0xbe   : > { %2335 = vmatpush2.bf16.msra.mxu1 %v3032_v40  ;;  %2295 = vmatprep.subr.bf16.mxu0 %v3033_v41  ;;  %v3090_v18 = vld [vmem:[%s3987_s6 + $0x6c4] ss:$16 sps:$4 sm:$0xff]   ;;  %v3088_v20 = vld [vmem:[%s3987_s6 + $0x6c0] ss:$16 sps:$4 sm:$0xff]  }
  0xbf   : > { %2336 = vmatprep.subr.bf16.mxu1 %v3035_v42  ;;  %v3093_v21 = vld [vmem:[%s3987_s6 + $0x4a4] ss:$16 sps:$4 sm:$0xff]   ;;  %v3091_v23 = vld [vmem:[%s3987_s6 + $0x4a0] ss:$16 sps:$4 sm:$0xff]  }
  0xc0   : > { %v3096_v22 = vld [vmem:[%s3987_s6 + $0x6a4] ss:$16 sps:$4 sm:$0xff]   ;;  %v3094_v24 = vld [vmem:[%s3987_s6 + $0x6a0] ss:$16 sps:$4 sm:$0xff]  }
  0xc1   : > { %2296 = vmatpush2.bf16.msra.mxu0 %v3037_v43  ;;  %v3099_v25 = vld [vmem:[%s3987_s6 + $0x484] ss:$16 sps:$4 sm:$0xff]   ;;  %v3097_v27 = vld [vmem:[%s3987_s6 + $0x480] ss:$16 sps:$4 sm:$0xff]  }
  0xc2   : > { %2337 = vmatpush2.bf16.msra.mxu1 %v3038_v44  ;;  %2297 = vmatprep.subr.bf16.mxu0 %v3039_v45  ;;  %v3102_v26 = vld [vmem:[%s3987_s6 + $0x684] ss:$16 sps:$4 sm:$0xff]   ;;  %v3100_v28 = vld [vmem:[%s3987_s6 + $0x680] ss:$16 sps:$4 sm:$0xff]  }
  0xc3   : > { %2338 = vmatprep.subr.bf16.mxu1 %v3041_v46  ;;  %v3105_v29 = vld [vmem:[%s3987_s6 + $0x464] ss:$16 sps:$4 sm:$0xff]   ;;  %v3103_v31 = vld [vmem:[%s3987_s6 + $0x460] ss:$16 sps:$4 sm:$0xff]  }
  0xc4   : > { %v3108_v30 = vld [vmem:[%s3987_s6 + $0x664] ss:$16 sps:$4 sm:$0xff]   ;;  %v3106_v32 = vld [vmem:[%s3987_s6 + $0x660] ss:$16 sps:$4 sm:$0xff]  }
  0xc5   : > { %2298 = vmatpush2.bf16.msra.mxu0 %v3043_v47  ;;  %v3111_v33 = vld [vmem:[%s3987_s6 + $0x444] ss:$16 sps:$4 sm:$0xff]   ;;  %v3109_v35 = vld [vmem:[%s3987_s6 + $0x440] ss:$16 sps:$4 sm:$0xff]  }
  0xc6   : > { %2339 = vmatpush2.bf16.msra.mxu1 %v3044_v48  ;;  %2299 = vmatprep.subr.bf16.mxu0 %v3045_v49  ;;  %v3114_v34 = vld [vmem:[%s3987_s6 + $0x644] ss:$16 sps:$4 sm:$0xff]   ;;  %v3112_v36 = vld [vmem:[%s3987_s6 + $0x640] ss:$16 sps:$4 sm:$0xff]  }
  0xc7   : > { %2340 = vmatprep.subr.bf16.mxu1 %v3047_v50  ;;  %v3117_v37 = vld [vmem:[%s3987_s6 + $0x424] ss:$16 sps:$4 sm:$0xff]   ;;  %v3115_v39 = vld [vmem:[%s3987_s6 + $0x420] ss:$16 sps:$4 sm:$0xff]  }
  0xc8   : > { %v3120_v38 = vld [vmem:[%s3987_s6 + $0x624] ss:$16 sps:$4 sm:$0xff]   ;;  %v3118_v40 = vld [vmem:[%s3987_s6 + $0x620] ss:$16 sps:$4 sm:$0xff]  }
  0xc9   : > { %2300 = vmatpush2.bf16.msra.mxu0 %v3049_v51  ;;  %v3123_v41 = vld [vmem:[%s3987_s6 + $0x404] ss:$16 sps:$4 sm:$0xff]   ;;  %v3121_v44 = vld [vmem:[%s3987_s6 + $0x400] ss:$16 sps:$4 sm:$0xff]  }
  0xca   : > { %2341 = vmatpush2.bf16.msra.mxu1 %v3050_v52  ;;  %2301 = vmatprep.subr.bf16.mxu0 %v3051_v53  ;;  %v3126_v42 = vld [vmem:[%s3987_s6 + $0x604] ss:$16 sps:$4 sm:$0xff]   ;;  %v3124_v45 = vld [vmem:[%s3987_s6 + $0x600] ss:$16 sps:$4 sm:$0xff]  }
  0xcb   : > { %2342 = vmatprep.subr.bf16.mxu1 %v3053_v54  ;;  %v963_v43 = vld [vmem:[%s4320_s1] sm:$0xff] }
  0xcc   : > { %966 = vperm.xlu0 %2978, %v963_v43   ;;  %v3129_v46 = vld [vmem:[%s3987_s6 + $0x5e4] ss:$16 sps:$4 sm:$0xff]   ;;  %v3127_v48 = vld [vmem:[%s3987_s6 + $0x5e0] ss:$16 sps:$4 sm:$0xff]   ;;  %v3212_v43 = vld [vmem:[%s3987_s6 + $0x248] ss:$16 sps:$4 sm:$0xff]  }
  0xcd   : > { %2302 = vmatpush2.bf16.msra.mxu0 %v3055_v55  ;;  %v3132_v47 = vld [vmem:[%s3987_s6 + $0x7e4] ss:$16 sps:$4 sm:$0xff]   ;;  %v3130_v49 = vld [vmem:[%s3987_s6 + $0x7e0] ss:$16 sps:$4 sm:$0xff]  }
  0xce   : > { %2343 = vmatpush2.bf16.msra.mxu1 %v3056_v56  ;;  %2303 = vmatprep.subr.bf16.mxu0 %v3057_v57  ;;  %v3135_v50 = vld [vmem:[%s3987_s6 + $0x5c4] ss:$16 sps:$4 sm:$0xff]   ;;  %v3133_v52 = vld [vmem:[%s3987_s6 + $0x5c0] ss:$16 sps:$4 sm:$0xff]  }
  0xcf   : > { %2344 = vmatprep.subr.bf16.mxu1 %v3059_v58  ;;  %v3138_v51 = vld [vmem:[%s3987_s6 + $0x7c4] ss:$16 sps:$4 sm:$0xff]   ;;  %v3136_v53 = vld [vmem:[%s3987_s6 + $0x7c0] ss:$16 sps:$4 sm:$0xff]  }
  0xd0   : > { %v3141_v54 = vld [vmem:[%s3987_s6 + $0x5a4] ss:$16 sps:$4 sm:$0xff]   ;;  %v3139_v56 = vld [vmem:[%s3987_s6 + $0x5a0] ss:$16 sps:$4 sm:$0xff]  }
  0xd1   : > { %2304 = vmatpush2.bf16.msra.mxu0 %v3061_v59  ;;  %v3144_v55 = vld [vmem:[%s3987_s6 + $0x7a4] ss:$16 sps:$4 sm:$0xff]   ;;  %v3142_v57 = vld [vmem:[%s3987_s6 + $0x7a0] ss:$16 sps:$4 sm:$0xff]  }
  0xd2   : > { %2345 = vmatpush2.bf16.msra.mxu1 %v3062_v60  ;;  %2305 = vmatprep.subr.bf16.mxu0 %v3063_v61  ;;  %v3147_v58 = vld [vmem:[%s3987_s6 + $0x584] ss:$16 sps:$4 sm:$0xff]   ;;  %v3145_v60 = vld [vmem:[%s3987_s6 + $0x580] ss:$16 sps:$4 sm:$0xff]  }
  0xd3   : > { %2346 = vmatprep.subr.bf16.mxu1 %v3065_v62  ;;  %v3150_v59 = vld [vmem:[%s3987_s6 + $0x784] ss:$16 sps:$4 sm:$0xff]   ;;  %v3148_v61 = vld [vmem:[%s3987_s6 + $0x780] ss:$16 sps:$4 sm:$0xff]  }
  0xd4   : > { %v3153_v62 = vld [vmem:[%s3987_s6 + $0x564] ss:$16 sps:$4 sm:$0xff]  }
  0xd5   : > { %2306 = vmatpush2.bf16.msra.mxu0 %v3067_v63  ;;  %v3156_v63 = vld [vmem:[%s3987_s6 + $0x764] ss:$16 sps:$4 sm:$0xff]  }
  0xd6   : > { %2347 = vmatpush2.bf16.msra.mxu1 %v3068_v4  ;;  %2307 = vmatprep.subr.bf16.mxu0 %v3069_v5  ;;  %v3151_v4 = vld [vmem:[%s3987_s6 + $0x560] ss:$16 sps:$4 sm:$0xff]  }
  0xd7   : > { %2348 = vmatprep.subr.bf16.mxu1 %v3071_v6  ;;  %v3154_v5 = vld [vmem:[%s3987_s6 + $0x760] ss:$16 sps:$4 sm:$0xff]   ;;  %v3159_v6 = vld [vmem:[%s3987_s6 + $0x544] ss:$16 sps:$4 sm:$0xff]  }
  0xd9   : > { %2308 = vmatpush2.bf16.msra.mxu0 %v3073_v7  ;;  %v3162_v7 = vld [vmem:[%s3987_s6 + $0x744] ss:$16 sps:$4 sm:$0xff]  }
  0xda   : > { %2349 = vmatpush2.bf16.msra.mxu1 %v3074_v8  ;;  %2359 = vmatprep.subr.bf16.mxu0 %v3081_v9  ;;  %v3157_v8 = vld [vmem:[%s3987_s6 + $0x540] ss:$16 sps:$4 sm:$0xff]  }
  0xdb   : > { %2400 = vmatprep.subr.bf16.mxu1 %v3084_v10  ;;  %v3160_v9 = vld [vmem:[%s3987_s6 + $0x740] ss:$16 sps:$4 sm:$0xff]   ;;  %v3165_v10 = vld [vmem:[%s3987_s6 + $0x524] ss:$16 sps:$4 sm:$0xff]  }
  0xdc   : > { %2310 = vmatmul.mubr.bf16.vlgmr.msra.gmra.mxu0 %v4069_v13 }
  0xdd   : > { %2351 = vmatmul.mubr.bf16.vlgmr.msra.gmra.mxu1 %v4073_v14  ;;  %2360 = vmatpush1.bf16.msra.mxu0 %v3079_v15  ;;  %v3168_v15 = vld [vmem:[%s3987_s6 + $0x724] ss:$16 sps:$4 sm:$0xff]  }
  0xde   : > { %2401 = vmatpush1.bf16.msra.mxu1 %v3082_v16  ;;  %2361 = vmatprep.subr.bf16.mxu0 %v3087_v17  ;;  %v3163_v16 = vld [vmem:[%s3987_s6 + $0x520] ss:$16 sps:$4 sm:$0xff]  }
  0xdf   : > { %2402 = vmatprep.subr.bf16.mxu1 %v3090_v18  ;;  %2391 = vmatprep.mubr.bf16.mxu0 %v4081_v0  ;;  %v3166_v17 = vld [vmem:[%s3987_s6 + $0x720] ss:$16 sps:$4 sm:$0xff]   ;;  %v3171_v18 = vld [vmem:[%s3987_s6 + $0x504] ss:$16 sps:$4 sm:$0xff]  }
  0xe0   : > { %2432 = vmatprep.mubr.bf16.mxu1 %v4085_v1 }
  0xe1   : > { %2362 = vmatpush1.bf16.msra.mxu0 %v3085_v19  ;;  %v3174_v19 = vld [vmem:[%s3987_s6 + $0x704] ss:$16 sps:$4 sm:$0xff]  }
  0xe2   : > { %2403 = vmatpush1.bf16.msra.mxu1 %v3088_v20  ;;  %2363 = vmatprep.subr.bf16.mxu0 %v3093_v21  ;;  %v3169_v20 = vld [vmem:[%s3987_s6 + $0x500] ss:$16 sps:$4 sm:$0xff]  }
  0xe3   : > { %2404 = vmatprep.subr.bf16.mxu1 %v3096_v22  ;;  %v3172_v21 = vld [vmem:[%s3987_s6 + $0x700] ss:$16 sps:$4 sm:$0xff]   ;;  %v3181_v22 = vld [vmem:[%s3987_s6 + $0xec] ss:$16 sps:$4 sm:$0xff]  }
  0xe5   : > { %2364 = vmatpush1.bf16.msra.mxu0 %v3091_v23  ;;  %v3184_v23 = vld [vmem:[%s3987_s6 + $0x2ec] ss:$16 sps:$4 sm:$0xff]  }
  0xe6   : > { %2405 = vmatpush1.bf16.msra.mxu1 %v3094_v24  ;;  %2365 = vmatprep.subr.bf16.mxu0 %v3099_v25  ;;  %v4156_v24 = vcombine.low %v4060_v11, %v4060_v11  ;;  %v4160_v25 = vcombine.low %v4065_v12, %v4065_v12  ;;  %v3185_v11 = vld [vmem:[%s3987_s6 + $0xc8] ss:$16 sps:$4 sm:$0xff]  }
  0xe7   : > { %2406 = vmatprep.subr.bf16.mxu1 %v3102_v26  ;;  %v3179_v26 = vld [vmem:[%s3987_s6 + $0xe8] ss:$16 sps:$4 sm:$0xff]  }
  0xe8   : > { %v3188_v12 = vld [vmem:[%s3987_s6 + $0x2c8] ss:$16 sps:$4 sm:$0xff]  }
  0xe9   : > { %2366 = vmatpush1.bf16.msra.mxu0 %v3097_v27  ;;  %v3182_v27 = vld [vmem:[%s3987_s6 + $0x2e8] ss:$16 sps:$4 sm:$0xff]  }
  0xea   : > { %2407 = vmatpush1.bf16.msra.mxu1 %v3100_v28  ;;  %2367 = vmatprep.subr.bf16.mxu0 %v3105_v29  ;;  %v3187_v28 = vld [vmem:[%s3987_s6 + $0xcc] ss:$16 sps:$4 sm:$0xff]  }
  0xeb   : > { %2408 = vmatprep.subr.bf16.mxu1 %v3108_v30  ;;  %v3190_v29 = vld [vmem:[%s3987_s6 + $0x2cc] ss:$16 sps:$4 sm:$0xff]  }
  0xec   : > { %v3193_v30 = vld [vmem:[%s3987_s6 + $0xac] ss:$16 sps:$4 sm:$0xff]  }
  0xed   : > { %2368 = vmatpush1.bf16.msra.mxu0 %v3103_v31  ;;  %v3196_v31 = vld [vmem:[%s3987_s6 + $0x2ac] ss:$16 sps:$4 sm:$0xff]  }
  0xee   : > { %2409 = vmatpush1.bf16.msra.mxu1 %v3106_v32  ;;  %2369 = vmatprep.subr.bf16.mxu0 %v3111_v33  ;;  %v3191_v32 = vld [vmem:[%s3987_s6 + $0xa8] ss:$16 sps:$4 sm:$0xff]  }
  0xef   : > { %2410 = vmatprep.subr.bf16.mxu1 %v3114_v34  ;;  %v3194_v33 = vld [vmem:[%s3987_s6 + $0x2a8] ss:$16 sps:$4 sm:$0xff]   ;;  %v3199_v34 = vld [vmem:[%s3987_s6 + $0x8c] ss:$16 sps:$4 sm:$0xff]  }
  0xf1   : > { %2370 = vmatpush1.bf16.msra.mxu0 %v3109_v35  ;;  %v3202_v35 = vld [vmem:[%s3987_s6 + $0x28c] ss:$16 sps:$4 sm:$0xff]  }
  0xf2   : > { %2411 = vmatpush1.bf16.msra.mxu1 %v3112_v36  ;;  %2371 = vmatprep.subr.bf16.mxu0 %v3117_v37  ;;  %v3197_v36 = vld [vmem:[%s3987_s6 + $0x88] ss:$16 sps:$4 sm:$0xff]   ;;  %v3208_v37 = vld [vmem:[%s3987_s6 + $0x26c] ss:$16 sps:$4 sm:$0xff]  }
  0xf3   : > { %2412 = vmatprep.subr.bf16.mxu1 %v3120_v38  ;;  %v3203_v38 = vld [vmem:[%s3987_s6 + $0x68] ss:$16 sps:$4 sm:$0xff]  }
  0xf5   : > { %2372 = vmatpush1.bf16.msra.mxu0 %v3115_v39  ;;  %v3206_v39 = vld [vmem:[%s3987_s6 + $0x268] ss:$16 sps:$4 sm:$0xff]  }
  0xf6   : > { %2413 = vmatpush1.bf16.msra.mxu1 %v3118_v40  ;;  %2373 = vmatprep.subr.bf16.mxu0 %v3123_v41  ;;  %v3211_v40 = vld [vmem:[%s3987_s6 + $0x4c] ss:$16 sps:$4 sm:$0xff]  }
  0xf7   : > { %2414 = vmatprep.subr.bf16.mxu1 %v3126_v42  ;;  %v3214_v41 = vld [vmem:[%s3987_s6 + $0x24c] ss:$16 sps:$4 sm:$0xff]   ;;  %v3209_v42 = vld [vmem:[%s3987_s6 + $0x48] ss:$16 sps:$4 sm:$0xff]  }
  0xf9   : > { %2374 = vmatpush1.bf16.msra.mxu0 %v3121_v44  ;;  %v3217_v44 = vld [vmem:[%s3987_s6 + $0x2c] ss:$16 sps:$4 sm:$0xff]  }
  0xfa   : > { %2415 = vmatpush1.bf16.msra.mxu1 %v3124_v45  ;;  %2375 = vmatprep.subr.bf16.mxu0 %v3129_v46  ;;  %v3220_v45 = vld [vmem:[%s3987_s6 + $0x22c] ss:$16 sps:$4 sm:$0xff]   ;;  %v3215_v46 = vld [vmem:[%s3987_s6 + $0x28] ss:$16 sps:$4 sm:$0xff]  }
  0xfb   : > { %2416 = vmatprep.subr.bf16.mxu1 %v3132_v47  ;;  %v3218_v47 = vld [vmem:[%s3987_s6 + $0x228] ss:$16 sps:$4 sm:$0xff]  }
  0xfd   : > { %2376 = vmatpush2.bf16.msra.mxu0 %v3127_v48  ;;  %v3223_v48 = vld [vmem:[%s3987_s6 + $0xc] ss:$16 sps:$4 sm:$0xff]  }
  0xfe   : > { %2417 = vmatpush2.bf16.msra.mxu1 %v3130_v49  ;;  %2377 = vmatprep.subr.bf16.mxu0 %v3135_v50  ;;  %v3226_v49 = vld [vmem:[%s3987_s6 + $0x20c] ss:$16 sps:$4 sm:$0xff]   ;;  %v3221_v50 = vld [vmem:[%s3987_s6 + $0x8] ss:$16 sps:$4 sm:$0xff]  }
  0xff   : > { %2418 = vmatprep.subr.bf16.mxu1 %v3138_v51  ;;  %v3224_v51 = vld [vmem:[%s3987_s6 + $0x208] ss:$16 sps:$4 sm:$0xff]  }
 0x101   : > { %2378 = vmatpush2.bf16.msra.mxu0 %v3133_v52  ;;  %v3229_v52 = vld [vmem:[%s3987_s6 + $0x1ec] ss:$16 sps:$4 sm:$0xff]  }
 0x102   : > { %2419 = vmatpush2.bf16.msra.mxu1 %v3136_v53  ;;  %2379 = vmatprep.subr.bf16.mxu0 %v3141_v54  ;;  %v3232_v53 = vld [vmem:[%s3987_s6 + $0x3ec] ss:$16 sps:$4 sm:$0xff]   ;;  %v3227_v54 = vld [vmem:[%s3987_s6 + $0x1e8] ss:$16 sps:$4 sm:$0xff]  }
 0x103   : > { %2420 = vmatprep.subr.bf16.mxu1 %v3144_v55  ;;  %v3230_v55 = vld [vmem:[%s3987_s6 + $0x3e8] ss:$16 sps:$4 sm:$0xff]  }
 0x105   : > { %2380 = vmatpush2.bf16.msra.mxu0 %v3139_v56  ;;  %v3235_v56 = vld [vmem:[%s3987_s6 + $0x1cc] ss:$16 sps:$4 sm:$0xff]  }
 0x106   : > { %2421 = vmatpush2.bf16.msra.mxu1 %v3142_v57  ;;  %2381 = vmatprep.subr.bf16.mxu0 %v3147_v58  ;;  %v3238_v57 = vld [vmem:[%s3987_s6 + $0x3cc] ss:$16 sps:$4 sm:$0xff]   ;;  %v3233_v58 = vld [vmem:[%s3987_s6 + $0x1c8] ss:$16 sps:$4 sm:$0xff]  }
 0x107   : > { %2422 = vmatprep.subr.bf16.mxu1 %v3150_v59  ;;  %v3236_v59 = vld [vmem:[%s3987_s6 + $0x3c8] ss:$16 sps:$4 sm:$0xff]  }
 0x109   : > { %2382 = vmatpush2.bf16.msra.mxu0 %v3145_v60  ;;  %v3241_v60 = vld [vmem:[%s3987_s6 + $0x1ac] ss:$16 sps:$4 sm:$0xff]  }
 0x10a   : > { %2423 = vmatpush2.bf16.msra.mxu1 %v3148_v61  ;;  %2383 = vmatprep.subr.bf16.mxu0 %v3153_v62  ;;  %v3244_v61 = vld [vmem:[%s3987_s6 + $0x3ac] ss:$16 sps:$4 sm:$0xff]   ;;  %v3239_v62 = vld [vmem:[%s3987_s6 + $0x1a8] ss:$16 sps:$4 sm:$0xff]  }
 0x10b   : > { %2424 = vmatprep.subr.bf16.mxu1 %v3156_v63  ;;  %v3242_v63 = vld [vmem:[%s3987_s6 + $0x3a8] ss:$16 sps:$4 sm:$0xff]  }
 0x10d   : > { %2384 = vmatpush2.bf16.msra.mxu0 %v3151_v4  ;;  %v3247_v4 = vld [vmem:[%s3987_s6 + $0x18c] ss:$16 sps:$4 sm:$0xff]  }
 0x10e   : > { %2425 = vmatpush2.bf16.msra.mxu1 %v3154_v5  ;;  %2385 = vmatprep.subr.bf16.mxu0 %v3159_v6  ;;  %v3250_v5 = vld [vmem:[%s3987_s6 + $0x38c] ss:$16 sps:$4 sm:$0xff]   ;;  %v3245_v6 = vld [vmem:[%s3987_s6 + $0x188] ss:$16 sps:$4 sm:$0xff]  }
 0x10f   : > { %2426 = vmatprep.subr.bf16.mxu1 %v3162_v7  ;;  %v3248_v7 = vld [vmem:[%s3987_s6 + $0x388] ss:$16 sps:$4 sm:$0xff]  }
 0x111   : > { %2386 = vmatpush2.bf16.msra.mxu0 %v3157_v8  ;;  %v3253_v8 = vld [vmem:[%s3987_s6 + $0x16c] ss:$16 sps:$4 sm:$0xff]  }
 0x112   : > { %2427 = vmatpush2.bf16.msra.mxu1 %v3160_v9  ;;  %2387 = vmatprep.subr.bf16.mxu0 %v3165_v10  ;;  %v3256_v9 = vld [vmem:[%s3987_s6 + $0x36c] ss:$16 sps:$4 sm:$0xff]   ;;  %v3251_v10 = vld [vmem:[%s3987_s6 + $0x168] ss:$16 sps:$4 sm:$0xff]  }
 0x113   : > { %2428 = vmatprep.subr.bf16.mxu1 %v3168_v15  ;;  %v3254_v15 = vld [vmem:[%s3987_s6 + $0x368] ss:$16 sps:$4 sm:$0xff]  }
 0x115   : > { %2388 = vmatpush2.bf16.msra.mxu0 %v3163_v16  ;;  %v3259_v16 = vld [vmem:[%s3987_s6 + $0x14c] ss:$16 sps:$4 sm:$0xff]  }
 0x116   : > { %2429 = vmatpush2.bf16.msra.mxu1 %v3166_v17  ;;  %2389 = vmatprep.subr.bf16.mxu0 %v3171_v18  ;;  %v3262_v17 = vld [vmem:[%s3987_s6 + $0x34c] ss:$16 sps:$4 sm:$0xff]   ;;  %v3257_v18 = vld [vmem:[%s3987_s6 + $0x148] ss:$16 sps:$4 sm:$0xff]  }
 0x117   : > { %2430 = vmatprep.subr.bf16.mxu1 %v3174_v19  ;;  %v3260_v19 = vld [vmem:[%s3987_s6 + $0x348] ss:$16 sps:$4 sm:$0xff]  }
 0x119   : > { %2390 = vmatpush2.bf16.msra.mxu0 %v3169_v20  ;;  %v3265_v20 = vld [vmem:[%s3987_s6 + $0x12c] ss:$16 sps:$4 sm:$0xff]  }
 0x11a   : > { %2431 = vmatpush2.bf16.msra.mxu1 %v3172_v21  ;;  %2441 = vmatprep.subr.bf16.mxu0 %v3181_v22  ;;  %v3268_v21 = vld [vmem:[%s3987_s6 + $0x32c] ss:$16 sps:$4 sm:$0xff]   ;;  %v3263_v22 = vld [vmem:[%s3987_s6 + $0x128] ss:$16 sps:$4 sm:$0xff]  }
 0x11b   : > { %2482 = vmatprep.subr.bf16.mxu1 %v3184_v23  ;;  %v3266_v23 = vld [vmem:[%s3987_s6 + $0x328] ss:$16 sps:$4 sm:$0xff]  }
 0x11c   : > { %2392 = vmatmul.mubr.bf16.vlgmr.msra.gmra.mxu0 %v4156_v24 }
 0x11d   : > { %2433 = vmatmul.mubr.bf16.vlgmr.msra.gmra.mxu1 %v4160_v25  ;;  %2442 = vmatpush1.bf16.msra.mxu0 %v3179_v26  ;;  %v3271_v26 = vld [vmem:[%s3987_s6 + $0x10c] ss:$16 sps:$4 sm:$0xff]  }
 0x11e   : > { %2483 = vmatpush1.bf16.msra.mxu1 %v3182_v27  ;;  %2443 = vmatprep.subr.bf16.mxu0 %v3187_v28  ;;  %v3274_v27 = vld [vmem:[%s3987_s6 + $0x30c] ss:$16 sps:$4 sm:$0xff]   ;;  %v3269_v28 = vld [vmem:[%s3987_s6 + $0x108] ss:$16 sps:$4 sm:$0xff]  }
 0x11f   : > { %2484 = vmatprep.subr.bf16.mxu1 %v3190_v29  ;;  %2473 = vmatprep.mubr.bf16.mxu0 %v3981_v2  ;;  %v3200_v2 = vld [vmem:[%s3987_s6 + $0x288] ss:$16 sps:$4 sm:$0xff]  }
 0x120   : > { %2514 = vmatprep.mubr.bf16.mxu1 %v3985_v3  ;;  %v3205_v3 = vld [vmem:[%s3987_s6 + $0x6c] ss:$16 sps:$4 sm:$0xff]   ;;  %v3272_v29 = vld [vmem:[%s3987_s6 + $0x308] ss:$16 sps:$4 sm:$0xff]  }
 0x121   : > { %2444 = vmatpush1.bf16.msra.mxu0 %v3185_v11  ;;  %v3277_v11 = vld [vmem:[%s3987_s6 + $0x4ec] ss:$16 sps:$4 sm:$0xff]  }
 0x122   : > { %2485 = vmatpush1.bf16.msra.mxu1 %v3188_v12  ;;  %2445 = vmatprep.subr.bf16.mxu0 %v3193_v30  ;;  %v3280_v12 = vld [vmem:[%s3987_s6 + $0x6ec] ss:$16 sps:$4 sm:$0xff]   ;;  %v3275_v30 = vld [vmem:[%s3987_s6 + $0x4e8] ss:$16 sps:$4 sm:$0xff]  }
 0x123   : > { %2486 = vmatprep.subr.bf16.mxu1 %v3196_v31  ;;  %v3278_v31 = vld [vmem:[%s3987_s6 + $0x6e8] ss:$16 sps:$4 sm:$0xff]  }
 0x125   : > { %2446 = vmatpush1.bf16.msra.mxu0 %v3191_v32  ;;  %v3283_v32 = vld [vmem:[%s3987_s6 + $0x4cc] ss:$16 sps:$4 sm:$0xff]  }
 0x126   : > { %2487 = vmatpush1.bf16.msra.mxu1 %v3194_v33  ;;  %2447 = vmatprep.subr.bf16.mxu0 %v3199_v34  ;;  %v3286_v33 = vld [vmem:[%s3987_s6 + $0x6cc] ss:$16 sps:$4 sm:$0xff]   ;;  %v3281_v34 = vld [vmem:[%s3987_s6 + $0x4c8] ss:$16 sps:$4 sm:$0xff]  }
 0x127   : > { %2488 = vmatprep.subr.bf16.mxu1 %v3202_v35  ;;  %v3284_v35 = vld [vmem:[%s3987_s6 + $0x6c8] ss:$16 sps:$4 sm:$0xff]  }
 0x129   : > { %2448 = vmatpush1.bf16.msra.mxu0 %v3197_v36  ;;  %v3289_v36 = vld [vmem:[%s3987_s6 + $0x4ac] ss:$16 sps:$4 sm:$0xff]  }
 0x12a   : > { %2489 = vmatpush1.bf16.msra.mxu1 %v3200_v2  ;;  %2449 = vmatprep.subr.bf16.mxu0 %v3205_v3  ;;  %v3292_v2 = vld [vmem:[%s3987_s6 + $0x6ac] ss:$16 sps:$4 sm:$0xff]  }
 0x12b   : > { %2490 = vmatprep.subr.bf16.mxu1 %v3208_v37  ;;  %v3295_v3 = vld [vmem:[%s3987_s6 + $0x48c] ss:$16 sps:$4 sm:$0xff]  }
 0x12c   : > { %v3298_v37 = vld [vmem:[%s3987_s6 + $0x68c] ss:$16 sps:$4 sm:$0xff]  }
 0x12d   : > { %2450 = vmatpush1.bf16.msra.mxu0 %v3203_v38  ;;  %v3293_v38 = vld [vmem:[%s3987_s6 + $0x488] ss:$16 sps:$4 sm:$0xff]  }
 0x12e   : > { %2491 = vmatpush1.bf16.msra.mxu1 %v3206_v39  ;;  %2451 = vmatprep.subr.bf16.mxu0 %v3211_v40  ;;  %v3304_v39 = vld [vmem:[%s3987_s6 + $0x66c] ss:$16 sps:$4 sm:$0xff]   ;;  %v3299_v40 = vld [vmem:[%s3987_s6 + $0x468] ss:$16 sps:$4 sm:$0xff]  }
 0x12f   : > { %2492 = vmatprep.subr.bf16.mxu1 %v3214_v41  ;;  %v3302_v41 = vld [vmem:[%s3987_s6 + $0x668] ss:$16 sps:$4 sm:$0xff]  }
 0x131   : > { %2452 = vmatpush1.bf16.msra.mxu0 %v3209_v42  ;;  %v3307_v42 = vld [vmem:[%s3987_s6 + $0x44c] ss:$16 sps:$4 sm:$0xff]  }
 0x132   : > { %2493 = vmatpush1.bf16.msra.mxu1 %v3212_v43  ;;  %2453 = vmatprep.subr.bf16.mxu0 %v3217_v44  ;;  %v3310_v43 = vld [vmem:[%s3987_s6 + $0x64c] ss:$16 sps:$4 sm:$0xff]   ;;  %v3305_v44 = vld [vmem:[%s3987_s6 + $0x448] ss:$16 sps:$4 sm:$0xff]  }
 0x133   : > { %2494 = vmatprep.subr.bf16.mxu1 %v3220_v45  ;;  %v3308_v45 = vld [vmem:[%s3987_s6 + $0x648] ss:$16 sps:$4 sm:$0xff]  }
 0x135   : > { %2454 = vmatpush1.bf16.msra.mxu0 %v3215_v46  ;;  %v3313_v46 = vld [vmem:[%s3987_s6 + $0x42c] ss:$16 sps:$4 sm:$0xff]  }
 0x136   : > { %2495 = vmatpush1.bf16.msra.mxu1 %v3218_v47  ;;  %2455 = vmatprep.subr.bf16.mxu0 %v3223_v48  ;;  %v3316_v47 = vld [vmem:[%s3987_s6 + $0x62c] ss:$16 sps:$4 sm:$0xff]   ;;  %v3311_v48 = vld [vmem:[%s3987_s6 + $0x428] ss:$16 sps:$4 sm:$0xff]  }
 0x137   : > { %2496 = vmatprep.subr.bf16.mxu1 %v3226_v49  ;;  %v3314_v49 = vld [vmem:[%s3987_s6 + $0x628] ss:$16 sps:$4 sm:$0xff]  }
 0x139   : > { %2456 = vmatpush1.bf16.msra.mxu0 %v3221_v50  ;;  %v3319_v50 = vld [vmem:[%s3987_s6 + $0x40c] ss:$16 sps:$4 sm:$0xff]  }
 0x13a   : > { %2497 = vmatpush1.bf16.msra.mxu1 %v3224_v51  ;;  %2457 = vmatprep.subr.bf16.mxu0 %v3229_v52  ;;  %v3322_v51 = vld [vmem:[%s3987_s6 + $0x60c] ss:$16 sps:$4 sm:$0xff]   ;;  %v3317_v52 = vld [vmem:[%s3987_s6 + $0x408] ss:$16 sps:$4 sm:$0xff]  }
 0x13b   : > { %2498 = vmatprep.subr.bf16.mxu1 %v3232_v53  ;;  %v3320_v53 = vld [vmem:[%s3987_s6 + $0x608] ss:$16 sps:$4 sm:$0xff]  }
 0x13d   : > { %2458 = vmatpush2.bf16.msra.mxu0 %v3227_v54  ;;  %v3325_v54 = vld [vmem:[%s3987_s6 + $0x5ec] ss:$16 sps:$4 sm:$0xff]  }
 0x13e   : > { %2499 = vmatpush2.bf16.msra.mxu1 %v3230_v55  ;;  %2459 = vmatprep.subr.bf16.mxu0 %v3235_v56  ;;  %v3328_v55 = vld [vmem:[%s3987_s6 + $0x7ec] ss:$16 sps:$4 sm:$0xff]   ;;  %v3323_v56 = vld [vmem:[%s3987_s6 + $0x5e8] ss:$16 sps:$4 sm:$0xff]  }
 0x13f   : > { %2500 = vmatprep.subr.bf16.mxu1 %v3238_v57  ;;  %v3326_v57 = vld [vmem:[%s3987_s6 + $0x7e8] ss:$16 sps:$4 sm:$0xff]  }
 0x141   : > { %2460 = vmatpush2.bf16.msra.mxu0 %v3233_v58  ;;  %v3331_v58 = vld [vmem:[%s3987_s6 + $0x5cc] ss:$16 sps:$4 sm:$0xff]  }
 0x142   : > { %2501 = vmatpush2.bf16.msra.mxu1 %v3236_v59  ;;  %2461 = vmatprep.subr.bf16.mxu0 %v3241_v60  ;;  %v3334_v59 = vld [vmem:[%s3987_s6 + $0x7cc] ss:$16 sps:$4 sm:$0xff]   ;;  %v3329_v60 = vld [vmem:[%s3987_s6 + $0x5c8] ss:$16 sps:$4 sm:$0xff]  }
 0x143   : > { %2502 = vmatprep.subr.bf16.mxu1 %v3244_v61  ;;  %v3332_v61 = vld [vmem:[%s3987_s6 + $0x7c8] ss:$16 sps:$4 sm:$0xff]  }
 0x145   : > { %2462 = vmatpush2.bf16.msra.mxu0 %v3239_v62  ;;  %v3337_v62 = vld [vmem:[%s3987_s6 + $0x5ac] ss:$16 sps:$4 sm:$0xff]  }
 0x146   : > { %2503 = vmatpush2.bf16.msra.mxu1 %v3242_v63  ;;  %2463 = vmatprep.subr.bf16.mxu0 %v3247_v4  ;;  %v3340_v63 = vld [vmem:[%s3987_s6 + $0x7ac] ss:$16 sps:$4 sm:$0xff]   ;;  %v3335_v4 = vld [vmem:[%s3987_s6 + $0x5a8] ss:$16 sps:$4 sm:$0xff]  }
 0x147   : > { %2504 = vmatprep.subr.bf16.mxu1 %v3250_v5  ;;  %v3338_v5 = vld [vmem:[%s3987_s6 + $0x7a8] ss:$16 sps:$4 sm:$0xff]  }
 0x149   : > { %2464 = vmatpush2.bf16.msra.mxu0 %v3245_v6  ;;  %v3343_v6 = vld [vmem:[%s3987_s6 + $0x58c] ss:$16 sps:$4 sm:$0xff]  }
 0x14a   : > { %2505 = vmatpush2.bf16.msra.mxu1 %v3248_v7  ;;  %2465 = vmatprep.subr.bf16.mxu0 %v3253_v8  ;;  %v3346_v7 = vld [vmem:[%s3987_s6 + $0x78c] ss:$16 sps:$4 sm:$0xff]   ;;  %v3341_v8 = vld [vmem:[%s3987_s6 + $0x588] ss:$16 sps:$4 sm:$0xff]  }
 0x14b   : > { %2506 = vmatprep.subr.bf16.mxu1 %v3256_v9  ;;  %v3344_v9 = vld [vmem:[%s3987_s6 + $0x788] ss:$16 sps:$4 sm:$0xff]  }
 0x14d   : > { %2466 = vmatpush2.bf16.msra.mxu0 %v3251_v10  ;;  %v3349_v10 = vld [vmem:[%s3987_s6 + $0x56c] ss:$16 sps:$4 sm:$0xff]  }
 0x14e   : > { %2507 = vmatpush2.bf16.msra.mxu1 %v3254_v15  ;;  %2467 = vmatprep.subr.bf16.mxu0 %v3259_v16  ;;  %v3352_v15 = vld [vmem:[%s3987_s6 + $0x76c] ss:$16 sps:$4 sm:$0xff]   ;;  %v3347_v16 = vld [vmem:[%s3987_s6 + $0x568] ss:$16 sps:$4 sm:$0xff]  }
 0x14f   : > { %2508 = vmatprep.subr.bf16.mxu1 %v3262_v17  ;;  %v3350_v17 = vld [vmem:[%s3987_s6 + $0x768] ss:$16 sps:$4 sm:$0xff]  }
 0x151   : > { %2468 = vmatpush2.bf16.msra.mxu0 %v3257_v18  ;;  %v3355_v18 = vld [vmem:[%s3987_s6 + $0x54c] ss:$16 sps:$4 sm:$0xff]  }
 0x152   : > { %2509 = vmatpush2.bf16.msra.mxu1 %v3260_v19  ;;  %2469 = vmatprep.subr.bf16.mxu0 %v3265_v20  ;;  %v3358_v19 = vld [vmem:[%s3987_s6 + $0x74c] ss:$16 sps:$4 sm:$0xff]   ;;  %v3353_v20 = vld [vmem:[%s3987_s6 + $0x548] ss:$16 sps:$4 sm:$0xff]  }
 0x153   : > { %2510 = vmatprep.subr.bf16.mxu1 %v3268_v21  ;;  %v3356_v21 = vld [vmem:[%s3987_s6 + $0x748] ss:$16 sps:$4 sm:$0xff]  }
 0x155   : > { %2470 = vmatpush2.bf16.msra.mxu0 %v3263_v22  ;;  %v3361_v22 = vld [vmem:[%s3987_s6 + $0x52c] ss:$16 sps:$4 sm:$0xff]  }
 0x156   : > { %2511 = vmatpush2.bf16.msra.mxu1 %v3266_v23  ;;  %2471 = vmatprep.subr.bf16.mxu0 %v3271_v26  ;;  %v3364_v23 = vld [vmem:[%s3987_s6 + $0x72c] ss:$16 sps:$4 sm:$0xff]   ;;  %v3359_v26 = vld [vmem:[%s3987_s6 + $0x528] ss:$16 sps:$4 sm:$0xff]  }
 0x157   : > { %2512 = vmatprep.subr.bf16.mxu1 %v3274_v27  ;;  %v3362_v27 = vld [vmem:[%s3987_s6 + $0x728] ss:$16 sps:$4 sm:$0xff]  }
 0x159   : > { %2472 = vmatpush2.bf16.msra.mxu0 %v3269_v28  ;;  %v3367_v28 = vld [vmem:[%s3987_s6 + $0x50c] ss:$16 sps:$4 sm:$0xff]  }
 0x15a   : > { %2513 = vmatpush2.bf16.msra.mxu1 %v3272_v29  ;;  %2523 = vmatprep.subr.bf16.mxu0 %v3277_v11  ;;  %v3370_v29 = vld [vmem:[%s3987_s6 + $0x70c] ss:$16 sps:$4 sm:$0xff]   ;;  %v3365_v11 = vld [vmem:[%s3987_s6 + $0x508] ss:$16 sps:$4 sm:$0xff]  }
 0x15b   : > { %2564 = vmatprep.subr.bf16.mxu1 %v3280_v12  ;;  %v3368_v12 = vld [vmem:[%s3987_s6 + $0x708] ss:$16 sps:$4 sm:$0xff]  }
 0x15c   : > { %2474 = vmatmul.mubr.bf16.vlgmr.msra.gmra.mxu0 %v4069_v13  ;;  %v3287_v13 = vld [vmem:[%s3987_s6 + $0x4a8] ss:$16 sps:$4 sm:$0xff]  }
 0x15d   : > { %2515 = vmatmul.mubr.bf16.vlgmr.msra.gmra.mxu1 %v4073_v14  ;;  %2524 = vmatpush1.bf16.msra.mxu0 %v3275_v30  ;;  %v3290_v14 = vld [vmem:[%s3987_s6 + $0x6a8] ss:$16 sps:$4 sm:$0xff]  }
 0x15e   : > { %2565 = vmatpush1.bf16.msra.mxu1 %v3278_v31  ;;  %2525 = vmatprep.subr.bf16.mxu0 %v3283_v32 }
 0x15f   : > { %2566 = vmatprep.subr.bf16.mxu1 %v3286_v33  ;;  %2555 = vmatprep.mubr.bf16.mxu0 %v4081_v0  ;;  %v3296_v0 = vld [vmem:[%s3987_s6 + $0x688] ss:$16 sps:$4 sm:$0xff]  }
 0x160   : > { %2596 = vmatprep.mubr.bf16.mxu1 %v4085_v1  ;;  %v3301_v1 = vld [vmem:[%s3987_s6 + $0x46c] ss:$16 sps:$4 sm:$0xff]  }
 0x161   : > { %2526 = vmatpush1.bf16.msra.mxu0 %v3281_v34 }
 0x162   : > { %2567 = vmatpush1.bf16.msra.mxu1 %v3284_v35  ;;  %2527 = vmatprep.subr.bf16.mxu0 %v3289_v36 }
 0x163   : > { %2568 = vmatprep.subr.bf16.mxu1 %v3292_v2 }
 0x165   : > { %2528 = vmatpush1.bf16.msra.mxu0 %v3287_v13  ;;  %v967_v13 = vpop.permute.xlu0 %966 }
 0x166   : > { %2569 = vmatpush1.bf16.msra.mxu1 %v3290_v14  ;;  %2529 = vmatprep.subr.bf16.mxu0 %v3295_v3 }
 0x167   : > { %2570 = vmatprep.subr.bf16.mxu1 %v3298_v37 }
 0x169   : > { %2530 = vmatpush1.bf16.msra.mxu0 %v3293_v38 }
 0x16a   : > { %2571 = vmatpush1.bf16.msra.mxu1 %v3296_v0  ;;  %2531 = vmatprep.subr.bf16.mxu0 %v3301_v1 }
 0x16b   : > { %2572 = vmatprep.subr.bf16.mxu1 %v3304_v39 }
 0x16d   : > { %2532 = vmatpush1.bf16.msra.mxu0 %v3299_v40 }
 0x16e   : > { %2573 = vmatpush1.bf16.msra.mxu1 %v3302_v41  ;;  %2533 = vmatprep.subr.bf16.mxu0 %v3307_v42 }
 0x16f   : > { %2574 = vmatprep.subr.bf16.mxu1 %v3310_v43 }
 0x171   : > { %2534 = vmatpush1.bf16.msra.mxu0 %v3305_v44 }
 0x172   : > { %2575 = vmatpush1.bf16.msra.mxu1 %v3308_v45  ;;  %2535 = vmatprep.subr.bf16.mxu0 %v3313_v46 }
 0x173   : > { %2576 = vmatprep.subr.bf16.mxu1 %v3316_v47 }
 0x175   : > { %2536 = vmatpush1.bf16.msra.mxu0 %v3311_v48 }
 0x176   : > { %2577 = vmatpush1.bf16.msra.mxu1 %v3314_v49  ;;  %2537 = vmatprep.subr.bf16.mxu0 %v3319_v50 }
 0x177   : > { %2578 = vmatprep.subr.bf16.mxu1 %v3322_v51 }
 0x179   : > { %2538 = vmatpush1.bf16.msra.mxu0 %v3317_v52 }
 0x17a   : > { %2579 = vmatpush1.bf16.msra.mxu1 %v3320_v53  ;;  %2539 = vmatprep.subr.bf16.mxu0 %v3325_v54 }
 0x17b   : > { %2580 = vmatprep.subr.bf16.mxu1 %v3328_v55 }
 0x17d   : > { %2540 = vmatpush2.bf16.msra.mxu0 %v3323_v56 }
 0x17e   : > { %2581 = vmatpush2.bf16.msra.mxu1 %v3326_v57  ;;  %2541 = vmatprep.subr.bf16.mxu0 %v3331_v58 }
 0x17f   : > { %2582 = vmatprep.subr.bf16.mxu1 %v3334_v59 }
 0x181   : > { %2542 = vmatpush2.bf16.msra.mxu0 %v3329_v60 }
 0x182   : > { %2583 = vmatpush2.bf16.msra.mxu1 %v3332_v61  ;;  %2543 = vmatprep.subr.bf16.mxu0 %v3337_v62 }
 0x183   : > { %2584 = vmatprep.subr.bf16.mxu1 %v3340_v63 }
 0x185   : > { %2544 = vmatpush2.bf16.msra.mxu0 %v3335_v4 }
 0x186   : > { %2585 = vmatpush2.bf16.msra.mxu1 %v3338_v5  ;;  %2545 = vmatprep.subr.bf16.mxu0 %v3343_v6 }
 0x187   : > { %2586 = vmatprep.subr.bf16.mxu1 %v3346_v7 }
 0x189   : > { %2546 = vmatpush2.bf16.msra.mxu0 %v3341_v8 }
 0x18a   : > { %2587 = vmatpush2.bf16.msra.mxu1 %v3344_v9  ;;  %2547 = vmatprep.subr.bf16.mxu0 %v3349_v10 }
 0x18b   : > { %2588 = vmatprep.subr.bf16.mxu1 %v3352_v15 }
 0x18d   : > { %2548 = vmatpush2.bf16.msra.mxu0 %v3347_v16 }
 0x18e   : > { %2589 = vmatpush2.bf16.msra.mxu1 %v3350_v17  ;;  %2549 = vmatprep.subr.bf16.mxu0 %v3355_v18 }
 0x18f   : > { %2590 = vmatprep.subr.bf16.mxu1 %v3358_v19 }
 0x191   : > { %2550 = vmatpush2.bf16.msra.mxu0 %v3353_v20 }
 0x192   : > { %2591 = vmatpush2.bf16.msra.mxu1 %v3356_v21  ;;  %2551 = vmatprep.subr.bf16.mxu0 %v3361_v22 }
 0x193   : > { %2592 = vmatprep.subr.bf16.mxu1 %v3364_v23 }
 0x195   : > { %2552 = vmatpush2.bf16.msra.mxu0 %v3359_v26 }
 0x196   : > { %2593 = vmatpush2.bf16.msra.mxu1 %v3362_v27  ;;  %2553 = vmatprep.subr.bf16.mxu0 %v3367_v28 }
 0x197   : > { %2594 = vmatprep.subr.bf16.mxu1 %v3370_v29 }
 0x199   : > { %2554 = vmatpush2.bf16.msra.mxu0 %v3365_v11 }
 0x19a   : > { %2595 = vmatpush2.bf16.msra.mxu1 %v3368_v12 }
 0x19c   : > { %v2311_v30 = vpop.f32.mrf.mxu0  ;;  %2556 = vmatmul.mubr.bf16.vlgmr.msra.gmra.mxu0 %v4156_v24 }
 0x19d   : > { %v2352_v31 = vpop.f32.mrf.mxu1  ;;  %2597 = vmatmul.mubr.bf16.vlgmr.msra.gmra.mxu1 %v4160_v25  ;;  %v2312_v14 = vadd.f32 %v2311_v30, %v967_v13 }
 0x19e   : > { %v2313_v32 = vpop.f32.mrf.mxu0 }
 0x19f   : > { %v2354_v33 = vpop.f32.mrf.mxu1  ;;  %v2314_v3 = vadd.f32 %v2313_v32, %v967_v13  ;;  %v2353_v37 = vadd.f32 %v2352_v31, %v2312_v14 }
 0x1a0   : > { %v2315_v34 = vpop.f32.mrf.mxu0 }
 0x1a1   : > { %v2356_v35 = vpop.f32.mrf.mxu1  ;;  %v2355_v1 = vadd.f32 %v2354_v33, %v2314_v3 }
 0x1a2   : > { %v2316_v36 = vpop.f32.mrf.mxu0 }
 0x1a3   : > { %v2357_v2 = vpop.f32.mrf.mxu1 }
 0x1dc   : > { %v2393_v38 = vpop.f32.mrf.mxu0 }
 0x1dd   : > { %v2434_v0 = vpop.f32.mrf.mxu1  ;;  %v2394_v24 = vadd.f32 %v2393_v38, %v2353_v37 }
 0x1de   : > { %v2395_v25 = vpop.f32.mrf.mxu0 }
 0x1df   : > { %v2436_v39 = vpop.f32.mrf.mxu1  ;;  %v2435_v40 = vadd.f32 %v2434_v0, %v2394_v24  ;;  %v2396_v41 = vadd.f32 %v2395_v25, %v2355_v1 }
 0x1e0   : > { %v2397_v42 = vpop.f32.mrf.mxu0 }
 0x1e1   : > { %v2438_v43 = vpop.f32.mrf.mxu1  ;;  %v2605_v44 = vmax.f32 %v2435_v40, 0.0  ;;  %v2437_v45 = vadd.f32 %v2436_v39, %v2396_v41 }
 0x1e2   : > { %v2398_v46 = vpop.f32.mrf.mxu0 }
 0x1e3   : > { %v2439_v47 = vpop.f32.mrf.mxu1  ;;  %2609 = vst [vmem:[%s4303_s14] sm:$0xff] %v2605_v44  ;;  %v2606_v48 = vmax.f32 %v2437_v45, 0.0 }
 0x1e5   : > { %2610 = vst [vmem:[%s4303_s14 + $0x8] sm:$0xff] %v2606_v48 }
 0x21c   : > { %v2475_v49 = vpop.f32.mrf.mxu0 }
 0x21d   : > { %v2516_v50 = vpop.f32.mrf.mxu1  ;;  %v2476_v57 = vadd.f32 %v2475_v49, %v967_v13 }
 0x21e   : > { %v2477_v51 = vpop.f32.mrf.mxu0 }
 0x21f   : > { %v2518_v52 = vpop.f32.mrf.mxu1  ;;  %v2478_v58 = vadd.f32 %v2477_v51, %v967_v13  ;;  %v2517_v59 = vadd.f32 %v2516_v50, %v2476_v57 }
 0x220   : > { %v2479_v53 = vpop.f32.mrf.mxu0 }
 0x221   : > { %v2520_v54 = vpop.f32.mrf.mxu1  ;;  %v2519_v62 = vadd.f32 %v2518_v52, %v2478_v58 }
 0x222   : > { %v2480_v55 = vpop.f32.mrf.mxu0 }
 0x223   : > { %v2521_v56 = vpop.f32.mrf.mxu1 }
 0x25c   : > { %v2557_v60 = vpop.f32.mrf.mxu0 }
 0x25d   : > { %v2598_v61 = vpop.f32.mrf.mxu1  ;;  %v2558_v63 = vadd.f32 %v2557_v60, %v2517_v59 }
 0x25e   : > { %v2559_v4 = vpop.f32.mrf.mxu0 }
 0x25f   : > { %v2600_v5 = vpop.f32.mrf.mxu1  ;;  %v2599_v6 = vadd.f32 %v2598_v61, %v2558_v63  ;;  %v2560_v7 = vadd.f32 %v2559_v4, %v2519_v62 }
 0x260   : > { %v2561_v8 = vpop.f32.mrf.mxu0 }
 0x261   : > { %v2602_v9 = vpop.f32.mrf.mxu1  ;;  %v2607_v10 = vmax.f32 %v2599_v6, 0.0  ;;  %v2601_v15 = vadd.f32 %v2600_v5, %v2560_v7 }
 0x262   : > { %v2562_v16 = vpop.f32.mrf.mxu0 }
 0x263   : > { %v2603_v17 = vpop.f32.mrf.mxu1  ;;  %2611 = vst [vmem:[%s4303_s14 + $0x10] sm:$0xff] %v2607_v10  ;;  %v2608_v18 = vmax.f32 %v2601_v15, 0.0 }
 0x265   : > { %2612 = vst [vmem:[%s4303_s14 + $0x18] sm:$0xff] %v2608_v18 }
 0x266 PF: > { %p10_p9 = scmp.ge.s32.totalorder %s3433_s16, 4   ;;  %s4323_s12 = smov %s3389_s13 }
 0x267   : > { %s4324_s13 = smov %s3442_s19  ;;  %s4325_s14 = smov %s3433_s16 }
 0x268   :  { %12 = sbr.rel (!%p10_p9) target bundleno = 2 (0x2), region = 90 }

</bundles_post_ra>
